<compile_context>
chip_gen: v7x
topology: tpu7x:2x2x1
jax: 0.10.0
libtpu: 0.0.40
codegen_flags: <defaults>
</compile_context>

<pallas_src>
import math
import functools

import jax
import jax.numpy as jnp
from jax.experimental import pallas as pl
from jax.experimental.pallas import tpu as pltpu


# ----------------------------------------------------------------------------
# Small helpers
# ----------------------------------------------------------------------------
def _round_up(x, m):
    return ((x + m - 1) // m) * m


def _largest_divisor(n, cap, step=1):
    """Largest divisor of n that is a multiple of `step` and <= cap (fallback n)."""
    t = min(cap, n)
    t -= t % step
    while t >= step:
        if n % t == 0:
            return t
        t -= step
    return n


# ----------------------------------------------------------------------------
# Kernel 1: fused Q/K/V pointwise (1x1) conv == row-tiled matmul + bias
# ----------------------------------------------------------------------------
def _qkv_proj_kernel(x_ref, w_ref, b_ref, o_ref):
    acc = jnp.dot(x_ref[...], w_ref[...], preferred_element_type=jnp.float32)
    o_ref[...] = (acc + b_ref[...]).astype(o_ref.dtype)


def fused_qkv_projection(x_flat, w_qkv, b_qkv, *, tm_cap=512):
    # x_flat: (M, Cin) bf16, w_qkv: (Cin, P) bf16, b_qkv: (1, P) f32,  P % 128 == 0
    M, cin = x_flat.shape
    P = w_qkv.shape[1]
    tm = _largest_divisor(M, tm_cap, step=8)
    return pl.pallas_call(
        _qkv_proj_kernel,
        out_shape=jax.ShapeDtypeStruct((M, P), jnp.bfloat16),
        grid=(M // tm,),
        in_specs=[
            pl.BlockSpec((tm, cin), lambda i: (i, 0)),
            pl.BlockSpec((cin, P), lambda i: (0, 0)),
            pl.BlockSpec((1, P), lambda i: (0, 0)),
        ],
        out_specs=pl.BlockSpec((tm, P), lambda i: (i, 0)),
        compiler_params=pltpu.CompilerParams(dimension_semantics=("parallel",)),
    )(x_flat, w_qkv, b_qkv)


# ----------------------------------------------------------------------------
# Kernel 2: scaled dot-product attention — flash-style online softmax
#           grid = (batch blocks, q tiles, kv tiles)
# ----------------------------------------------------------------------------
def _flash_attn_kernel(q_ref, k_ref, v_ref, o_ref, m_sc, l_sc, acc_sc, *, scale):
    kv = pl.program_id(2)

    @pl.when(kv == 0)
    def _():
        m_sc[...] = jnp.full_like(m_sc, -jnp.inf)
        l_sc[...] = jnp.zeros_like(l_sc)
        acc_sc[...] = jnp.zeros_like(acc_sc)

    s = jnp.einsum("bqd,bkd->bqk", q_ref[...], k_ref[...],
                   preferred_element_type=jnp.float32) * scale
    m_prev = m_sc[...]
    m_new = jnp.maximum(m_prev, s.max(axis=-1, keepdims=True))
    alpha = jnp.exp(m_prev - m_new)
    p = jnp.exp(s - m_new)
    l_sc[...] = alpha * l_sc[...] + p.sum(axis=-1, keepdims=True)
    acc_sc[...] = alpha * acc_sc[...] + jnp.einsum(
        "bqk,bkd->bqd", p.astype(v_ref.dtype), v_ref[...],
        preferred_element_type=jnp.float32)
    m_sc[...] = m_new

    @pl.when(kv == pl.num_programs(2) - 1)
    def _():
        o_ref[...] = (acc_sc[...] *
                      pl.reciprocal(l_sc[...], approx=True)).astype(o_ref.dtype)


def attention(q, k, v, *, tile_cap=256, batch_cap=8):
    # q, k, v: (B, N, D) bf16  ->  (B, N, D) bf16
    b, n, d = q.shape
    scale = 1.0 / math.sqrt(d)
    tq = _largest_divisor(n, tile_cap, step=8)
    tk = _largest_divisor(n, tile_cap, step=8)
    bb = _largest_divisor(b, batch_cap, step=1)
    # Keep >= 2 parallel grid steps when possible (v7x has 2 TensorCores).
    if (b // bb) * (n // tq) == 1 and bb % 2 == 0:
        bb //= 2
    return pl.pallas_call(
        functools.partial(_flash_attn_kernel, scale=scale),
        out_shape=jax.ShapeDtypeStruct((b, n, d), q.dtype),
        grid=(b // bb, n // tq, n // tk),
        in_specs=[
            pl.BlockSpec((bb, tq, d), lambda bi, qi, ki: (bi, qi, 0)),
            pl.BlockSpec((bb, tk, d), lambda bi, qi, ki: (bi, ki, 0)),
            pl.BlockSpec((bb, tk, d), lambda bi, qi, ki: (bi, ki, 0)),
        ],
        out_specs=pl.BlockSpec((bb, tq, d), lambda bi, qi, ki: (bi, qi, 0)),
        scratch_shapes=[
            pltpu.VMEM((bb, tq, 1), jnp.float32),
            pltpu.VMEM((bb, tq, 1), jnp.float32),
            pltpu.VMEM((bb, tq, d), jnp.float32),
        ],
        compiler_params=pltpu.CompilerParams(
            dimension_semantics=("parallel", "parallel", "arbitrary")),
    )(q, k, v)


# ----------------------------------------------------------------------------
# Kernel 3: 3x3 conv (padding=1) + LeakyReLU(0.2) via in-kernel im2col
#           (single K = 9*C matmul), several images per grid step.
# ----------------------------------------------------------------------------
def _conv3x3_lrelu_kernel(x_ref, w_ref, b_ref, o_ref, *, H, W, C):
    nb = o_ref.shape[0]
    taps = []
    for ky in range(3):
        for kx in range(3):
            taps.append(
                x_ref[:, ky:ky + H, kx:kx + W, :].reshape(nb * H * W, C))
    patches = jnp.concatenate(taps, axis=-1)                  # (nb*H*W, 9*C) bf16
    acc = jnp.dot(patches, w_ref[...], preferred_element_type=jnp.float32)
    acc = acc + b_ref[...]
    acc = jnp.where(acc >= 0, acc, 0.2 * acc)                 # LeakyReLU(0.2)
    o_ref[...] = acc.reshape(o_ref.shape).astype(o_ref.dtype)


def conv3x3_leaky_relu(x_nhwc, w_flat, bias, *, vmem_budget=2 << 20, img_cap=8):
    # x_nhwc: (BT, H, W, C) bf16, w_flat: (9*C, Pc) bf16, bias: (1, Pc) f32
    bt, H, W, C = x_nhwc.shape
    Pc = w_flat.shape[1]
    xp = jnp.pad(x_nhwc, ((0, 0), (1, 1), (1, 1), (0, 0)))
    per_img = ((H + 2) * (W + 2) * C * 2          # padded input block (bf16)
               + H * W * (9 * C) * 2              # im2col patches (bf16)
               + H * W * Pc * 4 * 2)              # f32 accumulator + output block
    cap = max(1, min(img_cap, vmem_budget // max(per_img, 1)))
    nb = _largest_divisor(bt, cap, step=1)
    if bt // nb == 1 and nb % 2 == 0:             # >= 2 grid steps when possible
        nb //= 2
    # TODO(synk): for large H*W on v7x (64 MiB VMEM) tile over output rows with a
    # 2-row halo instead of whole images per grid step.
    out = pl.pallas_call(
        functools.partial(_conv3x3_lrelu_kernel, H=H, W=W, C=C),
        out_shape=jax.ShapeDtypeStruct((bt, H, W, Pc), jnp.float32),
        grid=(bt // nb,),
        in_specs=[
            pl.BlockSpec((nb, H + 2, W + 2, C), lambda i: (i, 0, 0, 0)),
            pl.BlockSpec((9 * C, Pc), lambda i: (0, 0)),
            pl.BlockSpec((1, Pc), lambda i: (0, 0)),
        ],
        out_specs=pl.BlockSpec((nb, H, W, Pc), lambda i: (i, 0, 0, 0)),
        compiler_params=pltpu.CompilerParams(dimension_semantics=("parallel",)),
    )(xp, w_flat, bias)
    return out[..., :C]


# ----------------------------------------------------------------------------
# Full MultiHeadedAttention forward (glue in plain JAX, hot paths in Pallas)
# ----------------------------------------------------------------------------
def multi_headed_attention_forward(x_nchw, b, params, patchsize):
    bt, cin, H, W = x_nchw.shape
    t = bt // b
    d_model = params["wq"].shape[1]
    n_heads = len(patchsize)
    d_k = d_model // n_heads

    # ---- fused Q/K/V 1x1-conv projection (single HBM pass over x) ----
    x_flat = (jnp.transpose(x_nchw, (0, 2, 3, 1))
              .reshape(bt * H * W, cin).astype(jnp.bfloat16))
    w_qkv = jnp.concatenate([params["wq"], params["wk"], params["wv"]], axis=1)
    b_qkv = jnp.concatenate([params["bq"], params["bk"], params["bv"]], axis=1)
    P = _round_up(w_qkv.shape[1], 128)            # lane-dense, unmasked stores
    w_qkv = jnp.pad(w_qkv, ((0, 0), (0, P - w_qkv.shape[1]))).astype(jnp.bfloat16)
    b_qkv = jnp.pad(b_qkv, ((0, 0), (0, P - b_qkv.shape[1])))
    qkv = fused_qkv_projection(x_flat, w_qkv, b_qkv)          # (M, P) bf16
    q_all = qkv[:, 0:d_model].reshape(bt, H, W, d_model)
    k_all = qkv[:, d_model:2 * d_model].reshape(bt, H, W, d_model)
    v_all = qkv[:, 2 * d_model:3 * d_model].reshape(bt, H, W, d_model)

    head_outputs = []
    for head, (width, height) in enumerate(patchsize):
        sl = slice(head * d_k, (head + 1) * d_k)
        out_h, out_w = H // height, W // width
        n_tok = t * out_h * out_w
        d_feat = d_k * height * width

        # TODO(synk): fold this patch gather into the attention kernel's
        # index_map / manual DMA to avoid extra full HBM passes per head.
        def to_tokens(z):
            z = z[..., sl]                                     # (bt,H,W,d_k) bf16
            z = z.reshape(b, t, out_h, height, out_w, width, d_k)
            z = jnp.transpose(z, (0, 1, 2, 4, 6, 3, 5))        # b,t,oh,ow,dk,h,w
            return z.reshape(b, n_tok, d_feat)

        y = attention(to_tokens(q_all), to_tokens(k_all), to_tokens(v_all))

        y = y.reshape(b, t, out_h, out_w, d_k, height, width)
        y = jnp.transpose(y, (0, 1, 2, 5, 3, 6, 4))            # b,t,oh,hh,ow,ww,dk
        head_outputs.append(y.reshape(bt, H, W, d_k))

    out = jnp.concatenate(head_outputs, axis=-1)               # (bt,H,W,d_model) bf16

    # ---- output_linear: 3x3 conv + LeakyReLU(0.2) ----
    Pc = _round_up(d_model, 128)
    w_o = params["wo"].reshape(9 * d_model, d_model)
    w_o = jnp.pad(w_o, ((0, 0), (0, Pc - d_model))).astype(jnp.bfloat16)
    b_o = jnp.pad(params["bo"], ((0, 0), (0, Pc - d_model)))
    out = conv3x3_leaky_relu(out, w_o, b_o)                    # (bt,H,W,d_model) f32

    return jnp.transpose(out, (0, 3, 1, 2))                    # back to NCHW


# ----------------------------------------------------------------------------
# Pure-JAX f32 reference (numerical sanity check only)
# ----------------------------------------------------------------------------
def _reference_forward(x_nchw, b, params, patchsize):
    bt, cin, H, W = x_nchw.shape
    t = bt // b
    xf = jnp.transpose(x_nchw, (0, 2, 3, 1)).reshape(bt * H * W, cin)
    q_all = (xf @ params["wq"] + params["bq"]).reshape(bt, H, W, -1)
    k_all = (xf @ params["wk"] + params["bk"]).reshape(bt, H, W, -1)
    v_all = (xf @ params["wv"] + params["bv"]).reshape(bt, H, W, -1)
    d_model = q_all.shape[-1]
    d_k = d_model // len(patchsize)
    outs = []
    for head, (width, height) in enumerate(patchsize):
        sl = slice(head * d_k, (head + 1) * d_k)
        out_h, out_w = H // height, W // width

        def tok(z):
            z = z[..., sl].reshape(b, t, out_h, height, out_w, width, d_k)
            z = jnp.transpose(z, (0, 1, 2, 4, 6, 3, 5))
            return z.reshape(b, t * out_h * out_w, d_k * height * width)

        q, k, v = tok(q_all), tok(k_all), tok(v_all)
        s = jnp.einsum("bnd,bmd->bnm", q, k) / math.sqrt(q.shape[-1])
        p = jax.nn.softmax(s, axis=-1)
        y = jnp.einsum("bnm,bmd->bnd", p, v)
        y = y.reshape(b, t, out_h, out_w, d_k, height, width)
        y = jnp.transpose(y, (0, 1, 2, 5, 3, 6, 4)).reshape(bt, H, W, d_k)
        outs.append(y)
    out = jnp.concatenate(outs, axis=-1)
    xp = jnp.pad(out, ((0, 0), (1, 1), (1, 1), (0, 0)))
    acc = jnp.zeros((bt, H, W, d_model), jnp.float32)
    for ky in range(3):
        for kx in range(3):
            acc = acc + jnp.einsum(
                "bhwc,cd->bhwd", xp[:, ky:ky + H, kx:kx + W, :], params["wo"][ky, kx])
    acc = acc + params["bo"][0]
    acc = jnp.where(acc >= 0, acc, 0.2 * acc)
    return jnp.transpose(acc, (0, 3, 1, 2))


if __name__ == "__main__":
    # Shapes consistent with the module: b=2 videos, t=2 frames -> bt=4,
    # d_input=4, d_model=32, h=w=16, patchsize=[(8,8),(4,4)] (2 heads, d_k=16).
    b, t = 2, 2
    bt = b * t
    d_input, d_model = 4, 32
    H = W = 16
    patchsize = [(8, 8), (4, 4)]

    key = jax.random.PRNGKey(0)
    keys = jax.random.split(key, 10)
    x = jax.random.normal(keys[0], (bt, d_input, H, W), jnp.float32)

    params = {
        "wq": 0.1 * jax.random.normal(keys[1], (d_input, d_model), jnp.float32),
        "bq": 0.1 * jax.random.normal(keys[2], (1, d_model), jnp.float32),
        "wk": 0.1 * jax.random.normal(keys[3], (d_input, d_model), jnp.float32),
        "bk": 0.1 * jax.random.normal(keys[4], (1, d_model), jnp.float32),
        "wv": 0.1 * jax.random.normal(keys[5], (d_input, d_model), jnp.float32),
        "bv": 0.1 * jax.random.normal(keys[6], (1, d_model), jnp.float32),
        "wo": 0.1 * jax.random.normal(keys[7], (3, 3, d_model, d_model), jnp.float32),
        "bo": 0.1 * jax.random.normal(keys[8], (1, d_model), jnp.float32),
    }

    fwd = jax.jit(lambda xx, pp: multi_headed_attention_forward(xx, b, pp, patchsize))
    out = jax.block_until_ready(fwd(x, params))

    assert out.shape == (bt, d_model, H, W), out.shape

    ref = jax.block_until_ready(_reference_forward(x, b, params, patchsize))
    if not jnp.allclose(out, ref, rtol=2e-2, atol=2e-2):
        err = float(jnp.max(jnp.abs(out - ref)))
        raise AssertionError(f"Pallas output mismatches reference (max abs err={err})")

    print("KERNEL_OK")
</pallas_src>

<mosaic_0001>
module attributes {stable_mosaic.version = 11 : i64} {
  func.func @_qkv_proj_kernel(%arg0: i32, %arg1: memref<512x4xbf16, #tpu.memory_space<vmem>>, %arg2: memref<4x128xbf16, #tpu.memory_space<vmem>>, %arg3: memref<1x128xf32, #tpu.memory_space<vmem>>, %arg4: memref<512x128xbf16, #tpu.memory_space<vmem>>) attributes {dimension_semantics = [#tpu.dimension_semantics<parallel>], iteration_bounds = array<i64: 2>, scalar_prefetch = 0 : i64, scratch_operands = 0 : i64, tpu.core_type = #tpu.core_type<tc>, window_params = [{transform_indices = @transform_0, window_bounds = array<i64: 512, 4>}, {pipeline_mode = #tpu.pipeline_mode<synchronous>, transform_indices = @transform_1, window_bounds = array<i64: 4, 128>}, {pipeline_mode = #tpu.pipeline_mode<synchronous>, transform_indices = @transform_2, window_bounds = array<i64: 1, 128>}, {transform_indices = @transform_3, window_bounds = array<i64: 512, 128>}]} {
    %c0 = arith.constant 0 : index
    %c0_0 = arith.constant 0 : index
    %0 = vector.load %arg1[%c0, %c0_0] : memref<512x4xbf16, #tpu.memory_space<vmem>>, vector<512x4xbf16>
    %c0_1 = arith.constant 0 : index
    %c0_2 = arith.constant 0 : index
    %1 = vector.load %arg2[%c0_1, %c0_2] : memref<4x128xbf16, #tpu.memory_space<vmem>>, vector<4x128xbf16>
    %cst = arith.constant dense<0.000000e+00> : vector<512x128xf32>
    %2 = tpu.matmul %0, %1, %cst {dimension_numbers = #tpu.dot_dimension_numbers<[1], [0], [0], [1], [0, 0, 1, 1], [], []>} : vector<512x4xbf16>, vector<4x128xbf16>, vector<512x128xf32> -> vector<512x128xf32>
    %c0_3 = arith.constant 0 : index
    %c0_4 = arith.constant 0 : index
    %3 = vector.load %arg3[%c0_3, %c0_4] : memref<1x128xf32, #tpu.memory_space<vmem>>, vector<1x128xf32>
    %4 = vector.broadcast %3 : vector<1x128xf32> to vector<512x128xf32>
    %5 = arith.addf %2, %4 : vector<512x128xf32>
    %6 = arith.truncf %5 : vector<512x128xf32> to vector<512x128xbf16>
    %c0_5 = arith.constant 0 : index
    %c0_6 = arith.constant 0 : index
    %7 = vector.load %arg4[%c0_5, %c0_6] : memref<512x128xbf16, #tpu.memory_space<vmem>>, vector<512x128xbf16>
    tpu.vector_store %arg4[%c0_5, %c0_6], %6 {strides = array<i32>} : memref<512x128xbf16, #tpu.memory_space<vmem>>, vector<512x128xbf16>,
    return
  }
  func.func @transform_0(%arg0: i32) -> (i32, i32) {
    %c0_i32 = arith.constant 0 : i32
    %c0_i32_0 = arith.constant 0 : i32
    return %arg0, %c0_i32 : i32, i32
  }
  func.func @transform_1(%arg0: i32) -> (i32, i32) {
    %c0_i32 = arith.constant 0 : i32
    %c0_i32_0 = arith.constant 0 : i32
    %c0_i32_1 = arith.constant 0 : i32
    return %c0_i32, %c0_i32_0 : i32, i32
  }
  func.func @transform_2(%arg0: i32) -> (i32, i32) {
    %c0_i32 = arith.constant 0 : i32
    %c0_i32_0 = arith.constant 0 : i32
    %c0_i32_1 = arith.constant 0 : i32
    return %c0_i32, %c0_i32_0 : i32, i32
  }
  func.func @transform_3(%arg0: i32) -> (i32, i32) {
    %c0_i32 = arith.constant 0 : i32
    %c0_i32_0 = arith.constant 0 : i32
    return %arg0, %c0_i32 : i32, i32
  }
}

module attributes {stable_mosaic.version = 11 : i64} {
  func.func @_flash_attn_kernel(%arg0: i32, %arg1: i32, %arg2: i32, %arg3: memref<1x8x1024xbf16, #tpu.memory_space<vmem>>, %arg4: memref<1x8x1024xbf16, #tpu.memory_space<vmem>>, %arg5: memref<1x8x1024xbf16, #tpu.memory_space<vmem>>, %arg6: memref<1x8x1024xbf16, #tpu.memory_space<vmem>>, %arg7: memref<1x8x1xf32, #tpu.memory_space<vmem>>, %arg8: memref<1x8x1xf32, #tpu.memory_space<vmem>>, %arg9: memref<1x8x1024xf32, #tpu.memory_space<vmem>>) attributes {dimension_semantics = [#tpu.dimension_semantics<parallel>, #tpu.dimension_semantics<parallel>, #tpu.dimension_semantics<arbitrary>], iteration_bounds = array<i64: 2, 1, 1>, scalar_prefetch = 0 : i64, scratch_operands = 3 : i64, tpu.core_type = #tpu.core_type<tc>, window_params = [{transform_indices = @transform_0, window_bounds = array<i64: 1, 8, 1024>}, {transform_indices = @transform_1, window_bounds = array<i64: 1, 8, 1024>}, {transform_indices = @transform_2, window_bounds = array<i64: 1, 8, 1024>}, {transform_indices = @transform_3, window_bounds = array<i64: 1, 8, 1024>}]} {
    %c0_i32 = arith.constant 0 : i32
    %0 = arith.cmpi eq, %arg2, %c0_i32 : i32
    %1 = arith.extui %0 : i1 to i32
    %c0_i32_0 = arith.constant 0 : i32
    %2 = arith.cmpi ne, %1, %c0_i32_0 : i32
    scf.if %2 {
      %cst_33 = arith.constant 0xFF800000 : f32
      %35 = vector.broadcast %cst_33 : f32 to vector<1x8x1xf32>
      %c0_34 = arith.constant 0 : index
      %c0_35 = arith.constant 0 : index
      %c0_36 = arith.constant 0 : index
      %36 = vector.load %arg7[%c0_34, %c0_35, %c0_36] : memref<1x8x1xf32, #tpu.memory_space<vmem>>, vector<1x8x1xf32>
      tpu.vector_store %arg7[%c0_34, %c0_35, %c0_36], %35 {strides = array<i32>} : memref<1x8x1xf32, #tpu.memory_space<vmem>>, vector<1x8x1xf32>,
      %cst_37 = arith.constant 0.000000e+00 : f32
      %37 = vector.broadcast %cst_37 : f32 to vector<1x8x1xf32>
      %c0_38 = arith.constant 0 : index
      %c0_39 = arith.constant 0 : index
      %c0_40 = arith.constant 0 : index
      %38 = vector.load %arg8[%c0_38, %c0_39, %c0_40] : memref<1x8x1xf32, #tpu.memory_space<vmem>>, vector<1x8x1xf32>
      tpu.vector_store %arg8[%c0_38, %c0_39, %c0_40], %37 {strides = array<i32>} : memref<1x8x1xf32, #tpu.memory_space<vmem>>, vector<1x8x1xf32>,
      %cst_41 = arith.constant 0.000000e+00 : f32
      %39 = vector.broadcast %cst_41 : f32 to vector<1x8x1024xf32>
      %c0_42 = arith.constant 0 : index
      %c0_43 = arith.constant 0 : index
      %c0_44 = arith.constant 0 : index
      %40 = vector.load %arg9[%c0_42, %c0_43, %c0_44] : memref<1x8x1024xf32, #tpu.memory_space<vmem>>, vector<1x8x1024xf32>
      tpu.vector_store %arg9[%c0_42, %c0_43, %c0_44], %39 {strides = array<i32>} : memref<1x8x1024xf32, #tpu.memory_space<vmem>>, vector<1x8x1024xf32>,
    } else {
    }
    %c0 = arith.constant 0 : index
    %c0_1 = arith.constant 0 : index
    %c0_2 = arith.constant 0 : index
    %3 = vector.load %arg3[%c0, %c0_1, %c0_2] : memref<1x8x1024xbf16, #tpu.memory_space<vmem>>, vector<1x8x1024xbf16>
    %c0_3 = arith.constant 0 : index
    %c0_4 = arith.constant 0 : index
    %c0_5 = arith.constant 0 : index
    %4 = vector.load %arg4[%c0_3, %c0_4, %c0_5] : memref<1x8x1024xbf16, #tpu.memory_space<vmem>>, vector<1x8x1024xbf16>
    "tpu.trace_start"() <{level = 10 : i32, message = "bqd,bkd->bqk"}> : () -> ()
    %cst = arith.constant dense<0.000000e+00> : vector<1x8x8xf32>
    %5 = tpu.matmul %3, %4, %cst {dimension_numbers = #tpu.dot_dimension_numbers<[2], [2], [1], [1], [0, 0, 0, 1, 1, 1], [0], [0]>} : vector<1x8x1024xbf16>, vector<1x8x1024xbf16>, vector<1x8x8xf32> -> vector<1x8x8xf32>
    "tpu.trace_stop"() : () -> ()
    %cst_6 = arith.constant 3.125000e-02 : f32
    %6 = vector.broadcast %cst_6 : f32 to vector<1x8x8xf32>
    %7 = arith.mulf %5, %6 : vector<1x8x8xf32>
    %c0_7 = arith.constant 0 : index
    %c0_8 = arith.constant 0 : index
    %c0_9 = arith.constant 0 : index
    %8 = vector.load %arg7[%c0_7, %c0_8, %c0_9] : memref<1x8x1xf32, #tpu.memory_space<vmem>>, vector<1x8x1xf32>
    %cst_10 = arith.constant dense<0xFF800000> : vector<1x8xf32>
    %9 = vector.multi_reduction <maximumf>, %7, %cst_10 [2] : vector<1x8x8xf32> to vector<1x8xf32>
    %10 = vector.shape_cast %9 : vector<1x8xf32> to vector<1x8x1xf32>
    %11 = arith.maximumf %8, %10 : vector<1x8x1xf32>
    %12 = arith.subf %8, %11 : vector<1x8x1xf32>
    %13 = math.exp %12 : vector<1x8x1xf32>
    %14 = vector.broadcast %11 : vector<1x8x1xf32> to vector<1x8x8xf32>
    %15 = arith.subf %7, %14 : vector<1x8x8xf32>
    %16 = math.exp %15 : vector<1x8x8xf32>
    %c0_11 = arith.constant 0 : index
    %c0_12 = arith.constant 0 : index
    %c0_13 = arith.constant 0 : index
    %17 = vector.load %arg8[%c0_11, %c0_12, %c0_13] : memref<1x8x1xf32, #tpu.memory_space<vmem>>, vector<1x8x1xf32>
    %18 = arith.mulf %13, %17 : vector<1x8x1xf32>
    %cst_14 = arith.constant dense<0.000000e+00> : vector<1x8xf32>
    %19 = vector.multi_reduction <add>, %16, %cst_14 [2] : vector<1x8x8xf32> to vector<1x8xf32>
    %20 = vector.shape_cast %19 : vector<1x8xf32> to vector<1x8x1xf32>
    %21 = arith.addf %18, %20 : vector<1x8x1xf32>
    %c0_15 = arith.constant 0 : index
    %c0_16 = arith.constant 0 : index
    %c0_17 = arith.constant 0 : index
    %22 = vector.load %arg8[%c0_15, %c0_16, %c0_17] : memref<1x8x1xf32, #tpu.memory_space<vmem>>, vector<1x8x1xf32>
    tpu.vector_store %arg8[%c0_15, %c0_16, %c0_17], %21 {strides = array<i32>} : memref<1x8x1xf32, #tpu.memory_space<vmem>>, vector<1x8x1xf32>,
    %c0_18 = arith.constant 0 : index
    %c0_19 = arith.constant 0 : index
    %c0_20 = arith.constant 0 : index
    %23 = vector.load %arg9[%c0_18, %c0_19, %c0_20] : memref<1x8x1024xf32, #tpu.memory_space<vmem>>, vector<1x8x1024xf32>
    %24 = vector.broadcast %13 : vector<1x8x1xf32> to vector<1x8x1024xf32>
    %25 = arith.mulf %24, %23 : vector<1x8x1024xf32>
    %26 = arith.truncf %16 : vector<1x8x8xf32> to vector<1x8x8xbf16>
    %c0_21 = arith.constant 0 : index
    %c0_22 = arith.constant 0 : index
    %c0_23 = arith.constant 0 : index
    %27 = vector.load %arg5[%c0_21, %c0_22, %c0_23] : memref<1x8x1024xbf16, #tpu.memory_space<vmem>>, vector<1x8x1024xbf16>
    "tpu.trace_start"() <{level = 10 : i32, message = "bqk,bkd->bqd"}> : () -> ()
    %cst_24 = arith.constant dense<0.000000e+00> : vector<1x8x1024xf32>
    %28 = tpu.matmul %26, %27, %cst_24 {dimension_numbers = #tpu.dot_dimension_numbers<[2], [1], [1], [2], [0, 0, 0, 1, 1, 2], [0], [0]>} : vector<1x8x8xbf16>, vector<1x8x1024xbf16>, vector<1x8x1024xf32> -> vector<1x8x1024xf32>
    "tpu.trace_stop"() : () -> ()
    %29 = arith.addf %25, %28 : vector<1x8x1024xf32>
    %c0_25 = arith.constant 0 : index
    %c0_26 = arith.constant 0 : index
    %c0_27 = arith.constant 0 : index
    %30 = vector.load %arg9[%c0_25, %c0_26, %c0_27] : memref<1x8x1024xf32, #tpu.memory_space<vmem>>, vector<1x8x1024xf32>
    tpu.vector_store %arg9[%c0_25, %c0_26, %c0_27], %29 {strides = array<i32>} : memref<1x8x1024xf32, #tpu.memory_space<vmem>>, vector<1x8x1024xf32>,
    %c0_28 = arith.constant 0 : index
    %c0_29 = arith.constant 0 : index
    %c0_30 = arith.constant 0 : index
    %31 = vector.load %arg7[%c0_28, %c0_29, %c0_30] : memref<1x8x1xf32, #tpu.memory_space<vmem>>, vector<1x8x1xf32>
    tpu.vector_store %arg7[%c0_28, %c0_29, %c0_30], %11 {strides = array<i32>} : memref<1x8x1xf32, #tpu.memory_space<vmem>>, vector<1x8x1xf32>,
    %c0_i32_31 = arith.constant 0 : i32
    %32 = arith.cmpi eq, %arg2, %c0_i32_31 : i32
    %33 = arith.extui %32 : i1 to i32
    %c0_i32_32 = arith.constant 0 : i32
    %34 = arith.cmpi ne, %33, %c0_i32_32 : i32
    scf.if %34 {
      %c0_33 = arith.constant 0 : index
      %c0_34 = arith.constant 0 : index
      %c0_35 = arith.constant 0 : index
      %35 = vector.load %arg9[%c0_33, %c0_34, %c0_35] : memref<1x8x1024xf32, #tpu.memory_space<vmem>>, vector<1x8x1024xf32>
      %c0_36 = arith.constant 0 : index
      %c0_37 = arith.constant 0 : index
      %c0_38 = arith.constant 0 : index
      %36 = vector.load %arg8[%c0_36, %c0_37, %c0_38] : memref<1x8x1xf32, #tpu.memory_space<vmem>>, vector<1x8x1xf32>
      %37 = tpu.reciprocal %36 {approx = true} : vector<1x8x1xf32> -> vector<1x8x1xf32>
      %38 = vector.broadcast %37 : vector<1x8x1xf32> to vector<1x8x1024xf32>
      %39 = arith.mulf %35, %38 : vector<1x8x1024xf32>
      %40 = arith.truncf %39 : vector<1x8x1024xf32> to vector<1x8x1024xbf16>
      %c0_39 = arith.constant 0 : index
      %c0_40 = arith.constant 0 : index
      %c0_41 = arith.constant 0 : index
      %41 = vector.load %arg6[%c0_39, %c0_40, %c0_41] : memref<1x8x1024xbf16, #tpu.memory_space<vmem>>, vector<1x8x1024xbf16>
      tpu.vector_store %arg6[%c0_39, %c0_40, %c0_41], %40 {strides = array<i32>} : memref<1x8x1024xbf16, #tpu.memory_space<vmem>>, vector<1x8x1024xbf16>,
    } else {
    }
    return
  }
  func.func @transform_0(%arg0: i32, %arg1: i32, %arg2: i32) -> (i32, i32, i32) {
    %c0_i32 = arith.constant 0 : i32
    %c0_i32_0 = arith.constant 0 : i32
    return %arg0, %arg1, %c0_i32 : i32, i32, i32
  }
  func.func @transform_1(%arg0: i32, %arg1: i32, %arg2: i32) -> (i32, i32, i32) {
    %c0_i32 = arith.constant 0 : i32
    %c0_i32_0 = arith.constant 0 : i32
    return %arg0, %arg2, %c0_i32 : i32, i32, i32
  }
  func.func @transform_2(%arg0: i32, %arg1: i32, %arg2: i32) -> (i32, i32, i32) {
    %c0_i32 = arith.constant 0 : i32
    %c0_i32_0 = arith.constant 0 : i32
    return %arg0, %arg2, %c0_i32 : i32, i32, i32
  }
  func.func @transform_3(%arg0: i32, %arg1: i32, %arg2: i32) -> (i32, i32, i32) {
    %c0_i32 = arith.constant 0 : i32
    %c0_i32_0 = arith.constant 0 : i32
    return %arg0, %arg1, %c0_i32 : i32, i32, i32
  }
}

module attributes {stable_mosaic.version = 11 : i64} {
  func.func @_flash_attn_kernel(%arg0: i32, %arg1: i32, %arg2: i32, %arg3: memref<1x32x256xbf16, #tpu.memory_space<vmem>>, %arg4: memref<1x32x256xbf16, #tpu.memory_space<vmem>>, %arg5: memref<1x32x256xbf16, #tpu.memory_space<vmem>>, %arg6: memref<1x32x256xbf16, #tpu.memory_space<vmem>>, %arg7: memref<1x32x1xf32, #tpu.memory_space<vmem>>, %arg8: memref<1x32x1xf32, #tpu.memory_space<vmem>>, %arg9: memref<1x32x256xf32, #tpu.memory_space<vmem>>) attributes {dimension_semantics = [#tpu.dimension_semantics<parallel>, #tpu.dimension_semantics<parallel>, #tpu.dimension_semantics<arbitrary>], iteration_bounds = array<i64: 2, 1, 1>, scalar_prefetch = 0 : i64, scratch_operands = 3 : i64, tpu.core_type = #tpu.core_type<tc>, window_params = [{transform_indices = @transform_0, window_bounds = array<i64: 1, 32, 256>}, {transform_indices = @transform_1, window_bounds = array<i64: 1, 32, 256>}, {transform_indices = @transform_2, window_bounds = array<i64: 1, 32, 256>}, {transform_indices = @transform_3, window_bounds = array<i64: 1, 32, 256>}]} {
    %c0_i32 = arith.constant 0 : i32
    %0 = arith.cmpi eq, %arg2, %c0_i32 : i32
    %1 = arith.extui %0 : i1 to i32
    %c0_i32_0 = arith.constant 0 : i32
    %2 = arith.cmpi ne, %1, %c0_i32_0 : i32
    scf.if %2 {
      %cst_33 = arith.constant 0xFF800000 : f32
      %35 = vector.broadcast %cst_33 : f32 to vector<1x32x1xf32>
      %c0_34 = arith.constant 0 : index
      %c0_35 = arith.constant 0 : index
      %c0_36 = arith.constant 0 : index
      %36 = vector.load %arg7[%c0_34, %c0_35, %c0_36] : memref<1x32x1xf32, #tpu.memory_space<vmem>>, vector<1x32x1xf32>
      tpu.vector_store %arg7[%c0_34, %c0_35, %c0_36], %35 {strides = array<i32>} : memref<1x32x1xf32, #tpu.memory_space<vmem>>, vector<1x32x1xf32>,
      %cst_37 = arith.constant 0.000000e+00 : f32
      %37 = vector.broadcast %cst_37 : f32 to vector<1x32x1xf32>
      %c0_38 = arith.constant 0 : index
      %c0_39 = arith.constant 0 : index
      %c0_40 = arith.constant 0 : index
      %38 = vector.load %arg8[%c0_38, %c0_39, %c0_40] : memref<1x32x1xf32, #tpu.memory_space<vmem>>, vector<1x32x1xf32>
      tpu.vector_store %arg8[%c0_38, %c0_39, %c0_40], %37 {strides = array<i32>} : memref<1x32x1xf32, #tpu.memory_space<vmem>>, vector<1x32x1xf32>,
      %cst_41 = arith.constant 0.000000e+00 : f32
      %39 = vector.broadcast %cst_41 : f32 to vector<1x32x256xf32>
      %c0_42 = arith.constant 0 : index
      %c0_43 = arith.constant 0 : index
      %c0_44 = arith.constant 0 : index
      %40 = vector.load %arg9[%c0_42, %c0_43, %c0_44] : memref<1x32x256xf32, #tpu.memory_space<vmem>>, vector<1x32x256xf32>
      tpu.vector_store %arg9[%c0_42, %c0_43, %c0_44], %39 {strides = array<i32>} : memref<1x32x256xf32, #tpu.memory_space<vmem>>, vector<1x32x256xf32>,
    } else {
    }
    %c0 = arith.constant 0 : index
    %c0_1 = arith.constant 0 : index
    %c0_2 = arith.constant 0 : index
    %3 = vector.load %arg3[%c0, %c0_1, %c0_2] : memref<1x32x256xbf16, #tpu.memory_space<vmem>>, vector<1x32x256xbf16>
    %c0_3 = arith.constant 0 : index
    %c0_4 = arith.constant 0 : index
    %c0_5 = arith.constant 0 : index
    %4 = vector.load %arg4[%c0_3, %c0_4, %c0_5] : memref<1x32x256xbf16, #tpu.memory_space<vmem>>, vector<1x32x256xbf16>
    "tpu.trace_start"() <{level = 10 : i32, message = "bqd,bkd->bqk"}> : () -> ()
    %cst = arith.constant dense<0.000000e+00> : vector<1x32x32xf32>
    %5 = tpu.matmul %3, %4, %cst {dimension_numbers = #tpu.dot_dimension_numbers<[2], [2], [1], [1], [0, 0, 0, 1, 1, 1], [0], [0]>} : vector<1x32x256xbf16>, vector<1x32x256xbf16>, vector<1x32x32xf32> -> vector<1x32x32xf32>
    "tpu.trace_stop"() : () -> ()
    %cst_6 = arith.constant 6.250000e-02 : f32
    %6 = vector.broadcast %cst_6 : f32 to vector<1x32x32xf32>
    %7 = arith.mulf %5, %6 : vector<1x32x32xf32>
    %c0_7 = arith.constant 0 : index
    %c0_8 = arith.constant 0 : index
    %c0_9 = arith.constant 0 : index
    %8 = vector.load %arg7[%c0_7, %c0_8, %c0_9] : memref<1x32x1xf32, #tpu.memory_space<vmem>>, vector<1x32x1xf32>
    %cst_10 = arith.constant dense<0xFF800000> : vector<1x32xf32>
    %9 = vector.multi_reduction <maximumf>, %7, %cst_10 [2] : vector<1x32x32xf32> to vector<1x32xf32>
    %10 = vector.shape_cast %9 : vector<1x32xf32> to vector<1x32x1xf32>
    %11 = arith.maximumf %8, %10 : vector<1x32x1xf32>
    %12 = arith.subf %8, %11 : vector<1x32x1xf32>
    %13 = math.exp %12 : vector<1x32x1xf32>
    %14 = vector.broadcast %11 : vector<1x32x1xf32> to vector<1x32x32xf32>
    %15 = arith.subf %7, %14 : vector<1x32x32xf32>
    %16 = math.exp %15 : vector<1x32x32xf32>
    %c0_11 = arith.constant 0 : index
    %c0_12 = arith.constant 0 : index
    %c0_13 = arith.constant 0 : index
    %17 = vector.load %arg8[%c0_11, %c0_12, %c0_13] : memref<1x32x1xf32, #tpu.memory_space<vmem>>, vector<1x32x1xf32>
    %18 = arith.mulf %13, %17 : vector<1x32x1xf32>
    %cst_14 = arith.constant dense<0.000000e+00> : vector<1x32xf32>
    %19 = vector.multi_reduction <add>, %16, %cst_14 [2] : vector<1x32x32xf32> to vector<1x32xf32>
    %20 = vector.shape_cast %19 : vector<1x32xf32> to vector<1x32x1xf32>
    %21 = arith.addf %18, %20 : vector<1x32x1xf32>
    %c0_15 = arith.constant 0 : index
    %c0_16 = arith.constant 0 : index
    %c0_17 = arith.constant 0 : index
    %22 = vector.load %arg8[%c0_15, %c0_16, %c0_17] : memref<1x32x1xf32, #tpu.memory_space<vmem>>, vector<1x32x1xf32>
    tpu.vector_store %arg8[%c0_15, %c0_16, %c0_17], %21 {strides = array<i32>} : memref<1x32x1xf32, #tpu.memory_space<vmem>>, vector<1x32x1xf32>,
    %c0_18 = arith.constant 0 : index
    %c0_19 = arith.constant 0 : index
    %c0_20 = arith.constant 0 : index
    %23 = vector.load %arg9[%c0_18, %c0_19, %c0_20] : memref<1x32x256xf32, #tpu.memory_space<vmem>>, vector<1x32x256xf32>
    %24 = vector.broadcast %13 : vector<1x32x1xf32> to vector<1x32x256xf32>
    %25 = arith.mulf %24, %23 : vector<1x32x256xf32>
    %26 = arith.truncf %16 : vector<1x32x32xf32> to vector<1x32x32xbf16>
    %c0_21 = arith.constant 0 : index
    %c0_22 = arith.constant 0 : index
    %c0_23 = arith.constant 0 : index
    %27 = vector.load %arg5[%c0_21, %c0_22, %c0_23] : memref<1x32x256xbf16, #tpu.memory_space<vmem>>, vector<1x32x256xbf16>
    "tpu.trace_start"() <{level = 10 : i32, message = "bqk,bkd->bqd"}> : () -> ()
    %cst_24 = arith.constant dense<0.000000e+00> : vector<1x32x256xf32>
    %28 = tpu.matmul %26, %27, %cst_24 {dimension_numbers = #tpu.dot_dimension_numbers<[2], [1], [1], [2], [0, 0, 0, 1, 1, 2], [0], [0]>} : vector<1x32x32xbf16>, vector<1x32x256xbf16>, vector<1x32x256xf32> -> vector<1x32x256xf32>
    "tpu.trace_stop"() : () -> ()
    %29 = arith.addf %25, %28 : vector<1x32x256xf32>
    %c0_25 = arith.constant 0 : index
    %c0_26 = arith.constant 0 : index
    %c0_27 = arith.constant 0 : index
    %30 = vector.load %arg9[%c0_25, %c0_26, %c0_27] : memref<1x32x256xf32, #tpu.memory_space<vmem>>, vector<1x32x256xf32>
    tpu.vector_store %arg9[%c0_25, %c0_26, %c0_27], %29 {strides = array<i32>} : memref<1x32x256xf32, #tpu.memory_space<vmem>>, vector<1x32x256xf32>,
    %c0_28 = arith.constant 0 : index
    %c0_29 = arith.constant 0 : index
    %c0_30 = arith.constant 0 : index
    %31 = vector.load %arg7[%c0_28, %c0_29, %c0_30] : memref<1x32x1xf32, #tpu.memory_space<vmem>>, vector<1x32x1xf32>
    tpu.vector_store %arg7[%c0_28, %c0_29, %c0_30], %11 {strides = array<i32>} : memref<1x32x1xf32, #tpu.memory_space<vmem>>, vector<1x32x1xf32>,
    %c0_i32_31 = arith.constant 0 : i32
    %32 = arith.cmpi eq, %arg2, %c0_i32_31 : i32
    %33 = arith.extui %32 : i1 to i32
    %c0_i32_32 = arith.constant 0 : i32
    %34 = arith.cmpi ne, %33, %c0_i32_32 : i32
    scf.if %34 {
      %c0_33 = arith.constant 0 : index
      %c0_34 = arith.constant 0 : index
      %c0_35 = arith.constant 0 : index
      %35 = vector.load %arg9[%c0_33, %c0_34, %c0_35] : memref<1x32x256xf32, #tpu.memory_space<vmem>>, vector<1x32x256xf32>
      %c0_36 = arith.constant 0 : index
      %c0_37 = arith.constant 0 : index
      %c0_38 = arith.constant 0 : index
      %36 = vector.load %arg8[%c0_36, %c0_37, %c0_38] : memref<1x32x1xf32, #tpu.memory_space<vmem>>, vector<1x32x1xf32>
      %37 = tpu.reciprocal %36 {approx = true} : vector<1x32x1xf32> -> vector<1x32x1xf32>
      %38 = vector.broadcast %37 : vector<1x32x1xf32> to vector<1x32x256xf32>
      %39 = arith.mulf %35, %38 : vector<1x32x256xf32>
      %40 = arith.truncf %39 : vector<1x32x256xf32> to vector<1x32x256xbf16>
      %c0_39 = arith.constant 0 : index
      %c0_40 = arith.constant 0 : index
      %c0_41 = arith.constant 0 : index
      %41 = vector.load %arg6[%c0_39, %c0_40, %c0_41] : memref<1x32x256xbf16, #tpu.memory_space<vmem>>, vector<1x32x256xbf16>
      tpu.vector_store %arg6[%c0_39, %c0_40, %c0_41], %40 {strides = array<i32>} : memref<1x32x256xbf16, #tpu.memory_space<vmem>>, vector<1x32x256xbf16>,
    } else {
    }
    return
  }
  func.func @transform_0(%arg0: i32, %arg1: i32, %arg2: i32) -> (i32, i32, i32) {
    %c0_i32 = arith.constant 0 : i32
    %c0_i32_0 = arith.constant 0 : i32
    return %arg0, %arg1, %c0_i32 : i32, i32, i32
  }
  func.func @transform_1(%arg0: i32, %arg1: i32, %arg2: i32) -> (i32, i32, i32) {
    %c0_i32 = arith.constant 0 : i32
    %c0_i32_0 = arith.constant 0 : i32
    return %arg0, %arg2, %c0_i32 : i32, i32, i32
  }
  func.func @transform_2(%arg0: i32, %arg1: i32, %arg2: i32) -> (i32, i32, i32) {
    %c0_i32 = arith.constant 0 : i32
    %c0_i32_0 = arith.constant 0 : i32
    return %arg0, %arg2, %c0_i32 : i32, i32, i32
  }
  func.func @transform_3(%arg0: i32, %arg1: i32, %arg2: i32) -> (i32, i32, i32) {
    %c0_i32 = arith.constant 0 : i32
    %c0_i32_0 = arith.constant 0 : i32
    return %arg0, %arg1, %c0_i32 : i32, i32, i32
  }
}

module attributes {stable_mosaic.version = 11 : i64} {
  func.func @_conv3x3_lrelu_kernel(%arg0: i32, %arg1: memref<2x18x18x32xbf16, #tpu.memory_space<vmem>>, %arg2: memref<288x128xbf16, #tpu.memory_space<vmem>>, %arg3: memref<1x128xf32, #tpu.memory_space<vmem>>, %arg4: memref<2x16x16x128xf32, #tpu.memory_space<vmem>>) attributes {dimension_semantics = [#tpu.dimension_semantics<parallel>], iteration_bounds = array<i64: 2>, scalar_prefetch = 0 : i64, scratch_operands = 0 : i64, tpu.core_type = #tpu.core_type<tc>, window_params = [{transform_indices = @transform_0, window_bounds = array<i64: 2, 18, 18, 32>}, {pipeline_mode = #tpu.pipeline_mode<synchronous>, transform_indices = @transform_1, window_bounds = array<i64: 288, 128>}, {pipeline_mode = #tpu.pipeline_mode<synchronous>, transform_indices = @transform_2, window_bounds = array<i64: 1, 128>}, {transform_indices = @transform_3, window_bounds = array<i64: 2, 16, 16, 128>}]} {
    %c0 = arith.constant 0 : index
    %c0_0 = arith.constant 0 : index
    %c0_1 = arith.constant 0 : index
    %c0_2 = arith.constant 0 : index
    %0 = vector.load %arg1[%c0, %c0_0, %c0_1, %c0_2] : memref<2x18x18x32xbf16, #tpu.memory_space<vmem>>, vector<2x16x16x32xbf16>
    %1 = vector.shape_cast %0 : vector<2x16x16x32xbf16> to vector<512x32xbf16>
    %c0_3 = arith.constant 0 : index
    %c0_4 = arith.constant 0 : index
    %c1 = arith.constant 1 : index
    %c0_5 = arith.constant 0 : index
    %2 = vector.load %arg1[%c0_3, %c0_4, %c1, %c0_5] : memref<2x18x18x32xbf16, #tpu.memory_space<vmem>>, vector<2x16x16x32xbf16>
    %3 = vector.shape_cast %2 : vector<2x16x16x32xbf16> to vector<512x32xbf16>
    %c0_6 = arith.constant 0 : index
    %c0_7 = arith.constant 0 : index
    %c2 = arith.constant 2 : index
    %c0_8 = arith.constant 0 : index
    %4 = vector.load %arg1[%c0_6, %c0_7, %c2, %c0_8] : memref<2x18x18x32xbf16, #tpu.memory_space<vmem>>, vector<2x16x16x32xbf16>
    %5 = vector.shape_cast %4 : vector<2x16x16x32xbf16> to vector<512x32xbf16>
    %c0_9 = arith.constant 0 : index
    %c1_10 = arith.constant 1 : index
    %c0_11 = arith.constant 0 : index
    %c0_12 = arith.constant 0 : index
    %6 = vector.load %arg1[%c0_9, %c1_10, %c0_11, %c0_12] : memref<2x18x18x32xbf16, #tpu.memory_space<vmem>>, vector<2x16x16x32xbf16>
    %7 = vector.shape_cast %6 : vector<2x16x16x32xbf16> to vector<512x32xbf16>
    %c0_13 = arith.constant 0 : index
    %c1_14 = arith.constant 1 : index
    %c1_15 = arith.constant 1 : index
    %c0_16 = arith.constant 0 : index
    %8 = vector.load %arg1[%c0_13, %c1_14, %c1_15, %c0_16] : memref<2x18x18x32xbf16, #tpu.memory_space<vmem>>, vector<2x16x16x32xbf16>
    %9 = vector.shape_cast %8 : vector<2x16x16x32xbf16> to vector<512x32xbf16>
    %c0_17 = arith.constant 0 : index
    %c1_18 = arith.constant 1 : index
    %c2_19 = arith.constant 2 : index
    %c0_20 = arith.constant 0 : index
    %10 = vector.load %arg1[%c0_17, %c1_18, %c2_19, %c0_20] : memref<2x18x18x32xbf16, #tpu.memory_space<vmem>>, vector<2x16x16x32xbf16>
    %11 = vector.shape_cast %10 : vector<2x16x16x32xbf16> to vector<512x32xbf16>
    %c0_21 = arith.constant 0 : index
    %c2_22 = arith.constant 2 : index
    %c0_23 = arith.constant 0 : index
    %c0_24 = arith.constant 0 : index
    %12 = vector.load %arg1[%c0_21, %c2_22, %c0_23, %c0_24] : memref<2x18x18x32xbf16, #tpu.memory_space<vmem>>, vector<2x16x16x32xbf16>
    %13 = vector.shape_cast %12 : vector<2x16x16x32xbf16> to vector<512x32xbf16>
    %c0_25 = arith.constant 0 : index
    %c2_26 = arith.constant 2 : index
    %c1_27 = arith.constant 1 : index
    %c0_28 = arith.constant 0 : index
    %14 = vector.load %arg1[%c0_25, %c2_26, %c1_27, %c0_28] : memref<2x18x18x32xbf16, #tpu.memory_space<vmem>>, vector<2x16x16x32xbf16>
    %15 = vector.shape_cast %14 : vector<2x16x16x32xbf16> to vector<512x32xbf16>
    %c0_29 = arith.constant 0 : index
    %c2_30 = arith.constant 2 : index
    %c2_31 = arith.constant 2 : index
    %c0_32 = arith.constant 0 : index
    %16 = vector.load %arg1[%c0_29, %c2_30, %c2_31, %c0_32] : memref<2x18x18x32xbf16, #tpu.memory_space<vmem>>, vector<2x16x16x32xbf16>
    %17 = vector.shape_cast %16 : vector<2x16x16x32xbf16> to vector<512x32xbf16>
    %18 = tpu.concatenate %1, %3, %5, %7, %9, %11, %13, %15, %17 in 1 : vector<512x32xbf16>, vector<512x32xbf16>, vector<512x32xbf16>, vector<512x32xbf16>, vector<512x32xbf16>, vector<512x32xbf16>, vector<512x32xbf16>, vector<512x32xbf16>, vector<512x32xbf16> -> vector<512x288xbf16>
    %c0_33 = arith.constant 0 : index
    %c0_34 = arith.constant 0 : index
    %19 = vector.load %arg2[%c0_33, %c0_34] : memref<288x128xbf16, #tpu.memory_space<vmem>>, vector<288x128xbf16>
    %cst = arith.constant dense<0.000000e+00> : vector<512x128xf32>
    %20 = tpu.matmul %18, %19, %cst {dimension_numbers = #tpu.dot_dimension_numbers<[1], [0], [0], [1], [0, 0, 1, 1], [], []>} : vector<512x288xbf16>, vector<288x128xbf16>, vector<512x128xf32> -> vector<512x128xf32>
    %c0_35 = arith.constant 0 : index
    %c0_36 = arith.constant 0 : index
    %21 = vector.load %arg3[%c0_35, %c0_36] : memref<1x128xf32, #tpu.memory_space<vmem>>, vector<1x128xf32>
    %22 = vector.broadcast %21 : vector<1x128xf32> to vector<512x128xf32>
    %23 = arith.addf %20, %22 : vector<512x128xf32>
    %cst_37 = arith.constant 0.000000e+00 : f32
    %24 = vector.broadcast %cst_37 : f32 to vector<512x128xf32>
    %25 = arith.cmpf oge, %23, %24 : vector<512x128xf32>
    %cst_38 = arith.constant 2.000000e-01 : f32
    %26 = vector.broadcast %cst_38 : f32 to vector<512x128xf32>
    %27 = arith.mulf %26, %23 : vector<512x128xf32>
    %28 = arith.select %25, %23, %27 : vector<512x128xi1>, vector<512x128xf32>
    %29 = vector.shape_cast %28 : vector<512x128xf32> to vector<2x16x16x128xf32>
    %c0_39 = arith.constant 0 : index
    %c0_40 = arith.constant 0 : index
    %c0_41 = arith.constant 0 : index
    %c0_42 = arith.constant 0 : index
    %30 = vector.load %arg4[%c0_39, %c0_40, %c0_41, %c0_42] : memref<2x16x16x128xf32, #tpu.memory_space<vmem>>, vector<2x16x16x128xf32>
    tpu.vector_store %arg4[%c0_39, %c0_40, %c0_41, %c0_42], %29 {strides = array<i32>} : memref<2x16x16x128xf32, #tpu.memory_space<vmem>>, vector<2x16x16x128xf32>,
    return
  }
  func.func @transform_0(%arg0: i32) -> (i32, i32, i32, i32) {
    %c0_i32 = arith.constant 0 : i32
    %c0_i32_0 = arith.constant 0 : i32
    %c0_i32_1 = arith.constant 0 : i32
    %c0_i32_2 = arith.constant 0 : i32
    return %arg0, %c0_i32, %c0_i32_0, %c0_i32_1 : i32, i32, i32, i32
  }
  func.func @transform_1(%arg0: i32) -> (i32, i32) {
    %c0_i32 = arith.constant 0 : i32
    %c0_i32_0 = arith.constant 0 : i32
    %c0_i32_1 = arith.constant 0 : i32
    return %c0_i32, %c0_i32_0 : i32, i32
  }
  func.func @transform_2(%arg0: i32) -> (i32, i32) {
    %c0_i32 = arith.constant 0 : i32
    %c0_i32_0 = arith.constant 0 : i32
    %c0_i32_1 = arith.constant 0 : i32
    return %c0_i32, %c0_i32_0 : i32, i32
  }
  func.func @transform_3(%arg0: i32) -> (i32, i32, i32, i32) {
    %c0_i32 = arith.constant 0 : i32
    %c0_i32_0 = arith.constant 0 : i32
    %c0_i32_1 = arith.constant 0 : i32
    %c0_i32_2 = arith.constant 0 : i32
    return %arg0, %c0_i32, %c0_i32_0, %c0_i32_1 : i32, i32, i32, i32
  }
}

</mosaic_0001>

<bundles_post_ra>
// kernel: _lambda_.4
= control target key start
LH: loop header
LB: loop body
LE: loop exit
PB: predicated region body
PF: predicated region fallthrough
CT: control target
= control target key end

     0   :  { %s1739_s12 = smov 0   ;;  %s1935_s0 = inlined_call_operand.vmem [shape: bf16[1024,4], index: 0, kind: input, shape index: {}]   ;;  %s1936_s1 = inlined_call_operand.vmem [shape: bf16[4,128], index: 1, kind: input, shape index: {}]   ;;  %s1937_s2 = inlined_call_operand.vmem [shape: f32[1,128], index: 2, kind: input, shape index: {}]   ;;  %s1938_s3 = inlined_call_operand.vmem [shape: bf16[1024,128], index: 3, kind: output, shape index: {}]  }
   0x1 LB: > { %s1173_s13 = sadd.s32 4294967295, %s1717_s12   ;;  %p1177_p0 = scmp.ge.s32.totalorder %s1717_s12, 1  ;;  %s1717_s12 = sphi %s1739_s12, %s13_s12  }
   0x2   : > { %p138_p1 = scmp.lt.s32.totalorder %s1717_s12, 3 }
   0x4   : > { %p139_p2 = pnand %p1177_p0, %p138_p1 }
   0x5   : > { %v239_v0 = vld [vmem:[%s1936_s1] sm:$0x3] (!%p139_p2)  ;;  %vm504_vm0 = vcmask (!%p139_p2), 1041408   ;;  %s1178_s16 = sshll.u32 (!%p139_p2), %s1173_s13, 6  ;;  %vm407_vm1 = vcmask (!%p139_p2), 31744  }
   0x6   : > { %142 = sbr.rel (%p139_p2) target bundleno = 295 (0x127), region = 32  ;;  %1669 = vmatprep.subr.msk.bf16.mxu0 (!%p139_p2), %vm504_vm0, %v239_v0  ;;  %1670 = vmatprep.subr.msk.bf16.mxu1 (!%p139_p2), %vm504_vm0, %v239_v0  ;;  %v506_v1 = vsel (!%p139_p2), %vm504_vm0, %v239_v0, 0  ;;  %p163_p3 = scmp.lt.s32.totalorder (!%p139_p2), %s1178_s16, 127  ;;  %v1827_v35 = vld [vmem:[%s1937_s2] ss:$0 sm:$0xff] (!%p139_p2) }
   0x7   : > { %1602 = vmatpush3.bf16.msra.mxu0 (!%p139_p2), %v506_v1  ;;  %1668 = vmatpush3.bf16.msra.mxu1 (!%p139_p2), %v506_v1 }
   0xd   : > { %s1940_s16 = smov (!%p163_p3, %s1178_s16), 127 }
   0xe   : > { %s1179_s17 = sshll.u32 %s1940_s16, 2 }
   0xf   : > { %s1758_s20 = scalar_lea.vmem %s1935_s0, %s1179_s17  ;;  %s1838_s25 = scalar_lea.vmem %s1938_s3, %s1179_s17 }
  0x10   : > { %v1679_v2 = vld [vmem:[%s1758_s20] sm:$0xff]   ;;  %v1681_v4 = vld [vmem:[%s1758_s20 + $0x8] sm:$0xff]   ;;  %v1683_v6 = vld [vmem:[%s1758_s20 + $0x10] sm:$0xff]  }
  0x11   : > { %v1680_v3 = vld [vmem:[%s1758_s20 + $0x80] sm:$0xff]   ;;  %1603 = vmatprep.mubr.msk.bf16.mxu0 %vm407_vm1, %v1679_v2  ;;  %v1682_v5 = vld [vmem:[%s1758_s20 + $0x88] sm:$0xff]   ;;  %v1684_v7 = vld [vmem:[%s1758_s20 + $0x90] sm:$0xff]  }
  0x12   : > { %1635 = vmatprep.mubr.msk.bf16.mxu1 %vm407_vm1, %v1680_v3  ;;  %1604 = vmatmul.mubr.msk.bf16.vlgmr.msra.gmra.mrb[0].mxu0 %vm407_vm1, %v1681_v4  ;;  %v1685_v8 = vld [vmem:[%s1758_s20 + $0x18] sm:$0xff]   ;;  %v1687_v10 = vld [vmem:[%s1758_s20 + $0x20] sm:$0xff]   ;;  %v1689_v12 = vld [vmem:[%s1758_s20 + $0x28] sm:$0xff]  }
  0x13   : > { %1636 = vmatmul.mubr.msk.bf16.vlgmr.msra.gmra.mrb[0].mxu1 %vm407_vm1, %v1682_v5  ;;  %1607 = vmatprep.mubr.msk.bf16.mxu0 %vm407_vm1, %v1683_v6  ;;  %v1686_v9 = vld [vmem:[%s1758_s20 + $0x98] sm:$0xff]   ;;  %v1688_v11 = vld [vmem:[%s1758_s20 + $0xa0] sm:$0xff]   ;;  %v1690_v13 = vld [vmem:[%s1758_s20 + $0xa8] sm:$0xff]  }
  0x14   : > { %1639 = vmatprep.mubr.msk.bf16.mxu1 %vm407_vm1, %v1684_v7  ;;  %v1691_v14 = vld [vmem:[%s1758_s20 + $0x30] sm:$0xff]   ;;  %v1693_v16 = vld [vmem:[%s1758_s20 + $0x38] sm:$0xff]   ;;  %v1695_v18 = vld [vmem:[%s1758_s20 + $0x40] sm:$0xff]  }
  0x15   : > { %v1692_v15 = vld [vmem:[%s1758_s20 + $0xb0] sm:$0xff]   ;;  %v1694_v17 = vld [vmem:[%s1758_s20 + $0xb8] sm:$0xff]   ;;  %v1696_v19 = vld [vmem:[%s1758_s20 + $0xc0] sm:$0xff]  }
  0x16   : > { %v1697_v20 = vld [vmem:[%s1758_s20 + $0x48] sm:$0xff]   ;;  %v1699_v22 = vld [vmem:[%s1758_s20 + $0x50] sm:$0xff]   ;;  %v1701_v24 = vld [vmem:[%s1758_s20 + $0x58] sm:$0xff]  }
  0x17   : > { %v1698_v21 = vld [vmem:[%s1758_s20 + $0xc8] sm:$0xff]   ;;  %v1700_v23 = vld [vmem:[%s1758_s20 + $0xd0] sm:$0xff]   ;;  %v1702_v25 = vld [vmem:[%s1758_s20 + $0xd8] sm:$0xff]  }
  0x18   : > { %v1703_v26 = vld [vmem:[%s1758_s20 + $0x60] sm:$0xff]   ;;  %v1705_v28 = vld [vmem:[%s1758_s20 + $0x68] sm:$0xff]   ;;  %v1707_v30 = vld [vmem:[%s1758_s20 + $0x70] sm:$0xff]  }
  0x19   : > { %v1704_v27 = vld [vmem:[%s1758_s20 + $0xe0] sm:$0xff]   ;;  %v1706_v29 = vld [vmem:[%s1758_s20 + $0xe8] sm:$0xff]   ;;  %v1708_v31 = vld [vmem:[%s1758_s20 + $0xf0] sm:$0xff]  }
  0x1a   : > { %1608 = vmatmul.mubr.msk.bf16.gmra.mrb[4].mxu0 %vm407_vm1, %v1685_v8  ;;  %v1709_v32 = vld [vmem:[%s1758_s20 + $0x78] sm:$0xff]  }
  0x1b   : > { %1640 = vmatmul.mubr.msk.bf16.gmra.mrb[4].mxu1 %vm407_vm1, %v1686_v9  ;;  %1611 = vmatprep.mubr.msk.bf16.mxu0 %vm407_vm1, %v1687_v10  ;;  %v1710_v33 = vld [vmem:[%s1758_s20 + $0xf8] sm:$0xff]  }
  0x1c   : > { %1643 = vmatprep.mubr.msk.bf16.mxu1 %vm407_vm1, %v1688_v11 }
  0x22   : > { %1612 = vmatmul.mubr.msk.bf16.gmra.mrb[8].mxu0 %vm407_vm1, %v1689_v12 }
  0x23   : > { %1644 = vmatmul.mubr.msk.bf16.gmra.mrb[8].mxu1 %vm407_vm1, %v1690_v13  ;;  %1615 = vmatprep.mubr.msk.bf16.mxu0 %vm407_vm1, %v1691_v14 }
  0x24   : > { %1647 = vmatprep.mubr.msk.bf16.mxu1 %vm407_vm1, %v1692_v15 }
  0x2a   : > { %1616 = vmatmul.mubr.msk.bf16.gmra.mrb[12].mxu0 %vm407_vm1, %v1693_v16 }
  0x2b   : > { %1648 = vmatmul.mubr.msk.bf16.gmra.mrb[12].mxu1 %vm407_vm1, %v1694_v17  ;;  %1619 = vmatprep.mubr.msk.bf16.mxu0 %vm407_vm1, %v1695_v18 }
  0x2c   : > { %1651 = vmatprep.mubr.msk.bf16.mxu1 %vm407_vm1, %v1696_v19 }
  0x32   : > { %1620 = vmatmul.mubr.msk.bf16.gmra.mrb[16].mxu0 %vm407_vm1, %v1697_v20 }
  0x33   : > { %1652 = vmatmul.mubr.msk.bf16.gmra.mrb[16].mxu1 %vm407_vm1, %v1698_v21  ;;  %1623 = vmatprep.mubr.msk.bf16.mxu0 %vm407_vm1, %v1699_v22 }
  0x34   : > { %1655 = vmatprep.mubr.msk.bf16.mxu1 %vm407_vm1, %v1700_v23 }
  0x3a   : > { %1624 = vmatmul.mubr.msk.bf16.gmra.mrb[20].mxu0 %vm407_vm1, %v1701_v24 }
  0x3b   : > { %1656 = vmatmul.mubr.msk.bf16.gmra.mrb[20].mxu1 %vm407_vm1, %v1702_v25  ;;  %1627 = vmatprep.mubr.msk.bf16.mxu0 %vm407_vm1, %v1703_v26 }
  0x3c   : > { %1659 = vmatprep.mubr.msk.bf16.mxu1 %vm407_vm1, %v1704_v27 }
  0x42   : > { %1628 = vmatmul.mubr.msk.bf16.gmra.mrb[24].mxu0 %vm407_vm1, %v1705_v28 }
  0x43   : > { %1660 = vmatmul.mubr.msk.bf16.gmra.mrb[24].mxu1 %vm407_vm1, %v1706_v29  ;;  %1631 = vmatprep.mubr.msk.bf16.mxu0 %vm407_vm1, %v1707_v30 }
  0x44   : > { %1663 = vmatprep.mubr.msk.bf16.mxu1 %vm407_vm1, %v1708_v31 }
  0x4a   : > { %1632 = vmatmul.mubr.msk.bf16.gmra.mrb[28].mxu0 %vm407_vm1, %v1709_v32 }
  0x4b   : > { %1664 = vmatmul.mubr.msk.bf16.gmra.mrb[28].mxu1 %vm407_vm1, %v1710_v33 }
  0xe5   : > { %v1605_v34 = vpop.f32.mrb[0].mxu0 }
  0xe6   : > { %v1637_v36 = vpop.f32.mrb[0].mxu1  ;;  %v542_v37 = vpop.f32.mrb[1].mxu0  ;;  %v551_v40 = vadd.f32 %v1605_v34, %v1827_v35 }
  0xe7   : > { %v670_v38 = vpop.f32.mrb[1].mxu1  ;;  %v1606_v39 = vpop.f32.mrb[2].mxu0  ;;  %v679_v44 = vadd.f32 %v1637_v36, %v1827_v35  ;;  %v543_v45 = vadd.f32 %v1827_v35, %v542_v37 }
  0xe8   : > { %v554_v41 = vadd.f32 %v1606_v39, %v1827_v35  ;;  %v1638_v42 = vpop.f32.mrb[2].mxu1  ;;  %v545_v43 = vpop.f32.mrb[3].mxu0  ;;  %v671_v49 = vadd.f32 %v1827_v35, %v670_v38 }
  0xe9   : > { %v682_v46 = vadd.f32 %v1638_v42, %v1827_v35  ;;  %v546_v47 = vadd.f32 %v1827_v35, %v545_v43  ;;  %v673_v48 = vpop.f32.mrb[3].mxu1 }
  0xea   : > { %v1385_v50 = vpack.c.bf16 %v554_v41, %v551_v40  ;;  %v674_v51 = vadd.f32 %v1827_v35, %v673_v48 }
  0xeb   : > { %v1465_v52 = vpack.c.bf16 %v682_v46, %v679_v44  ;;  %v1380_v53 = vpack.c.bf16 %v546_v47, %v543_v45 }
  0xec   : > { %1537 = vst [vmem:[%s1838_s25 + $0x8] sm:$0xff] %v1385_v50   ;;  %v1460_v54 = vpack.c.bf16 %v674_v51, %v671_v49 }
  0xed   : > { %1553 = vst [vmem:[%s1838_s25 + $0x88] sm:$0xff] %v1465_v52   ;;  %1381 = vst [vmem:[%s1838_s25] sm:$0xff] %v1380_v53   ;;  %v1609_v55 = vpop.f32.mrb[4].mxu0 }
  0xee   : > { %1552 = vst [vmem:[%s1838_s25 + $0x80] sm:$0xff] %v1460_v54   ;;  %v1641_v56 = vpop.f32.mrb[4].mxu1  ;;  %v558_v57 = vpop.f32.mrb[5].mxu0  ;;  %v567_v60 = vadd.f32 %v1609_v55, %v1827_v35 }
  0xef   : > { %v686_v58 = vpop.f32.mrb[5].mxu1  ;;  %v1610_v59 = vpop.f32.mrb[6].mxu0  ;;  %v695_v0 = vadd.f32 %v1641_v56, %v1827_v35  ;;  %v559_v1 = vadd.f32 %v1827_v35, %v558_v57 }
  0xf0   : > { %v570_v61 = vadd.f32 %v1610_v59, %v1827_v35  ;;  %v1642_v62 = vpop.f32.mrb[6].mxu1  ;;  %v561_v63 = vpop.f32.mrb[7].mxu0  ;;  %v687_v5 = vadd.f32 %v1827_v35, %v686_v58 }
  0xf1   : > { %v698_v2 = vadd.f32 %v1642_v62, %v1827_v35  ;;  %v562_v3 = vadd.f32 %v1827_v35, %v561_v63  ;;  %v689_v4 = vpop.f32.mrb[7].mxu1 }
  0xf2   : > { %v1395_v6 = vpack.c.bf16 %v570_v61, %v567_v60  ;;  %v690_v7 = vadd.f32 %v1827_v35, %v689_v4 }
  0xf3   : > { %v1475_v8 = vpack.c.bf16 %v698_v2, %v695_v0  ;;  %v1390_v9 = vpack.c.bf16 %v562_v3, %v559_v1 }
  0xf4   : > { %1539 = vst [vmem:[%s1838_s25 + $0x18] sm:$0xff] %v1395_v6   ;;  %v1470_v10 = vpack.c.bf16 %v690_v7, %v687_v5 }
  0xf5   : > { %1555 = vst [vmem:[%s1838_s25 + $0x98] sm:$0xff] %v1475_v8   ;;  %1538 = vst [vmem:[%s1838_s25 + $0x10] sm:$0xff] %v1390_v9   ;;  %v1613_v11 = vpop.f32.mrb[8].mxu0 }
  0xf6   : > { %1554 = vst [vmem:[%s1838_s25 + $0x90] sm:$0xff] %v1470_v10   ;;  %v1645_v12 = vpop.f32.mrb[8].mxu1  ;;  %v574_v13 = vpop.f32.mrb[9].mxu0  ;;  %v583_v16 = vadd.f32 %v1613_v11, %v1827_v35 }
  0xf7   : > { %v702_v14 = vpop.f32.mrb[9].mxu1  ;;  %v1614_v15 = vpop.f32.mrb[10].mxu0  ;;  %v711_v20 = vadd.f32 %v1645_v12, %v1827_v35  ;;  %v575_v21 = vadd.f32 %v1827_v35, %v574_v13 }
  0xf8   : > { %v586_v17 = vadd.f32 %v1614_v15, %v1827_v35  ;;  %v1646_v18 = vpop.f32.mrb[10].mxu1  ;;  %v577_v19 = vpop.f32.mrb[11].mxu0  ;;  %v703_v25 = vadd.f32 %v1827_v35, %v702_v14 }
  0xf9   : > { %v714_v22 = vadd.f32 %v1646_v18, %v1827_v35  ;;  %v578_v23 = vadd.f32 %v1827_v35, %v577_v19  ;;  %v705_v24 = vpop.f32.mrb[11].mxu1 }
  0xfa   : > { %v1405_v26 = vpack.c.bf16 %v586_v17, %v583_v16  ;;  %v706_v27 = vadd.f32 %v1827_v35, %v705_v24 }
  0xfb   : > { %v1485_v28 = vpack.c.bf16 %v714_v22, %v711_v20  ;;  %v1400_v29 = vpack.c.bf16 %v578_v23, %v575_v21 }
  0xfc   : > { %1541 = vst [vmem:[%s1838_s25 + $0x28] sm:$0xff] %v1405_v26   ;;  %v1480_v30 = vpack.c.bf16 %v706_v27, %v703_v25 }
  0xfd   : > { %1557 = vst [vmem:[%s1838_s25 + $0xa8] sm:$0xff] %v1485_v28   ;;  %1540 = vst [vmem:[%s1838_s25 + $0x20] sm:$0xff] %v1400_v29   ;;  %v1617_v31 = vpop.f32.mrb[12].mxu0 }
  0xfe   : > { %1556 = vst [vmem:[%s1838_s25 + $0xa0] sm:$0xff] %v1480_v30   ;;  %v1649_v32 = vpop.f32.mrb[12].mxu1  ;;  %v590_v33 = vpop.f32.mrb[13].mxu0  ;;  %v599_v37 = vadd.f32 %v1617_v31, %v1827_v35 }
  0xff   : > { %v718_v34 = vpop.f32.mrb[13].mxu1  ;;  %v1618_v36 = vpop.f32.mrb[14].mxu0  ;;  %v727_v41 = vadd.f32 %v1649_v32, %v1827_v35  ;;  %v591_v42 = vadd.f32 %v1827_v35, %v590_v33 }
 0x100   : > { %v602_v38 = vadd.f32 %v1618_v36, %v1827_v35  ;;  %v1650_v39 = vpop.f32.mrb[14].mxu1  ;;  %v593_v40 = vpop.f32.mrb[15].mxu0  ;;  %v719_v46 = vadd.f32 %v1827_v35, %v718_v34 }
 0x101   : > { %v730_v43 = vadd.f32 %v1650_v39, %v1827_v35  ;;  %v594_v44 = vadd.f32 %v1827_v35, %v593_v40  ;;  %v721_v45 = vpop.f32.mrb[15].mxu1 }
 0x102   : > { %v1415_v47 = vpack.c.bf16 %v602_v38, %v599_v37  ;;  %v722_v48 = vadd.f32 %v1827_v35, %v721_v45 }
 0x103   : > { %v1495_v49 = vpack.c.bf16 %v730_v43, %v727_v41  ;;  %v1410_v50 = vpack.c.bf16 %v594_v44, %v591_v42 }
 0x104   : > { %1543 = vst [vmem:[%s1838_s25 + $0x38] sm:$0xff] %v1415_v47   ;;  %v1490_v51 = vpack.c.bf16 %v722_v48, %v719_v46 }
 0x105   : > { %1559 = vst [vmem:[%s1838_s25 + $0xb8] sm:$0xff] %v1495_v49   ;;  %1542 = vst [vmem:[%s1838_s25 + $0x30] sm:$0xff] %v1410_v50   ;;  %v1621_v52 = vpop.f32.mrb[16].mxu0 }
 0x106   : > { %1558 = vst [vmem:[%s1838_s25 + $0xb0] sm:$0xff] %v1490_v51   ;;  %v1653_v53 = vpop.f32.mrb[16].mxu1  ;;  %v606_v54 = vpop.f32.mrb[17].mxu0  ;;  %v615_v57 = vadd.f32 %v1621_v52, %v1827_v35 }
 0x107   : > { %v734_v55 = vpop.f32.mrb[17].mxu1  ;;  %v1622_v56 = vpop.f32.mrb[18].mxu0  ;;  %v743_v61 = vadd.f32 %v1653_v53, %v1827_v35  ;;  %v607_v62 = vadd.f32 %v1827_v35, %v606_v54 }
 0x108   : > { %v618_v58 = vadd.f32 %v1622_v56, %v1827_v35  ;;  %v1654_v59 = vpop.f32.mrb[18].mxu1  ;;  %v609_v60 = vpop.f32.mrb[19].mxu0  ;;  %v735_v2 = vadd.f32 %v1827_v35, %v734_v55 }
 0x109   : > { %v746_v63 = vadd.f32 %v1654_v59, %v1827_v35  ;;  %v610_v0 = vadd.f32 %v1827_v35, %v609_v60  ;;  %v737_v1 = vpop.f32.mrb[19].mxu1 }
 0x10a   : > { %v1425_v3 = vpack.c.bf16 %v618_v58, %v615_v57  ;;  %v738_v4 = vadd.f32 %v1827_v35, %v737_v1 }
 0x10b   : > { %v1505_v5 = vpack.c.bf16 %v746_v63, %v743_v61  ;;  %v1420_v6 = vpack.c.bf16 %v610_v0, %v607_v62 }
 0x10c   : > { %1545 = vst [vmem:[%s1838_s25 + $0x48] sm:$0xff] %v1425_v3   ;;  %v1500_v7 = vpack.c.bf16 %v738_v4, %v735_v2 }
 0x10d   : > { %1561 = vst [vmem:[%s1838_s25 + $0xc8] sm:$0xff] %v1505_v5   ;;  %1544 = vst [vmem:[%s1838_s25 + $0x40] sm:$0xff] %v1420_v6   ;;  %v1625_v8 = vpop.f32.mrb[20].mxu0 }
 0x10e   : > { %1560 = vst [vmem:[%s1838_s25 + $0xc0] sm:$0xff] %v1500_v7   ;;  %v1657_v9 = vpop.f32.mrb[20].mxu1  ;;  %v622_v10 = vpop.f32.mrb[21].mxu0  ;;  %v631_v13 = vadd.f32 %v1625_v8, %v1827_v35 }
 0x10f   : > { %v750_v11 = vpop.f32.mrb[21].mxu1  ;;  %v1626_v12 = vpop.f32.mrb[22].mxu0  ;;  %v759_v17 = vadd.f32 %v1657_v9, %v1827_v35  ;;  %v623_v18 = vadd.f32 %v1827_v35, %v622_v10 }
 0x110   : > { %v634_v14 = vadd.f32 %v1626_v12, %v1827_v35  ;;  %v1658_v15 = vpop.f32.mrb[22].mxu1  ;;  %v625_v16 = vpop.f32.mrb[23].mxu0  ;;  %v751_v22 = vadd.f32 %v1827_v35, %v750_v11 }
 0x111   : > { %v762_v19 = vadd.f32 %v1658_v15, %v1827_v35  ;;  %v626_v20 = vadd.f32 %v1827_v35, %v625_v16  ;;  %v753_v21 = vpop.f32.mrb[23].mxu1 }
 0x112   : > { %v1435_v23 = vpack.c.bf16 %v634_v14, %v631_v13  ;;  %v754_v24 = vadd.f32 %v1827_v35, %v753_v21 }
 0x113   : > { %v1515_v25 = vpack.c.bf16 %v762_v19, %v759_v17  ;;  %v1430_v26 = vpack.c.bf16 %v626_v20, %v623_v18 }
 0x114   : > { %1547 = vst [vmem:[%s1838_s25 + $0x58] sm:$0xff] %v1435_v23   ;;  %v1510_v27 = vpack.c.bf16 %v754_v24, %v751_v22 }
 0x115   : > { %1563 = vst [vmem:[%s1838_s25 + $0xd8] sm:$0xff] %v1515_v25   ;;  %1546 = vst [vmem:[%s1838_s25 + $0x50] sm:$0xff] %v1430_v26   ;;  %v1629_v28 = vpop.f32.mrb[24].mxu0 }
 0x116   : > { %1562 = vst [vmem:[%s1838_s25 + $0xd0] sm:$0xff] %v1510_v27   ;;  %v1661_v29 = vpop.f32.mrb[24].mxu1  ;;  %v638_v30 = vpop.f32.mrb[25].mxu0  ;;  %v647_v33 = vadd.f32 %v1629_v28, %v1827_v35 }
 0x117   : > { %v766_v31 = vpop.f32.mrb[25].mxu1  ;;  %v1630_v32 = vpop.f32.mrb[26].mxu0  ;;  %v775_v38 = vadd.f32 %v1661_v29, %v1827_v35  ;;  %v639_v39 = vadd.f32 %v1827_v35, %v638_v30 }
 0x118   : > { %v650_v34 = vadd.f32 %v1630_v32, %v1827_v35  ;;  %v1662_v36 = vpop.f32.mrb[26].mxu1  ;;  %v641_v37 = vpop.f32.mrb[27].mxu0  ;;  %v767_v43 = vadd.f32 %v1827_v35, %v766_v31 }
 0x119   : > { %v778_v40 = vadd.f32 %v1662_v36, %v1827_v35  ;;  %v642_v41 = vadd.f32 %v1827_v35, %v641_v37  ;;  %v769_v42 = vpop.f32.mrb[27].mxu1 }
 0x11a   : > { %v1445_v44 = vpack.c.bf16 %v650_v34, %v647_v33  ;;  %v770_v45 = vadd.f32 %v1827_v35, %v769_v42 }
 0x11b   : > { %v1525_v46 = vpack.c.bf16 %v778_v40, %v775_v38  ;;  %v1440_v47 = vpack.c.bf16 %v642_v41, %v639_v39 }
 0x11c   : > { %1549 = vst [vmem:[%s1838_s25 + $0x68] sm:$0xff] %v1445_v44   ;;  %v1520_v48 = vpack.c.bf16 %v770_v45, %v767_v43 }
 0x11d   : > { %1565 = vst [vmem:[%s1838_s25 + $0xe8] sm:$0xff] %v1525_v46   ;;  %1548 = vst [vmem:[%s1838_s25 + $0x60] sm:$0xff] %v1440_v47   ;;  %v1633_v49 = vpop.f32.mrb[28].mxu0 }
 0x11e   : > { %1564 = vst [vmem:[%s1838_s25 + $0xe0] sm:$0xff] %v1520_v48   ;;  %v1665_v50 = vpop.f32.mrb[28].mxu1  ;;  %v654_v51 = vpop.f32.mrb[29].mxu0  ;;  %v663_v54 = vadd.f32 %v1633_v49, %v1827_v35 }
 0x11f   : > { %v782_v52 = vpop.f32.mrb[29].mxu1  ;;  %v1634_v53 = vpop.f32.mrb[30].mxu0  ;;  %v791_v58 = vadd.f32 %v1665_v50, %v1827_v35  ;;  %v655_v59 = vadd.f32 %v1827_v35, %v654_v51 }
 0x120   : > { %v666_v55 = vadd.f32 %v1634_v53, %v1827_v35  ;;  %v1666_v56 = vpop.f32.mrb[30].mxu1  ;;  %v657_v57 = vpop.f32.mrb[31].mxu0  ;;  %v783_v63 = vadd.f32 %v1827_v35, %v782_v52 }
 0x121   : > { %v794_v60 = vadd.f32 %v1666_v56, %v1827_v35  ;;  %v658_v61 = vadd.f32 %v1827_v35, %v657_v57  ;;  %v785_v62 = vpop.f32.mrb[31].mxu1 }
 0x122   : > { %v1455_v0 = vpack.c.bf16 %v666_v55, %v663_v54  ;;  %v786_v1 = vadd.f32 %v1827_v35, %v785_v62 }
 0x123   : > { %v1535_v2 = vpack.c.bf16 %v794_v60, %v791_v58  ;;  %v1450_v3 = vpack.c.bf16 %v658_v61, %v655_v59 }
 0x124   : > { %1551 = vst [vmem:[%s1838_s25 + $0x78] sm:$0xff] %v1455_v0   ;;  %v1530_v4 = vpack.c.bf16 %v786_v1, %v783_v63 }
 0x125   : > { %1567 = vst [vmem:[%s1838_s25 + $0xf8] sm:$0xff] %v1535_v2   ;;  %1550 = vst [vmem:[%s1838_s25 + $0x70] sm:$0xff] %v1450_v3  }
 0x126   : > { %1566 = vst [vmem:[%s1838_s25 + $0xf0] sm:$0xff] %v1530_v4  }
 0x127 PF: > { %s13_s12 = sadd.s32 1, %s1717_s12  }
 0x128   : > { %p10_p4 = scmp.ge.s32.totalorder %s13_s12, 4  }
 0x12a   :  { %12 = sbr.rel (!%p10_p4) target bundleno = 1 (0x1), region = 62 }

// kernel: _lambda_.5
= control target key start
LH: loop header
LB: loop body
LE: loop exit
PB: predicated region body
PF: predicated region fallthrough
CT: control target
= control target key end

     0   :  { %s1179_s12 = smov 0   ;;  %s1181_s13 = smov 0   ;;  %s1248_s0 = inlined_call_operand.vmem [shape: bf16[2,8,1024], index: 0, kind: input, shape index: {}]   ;;  %s1249_s1 = inlined_call_operand.vmem [shape: bf16[2,8,1024], index: 1, kind: input, shape index: {}]   ;;  %s1250_s2 = inlined_call_operand.vmem [shape: bf16[2,8,1024], index: 2, kind: input, shape index: {}]   ;;  %s1251_s3 = inlined_call_operand.vmem [shape: bf16[2,8,1024], index: 3, kind: output, shape index: {}]  }
   0x1   :  { %s1183_s14 = smov 0  }
   0x2 LB: > { %s32_s15 = sadd.s32 1, %s1150_s13  ;;  %p1006_p0 = scmp.ge.s32.totalorder %s1154_s14, 1  ;;  %s1154_s14 = sphi %s1183_s14, %s13_s14   ;;  %s1150_s13 = sphi %s1181_s13, %s1253_s13   ;;  %s1146_s12 = sphi %s1179_s12, %s1252_s12  }
   0x3   : > { %p34_p1 = scmp.ge.s32.totalorder %s32_s15, 2  ;;  %p196_p2 = scmp.lt.s32.totalorder %s1154_s14, 3 }
   0x5   : > { %s1255_s15 = smov (%p34_p1, %s32_s15), 0  ;;  %p197_p3 = pnand %p1006_p0, %p196_p2 }
   0x6   : > { %p246_p4 = scmp.lt.s32.totalorder (!%p197_p3), %s1146_s12, 1  ;;  %vm287_vm0 = vcmask (!%p197_p3), 7168   ;;  %v1156_v24 = vmov (!%p197_p3), -inf   ;;  %vm524_vm1 = vcmask (!%p197_p3), 64512   ;;  %v1157_v31 = vmov (!%p197_p3), 0  }
   0x7   : > { %200 = sbr.rel (%p197_p3) target bundleno = 864 (0x360), region = 32  ;;  %288 = vst.msk [vmem:[#allocation2] sm:$0xff] (!%p197_p3), %vm287_vm0, %v1156_v24  ;;  %1100 = vset.pattern.permute.xlu0 (!%p197_p3), %v1157_v31  ;;  %654 = vmatprep.mubr.bf16.mxu1 (!%p197_p3), %v1157_v31  ;;  %v1158_v32 = vmov (!%p197_p3), 0.0   ;;  %vm597_vm2 = vcmask (!%p197_p3), 1043456  }
   0x8   : > { %1101 = vset.pattern.permute.xlu1 (!%p197_p3), %v1157_v31  ;;  %289 = vst.msk [vmem:[#allocation3] sm:$0xff] (!%p197_p3), %vm287_vm0, %v1158_v32 }
   0xe   : > { %s1257_s12 = smov (!%p246_p4, %s1146_s12), 1  ;;  %v523_v33 = vld [vmem:[#allocation2] sm:$0xff] }
   0xf   : > { %s1197_s16 = sshll.u32 %s1257_s12, 5  ;;  %v540_v61 = vld [vmem:[#allocation3] sm:$0xff] }
  0x10   : > { %s263_s19 = scalar_lea.vmem %s1249_s1, %s1197_s16  ;;  %s1207_s22 = scalar_lea.vmem %s1248_s0, %s1197_s16 }
  0x11   : > { %v302_v0 = vld [vmem:[%s263_s19] sm:$0xff]  ;;  %v303_v1 = vld [vmem:[%s263_s19 + $0x8] sm:$0xff]  ;;  %v304_v8 = vld [vmem:[%s263_s19 + $0x10] sm:$0xff]  ;;  %s272_s25 = scalar_lea.vmem %s1250_s2, %s1197_s16  ;;  %s281_s28 = scalar_lea.vmem %s1251_s3, %s1197_s16 }
  0x12   : > { %v1024_v2 = vcombine.high %v302_v0, %v302_v0  ;;  %v1023_v3 = vcombine.low %v302_v0, %v302_v0  ;;  %v298_v4 = vld [vmem:[%s1207_s22] sm:$0xff]  ;;  %v1026_v5 = vcombine.high %v303_v1, %v303_v1  ;;  %v299_v7 = vld [vmem:[%s1207_s22 + $0x8] sm:$0xff]  ;;  %v1025_v10 = vcombine.low %v303_v1, %v303_v1  ;;  %v300_v13 = vld [vmem:[%s1207_s22 + $0x10] sm:$0xff] }
  0x13   : > { %v1016_v6 = vcombine.high %v298_v4, %v298_v4  ;;  %v1015_v9 = vcombine.low %v298_v4, %v298_v4  ;;  %v1018_v11 = vcombine.high %v299_v7, %v299_v7  ;;  %v1028_v12 = vcombine.high %v304_v8, %v304_v8  ;;  %v305_v14 = vld [vmem:[%s263_s19 + $0x18] sm:$0xff]  ;;  %v570_v37 = vld [vmem:[%s272_s25] sm:$0xff]  ;;  %v571_v41 = vld [vmem:[%s272_s25 + $0x8] sm:$0xff] }
  0x14   : > { %362 = vmatprep.subr.bf16.mxu0 %v1024_v2  ;;  %v1017_v15 = vcombine.low %v299_v7, %v299_v7  ;;  %v1027_v16 = vcombine.low %v304_v8, %v304_v8  ;;  %v1020_v17 = vcombine.high %v300_v13, %v300_v13  ;;  %v1030_v18 = vcombine.high %v305_v14, %v305_v14  ;;  %v301_v19 = vld [vmem:[%s1207_s22 + $0x18] sm:$0xff]  ;;  %v572_v47 = vld [vmem:[%s272_s25 + $0x10] sm:$0xff] }
  0x15   : > { %363 = vmatpush1.bf16.xpose.msra.mxu0 %v1023_v3  ;;  %394 = vmatprep.mubr.bf16.mxu0 %v1016_v6  ;;  %v1019_v20 = vcombine.low %v300_v13, %v300_v13  ;;  %v1029_v21 = vcombine.low %v305_v14, %v305_v14  ;;  %v1022_v22 = vcombine.high %v301_v19, %v301_v19  ;;  %v573_v55 = vld [vmem:[%s272_s25 + $0x18] sm:$0xff] }
  0x16   : > { %402 = vmatprep.subr.bf16.mxu0 %v1026_v5  ;;  %v1021_v23 = vcombine.low %v301_v19, %v301_v19  ;;  %v1032_v38 = vcombine.high %v570_v37, %v570_v37  ;;  %v1031_v39 = vcombine.low %v570_v37, %v570_v37  ;;  %v1034_v42 = vcombine.high %v571_v41, %v571_v41 }
  0x17   : > { %v1033_v46 = vcombine.low %v571_v41, %v571_v41  ;;  %v1036_v52 = vcombine.high %v572_v47, %v572_v47  ;;  %v1035_v54 = vcombine.low %v572_v47, %v572_v47  ;;  %v1038_v57 = vcombine.high %v573_v55, %v573_v55 }
  0x18   : > { %1039 = vmatprep.subr.msk.bf16.mxu1 %vm597_vm2, %v1032_v38  ;;  %v599_v40 = vsel %vm597_vm2, %v1031_v39, 0  ;;  %v1037_v58 = vcombine.low %v573_v55, %v573_v55 }
  0x19   : > { %623 = vmatpush1.bf16.msra.mxu1 %v599_v40  ;;  %v605_v51 = vsel %vm597_vm2, %v1033_v46, 0  ;;  %v611_v56 = vsel %vm597_vm2, %v1035_v54, 0 }
  0x1a   : > { %1041 = vmatprep.subr.msk.bf16.mxu1 %vm597_vm2, %v1034_v42  ;;  %v617_v59 = vsel %vm597_vm2, %v1037_v58, 0 }
  0x1c   : > { %395 = vmatmul.mubr.bf16.vlgmr.msra.gmra.mrb[0].mxu0 %v1015_v9 }
  0x1d   : > { %403 = vmatpush1.bf16.xpose.msra.mxu0 %v1025_v10  ;;  %434 = vmatprep.mubr.bf16.mxu0 %v1018_v11 }
  0x1e   : > { %442 = vmatprep.subr.bf16.mxu0 %v1028_v12 }
  0x28   : > { %435 = vmatmul.mubr.bf16.vlgmr.msra.gmra.mrb[0].mxu0 %v1017_v15 }
  0x29   : > { %443 = vmatpush1.bf16.xpose.msra.mxu0 %v1027_v16  ;;  %474 = vmatprep.mubr.bf16.mxu0 %v1020_v17 }
  0x2a   : > { %482 = vmatprep.subr.bf16.mxu0 %v1030_v18 }
  0x34   : > { %475 = vmatmul.mubr.bf16.vlgmr.msra.gmra.mrb[0].mxu0 %v1019_v20 }
  0x35   : > { %483 = vmatpush1.bf16.xpose.msra.mxu0 %v1029_v21  ;;  %514 = vmatprep.mubr.bf16.mxu0 %v1022_v22 }
  0x40   : > { %515 = vmatmul.mubr.bf16.vlgmr.msra.gmra.mrb[0].mxu0 %v1021_v23 }
 0x113   : > { %v516_v25 = vpop.f32.mrb[0].mxu0 }
 0x114   : > { %v522_v26 = vmul.f32 0.03125, %v516_v25  ;;  %v518_v27 = vpop.f32.mrb[1].mxu0 }
 0x115   : > { %v519_v28 = vpop.f32.mrb[2].mxu0 }
 0x116   : > { %v520_v29 = vpop.f32.mrb[3].mxu0  ;;  %v525_v30 = vsel %vm524_vm1, %v522_v26, -inf }
 0x117   : > { %526 = vmax.xlane.f32.xlu0 %v525_v30 }
 0x1a4   : > { %v527_v34 = vpop.xlane.xlu0 %526 }
 0x1a5   : > { %v528_v35 = vmax.f32 %v523_v33, %v527_v34 }
 0x1a7   : > { %v529_v36 = vsub.f32 %v523_v33, %v528_v35  ;;  %802 = vst.msk [vmem:[#allocation2] sm:$0xff] %vm287_vm0, %v528_v35  ;;  %534 = vperm.xlu0 %1100, %v528_v35  }
 0x1a9   : > { %v530_v53 = vmul.f32 1.442695, %v529_v36 }
 0x226   : > { %v535_v43 = vpop.permute.xlu0 %534 }
 0x227   : > { %v537_v44 = vsub.f32 %v522_v26, %v535_v43 }
 0x229   : > { %v538_v45 = vmul.f32 1.442695, %v537_v44 }
 0x22b   : > { %1126 = vpow2.f32 %v538_v45 }
 0x22c   : > { %1128 = vpow2.f32 %v530_v53 }
 0x235   : > { %v1127_v48 = vpop.eup %1126 }
 0x236   : > { %v542_v49 = vsel %vm524_vm1, %v1127_v48, 0.0  ;;  %v569_v50 = vpack.c.bf16 %v1127_v48, %v1127_v48  ;;  %v1129_v60 = vpop.eup %1128 }
 0x237   : > { %543 = vadd.xlane.f32.xlu1 %v542_v49  ;;  %v541_v62 = vmul.f32 %v1129_v60, %v540_v61 }
 0x238   : > { %1040 = vmatmul.mubr.msk.bf16.vlgmr.msra.gmra.mrb[0].mxu1 %vm524_vm1, %v569_v50 }
 0x239   : > { %664 = vmatpush1.bf16.msra.mxu1 %v605_v51  ;;  %695 = vmatprep.mubr.bf16.mxu1 %v1157_v31 }
 0x23a   : > { %1043 = vmatprep.subr.msk.bf16.mxu1 %vm597_vm2, %v1036_v52 }
 0x240   : > { %1042 = vmatmul.mubr.msk.bf16.vlgmr.msra.gmra.mrb[4].mxu1 %vm524_vm1, %v569_v50 }
 0x241   : > { %705 = vmatpush1.bf16.msra.mxu1 %v611_v56  ;;  %736 = vmatprep.mubr.bf16.mxu1 %v1157_v31 }
 0x242   : > { %1045 = vmatprep.subr.msk.bf16.mxu1 %vm597_vm2, %v1038_v57 }
 0x248   : > { %1044 = vmatmul.mubr.msk.bf16.vlgmr.msra.gmra.mrb[8].mxu1 %vm524_vm1, %v569_v50  ;;  %558 = vperm.xlu1 %1101, %v1129_v60  }
 0x249   : > { %746 = vmatpush1.bf16.msra.mxu1 %v617_v59  ;;  %777 = vmatprep.mubr.bf16.mxu1 %v1157_v31 }
 0x250   : > { %1046 = vmatmul.mubr.msk.bf16.vlgmr.msra.gmra.mrb[12].mxu1 %vm524_vm1, %v569_v50 }
 0x2c4   : > { %v544_v63 = vpop.xlane.xlu1 %543 }
 0x2c5   : > { %v545_v0 = vadd.f32 %v544_v63, %v541_v62 }
 0x2c7   : > { %547 = vst.msk [vmem:[#allocation3] sm:$0xff] %vm287_vm0, %v545_v0 }
 0x2c8   : > { %v559_v19 = vpop.permute.xlu1 %558 }
 0x2c9   : > { %v561_v20 = vmul.f32 0.0, %v559_v19 }
 0x2ce   : > { %v814_v1 = vld [vmem:[#allocation3] sm:$0xff] }
 0x2cf   : > { %1130 = vrcp.f32 %v814_v1 }
 0x2d9   : > { %v1131_v2 = vpop.eup %1130 }
 0x2da   : > { %818 = vperm.xlu1 %1101, %v1131_v2  }
 0x30b   : > { %v656_v3 = vpop.f32.mrb[0].mxu1 }
 0x30c   : > { %v658_v4 = vpop.f32.mrb[1].mxu1  ;;  %v786_v21 = vadd.f32 %v656_v3, %v561_v20 }
 0x30d   : > { %v660_v5 = vpop.f32.mrb[2].mxu1  ;;  %v787_v22 = vadd.f32 %v658_v4, %v561_v20 }
 0x30e   : > { %v661_v6 = vpop.f32.mrb[3].mxu1 }
 0x313   : > { %v697_v7 = vpop.f32.mrb[4].mxu1 }
 0x314   : > { %v699_v8 = vpop.f32.mrb[5].mxu1  ;;  %v788_v23 = vadd.f32 %v697_v7, %v561_v20 }
 0x315   : > { %v701_v9 = vpop.f32.mrb[6].mxu1  ;;  %v789_v24 = vadd.f32 %v699_v8, %v561_v20 }
 0x316   : > { %v702_v10 = vpop.f32.mrb[7].mxu1 }
 0x31b   : > { %v738_v11 = vpop.f32.mrb[8].mxu1 }
 0x31c   : > { %v740_v12 = vpop.f32.mrb[9].mxu1  ;;  %v790_v25 = vadd.f32 %v738_v11, %v561_v20 }
 0x31d   : > { %v742_v13 = vpop.f32.mrb[10].mxu1  ;;  %v791_v26 = vadd.f32 %v740_v12, %v561_v20 }
 0x31e   : > { %v743_v14 = vpop.f32.mrb[11].mxu1 }
 0x323   : > { %v779_v15 = vpop.f32.mrb[12].mxu1 }
 0x324   : > { %v781_v16 = vpop.f32.mrb[13].mxu1  ;;  %v792_v27 = vadd.f32 %v779_v15, %v561_v20 }
 0x325   : > { %v783_v17 = vpop.f32.mrb[14].mxu1  ;;  %v793_v28 = vadd.f32 %v781_v16, %v561_v20 }
 0x326   : > { %v784_v18 = vpop.f32.mrb[15].mxu1 }
 0x359   : > { %v819_v29 = vpop.permute.xlu1 %818 }
 0x35a   : > { %v821_v30 = vmul.f32 %v819_v29, %v786_v21  ;;  %v822_v31 = vmul.f32 %v819_v29, %v787_v22  ;;  %v823_v32 = vmul.f32 %v819_v29, %v788_v23  ;;  %v824_v33 = vmul.f32 %v819_v29, %v789_v24 }
 0x35b   : > { %v825_v34 = vmul.f32 %v819_v29, %v790_v25  ;;  %v826_v35 = vmul.f32 %v819_v29, %v791_v26  ;;  %v827_v36 = vmul.f32 %v819_v29, %v792_v27  ;;  %v828_v37 = vmul.f32 %v819_v29, %v793_v28 }
 0x35c   : > { %v1057_v38 = vpack.c.bf16 %v822_v31, %v821_v30  ;;  %v1058_v39 = vpack.c.bf16 %v824_v33, %v823_v32 }
 0x35d   : > { %v1059_v40 = vpack.c.bf16 %v826_v35, %v825_v34  ;;  %v1060_v41 = vpack.c.bf16 %v828_v37, %v827_v36 }
 0x35e   : > { %861 = vst [vmem:[%s281_s28] sm:$0xff] %v1057_v38  ;;  %862 = vst [vmem:[%s281_s28 + $0x8] sm:$0xff] %v1058_v39 }
 0x35f   : > { %863 = vst [vmem:[%s281_s28 + $0x10] sm:$0xff] %v1059_v40  ;;  %864 = vst [vmem:[%s281_s28 + $0x18] sm:$0xff] %v1060_v41 }
 0x360 PF: > { %s13_s14 = sadd.s32 1, %s1154_s14   ;;  %s1252_s12 = smov %s1150_s13 }
 0x361   : > { %p10_p5 = scmp.ge.s32.totalorder %s13_s14, 4   ;;  %s1253_s13 = smov %s1255_s15 }
 0x363   :  { %12 = sbr.rel (!%p10_p5) target bundleno = 2 (0x2), region = 76 }

// kernel: _lambda_.6
= control target key start
LH: loop header
LB: loop body
LE: loop exit
PB: predicated region body
PF: predicated region fallthrough
CT: control target
= control target key end

     0   :  { %s1033_s12 = smov 0   ;;  %s1035_s13 = smov 0   ;;  %s1132_s0 = inlined_call_operand.vmem [shape: bf16[2,32,256], index: 0, kind: input, shape index: {}]   ;;  %s1133_s1 = inlined_call_operand.vmem [shape: bf16[2,32,256], index: 1, kind: input, shape index: {}]   ;;  %s1134_s2 = inlined_call_operand.vmem [shape: bf16[2,32,256], index: 2, kind: input, shape index: {}]   ;;  %s1135_s3 = inlined_call_operand.vmem [shape: bf16[2,32,256], index: 3, kind: output, shape index: {}]  }
   0x1   :  { %s1037_s14 = smov 0  }
   0x2 LB: > { %s32_s15 = sadd.s32 1, %s1004_s13  ;;  %p878_p0 = scmp.ge.s32.totalorder %s1008_s14, 1  ;;  %s1008_s14 = sphi %s1037_s14, %s13_s14   ;;  %s1004_s13 = sphi %s1035_s13, %s1137_s13   ;;  %s1000_s12 = sphi %s1033_s12, %s1136_s12  }
   0x3   : > { %p34_p1 = scmp.ge.s32.totalorder %s32_s15, 2  ;;  %p202_p2 = scmp.lt.s32.totalorder %s1008_s14, 3 }
   0x5   : > { %s1139_s15 = smov (%p34_p1, %s32_s15), 0  ;;  %p203_p3 = pnand %p878_p0, %p202_p2 }
   0x6   : > { %p257_p4 = scmp.lt.s32.totalorder (!%p203_p3), %s1000_s12, 1  ;;  %vm305_vm0 = vcmask (!%p203_p3), 7168   ;;  %v1010_v8 = vmov (!%p203_p3), -inf   ;;  %vm427_vm1 = vcmask (!%p203_p3), 261120   ;;  %v1011_v25 = vmov (!%p203_p3), 0  }
   0x7   : > { %206 = sbr.rel (%p203_p3) target bundleno = 845 (0x34d), region = 32  ;;  %306 = vst.msk [vmem:[#allocation2] sm:$0xff] (!%p203_p3), %vm305_vm0, %v1010_v8  ;;  %307 = vst.msk [vmem:[#allocation2 + $0x8] sm:$0xff] (!%p203_p3), %vm305_vm0, %v1010_v8  ;;  %942 = vset.pattern.permute.xlu0 (!%p203_p3), %v1011_v25  ;;  %943 = vset.pattern.permute.xlu1 (!%p203_p3), %v1011_v25  ;;  %v1012_v26 = vmov (!%p203_p3), 0.0  }
   0x8   : > { %308 = vst.msk [vmem:[#allocation2 + $0x10] sm:$0xff] (!%p203_p3), %vm305_vm0, %v1010_v8  ;;  %309 = vst.msk [vmem:[#allocation2 + $0x18] sm:$0xff] (!%p203_p3), %vm305_vm0, %v1010_v8  ;;  %617 = vmatprep.mubr.bf16.mxu1 (!%p203_p3), %v1011_v25 }
   0x9   : > { %310 = vst.msk [vmem:[#allocation3] sm:$0xff] (!%p203_p3), %vm305_vm0, %v1012_v26  ;;  %311 = vst.msk [vmem:[#allocation3 + $0x8] sm:$0xff] (!%p203_p3), %vm305_vm0, %v1012_v26 }
   0xa   : > { %312 = vst.msk [vmem:[#allocation3 + $0x10] sm:$0xff] (!%p203_p3), %vm305_vm0, %v1012_v26  ;;  %313 = vst.msk [vmem:[#allocation3 + $0x18] sm:$0xff] (!%p203_p3), %vm305_vm0, %v1012_v26 }
   0xe   : > { %s1141_s12 = smov (!%p257_p4, %s1000_s12), 1  ;;  %v1085_v27 = vld [vmem:[#allocation2] sm:$0xff]  ;;  %v424_v30 = vld [vmem:[#allocation2 + $0x8] sm:$0xff] }
   0xf   : > { %s1051_s16 = sshll.u32 %s1141_s12, 5  ;;  %v425_v34 = vld [vmem:[#allocation2 + $0x10] sm:$0xff]  ;;  %v426_v38 = vld [vmem:[#allocation2 + $0x18] sm:$0xff] }
  0x10   : > { %s276_s19 = scalar_lea.vmem %s1133_s1, %s1051_s16  ;;  %s265_s22 = scalar_lea.vmem %s1132_s0, %s1051_s16 }
  0x11   : > { %v944_v0 = vld [vmem:[%s276_s19 + $0x4] ss:$8 sps:$4 sm:$0xff]   ;;  %v946_v1 = vld [vmem:[%s276_s19] ss:$8 sps:$4 sm:$0xff]   ;;  %v947_v2 = vld [vmem:[%s276_s19 + $0x14] ss:$8 sps:$4 sm:$0xff]   ;;  %s287_s25 = scalar_lea.vmem %s1134_s2, %s1051_s16  ;;  %s298_s28 = scalar_lea.vmem %s1135_s3, %s1051_s16 }
  0x12   : > { %370 = vmatprep.subr.bf16.mxu0 %v944_v0  ;;  %v952_v3 = vld [vmem:[%s265_s22 + $0x4] ss:$8 sps:$4 sm:$0xff]   ;;  %v949_v4 = vld [vmem:[%s276_s19 + $0x10] ss:$8 sps:$4 sm:$0xff]   ;;  %v950_v5 = vld [vmem:[%s265_s22] ss:$8 sps:$4 sm:$0xff]  }
  0x13   : > { %371 = vmatpush1.bf16.xpose.msra.mxu0 %v946_v1  ;;  %402 = vmatprep.mubr.bf16.mxu0 %v952_v3  ;;  %v953_v6 = vld [vmem:[%s265_s22 + $0x14] ss:$8 sps:$4 sm:$0xff]   ;;  %v955_v7 = vld [vmem:[%s265_s22 + $0x10] ss:$8 sps:$4 sm:$0xff]   ;;  %v956_v42 = vld [vmem:[%s287_s25 + $0x4] ss:$8 sps:$4 sm:$0xff]  }
  0x14   : > { %372 = vmatprep.subr.bf16.mxu0 %v947_v2  ;;  %v958_v44 = vld [vmem:[%s287_s25] ss:$8 sps:$4 sm:$0xff]   ;;  %585 = vmatprep.subr.bf16.mxu1 %v956_v42  ;;  %v959_v45 = vld [vmem:[%s287_s25 + $0x14] ss:$8 sps:$4 sm:$0xff]   ;;  %v961_v46 = vld [vmem:[%s287_s25 + $0x10] ss:$8 sps:$4 sm:$0xff]  }
  0x15   : > { %586 = vmatpush1.bf16.msra.mxu1 %v958_v44 }
  0x16   : > { %587 = vmatprep.subr.bf16.mxu1 %v959_v45 }
  0x19   : > { %588 = vmatpush1.bf16.msra.mxu1 %v961_v46 }
  0x1b   : > { %373 = vmatpush1.bf16.xpose.msra.mxu0 %v949_v4 }
  0x22   : > { %403 = vmatmul.mubr.bf16.vlgmr.msra.gmra.mrb[0].mxu0 %v950_v5 }
  0x23   : > { %410 = vmatprep.mubr.bf16.mxu0 %v953_v6 }
  0x2a   : > { %411 = vmatmul.mubr.bf16.gmra.mrb[4].mxu0 %v955_v7 }
  0xf5   : > { %v404_v9 = vpop.f32.mrb[0].mxu0 }
  0xf6   : > { %v1065_v10 = vmul.f32 0.0625, %v404_v9  ;;  %v406_v11 = vpop.f32.mrb[1].mxu0 }
  0xf7   : > { %v407_v12 = vpop.f32.mrb[2].mxu0 }
  0xf8   : > { %v1067_v13 = vmul.f32 0.0625, %v407_v12  ;;  %v409_v14 = vpop.f32.mrb[3].mxu0  ;;  %v428_v15 = vsel %vm427_vm1, %v1065_v10, -inf }
  0xf9   : > { %429 = vmax.xlane.f32.xlu0 %v428_v15 }
  0xfa   : > { %v431_v16 = vsel %vm427_vm1, %v1067_v13, -inf }
  0xfd   : > { %432 = vmax.xlane.f32.xlu0 %v431_v16  ;;  %v412_v17 = vpop.f32.mrb[4].mxu0  ;;  %v489_v16 = vld [vmem:[#allocation3 + $0x8] sm:$0xff] }
  0xfe   : > { %v421_v18 = vmul.f32 0.0625, %v412_v17  ;;  %v414_v19 = vpop.f32.mrb[5].mxu0 }
  0xff   : > { %v415_v20 = vpop.f32.mrb[6].mxu0 }
 0x100   : > { %v1073_v21 = vmul.f32 0.0625, %v415_v20  ;;  %v417_v22 = vpop.f32.mrb[7].mxu0  ;;  %v434_v23 = vsel %vm427_vm1, %v421_v18, -inf  ;;  %v490_v20 = vld [vmem:[#allocation3 + $0x10] sm:$0xff] }
 0x101   : > { %435 = vmax.xlane.f32.xlu1 %v434_v23 }
 0x102   : > { %v437_v24 = vsel %vm427_vm1, %v1073_v21, -inf }
 0x105   : > { %438 = vmax.xlane.f32.xlu1 %v437_v24  ;;  %v491_v24 = vld [vmem:[#allocation3 + $0x18] sm:$0xff] }
 0x186   : > { %v430_v28 = vpop.xlane.xlu0 %429 }
 0x187   : > { %v1088_v29 = vmax.f32 %v1085_v27, %v430_v28 }
 0x189   : > { %v444_v31 = vsub.f32 %v1085_v27, %v1088_v29  ;;  %654 = vst.msk [vmem:[#allocation2] sm:$0xff] %vm305_vm0, %v1088_v29  ;;  %458 = vperm.xlu0 %942, %v1088_v29  }
 0x18a   : > { %v433_v32 = vpop.xlane.xlu0 %432 }
 0x18b   : > { %v441_v33 = vmax.f32 %v424_v30, %v433_v32  ;;  %v448_v6 = vmul.f32 1.442695, %v444_v31 }
 0x18d   : > { %v445_v35 = vsub.f32 %v424_v30, %v441_v33  ;;  %655 = vst.msk [vmem:[#allocation2 + $0x8] sm:$0xff] %vm305_vm0, %v441_v33  ;;  %463 = vperm.xlu1 %943, %v441_v33  }
 0x18e   : > { %v436_v36 = vpop.xlane.xlu1 %435 }
 0x18f   : > { %v442_v37 = vmax.f32 %v425_v34, %v436_v36  ;;  %v450_v3 = vmul.f32 1.442695, %v445_v35 }
 0x191   : > { %v446_v39 = vsub.f32 %v425_v34, %v442_v37  ;;  %656 = vst.msk [vmem:[#allocation2 + $0x10] sm:$0xff] %vm305_vm0, %v442_v37  ;;  %468 = vperm.xlu1 %943, %v442_v37  }
 0x192   : > { %v439_v40 = vpop.xlane.xlu1 %438 }
 0x193   : > { %v443_v41 = vmax.f32 %v426_v38, %v439_v40  ;;  %v452_v7 = vmul.f32 1.442695, %v446_v39 }
 0x195   : > { %v447_v43 = vsub.f32 %v426_v38, %v443_v41  ;;  %657 = vst.msk [vmem:[#allocation2 + $0x18] sm:$0xff] %vm305_vm0, %v443_v41  ;;  %473 = vperm.xlu1 %943, %v443_v41  }
 0x197   : > { %v454_v8 = vmul.f32 1.442695, %v447_v43 }
 0x208   : > { %v459_v47 = vpop.permute.xlu0 %458 }
 0x209   : > { %v476_v48 = vsub.f32 %v1065_v10, %v459_v47 }
 0x20b   : > { %v480_v49 = vmul.f32 1.442695, %v476_v48 }
 0x20c   : > { %v464_v50 = vpop.permute.xlu1 %463 }
 0x20d   : > { %962 = vpow2.f32 %v480_v49  ;;  %v477_v51 = vsub.f32 %v1067_v13, %v464_v50  ;;  %v488_v13 = vld [vmem:[#allocation3] sm:$0xff] }
 0x20f   : > { %v482_v52 = vmul.f32 1.442695, %v477_v51 }
 0x210   : > { %v469_v53 = vpop.permute.xlu1 %468 }
 0x211   : > { %964 = vpow2.f32 %v482_v52  ;;  %v478_v54 = vsub.f32 %v421_v18, %v469_v53 }
 0x213   : > { %v484_v55 = vmul.f32 1.442695, %v478_v54 }
 0x214   : > { %v474_v56 = vpop.permute.xlu1 %473 }
 0x215   : > { %966 = vpow2.f32 %v484_v55  ;;  %v479_v57 = vsub.f32 %v1073_v21, %v474_v56 }
 0x217   : > { %v963_v58 = vpop.eup %962  ;;  %v486_v59 = vmul.f32 1.442695, %v479_v57 }
 0x218   : > { %v496_v60 = vsel %vm427_vm1, %v963_v58, 0.0 }
 0x219   : > { %968 = vpow2.f32 %v486_v59  ;;  %497 = vadd.xlane.f32.xlu1 %v496_v60 }
 0x21a   : > { %970 = vpow2.f32 %v450_v3 }
 0x21b   : > { %v965_v61 = vpop.eup %964  ;;  %972 = vpow2.f32 %v448_v6 }
 0x21c   : > { %v499_v62 = vsel %vm427_vm1, %v965_v61, 0.0  ;;  %v553_v63 = vpack.c.bf16 %v965_v61, %v963_v58  ;;  %974 = vpow2.f32 %v452_v7 }
 0x21d   : > { %500 = vadd.xlane.f32.xlu0 %v499_v62  ;;  %976 = vpow2.f32 %v454_v8 }
 0x21e   : > { %899 = vmatmul.mubr.msk.bf16.vlgmr.msra.gmra.mrb[0].mxu1 %vm427_vm1, %v553_v63 }
 0x21f   : > { %v967_v0 = vpop.eup %966  ;;  %627 = vmatprep.mubr.bf16.mxu1 %v1011_v25 }
 0x220   : > { %v502_v1 = vsel %vm427_vm1, %v967_v0, 0.0 }
 0x221   : > { %503 = vadd.xlane.f32.xlu1 %v502_v1 }
 0x223   : > { %v969_v2 = vpop.eup %968 }
 0x224   : > { %v505_v4 = vsel %vm427_vm1, %v969_v2, 0.0  ;;  %v554_v5 = vpack.c.bf16 %v969_v2, %v967_v0  ;;  %v971_v9 = vpop.eup %970 }
 0x225   : > { %506 = vadd.xlane.f32.xlu1 %v505_v4  ;;  %v973_v10 = vpop.eup %972  ;;  %v493_v18 = vmul.f32 %v971_v9, %v489_v16 }
 0x226   : > { %900 = vmatmul.mubr.msk.bf16.gmra.mrb[4].mxu1 %vm427_vm1, %v554_v5  ;;  %v975_v11 = vpop.eup %974  ;;  %v492_v14 = vmul.f32 %v973_v10, %v488_v13 }
 0x227   : > { %v977_v12 = vpop.eup %976  ;;  %v494_v22 = vmul.f32 %v975_v11, %v490_v20 }
 0x228   : > { %v495_v27 = vmul.f32 %v977_v12, %v491_v24 }
 0x233   : > { %532 = vperm.xlu0 %942, %v971_v9  }
 0x236   : > { %527 = vperm.xlu1 %943, %v973_v10  }
 0x23a   : > { %537 = vperm.xlu1 %943, %v975_v11  }
 0x23e   : > { %542 = vperm.xlu1 %943, %v977_v12  }
 0x2a6   : > { %v498_v15 = vpop.xlane.xlu1 %497 }
 0x2a7   : > { %v508_v17 = vadd.f32 %v498_v15, %v492_v14 }
 0x2a9   : > { %513 = vst.msk [vmem:[#allocation3] sm:$0xff] %vm305_vm0, %v508_v17 }
 0x2aa   : > { %v501_v19 = vpop.xlane.xlu0 %500 }
 0x2ab   : > { %v509_v21 = vadd.f32 %v501_v19, %v493_v18 }
 0x2ad   : > { %514 = vst.msk [vmem:[#allocation3 + $0x8] sm:$0xff] %vm305_vm0, %v509_v21 }
 0x2ae   : > { %v504_v23 = vpop.xlane.xlu1 %503 }
 0x2af   : > { %v510_v25 = vadd.f32 %v504_v23, %v494_v22 }
 0x2b0   : > { %v669_v26 = vld [vmem:[#allocation3] sm:$0xff] }
 0x2b1   : > { %515 = vst.msk [vmem:[#allocation3 + $0x10] sm:$0xff] %vm305_vm0, %v510_v25  ;;  %978 = vrcp.f32 %v669_v26 }
 0x2b2   : > { %v507_v28 = vpop.xlane.xlu1 %506  ;;  %v533_v49 = vpop.permute.xlu0 %532 }
 0x2b3   : > { %v511_v29 = vadd.f32 %v507_v28, %v495_v27  ;;  %v547_v53 = vmul.f32 0.0, %v533_v49 }
 0x2b4   : > { %v670_v30 = vld [vmem:[#allocation3 + $0x8] sm:$0xff] }
 0x2b5   : > { %516 = vst.msk [vmem:[#allocation3 + $0x18] sm:$0xff] %vm305_vm0, %v511_v29  ;;  %980 = vrcp.f32 %v670_v30 }
 0x2b6   : > { %v528_v45 = vpop.permute.xlu1 %527 }
 0x2b7   : > { %v545_v48 = vmul.f32 0.0, %v528_v45 }
 0x2b8   : > { %v671_v31 = vld [vmem:[#allocation3 + $0x10] sm:$0xff] }
 0x2b9   : > { %982 = vrcp.f32 %v671_v31 }
 0x2ba   : > { %v538_v46 = vpop.permute.xlu1 %537 }
 0x2bb   : > { %v979_v32 = vpop.eup %978  ;;  %v549_v60 = vmul.f32 0.0, %v538_v46 }
 0x2bc   : > { %679 = vperm.xlu1 %943, %v979_v32   ;;  %v672_v33 = vld [vmem:[#allocation3 + $0x18] sm:$0xff] }
 0x2bd   : > { %984 = vrcp.f32 %v672_v33 }
 0x2be   : > { %v543_v47 = vpop.permute.xlu1 %542 }
 0x2bf   : > { %v981_v34 = vpop.eup %980  ;;  %v551_v3 = vmul.f32 0.0, %v543_v47 }
 0x2c0   : > { %684 = vperm.xlu0 %942, %v981_v34  }
 0x2c3   : > { %v983_v35 = vpop.eup %982 }
 0x2c4   : > { %689 = vperm.xlu1 %943, %v983_v35  }
 0x2c7   : > { %v985_v36 = vpop.eup %984 }
 0x2c8   : > { %694 = vperm.xlu0 %942, %v985_v36  }
 0x2f1   : > { %v619_v37 = vpop.f32.mrb[0].mxu1 }
 0x2f2   : > { %v621_v38 = vpop.f32.mrb[1].mxu1  ;;  %v638_v50 = vadd.f32 %v619_v37, %v545_v48 }
 0x2f3   : > { %v623_v39 = vpop.f32.mrb[2].mxu1  ;;  %v639_v51 = vadd.f32 %v621_v38, %v545_v48 }
 0x2f4   : > { %v625_v40 = vpop.f32.mrb[3].mxu1  ;;  %v640_v56 = vadd.f32 %v623_v39, %v547_v53 }
 0x2f5   : > { %v641_v57 = vadd.f32 %v625_v40, %v547_v53 }
 0x2f9   : > { %v629_v41 = vpop.f32.mrb[4].mxu1 }
 0x2fa   : > { %v631_v42 = vpop.f32.mrb[5].mxu1  ;;  %v642_v63 = vadd.f32 %v629_v41, %v549_v60 }
 0x2fb   : > { %v633_v43 = vpop.f32.mrb[6].mxu1  ;;  %v643_v0 = vadd.f32 %v631_v42, %v549_v60 }
 0x2fc   : > { %v635_v44 = vpop.f32.mrb[7].mxu1  ;;  %v644_v6 = vadd.f32 %v633_v43, %v551_v3 }
 0x2fd   : > { %v645_v7 = vadd.f32 %v635_v44, %v551_v3 }
 0x33b   : > { %v680_v52 = vpop.permute.xlu1 %679 }
 0x33c   : > { %v697_v54 = vmul.f32 %v680_v52, %v638_v50  ;;  %v698_v55 = vmul.f32 %v680_v52, %v639_v51 }
 0x33e   : > { %v911_v58 = vpack.c.bf16 %v698_v55, %v697_v54 }
 0x33f   : > { %v685_v59 = vpop.permute.xlu0 %684 }
 0x340   : > { %729 = vst [vmem:[%s298_s28] sm:$0xff] %v911_v58  ;;  %v699_v61 = vmul.f32 %v685_v59, %v640_v56  ;;  %v700_v62 = vmul.f32 %v685_v59, %v641_v57 }
 0x342   : > { %v912_v1 = vpack.c.bf16 %v700_v62, %v699_v61 }
 0x343   : > { %v690_v2 = vpop.permute.xlu1 %689 }
 0x344   : > { %730 = vst [vmem:[%s298_s28 + $0x8] sm:$0xff] %v912_v1  ;;  %v701_v4 = vmul.f32 %v690_v2, %v642_v63  ;;  %v702_v5 = vmul.f32 %v690_v2, %v643_v0 }
 0x346   : > { %v913_v8 = vpack.c.bf16 %v702_v5, %v701_v4 }
 0x347   : > { %v695_v9 = vpop.permute.xlu0 %694 }
 0x348   : > { %731 = vst [vmem:[%s298_s28 + $0x10] sm:$0xff] %v913_v8  ;;  %v703_v10 = vmul.f32 %v695_v9, %v644_v6  ;;  %v704_v11 = vmul.f32 %v695_v9, %v645_v7 }
 0x34a   : > { %v914_v12 = vpack.c.bf16 %v704_v11, %v703_v10 }
 0x34c   : > { %732 = vst [vmem:[%s298_s28 + $0x18] sm:$0xff] %v914_v12 }
 0x34d PF: > { %s13_s14 = sadd.s32 1, %s1008_s14   ;;  %s1136_s12 = smov %s1004_s13 }
 0x34e   : > { %p10_p5 = scmp.ge.s32.totalorder %s13_s14, 4   ;;  %s1137_s13 = smov %s1139_s15 }
 0x350   :  { %12 = sbr.rel (!%p10_p5) target bundleno = 2 (0x2), region = 76 }

// kernel: _lambda_.7
= control target key start
LH: loop header
LB: loop body
LE: loop exit
PB: predicated region body
PF: predicated region fallthrough
CT: control target
= control target key end

     0   :  { %s7984_s12 = smov 0   ;;  %s12004_s0 = inlined_call_operand.vmem [shape: bf16[4,18,18,32], index: 0, kind: input, shape index: {}]   ;;  %s12005_s1 = inlined_call_operand.vmem [shape: bf16[288,128], index: 1, kind: input, shape index: {}]   ;;  %s12006_s2 = inlined_call_operand.vmem [shape: f32[1,128], index: 2, kind: input, shape index: {}]   ;;  %s12007_s3 = inlined_call_operand.vmem [shape: f32[4,16,16,128], index: 3, kind: output, shape index: {}]  }
   0x1 LB: > { %s6834_s13 = sadd.s32 4294967295, %s7958_s12   ;;  %p6838_p0 = scmp.ge.s32.totalorder %s7958_s12, 1  ;;  %s7958_s12 = sphi %s7984_s12, %s13_s12  }
   0x2   : > { %p139_p1 = scmp.lt.s32.totalorder %s7958_s12, 3 }
   0x4   : > { %p140_p2 = pnand %p6838_p0, %p139_p1 }
   0x6   : > { %143 = sbr.rel (%p140_p2) target bundleno = 942 (0x3ae), region = 32 }
   0xd   : > { %s6839_s14 = sshll.u32 %s6834_s13, 1  ;;  %v7697_v0 = vld [vmem:[%s12005_s1] sm:$0xff]   ;;  %v7960_v1 = vmov 0   ;;  %v7699_v2 = vld [vmem:[%s12005_s1 + $0x8] sm:$0xff]   ;;  %v7700_v3 = vld [vmem:[%s12005_s1 + $0x10] sm:$0xff]   ;;  %s7961_s25 = smov 64  }
   0xe   : > { %p166_p3 = scmp.lt.s32.totalorder %s6839_s14, 3  ;;  %5942 = vmatprep.subr.bf16.mxu0 %v7960_v1  ;;  %7640 = vmatprep.subr.bf16.mxu1 %v7960_v1  ;;  %v7702_v13 = vld [vmem:[%s12005_s1 + $0x18] sm:$0xff]   ;;  %vm1175_vm0 = vcmask 1042432   ;;  %vm1176_vm1 = vcmask 1046532   ;;  %v7704_v24 = vld [vmem:[%s12005_s1 + $0x20] sm:$0xff]   ;;  %s7962_s30 = smov 96  }
   0xf   : > { %5943 = vmatpush1.bf16.msra.mxu0 %v7697_v0  ;;  %7656 = vmatpush1.bf16.msra.mxu1 %v7697_v0  ;;  %vm8047_vm2 = vmor %vm1175_vm0, %vm1176_vm1  ;;  %vm276_vm3 = vsmask.f32 3328  ;;  %vm277_vm4 = vsmask.f32 7440  ;;  %v7706_v39 = vld [vmem:[%s12005_s1 + $0x28] sm:$0xff]   ;;  %s7963_s6 = smov 32  }
  0x10   : > { %s12290_s14 = smov (!%p166_p3, %s6839_s14), 3  ;;  %5944 = vmatprep.subr.bf16.mxu0 %v7960_v1  ;;  %7641 = vmatprep.subr.bf16.mxu1 %v7960_v1  ;;  %v7707_v63 = vld [vmem:[%s12005_s1 + $0x30] sm:$0xff]   ;;  %vm8136_vm5 = vmor %vm276_vm3, %vm277_vm4  ;;  %vm5180_vm6 = vcmask 261120   ;;  %vm5277_vm7 = vcmask 523264   ;;  %vm5342_vm8 = vcmask 785408  }
  0x11   : > { %s7672_s19 = smul.u32 216, %s12290_s14 }
  0x13   : > { %s8008_s22 = scalar_lea.vmem %s12004_s0, %s7672_s19  ;;  %5945 = vmatpush1.bf16.msra.mxu0 %v7699_v2  ;;  %7657 = vmatpush1.bf16.msra.mxu1 %v7699_v2 }
  0x14   : > { %v7036_v4 = vld [vmem:[%s8008_s22 + $0x18] sm:$0xf]  ;;  %v8015_v5 = vld [vmem:[%s8008_s22 + $0x1c] sm:$0xf]  ;;  %v7084_v6 = vld [vmem:[%s8008_s22 + $0x150] sm:$0xf]  ;;  %5946 = vmatprep.subr.bf16.mxu0 %v7960_v1  ;;  %7642 = vmatprep.subr.bf16.mxu1 %v7960_v1 }
  0x15   : > { %12062 = vst [vmem:[#allocation2_spill] sm:$0xff] %v8015_v5  ;;  %v7388_v7 = vcombine.low %v7036_v4, %v8015_v5  ;;  %v8022_v8 = vld [vmem:[%s8008_s22 + $0x154] sm:$0xf]  ;;  %v2717_v9 = vshrl.u32 %v7036_v4, 16  ;;  %v2720_v10 = vshll.u32 %v7036_v4, 16  ;;  %v2726_v20 = vshll.u32 %v8015_v5, 16 }
  0x16   : > { %12063 = vst [vmem:[#allocation3_spill] sm:$0xff] %v8022_v8  ;;  %v7412_v11 = vcombine.low %v7084_v6, %v8022_v8  ;;  %v8027_v12 = vld [vmem:[%s8008_s22 + $0xc] sm:$0xf]  ;;  %v8035_v14 = vld [vmem:[%s8008_s22 + $0x10] sm:$0xf]  ;;  %v2730_v21 = vshrl.u32 %v8015_v5, 16 }
  0x17   : > { %4860 = vrot.lane.b32.xlu1 %v7388_v7, %s7961_s25  ;;  %5947 = vmatpush1.bf16.msra.mxu0 %v7700_v3  ;;  %v6972_v15 = vld [vmem:[%s8008_s22 + $0xc] sm:$0xe]  ;;  %v2719_v16 = vrot.slane %v2717_v9, 4  ;;  %v2722_v17 = vrot.slane %v2720_v10, 5  ;;  %v7292_v18 = vcombine.low %v8027_v12, %v8035_v14  ;;  %v8042_v19 = vld [vmem:[%s8008_s22 + $0x14] sm:$0x1] }
  0x18   : > { %7658 = vmatpush1.bf16.msra.mxu1 %v7700_v3  ;;  %5948 = vmatprep.subr.bf16.mxu0 %v7960_v1  ;;  %v3293_v22 = vshrl.u32 %v7084_v6, 16  ;;  %v12009_v25 = vrot.slane %v8015_v5, 5  ;;  %v3296_v26 = vshll.u32 %v7084_v6, 16  ;;  %v7004_v27 = vrot.slane %v6972_v15, 9  ;;  %v8058_v29 = vld [vmem:[%s8008_s22 + $0x144] sm:$0xf] }
  0x19   : > { %4908 = vrot.lane.b32.xlu0 %v7412_v11, %s7961_s25  ;;  %7643 = vmatprep.subr.bf16.mxu1 %v7960_v1  ;;  %v2397_v28 = vrot.slane %v8035_v14, 5  ;;  %v3302_v30 = vshll.u32 %v8022_v8, 16  ;;  %v2400_v31 = vrot.slane %v8042_v19, 5  ;;  %v8063_v32 = vld [vmem:[%s8008_s22 + $0x148] sm:$0xf]  ;;  %v2723_v34 = vor.u32 %v2722_v17, %v2719_v16 }
  0x1a   : > { %v1071_v33 = vld [vmem:[%s8008_s22 + $0x138] sm:$0xe]  ;;  %v3306_v35 = vshrl.u32 %v8022_v8, 16  ;;  %v8072_v38 = vld [vmem:[%s8008_s22 + $0x13c] sm:$0xf]  ;;  %v8077_v40 = vrot.slane %v2730_v21, 4  ;;  %v7316_v46 = vcombine.low %v8058_v29, %v8063_v32 }
  0x1b   : > { %5949 = vmatpush1.bf16.msra.mxu0 %v7702_v13  ;;  %4412 = vrot.lane.b32.xlu1 %v7292_v18, %s7962_s30  ;;  %v2398_v36 = vsel %vm8047_vm2, %v7004_v27, %v2397_v28  ;;  %v2399_v37 = vrot.slane %v2397_v28, 4  ;;  %v8079_v41 = vrot.slane %v3293_v22, 4  ;;  %v8082_v42 = vld [vmem:[%s8008_s22 + $0x140] sm:$0x1]  ;;  %v6996_v43 = vld [vmem:[%s8008_s22 + $0x144] sm:$0xe] }
  0x1c   : > { %7659 = vmatpush1.bf16.msra.mxu1 %v7702_v13  ;;  %5950 = vmatprep.subr.bf16.mxu0 %v7960_v1  ;;  %v8085_v44 = vrot.slane %v3296_v26, 5  ;;  %v6868_v47 = vrot.slane %v1071_v33, 9  ;;  %v8092_v48 = vld [vmem:[%s8008_s22 + $0x14c] sm:$0x1]  ;;  %v8097_v49 = vrot.slane %v12009_v25, 4  ;;  %v1348_v51 = vrot.slane %v8072_v38, 5 }
  0x1d   : > { %7644 = vmatprep.subr.bf16.mxu1 %v7960_v1  ;;  %v2401_v45 = vsel %vm8047_vm2, %v2399_v37, %v2400_v31  ;;  %v180_v52 = vld [vmem:[%s8008_s22] sm:$0xf]  ;;  %v181_v53 = vld [vmem:[%s8008_s22 + $0x4] sm:$0xf]  ;;  %v8103_v54 = vrot.slane %v2723_v34, 4  ;;  %v8105_v55 = vrot.slane %v3306_v35, 4 }
  0x1e   : > { %12066 = vst [vmem:[#allocation4_spill] sm:$0xff] %v8097_v49  ;;  %v7356_v50 = vcombine.low %v2398_v36, %v2401_v45  ;;  %v1351_v56 = vrot.slane %v8082_v42, 5  ;;  %v7028_v57 = vrot.slane %v6996_v43, 9  ;;  %v1349_v58 = vsel %vm8047_vm2, %v6868_v47, %v1348_v51  ;;  %v244_v62 = vld [vmem:[%s8008_s22 + $0x8] sm:$0x1]  ;;  %v7709_v27 = vld [vmem:[%s12005_s1 + $0x38] sm:$0xff]  }
  0x1f   : > { %5951 = vmatpush1.bf16.msra.mxu0 %v7704_v24  ;;  %4460 = vrot.lane.b32.xlu1 %v7316_v46, %s7962_s30  ;;  %v1350_v59 = vrot.slane %v1348_v51, 4  ;;  %v2565_v60 = vrot.slane %v8063_v32, 5  ;;  %v2568_v61 = vrot.slane %v8092_v48, 5  ;;  %v3299_v0 = vor.u32 %v8085_v44, %v8079_v41  ;;  %v1047_v6 = vld [vmem:[%s8008_s22] sm:$0xe] }
  0x20   : > { %7660 = vmatpush1.bf16.msra.mxu1 %v7704_v24  ;;  %5952 = vmatprep.subr.bf16.mxu0 %v7960_v1  ;;  %v280_v2 = vshrl.u32 %v180_v52, 16  ;;  %v283_v3 = vshll.u32 %v180_v52, 16  ;;  %v289_v4 = vshll.u32 %v181_v53, 16  ;;  %v293_v11 = vshrl.u32 %v181_v53, 16  ;;  %v228_v18 = vld [vmem:[%s8008_s22 + $0x138] sm:$0xf] }
  0x21   : > { %7645 = vmatprep.subr.bf16.mxu1 %v7960_v1  ;;  %4668 = vrot.lane.b32.xlu0 %v7356_v50, %s7963_s6  ;;  %v1352_v7 = vsel %vm8047_vm2, %v1350_v59, %v1351_v56  ;;  %v2566_v9 = vsel %vm8047_vm2, %v7028_v57, %v2565_v60  ;;  %v2567_v10 = vrot.slane %v2565_v60, 4  ;;  %v299_v24 = vshll.u32 %v244_v62, 16  ;;  %v7710_v47 = vld [vmem:[%s12005_s1 + $0x40] sm:$0xff]   ;;  %v8551_v25 = vld [vmem:[%s8008_s22 + $0x38] sm:$0x1] }
  0x22   : > { %v7284_v13 = vcombine.low %v1349_v58, %v1352_v7  ;;  %v282_v15 = vrot.slane %v280_v2, 4  ;;  %v285_v16 = vrot.slane %v283_v3, 5  ;;  %v291_v17 = vrot.slane %v289_v4, 5  ;;  %v8151_v56 = vld [vmem:[%s8008_s22 + $0x20] sm:$0x1]  ;;  %12085 = vst [vmem:[#allocation21_spill] sm:$0xff] %v8551_v25 }
  0x23   : > { %5953 = vmatpush1.bf16.msra.mxu0 %v7706_v39  ;;  %v2569_v21 = vsel %vm8047_vm2, %v2567_v10, %v2568_v61  ;;  %v295_v22 = vrot.slane %v293_v11, 4  ;;  %v6844_v26 = vrot.slane %v1047_v6, 9  ;;  %v1180_v33 = vrot.slane %v181_v53, 5  ;;  %12069 = vst [vmem:[#allocation5_spill] sm:$0xff] %v8151_v56  ;;  %v8162_v2 = vld [vmem:[%s8008_s22 + $0x158] sm:$0x1] }
  0x24   : > { %7661 = vmatpush1.bf16.msra.mxu1 %v7706_v39  ;;  %5954 = vmatprep.subr.bf16.mxu0 %v7960_v1  ;;  %v7380_v28 = vcombine.low %v2566_v9, %v2569_v21  ;;  %v286_v31 = vor.u32 %v285_v16, %v282_v15  ;;  %v1183_v34 = vrot.slane %v244_v62, 5  ;;  %v301_v37 = vrot.slane %v299_v24, 5  ;;  %12070 = vst [vmem:[#allocation6_spill] sm:$0xff] %v8162_v2 }
  0x25   : > { %7646 = vmatprep.subr.bf16.mxu1 %v7960_v1  ;;  %4268 = vrot.lane.b32.xlu0 %v7284_v13, %s7961_s25  ;;  %v296_v36 = vor.u32 %v295_v22, %v291_v17  ;;  %v856_v39 = vshrl.u32 %v228_v18, 16  ;;  %v859_v41 = vshll.u32 %v228_v18, 16  ;;  %v1181_v44 = vsel %vm8047_vm2, %v6844_v26, %v1180_v33  ;;  %v182_v13 = vld [vmem:[%s8008_s22 + $0xc] sm:$0xf]  ;;  %v8180_v18 = vld [vmem:[%s8008_s22 + $0x10] sm:$0xf] }
  0x26   : > { %4716 = vrot.lane.b32.xlu1 %v7380_v28, %s7963_s6  ;;  %v287_v43 = vrot.slane %v286_v31, 4  ;;  %v1182_v45 = vrot.slane %v1180_v33, 4  ;;  %v865_v46 = vshll.u32 %v8072_v38, 16  ;;  %v869_v53 = vshrl.u32 %v8072_v38, 16  ;;  %v8193_v28 = vld [vmem:[%s8008_s22 + $0x14] sm:$0x1] }
  0x27   : > { %5955 = vmatpush1.bf16.msra.mxu0 %v7707_v63  ;;  %v297_v50 = vrot.slane %v296_v36, 4  ;;  %v858_v51 = vrot.slane %v856_v39, 4  ;;  %v861_v52 = vrot.slane %v859_v41, 5  ;;  %v875_v60 = vshll.u32 %v8082_v42, 16  ;;  %v8199_v36 = vld [vmem:[%s8008_s22 + $0x1c] sm:$0xf] }
  0x28   : > { %7662 = vmatpush1.bf16.msra.mxu1 %v7707_v63  ;;  %5956 = vmatprep.subr.bf16.mxu0 %v7960_v1  ;;  %v292_v57 = vsel %vm8136_vm5, %v287_v43, %v291_v17  ;;  %v1184_v58 = vsel %vm8047_vm2, %v1182_v45, %v1183_v34  ;;  %v867_v59 = vrot.slane %v865_v46, 5  ;;  %v871_v63 = vrot.slane %v869_v53, 4  ;;  %v8208_v45 = vld [vmem:[%s8008_s22 + $0x20] sm:$0x1]  ;;  %v6973_v46 = vld [vmem:[%s8008_s22 + $0x18] sm:$0xe] }
  0x29   : > { %7647 = vmatprep.subr.bf16.mxu1 %v7960_v1  ;;  %v302_v61 = vsel %vm8136_vm5, %v297_v50, %v301_v37  ;;  %v7260_v38 = vcombine.low %v1181_v44, %v1184_v58  ;;  %v862_v62 = vor.u32 %v861_v52, %v858_v51  ;;  %v3300_v3 = vrot.slane %v3299_v0, 4  ;;  %v7712_v0 = vld [vmem:[%s12005_s1 + $0x48] sm:$0xff]   ;;  %v7714_v37 = vld [vmem:[%s12005_s1 + $0x50] sm:$0xff]   ;;  %12071 = vst [vmem:[#allocation7_spill] sm:$0xff] %v8208_v45  ;;  %v8215_v53 = vld [vmem:[%s8008_s22 + $0x24] sm:$0xf] }
  0x2a   : > { %v7228_v4 = vcombine.low %v292_v57, %v302_v61  ;;  %v2728_v42 = vrot.slane %v2726_v20, 5  ;;  %v2736_v6 = vshll.u32 %v8151_v56, 16  ;;  %v872_v9 = vor.u32 %v871_v63, %v867_v59  ;;  %v7000_v56 = vld [vmem:[%s8008_s22 + $0x174] sm:$0xe] }
  0x2b   : > { %5957 = vmatpush1.bf16.msra.mxu0 %v7709_v27  ;;  %4220 = vrot.lane.b32.xlu1 %v7260_v38, %s7961_s25  ;;  %v863_v7 = vrot.slane %v862_v62, 4  ;;  %v877_v10 = vrot.slane %v875_v60, 5  ;;  %v3304_v11 = vrot.slane %v3302_v30, 5  ;;  %v12008_v15 = vrot.slane %v8022_v8, 5  ;;  %v234_v8 = vld [vmem:[%s8008_s22 + $0x15c] sm:$0xf] }
  0x2c   : > { %7663 = vmatpush1.bf16.msra.mxu1 %v7709_v27  ;;  %5958 = vmatprep.subr.bf16.mxu0 %v7960_v1  ;;  %v2733_v20 = vor.u32 %v8077_v40, %v2728_v42  ;;  %v2738_v16 = vrot.slane %v2736_v6, 5  ;;  %v3312_v17 = vshll.u32 %v8162_v2, 16  ;;  %v873_v21 = vrot.slane %v872_v9, 4 }
  0x2d   : > { %7648 = vmatprep.subr.bf16.mxu1 %v7960_v1  ;;  %4060 = vrot.lane.b32.xlu0 %v7228_v4, %s7963_s6  ;;  %v868_v30 = vsel %vm8136_vm5, %v863_v7, %v867_v59  ;;  %v2729_v22 = vsel %vm8136_vm5, %v8103_v54, %v2728_v42  ;;  %v3309_v24 = vor.u32 %v8105_v55, %v3304_v11  ;;  %v304_v31 = vshrl.u32 %v182_v13, 16  ;;  %v7716_v4 = vld [vmem:[%s12005_s1 + $0x58] sm:$0xff]  }
  0x2e   : > { %v2734_v40 = vrot.slane %v2733_v20, 4  ;;  %v3305_v26 = vsel %vm8136_vm5, %v3300_v3, %v3304_v11  ;;  %v3314_v27 = vrot.slane %v3312_v17, 5  ;;  %v878_v33 = vsel %vm8136_vm5, %v873_v21, %v877_v10  ;;  %v8225_v3 = vld [vmem:[%s8008_s22 + $0x28] sm:$0xf]  ;;  %v6997_v20 = vld [vmem:[%s8008_s22 + $0x150] sm:$0xe] }
  0x2f   : > { %5959 = vmatpush1.bf16.msra.mxu0 %v7710_v47  ;;  %v3310_v54 = vrot.slane %v3309_v24, 4  ;;  %v307_v34 = vshll.u32 %v182_v13, 16  ;;  %v313_v55 = vshll.u32 %v8180_v18, 16  ;;  %v7252_v39 = vcombine.low %v868_v30, %v878_v33  ;;  %12072 = vst [vmem:[#allocation8_spill] sm:$0xff] %v8225_v3  ;;  %v8241_v30 = vld [vmem:[%s8008_s22 + $0x154] sm:$0xf] }
  0x30   : > { %7664 = vmatpush1.bf16.msra.mxu1 %v7710_v47  ;;  %5960 = vmatprep.subr.bf16.mxu0 %v7960_v1  ;;  %v2739_v41 = vsel %vm8136_vm5, %v2734_v40, %v2738_v16  ;;  %v306_v43 = vrot.slane %v304_v31, 4  ;;  %v317_v44 = vshrl.u32 %v8180_v18, 16  ;;  %v1513_v57 = vshrl.u32 %v8035_v14, 16  ;;  %v8244_v21 = vld [vmem:[%s8008_s22 + $0x158] sm:$0x1]  ;;  %v7717_v31 = vld [vmem:[%s12005_s1 + $0x60] sm:$0xff]  }
  0x31   : > { %7649 = vmatprep.subr.bf16.mxu1 %v7960_v1  ;;  %v7420_v47 = vcombine.low %v2729_v22, %v2739_v41  ;;  %v3315_v50 = vsel %vm8136_vm5, %v3310_v54, %v3314_v27  ;;  %v309_v51 = vrot.slane %v307_v34, 5  ;;  %v315_v52 = vrot.slane %v313_v55, 5  ;;  %4108 = vrot.lane.b32.xlu0 %v7252_v39, %s7963_s6  ;;  %12073 = vst [vmem:[#allocation9_spill] sm:$0xff] %v8244_v21  ;;  %v1048_v27 = vld [vmem:[%s8008_s22 + $0xc] sm:$0xe] }
  0x32   : > { %v7444_v58 = vcombine.low %v3305_v26, %v3315_v50  ;;  %v319_v59 = vrot.slane %v317_v44, 4  ;;  %v323_v60 = vshll.u32 %v8193_v28, 16  ;;  %v7005_v38 = vrot.slane %v6973_v46, 9  ;;  %v8267_v46 = vld [vmem:[%s8008_s22 + $0x148] sm:$0xf] }
  0x33   : > { %5961 = vmatpush1.bf16.msra.mxu0 %v7712_v0  ;;  %5020 = vrot.lane.b32.xlu1 %v7420_v47, %s7962_s30  ;;  %v310_v61 = vor.u32 %v309_v51, %v306_v43  ;;  %v2404_v62 = vrot.slane %v8199_v36, 5  ;;  %v2407_v63 = vrot.slane %v8208_v45, 5  ;;  %v2741_v7 = vshrl.u32 %v8215_v53, 16  ;;  %v8782_v45 = vld [vmem:[%s8008_s22 + $0x180] sm:$0xf] }
  0x34   : > { %7665 = vmatpush1.bf16.msra.mxu1 %v7712_v0  ;;  %5962 = vmatprep.subr.bf16.mxu0 %v7960_v1  ;;  %v320_v42 = vor.u32 %v319_v59, %v315_v52  ;;  %v325_v6 = vrot.slane %v323_v60, 5  ;;  %v2744_v9 = vshll.u32 %v8215_v53, 16  ;;  %v1500_v10 = vshrl.u32 %v8027_v12, 16 }
  0x35   : > { %7650 = vmatprep.subr.bf16.mxu1 %v7960_v1  ;;  %v311_v11 = vrot.slane %v310_v61, 4  ;;  %v2405_v13 = vsel %vm8047_vm2, %v7005_v38, %v2404_v62  ;;  %v2406_v0 = vrot.slane %v2404_v62, 4  ;;  %5068 = vrot.lane.b32.xlu0 %v7444_v58, %s7962_s30  ;;  %v2754_v17 = vshrl.u32 %v8225_v3, 16  ;;  %v8275_v58 = vld [vmem:[%s8008_s22 + $0x14c] sm:$0x1] }
  0x36   : > { %v321_v16 = vrot.slane %v320_v42, 4  ;;  %v8250_v40 = vrot.slane %v2741_v7, 4  ;;  %v12010_v26 = vrot.slane %v8225_v3, 5  ;;  %v2746_v34 = vrot.slane %v2744_v9, 5  ;;  %v7719_v38 = vld [vmem:[%s12005_s1 + $0x68] sm:$0xff]  }
  0x37   : > { %5963 = vmatpush1.bf16.msra.mxu0 %v7714_v37  ;;  %v316_v22 = vsel %vm8136_vm5, %v311_v11, %v315_v52  ;;  %v2408_v24 = vsel %vm8047_vm2, %v2406_v0, %v2407_v63  ;;  %v7029_v55 = vrot.slane %v6997_v20, 9  ;;  %v7389_v43 = vcombine.low %v8215_v53, %v8225_v3  ;;  %v7101_v9 = vld [vmem:[%s8008_s22 + $0x2c] sm:$0x1] }
  0x38   : > { %7666 = vmatpush1.bf16.msra.mxu1 %v7714_v37  ;;  %5964 = vmatprep.subr.bf16.mxu0 %v7960_v1  ;;  %v326_v33 = vsel %vm8136_vm5, %v321_v16, %v325_v6  ;;  %v7357_v54 = vcombine.low %v2405_v13, %v2408_v24  ;;  %v230_v37 = vld [vmem:[%s8008_s22 + $0x144] sm:$0xf]  ;;  %v3623_v41 = vrot.slane %v12010_v26, 4  ;;  %v2572_v44 = vrot.slane %v8241_v30, 5  ;;  %v8296_v16 = vld [vmem:[%s8008_s22 + $0x15c] sm:$0xf] }
  0x39   : > { %7651 = vmatprep.subr.bf16.mxu1 %v7960_v1  ;;  %v7229_v39 = vcombine.low %v316_v22, %v326_v33  ;;  %v2575_v47 = vrot.slane %v8244_v21, 5  ;;  %v6845_v50 = vrot.slane %v1048_v27, 9  ;;  %v1187_v51 = vrot.slane %v8180_v18, 5  ;;  %v8764_v21 = vld [vmem:[%s8008_s22 + $0x170] sm:$0x1] }
  0x3a   : > { %4670 = vrot.lane.b32.xlu0 %v7357_v54, %s7963_s6  ;;  %v1190_v52 = vrot.slane %v8193_v28, 5  ;;  %v2573_v53 = vsel %vm8047_vm2, %v7029_v55, %v2572_v44  ;;  %v2574_v59 = vrot.slane %v2572_v44, 4  ;;  %v880_v60 = vshrl.u32 %v230_v37, 16 }
  0x3b   : > { %5965 = vmatpush1.bf16.msra.mxu0 %v7716_v4  ;;  %4062 = vrot.lane.b32.xlu1 %v7229_v39, %s7963_s6  ;;  %v883_v61 = vshll.u32 %v230_v37, 16  ;;  %v1188_v18 = vsel %vm8047_vm2, %v6845_v50, %v1187_v51  ;;  %v1189_v28 = vrot.slane %v1187_v51, 4  ;;  %v889_v62 = vshll.u32 %v8267_v46, 16 }
  0x3c   : > { %7667 = vmatpush1.bf16.msra.mxu1 %v7716_v4  ;;  %5966 = vmatprep.subr.bf16.mxu0 %v7960_v1  ;;  %v893_v63 = vshrl.u32 %v8267_v46, 16  ;;  %v2576_v4 = vsel %vm8047_vm2, %v2574_v59, %v2575_v47  ;;  %v882_v42 = vrot.slane %v880_v60, 4  ;;  %v899_v7 = vshll.u32 %v8275_v58, 16  ;;  %v1072_v60 = vld [vmem:[%s8008_s22 + $0x144] sm:$0xe] }
  0x3d   : > { %7652 = vmatprep.subr.bf16.mxu1 %v7960_v1  ;;  %v885_v6 = vrot.slane %v883_v61, 5  ;;  %v7381_v11 = vcombine.low %v2573_v53, %v2576_v4  ;;  %v1191_v13 = vsel %vm8047_vm2, %v1189_v28, %v1190_v52  ;;  %v891_v0 = vrot.slane %v889_v62, 5  ;;  %v8327_v62 = vld [vmem:[%s8008_s22 + $0x160] sm:$0xf] }
  0x3e   : > { %v895_v20 = vrot.slane %v893_v63, 4  ;;  %v7261_v22 = vcombine.low %v1188_v18, %v1191_v13  ;;  %v901_v27 = vrot.slane %v899_v7, 5  ;;  %v2750_v54 = vshll.u32 %v8225_v3, 16  ;;  %12076 = vst [vmem:[#allocation12_spill] sm:$0xff] %v8327_v62  ;;  %v7721_v63 = vld [vmem:[%s12005_s1 + $0x70] sm:$0xff]  }
  0x3f   : > { %5967 = vmatpush1.bf16.msra.mxu0 %v7717_v31  ;;  %4862 = vrot.lane.b32.xlu1 %v7389_v43, %s7961_s25  ;;  %v886_v24 = vor.u32 %v885_v6, %v882_v42  ;;  %v2756_v55 = vrot.slane %v2754_v17, 4  ;;  %v2760_v37 = vshll.u32 %v7101_v9, 16  ;;  %v1503_v39 = vshll.u32 %v8027_v12, 16  ;;  %v1051_v3 = vld [vmem:[%s8008_s22 + $0x30] sm:$0xe] }
  0x40   : > { %7668 = vmatpush1.bf16.msra.mxu1 %v7717_v31  ;;  %5968 = vmatprep.subr.bf16.mxu0 %v7960_v1  ;;  %v2747_v31 = vor.u32 %v2746_v34, %v8250_v40  ;;  %v896_v33 = vor.u32 %v895_v20, %v891_v0  ;;  %v3624_v47 = vrot.slane %v7101_v9, 5  ;;  %v3317_v43 = vshrl.u32 %v8296_v16, 16 }
  0x41   : > { %7653 = vmatprep.subr.bf16.mxu1 %v7960_v1  ;;  %4718 = vrot.lane.b32.xlu0 %v7381_v11, %s7963_s6  ;;  %v887_v44 = vrot.slane %v886_v24, 4  ;;  %v2752_v50 = vrot.slane %v2750_v54, 5  ;;  %v3320_v51 = vshll.u32 %v8296_v16, 16  ;;  %v8309_v17 = vrot.slane %v12008_v15, 4  ;;  %v8362_v54 = vld [vmem:[%s8008_s22 + $0x150] sm:$0xf] }
  0x42   : > { %v897_v40 = vrot.slane %v896_v33, 4  ;;  %v2748_v34 = vrot.slane %v2747_v31, 4  ;;  %v8317_v59 = vsel %vm8047_vm2, %v3623_v41, %v3624_v47  ;;  %v8322_v61 = vrot.slane %v1513_v57, 4  ;;  %v8355_v31 = vld [vmem:[%s8008_s22 + $0x164] sm:$0x1] }
  0x43   : > { %5969 = vmatpush1.bf16.msra.mxu0 %v7719_v38  ;;  %12074 = vst [vmem:[#allocation10_spill] sm:$0xff] %v8309_v17  ;;  %4222 = vrot.lane.b32.xlu1 %v7261_v22, %s7961_s25  ;;  %v892_v53 = vsel %vm8136_vm5, %v887_v44, %v891_v0  ;;  %12075 = vst [vmem:[#allocation11_spill] sm:$0xff] %v8317_v59  ;;  %v2757_v18 = vor.u32 %v2756_v55, %v2752_v50  ;;  %v2762_v28 = vrot.slane %v2760_v37, 5  ;;  %v8370_v47 = vld [vmem:[%s8008_s22 + $0x1c] sm:$0xf] }
  0x44   : > { %7669 = vmatpush1.bf16.msra.mxu1 %v7719_v38  ;;  %5970 = vmatprep.subr.bf16.mxu0 %v7960_v1  ;;  %v902_v38 = vsel %vm8136_vm5, %v897_v40, %v901_v27  ;;  %v8334_v41 = vrot.slane %v1500_v10, 4  ;;  %v8336_v4 = vrot.slane %v1503_v39, 5  ;;  %v3319_v57 = vrot.slane %v3317_v43, 4  ;;  %v8352_v27 = vld [vmem:[%s8008_s22 + $0x18] sm:$0xf]  ;;  %12077 = vst [vmem:[#allocation13_spill] sm:$0xff] %v8355_v31 }
  0x45   : > { %7654 = vmatprep.subr.bf16.mxu1 %v7960_v1  ;;  %v7253_v42 = vcombine.low %v892_v53, %v902_v38  ;;  %v2753_v6 = vsel %vm8136_vm5, %v2748_v34, %v2752_v50  ;;  %v2758_v7 = vrot.slane %v2757_v18, 4  ;;  %v3322_v9 = vrot.slane %v3320_v51, 5  ;;  %v8380_v50 = vld [vmem:[%s8008_s22 + $0x20] sm:$0x1]  ;;  %v7724_v51 = vld [vmem:[%s12005_s1 + $0x78] sm:$0xff]  }
  0x46   : > { %v6869_v11 = vrot.slane %v1072_v60, 9  ;;  %v3330_v12 = vshrl.u32 %v8327_v62, 16  ;;  %v7413_v10 = vcombine.low %v8296_v16, %v8327_v62  ;;  %v1355_v13 = vrot.slane %v8267_v46, 5 }
  0x47   : > { %5971 = vmatpush1.bf16.msra.mxu0 %v7721_v63  ;;  %4110 = vrot.lane.b32.xlu0 %v7253_v42, %s7963_s6  ;;  %v1358_v0 = vrot.slane %v8275_v58, 5  ;;  %v2076_v22 = vshrl.u32 %v8058_v29, 16  ;;  %v2763_v24 = vsel %vm8136_vm5, %v2758_v7, %v2762_v28  ;;  %v2079_v46 = vshll.u32 %v8058_v29, 16  ;;  %v8394_v42 = vld [vmem:[%s8008_s22 + $0x2c] sm:$0x1] }
  0x48   : > { %7670 = vmatpush1.bf16.msra.mxu1 %v7721_v63  ;;  %5972 = vmatprep.subr.bf16.mxu0 %v7960_v1  ;;  %v7421_v58 = vcombine.low %v2753_v6, %v2763_v24  ;;  %v1356_v16 = vsel %vm8047_vm2, %v6869_v11, %v1355_v13  ;;  %v1357_v33 = vrot.slane %v1355_v13, 4  ;;  %v1506_v55 = vor.u32 %v8336_v4, %v8334_v41  ;;  %v6974_v11 = vld [vmem:[%s8008_s22 + $0x24] sm:$0xe] }
  0x49   : > { %7655 = vmatprep.subr.bf16.mxu1 %v7960_v1  ;;  %v3323_v39 = vor.u32 %v3322_v9, %v3319_v57  ;;  %v3326_v44 = vshll.u32 %v8327_v62, 16  ;;  %v184_v1 = vld [vmem:[%s8008_s22 + $0x18] sm:$0xf]  ;;  %v7293_v29 = vcombine.low %v8352_v27, %v8199_v36  ;;  %v3332_v40 = vrot.slane %v3330_v12, 4  ;;  %v8389_v36 = vld [vmem:[%s8008_s22 + $0x28] sm:$0xf] }
  0x4a   : > { %5022 = vrot.lane.b32.xlu1 %v7421_v58, %s7962_s30  ;;  %v1359_v43 = vsel %vm8047_vm2, %v1357_v33, %v1358_v0  ;;  %v3336_v34 = vshll.u32 %v8355_v31, 16  ;;  %v8385_v53 = vrot.slane %v2076_v22, 4  ;;  %v2089_v60 = vshrl.u32 %v8063_v32, 16  ;;  %12078 = vst [vmem:[#allocation14_spill] sm:$0xff] %v8394_v42  ;;  %v8405_v22 = vld [vmem:[%s8008_s22 + $0x30] sm:$0xf] }
  0x4b   : > { %4910 = vrot.lane.b32.xlu0 %v7413_v10, %s7961_s25  ;;  %v7285_v38 = vcombine.low %v1356_v16, %v1359_v43  ;;  %v3324_v18 = vrot.slane %v3323_v39, 4  ;;  %v8391_v28 = vrot.slane %v2079_v46, 5  ;;  %v3328_v63 = vrot.slane %v3326_v44, 5  ;;  %5973 = vmatpush1.bf16.msra.mxu0 %v7724_v51  ;;  %v8716_v62 = vld [vmem:[%s8008_s22 + $0x4c] sm:$0xf] }
  0x4c   : > { %v328_v41 = vshrl.u32 %v184_v1, 16  ;;  %v331_v4 = vshll.u32 %v184_v1, 16  ;;  %7671 = vmatpush1.bf16.msra.mxu1 %v7724_v51  ;;  %v7317_v57 = vcombine.low %v8362_v54, %v8241_v30  ;;  %v337_v6 = vshll.u32 %v8370_v47, 16  ;;  %v8411_v1 = vld [vmem:[%s8008_s22 + $0x34] sm:$0xf]  ;;  %12095 = vst [vmem:[#allocation30_spill] sm:$0xff] %v8716_v62 }
  0x4d   : > { %v341_v7 = vshrl.u32 %v8370_v47, 16  ;;  %v347_v9 = vshll.u32 %v8380_v50, 16  ;;  %v3333_v12 = vor.u32 %v3332_v40, %v3328_v63  ;;  %v3338_v10 = vrot.slane %v3336_v34, 5  ;;  %12079 = vst [vmem:[#allocation15_spill] sm:$0xff] %v8411_v1  ;;  %v8417_v51 = vld [vmem:[%s8008_s22 + $0x160] sm:$0xf] }
  0x4e   : > { %4414 = vrot.lane.b32.xlu1 %v7293_v29, %s7962_s30  ;;  %v330_v13 = vrot.slane %v328_v41, 4  ;;  %v333_v0 = vrot.slane %v331_v4, 5  ;;  %v3329_v30 = vsel %vm8136_vm5, %v3324_v18, %v3328_v63  ;;  %v339_v24 = vrot.slane %v337_v6, 5  ;;  %v8425_v4 = vld [vmem:[%s8008_s22 + $0x164] sm:$0x1] }
  0x4f   : > { %4270 = vrot.lane.b32.xlu0 %v7285_v38, %s7961_s25  ;;  %v343_v46 = vrot.slane %v341_v7, 4  ;;  %v349_v58 = vrot.slane %v347_v9, 5  ;;  %v3334_v16 = vrot.slane %v3333_v12, 4  ;;  %v7006_v39 = vrot.slane %v6974_v11, 9  ;;  %12080 = vst [vmem:[#allocation16_spill] sm:$0xff] %v8425_v4 }
  0x50   : > { %v334_v33 = vor.u32 %v333_v0, %v330_v13  ;;  %v2411_v44 = vrot.slane %v8389_v36, 5  ;;  %v2414_v43 = vrot.slane %v8394_v42, 5  ;;  %v2765_v40 = vshrl.u32 %v8405_v22, 16  ;;  %v6998_v6 = vld [vmem:[%s8008_s22 + $0x15c] sm:$0xe] }
  0x51   : > { %v344_v29 = vor.u32 %v343_v46, %v339_v24  ;;  %v2768_v34 = vshll.u32 %v8405_v22, 16  ;;  %v3339_v38 = vsel %vm8136_vm5, %v3334_v16, %v3338_v10  ;;  %v8428_v7 = vrot.slane %v1506_v55, 4  ;;  %v232_v13 = vld [vmem:[%s8008_s22 + $0x150] sm:$0xf] }
  0x52   : > { %4462 = vrot.lane.b32.xlu1 %v7317_v57, %s7962_s30  ;;  %v335_v18 = vrot.slane %v334_v33, 4  ;;  %v2412_v63 = vsel %vm8047_vm2, %v7006_v39, %v2411_v44  ;;  %v2413_v41 = vrot.slane %v2411_v44, 4  ;;  %v2082_v9 = vor.u32 %v8391_v28, %v8385_v53  ;;  %v1049_v57 = vld [vmem:[%s8008_s22 + $0x18] sm:$0xe] }
  0x53   : > { %v7445_v11 = vcombine.low %v3329_v30, %v3339_v38  ;;  %v345_v12 = vrot.slane %v344_v29, 4  ;;  %v2767_v46 = vrot.slane %v2765_v40, 4  ;;  %v2770_v16 = vrot.slane %v2768_v34, 5  ;;  %v8445_v30 = vld [vmem:[%s8008_s22 + $0x154] sm:$0xf] }
  0x54   : > { %v340_v10 = vsel %vm8136_vm5, %v335_v18, %v339_v24  ;;  %v2415_v0 = vsel %vm8047_vm2, %v2413_v41, %v2414_v43  ;;  %v2778_v53 = vshrl.u32 %v8411_v1, 16  ;;  %v7390_v28 = vcombine.low %v8405_v22, %v8411_v1  ;;  %v8452_v34 = vld [vmem:[%s8008_s22 + $0x158] sm:$0x1] }
  0x55   : > { %5070 = vrot.lane.b32.xlu0 %v7445_v11, %s7962_s30  ;;  %v350_v55 = vsel %vm8136_vm5, %v345_v12, %v349_v58  ;;  %v7358_v33 = vcombine.low %v2412_v63, %v2415_v0  ;;  %v7030_v39 = vrot.slane %v6998_v6, 9  ;;  %v2579_v44 = vrot.slane %v8417_v51, 5  ;;  %v8459_v6 = vld [vmem:[%s8008_s22 + $0x38] sm:$0x1] }
  0x56   : > { %v7230_v24 = vcombine.low %v340_v10, %v350_v55  ;;  %v2582_v29 = vrot.slane %v8425_v4, 5  ;;  %v6846_v43 = vrot.slane %v1049_v57, 9  ;;  %v1194_v40 = vrot.slane %v8370_v47, 5  ;;  %12081 = vst [vmem:[#allocation17_spill] sm:$0xff] %v8459_v6 }
  0x57   : > { %v1197_v58 = vrot.slane %v8380_v50, 5  ;;  %v904_v38 = vshrl.u32 %v232_v13, 16  ;;  %v2580_v22 = vsel %vm8047_vm2, %v7030_v39, %v2579_v44  ;;  %v2581_v18 = vrot.slane %v2579_v44, 4  ;;  %v7088_v44 = vld [vmem:[%s8008_s22 + $0x168] sm:$0xf] }
  0x58   : > { %4064 = vrot.lane.b32.xlu1 %v7230_v24, %s7963_s6  ;;  %v907_v63 = vshll.u32 %v232_v13, 16  ;;  %v913_v41 = vshll.u32 %v8445_v30, 16  ;;  %v1195_v47 = vsel %vm8047_vm2, %v6846_v43, %v1194_v40  ;;  %v1196_v50 = vrot.slane %v1194_v40, 4 }
  0x59   : > { %4672 = vrot.lane.b32.xlu0 %v7358_v33, %s7963_s6  ;;  %v906_v11 = vrot.slane %v904_v38, 4  ;;  %v917_v12 = vshrl.u32 %v8445_v30, 16  ;;  %v2583_v57 = vsel %vm8047_vm2, %v2581_v18, %v2582_v29  ;;  %v923_v13 = vshll.u32 %v8452_v34, 16 }
  0x5a   : > { %v909_v10 = vrot.slane %v907_v63, 5  ;;  %v915_v0 = vrot.slane %v913_v41, 5  ;;  %v7382_v55 = vcombine.low %v2580_v22, %v2583_v57  ;;  %v1198_v24 = vsel %vm8047_vm2, %v1196_v50, %v1197_v58  ;;  %v8483_v50 = vld [vmem:[%s8008_s22 + $0x24] sm:$0xe] }
  0x5b   : > { %v919_v39 = vrot.slane %v917_v12, 4  ;;  %v2771_v33 = vor.u32 %v2770_v16, %v2767_v46  ;;  %v7262_v43 = vcombine.low %v1195_v47, %v1198_v24  ;;  %v925_v38 = vrot.slane %v923_v13, 5  ;;  %12082 = vst [vmem:[#allocation18_spill] sm:$0xff] %v8483_v50  ;;  %v8490_v13 = vld [vmem:[%s8008_s22 + $0x16c] sm:$0xf] }
  0x5c   : > { %4864 = vrot.lane.b32.xlu1 %v7390_v28, %s7961_s25  ;;  %v910_v40 = vor.u32 %v909_v10, %v906_v11  ;;  %v2774_v15 = vshll.u32 %v8411_v1, 16  ;;  %v2780_v63 = vrot.slane %v2778_v53, 4  ;;  %v2784_v22 = vshll.u32 %v8459_v6, 16  ;;  %12083 = vst [vmem:[#allocation19_spill] sm:$0xff] %v8490_v13  ;;  %v7042_v47 = vld [vmem:[%s8008_s22 + $0x3c] sm:$0xf] }
  0x5d   : > { %4720 = vrot.lane.b32.xlu0 %v7382_v55, %s7963_s6  ;;  %v920_v29 = vor.u32 %v919_v39, %v915_v0  ;;  %v2772_v18 = vrot.slane %v2771_v33, 4  ;;  %v8477_v46 = vrot.slane %v2089_v60, 4  ;;  %v3341_v58 = vshrl.u32 %v7088_v44, 16  ;;  %v8901_v6 = vld [vmem:[%s8008_s22 + $0x54] sm:$0xf] }
  0x5e   : > { %v911_v16 = vrot.slane %v910_v40, 4  ;;  %v2776_v28 = vrot.slane %v2774_v15, 5  ;;  %v8479_v41 = vrot.slane %v2082_v9, 4  ;;  %v3344_v12 = vshll.u32 %v7088_v44, 16  ;;  %v1073_v15 = vld [vmem:[%s8008_s22 + $0x150] sm:$0xe] }
  0x5f   : > { %v921_v11 = vrot.slane %v920_v29, 4  ;;  %v2786_v10 = vrot.slane %v2784_v22, 5  ;;  %v3343_v40 = vrot.slane %v3341_v58, 4  ;;  %v3354_v29 = vshrl.u32 %v8490_v13, 16  ;;  %v8509_v58 = vld [vmem:[%s8008_s22 + $0x24] sm:$0xf] }
  0x60   : > { %4224 = vrot.lane.b32.xlu1 %v7262_v43, %s7961_s25  ;;  %v916_v57 = vsel %vm8136_vm5, %v911_v16, %v915_v0  ;;  %v2781_v60 = vor.u32 %v2780_v63, %v2776_v28  ;;  %v2777_v39 = vsel %vm8136_vm5, %v2772_v18, %v2776_v28  ;;  %v3346_v0 = vrot.slane %v3344_v12, 5 }
  0x61   : > { %v926_v24 = vsel %vm8136_vm5, %v921_v11, %v925_v38  ;;  %v6870_v63 = vrot.slane %v1073_v15, 9  ;;  %v1362_v22 = vrot.slane %v8445_v30, 5  ;;  %v1365_v16 = vrot.slane %v8452_v34, 5 }
  0x62   : > { %v7254_v33 = vcombine.low %v916_v57, %v926_v24  ;;  %v2782_v43 = vrot.slane %v2781_v60, 4  ;;  %v1524_v38 = vshrl.u32 %v8352_v27, 16  ;;  %v7414_v28 = vcombine.low %v7088_v44, %v8490_v13  ;;  %v8515_v57 = vld [vmem:[%s8008_s22 + $0x170] sm:$0x1]  ;;  %v8518_v60 = vld [vmem:[%s8008_s22 + $0x15c] sm:$0xf] }
  0x63   : > { %v1527_v11 = vshll.u32 %v8352_v27, 16  ;;  %v1363_v30 = vsel %vm8047_vm2, %v6870_v63, %v1362_v22  ;;  %v1364_v34 = vrot.slane %v1362_v22, 4  ;;  %12084 = vst [vmem:[#allocation20_spill] sm:$0xff] %v8515_v57  ;;  %v3347_v15 = vor.u32 %v3346_v0, %v3343_v40  ;;  %v186_v24 = vld [vmem:[%s8008_s22 + $0x24] sm:$0xf] }
  0x64   : > { %4112 = vrot.lane.b32.xlu0 %v7254_v33, %s7963_s6  ;;  %v2787_v18 = vsel %vm8136_vm5, %v2782_v43, %v2786_v10  ;;  %v7294_v44 = vcombine.low %v8509_v58, %v8389_v36  ;;  %v3350_v10 = vshll.u32 %v8490_v13, 16  ;;  %v8528_v33 = vld [vmem:[%s8008_s22 + $0x28] sm:$0xf]  ;;  %v8530_v43 = vrot.slane %v1524_v38, 4  ;;  %v8536_v22 = vld [vmem:[%s8008_s22 + $0x2c] sm:$0x1] }
  0x65   : > { %v7422_v12 = vcombine.low %v2777_v39, %v2787_v18  ;;  %v1366_v27 = vsel %vm8047_vm2, %v1364_v34, %v1365_v16  ;;  %v3356_v39 = vrot.slane %v3354_v29, 4  ;;  %v2100_v40 = vshrl.u32 %v8362_v54, 16 }
  0x66   : > { %v7286_v0 = vcombine.low %v1363_v30, %v1366_v27  ;;  %v3360_v63 = vshll.u32 %v8515_v57, 16  ;;  %v8538_v36 = vrot.slane %v1527_v11, 5  ;;  %v3348_v16 = vrot.slane %v3347_v15, 4  ;;  %v6975_v30 = vld [vmem:[%s8008_s22 + $0x30] sm:$0xe] }
  0x67   : > { %5024 = vrot.lane.b32.xlu1 %v7422_v12, %s7962_s30  ;;  %v3352_v18 = vrot.slane %v3350_v10, 5  ;;  %v352_v29 = vshrl.u32 %v186_v24, 16  ;;  %v8541_v12 = vld [vmem:[%s8008_s22 + $0x34] sm:$0xf]  ;;  %v355_v34 = vshll.u32 %v186_v24, 16  ;;  %v361_v53 = vshll.u32 %v8528_v33, 16 }
  0x68   : > { %4912 = vrot.lane.b32.xlu0 %v7414_v28, %s7961_s25  ;;  %v365_v28 = vshrl.u32 %v8528_v33, 16  ;;  %v7318_v11 = vcombine.low %v8518_v60, %v8417_v51  ;;  %v3362_v15 = vrot.slane %v3360_v63, 5  ;;  %v371_v55 = vshll.u32 %v8536_v22, 16 }
  0x69   : > { %v3357_v27 = vor.u32 %v3356_v39, %v3352_v18  ;;  %v354_v10 = vrot.slane %v352_v29, 4  ;;  %v357_v9 = vrot.slane %v355_v34, 5  ;;  %v363_v24 = vrot.slane %v361_v53, 5  ;;  %v8561_v34 = vld [vmem:[%s8008_s22 + $0x40] sm:$0xf] }
  0x6a   : > { %v367_v26 = vrot.slane %v365_v28, 4  ;;  %v7007_v39 = vrot.slane %v6975_v30, 9  ;;  %v2418_v63 = vrot.slane %v8541_v12, 5  ;;  %v2421_v53 = vrot.slane %v8551_v25, 5  ;;  %12086 = vst [vmem:[#allocation22_spill] sm:$0xff] %v8561_v34 }
  0x6b   : > { %4416 = vrot.lane.b32.xlu1 %v7294_v44, %s7962_s30  ;;  %v3353_v44 = vsel %vm8136_vm5, %v3348_v16, %v3352_v18  ;;  %v3358_v51 = vrot.slane %v3357_v27, 4  ;;  %v358_v29 = vor.u32 %v357_v9, %v354_v10  ;;  %v2789_v30 = vshrl.u32 %v7042_v47, 16  ;;  %v8569_v9 = vld [vmem:[%s8008_s22 + $0x16c] sm:$0xf] }
  0x6c   : > { %4272 = vrot.lane.b32.xlu0 %v7286_v0, %s7961_s25  ;;  %v368_v37 = vor.u32 %v367_v26, %v363_v24  ;;  %v373_v0 = vrot.slane %v371_v55, 5  ;;  %v2419_v16 = vsel %vm8047_vm2, %v7007_v39, %v2418_v63  ;;  %v2420_v18 = vrot.slane %v2418_v63, 4  ;;  %v8572_v26 = vld [vmem:[%s8008_s22 + $0x170] sm:$0x1]  ;;  %v6999_v55 = vld [vmem:[%s8008_s22 + $0x168] sm:$0xe] }
  0x6d   : > { %v3363_v28 = vsel %vm8136_vm5, %v3358_v51, %v3362_v15  ;;  %12087 = vst [vmem:[#allocation23_spill] sm:$0xff] %v8572_v26  ;;  %v359_v10 = vrot.slane %v358_v29, 4  ;;  %v2792_v20 = vshll.u32 %v7042_v47, 16  ;;  %v8576_v38 = vrot.slane %v2100_v40, 4  ;;  %v8582_v39 = vld [vmem:[%s8008_s22 + $0x160] sm:$0xf] }
  0x6e   : > { %v7446_v27 = vcombine.low %v3353_v44, %v3363_v28  ;;  %v369_v52 = vrot.slane %v368_v37, 4  ;;  %v2422_v15 = vsel %vm8047_vm2, %v2420_v18, %v2421_v53  ;;  %v2791_v51 = vrot.slane %v2789_v30, 4 }
  0x6f   : > { %4464 = vrot.lane.b32.xlu1 %v7318_v11, %s7962_s30  ;;  %v1050_v11 = vld [vmem:[%s8008_s22 + $0x24] sm:$0xe]  ;;  %v364_v63 = vsel %vm8136_vm5, %v359_v10, %v363_v24  ;;  %v7359_v44 = vcombine.low %v2419_v16, %v2422_v15  ;;  %v2802_v40 = vshrl.u32 %v8561_v34, 16  ;;  %v2794_v28 = vrot.slane %v2792_v20, 5 }
  0x70   : > { %5072 = vrot.lane.b32.xlu0 %v7446_v27, %s7962_s30  ;;  %v374_v37 = vsel %vm8136_vm5, %v369_v52, %v373_v0  ;;  %v7391_v53 = vcombine.low %v7042_v47, %v8561_v34  ;;  %v7031_v18 = vrot.slane %v6999_v55, 9  ;;  %v2586_v30 = vrot.slane %v8569_v9, 5  ;;  %v8597_v52 = vld [vmem:[%s8008_s22 + $0x164] sm:$0x1] }
  0x71   : > { %v7231_v29 = vcombine.low %v364_v63, %v374_v37  ;;  %v2589_v17 = vrot.slane %v8572_v26, 5  ;;  %v6847_v2 = vrot.slane %v1050_v11, 9  ;;  %v1201_v27 = vrot.slane %v8528_v33, 5  ;;  %v7096_v26 = vld [vmem:[%s8008_s22 + $0x198] sm:$0xf] }
  0x72   : > { %v1204_v24 = vrot.slane %v8536_v22, 5  ;;  %v928_v0 = vshrl.u32 %v234_v8, 16  ;;  %v931_v16 = vshll.u32 %v234_v8, 16  ;;  %v937_v20 = vshll.u32 %v8582_v39, 16 }
  0x73   : > { %4066 = vrot.lane.b32.xlu1 %v7231_v29, %s7963_s6  ;;  %v2587_v47 = vsel %vm8047_vm2, %v7031_v18, %v2586_v30  ;;  %v2588_v55 = vrot.slane %v2586_v30, 4  ;;  %v1202_v33 = vsel %vm8047_vm2, %v6847_v2, %v1201_v27  ;;  %v1203_v10 = vrot.slane %v1201_v27, 4  ;;  %v8612_v29 = vld [vmem:[%s8008_s22 + $0x44] sm:$0x1]  ;;  %v8615_v30 = vld [vmem:[%s8008_s22 + $0x174] sm:$0xf] }
  0x74   : > { %4674 = vrot.lane.b32.xlu0 %v7359_v44, %s7963_s6  ;;  %v930_v11 = vrot.slane %v928_v0, 4  ;;  %v933_v22 = vrot.slane %v931_v16, 5  ;;  %v939_v15 = vrot.slane %v937_v20, 5  ;;  %v941_v63 = vshrl.u32 %v8582_v39, 16  ;;  %12088 = vst [vmem:[#allocation24_spill] sm:$0xff] %v8612_v29 }
  0x75   : > { %v2590_v8 = vsel %vm8047_vm2, %v2588_v55, %v2589_v17  ;;  %v1205_v37 = vsel %vm8047_vm2, %v1203_v10, %v1204_v24  ;;  %v947_v44 = vshll.u32 %v8597_v52, 16  ;;  %v2795_v18 = vor.u32 %v2794_v28, %v2791_v51 }
  0x76   : > { %v7383_v2 = vcombine.low %v2587_v47, %v2590_v8  ;;  %v7263_v27 = vcombine.low %v1202_v33, %v1205_v37  ;;  %v934_v0 = vor.u32 %v933_v22, %v930_v11  ;;  %v943_v16 = vrot.slane %v941_v63, 4  ;;  %v1074_v37 = vld [vmem:[%s8008_s22 + $0x15c] sm:$0xe] }
  0x77   : > { %4866 = vrot.lane.b32.xlu1 %v7391_v53, %s7961_s25  ;;  %v12089_v20 = vshll.u32 %v8362_v54, 16  ;;  %v949_v17 = vrot.slane %v947_v44, 5  ;;  %v2798_v55 = vshll.u32 %v8561_v34, 16  ;;  %v2804_v24 = vrot.slane %v2802_v40, 4 }
  0x78   : > { %4722 = vrot.lane.b32.xlu0 %v7383_v2, %s7963_s6  ;;  %v935_v10 = vrot.slane %v934_v0, 4  ;;  %v944_v51 = vor.u32 %v943_v16, %v939_v15  ;;  %v2796_v28 = vrot.slane %v2795_v18, 4  ;;  %v2808_v53 = vshll.u32 %v8612_v29, 16  ;;  %v8636_v16 = vld [vmem:[%s8008_s22 + $0x178] sm:$0xf] }
  0x79   : > { %v2105_v59 = vrot.slane %v12089_v20, 5  ;;  %v2800_v33 = vrot.slane %v2798_v55, 5  ;;  %v3365_v11 = vshrl.u32 %v8615_v30, 16  ;;  %v3368_v54 = vshll.u32 %v8615_v30, 16  ;;  %12090 = vst [vmem:[#allocation25_spill] sm:$0xff] %v8636_v16 }
  0x7a   : > { %v1530_v40 = vor.u32 %v8538_v36, %v8530_v43  ;;  %v940_v63 = vsel %vm8136_vm5, %v935_v10, %v939_v15  ;;  %v945_v8 = vrot.slane %v944_v51, 4  ;;  %v1548_v18 = vshrl.u32 %v8509_v58, 16  ;;  %v8992_v29 = vld [vmem:[%s8008_s22 + $0x5c] sm:$0x1] }
  0x7b   : > { %4226 = vrot.lane.b32.xlu1 %v7263_v27, %s7961_s25  ;;  %v2106_v44 = vor.u32 %v2105_v59, %v8576_v38  ;;  %v2805_v2 = vor.u32 %v2804_v24, %v2800_v33  ;;  %v2810_v0 = vrot.slane %v2808_v53, 5  ;;  %v1551_v20 = vshll.u32 %v8509_v58, 16  ;;  %12111 = vst [vmem:[#allocation41_spill] sm:$0xff] %v8992_v29 }
  0x7c   : > { %v950_v43 = vsel %vm8136_vm5, %v945_v8, %v949_v17  ;;  %v2801_v36 = vsel %vm8136_vm5, %v2796_v28, %v2800_v33  ;;  %v3367_v15 = vrot.slane %v3365_v11, 4  ;;  %v3370_v59 = vrot.slane %v3368_v54, 5  ;;  %v8657_v11 = vld [vmem:[%s8008_s22 + $0x30] sm:$0xf]  ;;  %v8660_v54 = vld [vmem:[%s8008_s22 + $0x17c] sm:$0x1] }
  0x7d   : > { %v7255_v27 = vcombine.low %v940_v63, %v950_v43  ;;  %v2806_v55 = vrot.slane %v2805_v2, 4  ;;  %v6871_v38 = vrot.slane %v1074_v37, 9  ;;  %v3378_v10 = vshrl.u32 %v8636_v16, 16  ;;  %12092 = vst [vmem:[#allocation27_spill] sm:$0xff] %v8660_v54  ;;  %v188_v2 = vld [vmem:[%s8008_s22 + $0x30] sm:$0xf] }
  0x7e   : > { %v1369_v51 = vrot.slane %v8582_v39, 5  ;;  %v1372_v58 = vrot.slane %v8597_v52, 5  ;;  %v8647_v17 = vrot.slane %v1530_v40, 4  ;;  %v8649_v53 = vrot.slane %v1548_v18, 4  ;;  %v8677_v43 = vld [vmem:[%s8008_s22 + $0x168] sm:$0xf] }
  0x7f   : > { %4114 = vrot.lane.b32.xlu0 %v7255_v27, %s7963_s6  ;;  %v2811_v28 = vsel %vm8136_vm5, %v2806_v55, %v2810_v0  ;;  %v7415_v33 = vcombine.low %v8615_v30, %v8636_v16  ;;  %v8662_v39 = vrot.slane %v1551_v20, 5  ;;  %v8666_v8 = vrot.slane %v2106_v44, 4  ;;  %v8681_v27 = vld [vmem:[%s8008_s22 + $0x34] sm:$0xf]  ;;  %v8705_v37 = vld [vmem:[%s8008_s22 + $0x48] sm:$0xf] }
  0x80   : > { %12091 = vst [vmem:[#allocation26_spill] sm:$0xff] %v8647_v17  ;;  %v7423_v52 = vcombine.low %v2801_v36, %v2811_v28  ;;  %v1370_v40 = vsel %vm8047_vm2, %v6871_v38, %v1369_v51  ;;  %v1371_v63 = vrot.slane %v1369_v51, 4  ;;  %v3371_v18 = vor.u32 %v3370_v59, %v3367_v15  ;;  %v8686_v38 = vld [vmem:[%s8008_s22 + $0x38] sm:$0x1] }
  0x81   : > { %12093 = vst [vmem:[#allocation28_spill] sm:$0xff] %v8666_v8  ;;  %v3374_v30 = vshll.u32 %v8636_v16, 16  ;;  %v7295_v0 = vcombine.low %v8657_v11, %v8541_v12  ;;  %v3380_v44 = vrot.slane %v3378_v10, 4  ;;  %v3384_v36 = vshll.u32 %v8660_v54, 16 }
  0x82   : > { %5026 = vrot.lane.b32.xlu1 %v7423_v52, %s7962_s30  ;;  %v1373_v20 = vsel %vm8047_vm2, %v1371_v63, %v1372_v58  ;;  %v2124_v15 = vshrl.u32 %v8518_v60, 16  ;;  %v3372_v59 = vrot.slane %v3371_v18, 4  ;;  %v2127_v10 = vshll.u32 %v8518_v60, 16  ;;  %v6976_v52 = vld [vmem:[%s8008_s22 + $0x3c] sm:$0xe] }
  0x83   : > { %4914 = vrot.lane.b32.xlu0 %v7415_v33, %s7961_s25  ;;  %v7287_v55 = vcombine.low %v1370_v40, %v1373_v20  ;;  %v3376_v12 = vrot.slane %v3374_v30, 5  ;;  %v376_v58 = vshrl.u32 %v188_v2, 16  ;;  %v379_v28 = vshll.u32 %v188_v2, 16  ;;  %v8696_v40 = vld [vmem:[%s8008_s22 + $0x40] sm:$0xf] }
  0x84   : > { %v7319_v63 = vcombine.low %v8677_v43, %v8569_v9  ;;  %v3386_v22 = vrot.slane %v3384_v36, 5  ;;  %v385_v33 = vshll.u32 %v8681_v27, 16  ;;  %v8699_v18 = vld [vmem:[%s8008_s22 + $0x44] sm:$0x1]  ;;  %v389_v60 = vshrl.u32 %v8681_v27, 16 }
  0x85   : > { %v3381_v24 = vor.u32 %v3380_v44, %v3376_v12  ;;  %12094 = vst [vmem:[#allocation29_spill] sm:$0xff] %v8699_v18  ;;  %v378_v30 = vrot.slane %v376_v58, 4  ;;  %v381_v20 = vrot.slane %v379_v28, 5  ;;  %v395_v2 = vshll.u32 %v8686_v38, 16 }
  0x86   : > { %4418 = vrot.lane.b32.xlu1 %v7295_v0, %s7962_s30  ;;  %v3377_v44 = vsel %vm8136_vm5, %v3372_v59, %v3376_v12  ;;  %v387_v47 = vrot.slane %v385_v33, 5  ;;  %v7008_v0 = vrot.slane %v6976_v52, 9  ;;  %v8712_v51 = vrot.slane %v2124_v15, 4  ;;  %v8726_v12 = vld [vmem:[%s8008_s22 + $0x178] sm:$0xf] }
  0x87   : > { %4274 = vrot.lane.b32.xlu0 %v7287_v55, %s7961_s25  ;;  %v3382_v36 = vrot.slane %v3381_v24, 4  ;;  %v382_v58 = vor.u32 %v381_v20, %v378_v30  ;;  %v391_v28 = vrot.slane %v389_v60, 4  ;;  %v2425_v31 = vrot.slane %v8696_v40, 5  ;;  %v8730_v60 = vld [vmem:[%s8008_s22 + $0x17c] sm:$0x1] }
  0x88   : > { %v2428_v24 = vrot.slane %v8699_v18, 5  ;;  %v2813_v59 = vshrl.u32 %v8705_v37, 16  ;;  %v2816_v15 = vshll.u32 %v8705_v37, 16  ;;  %v397_v20 = vrot.slane %v395_v2, 5  ;;  %12096 = vst [vmem:[#allocation31_spill] sm:$0xff] %v8730_v60 }
  0x89   : > { %v8707_v9 = vpop.permute.xlu1 %4860  ;;  %v3387_v55 = vsel %vm8136_vm5, %v3382_v36, %v3386_v22  ;;  %v383_v33 = vrot.slane %v382_v58, 4  ;;  %v392_v30 = vor.u32 %v391_v28, %v387_v47  ;;  %v8733_v22 = vrot.slane %v2127_v10, 5  ;;  %v9224_v18 = vld [vmem:[%s8008_s22 + $0x68] sm:$0x1] }
  0x8a   : > { %4466 = vrot.lane.b32.xlu1 %v7319_v63, %s7962_s30  ;;  %v7447_v52 = vcombine.low %v3377_v44, %v3387_v55  ;;  %v2426_v36 = vsel %vm8047_vm2, %v7008_v0, %v2425_v31  ;;  %v2427_v5 = vrot.slane %v2425_v31, 4  ;;  %v2815_v50 = vrot.slane %v2813_v59, 4  ;;  %v236_v59 = vld [vmem:[%s8008_s22 + $0x168] sm:$0xf] }
  0x8b   : > { %v8718_v49 = vpop.permute.xlu0 %4908  ;;  %v388_v63 = vsel %vm8136_vm5, %v383_v33, %v387_v47  ;;  %v393_v44 = vrot.slane %v392_v30, 4  ;;  %v2818_v2 = vrot.slane %v2816_v15, 5  ;;  %v2826_v58 = vshrl.u32 %v8716_v62, 16 }
  0x8c   : > { %5074 = vrot.lane.b32.xlu0 %v7447_v52, %s7962_s30  ;;  %v2429_v10 = vsel %vm8047_vm2, %v2427_v5, %v2428_v24  ;;  %v7392_v0 = vcombine.low %v8705_v37, %v8716_v62  ;;  %v7032_v31 = vrot.slane %v7000_v56, 9  ;;  %v2593_v55 = vrot.slane %v8726_v12, 5  ;;  %v8751_v52 = vld [vmem:[%s8008_s22 + $0x16c] sm:$0xf] }
  0x8d   : > { %v8742_v28 = vpop.permute.xlu1 %4412  ;;  %v398_v47 = vsel %vm8136_vm5, %v393_v44, %v397_v20  ;;  %v7360_v15 = vcombine.low %v2426_v36, %v2429_v10  ;;  %v2596_v33 = vrot.slane %v8730_v60, 5  ;;  %v6848_v30 = vrot.slane %v1051_v3, 9 }
  0x8e   : > { %v7232_v5 = vcombine.low %v388_v63, %v398_v47  ;;  %v2594_v37 = vsel %vm8047_vm2, %v7032_v31, %v2593_v55  ;;  %v2595_v24 = vrot.slane %v2593_v55, 4  ;;  %v1208_v56 = vrot.slane %v8681_v27, 5 }
  0x8f   : > { %v1211_v8 = vrot.slane %v8686_v38, 5  ;;  %v952_v20 = vshrl.u32 %v236_v59, 16  ;;  %v955_v36 = vshll.u32 %v236_v59, 16  ;;  %v961_v3 = vshll.u32 %v8751_v52, 16 }
  0x90   : > { %4676 = vrot.lane.b32.xlu0 %v7360_v15, %s7963_s6  ;;  %4068 = vrot.lane.b32.xlu1 %v7232_v5, %s7963_s6  ;;  %v2597_v63 = vsel %vm8047_vm2, %v2595_v24, %v2596_v33  ;;  %v1209_v27 = vsel %vm8047_vm2, %v6848_v30, %v1208_v56  ;;  %v1210_v44 = vrot.slane %v1208_v56, 4  ;;  %v965_v10 = vshrl.u32 %v8751_v52, 16  ;;  %v8774_v15 = vld [vmem:[%s8008_s22 + $0x50] sm:$0x1] }
  0x91   : > { %v7384_v31 = vcombine.low %v2594_v37, %v2597_v63  ;;  %v954_v38 = vrot.slane %v952_v20, 4  ;;  %v957_v55 = vrot.slane %v955_v36, 5  ;;  %v963_v47 = vrot.slane %v961_v3, 5  ;;  %12097 = vst [vmem:[#allocation32_spill] sm:$0xff] %v8774_v15  ;;  %v8776_v59 = vpop.permute.xlu1 %4460 }
  0x92   : > { %v1212_v5 = vsel %vm8047_vm2, %v1210_v44, %v1211_v8  ;;  %v967_v17 = vrot.slane %v965_v10, 4  ;;  %v971_v33 = vshll.u32 %v8764_v21, 16  ;;  %v2819_v24 = vor.u32 %v2818_v2, %v2815_v50 }
  0x93   : > { %v8756_v42 = vpop.permute.xlu0 %4668  ;;  %v7264_v30 = vcombine.low %v1209_v27, %v1212_v5  ;;  %v958_v37 = vor.u32 %v957_v55, %v954_v38  ;;  %v2822_v56 = vshll.u32 %v8716_v62, 16  ;;  %v2828_v20 = vrot.slane %v2826_v58, 4 }
  0x94   : > { %4724 = vrot.lane.b32.xlu0 %v7384_v31, %s7963_s6  ;;  %4868 = vrot.lane.b32.xlu1 %v7392_v0, %s7961_s25  ;;  %v968_v3 = vor.u32 %v967_v17, %v963_v47  ;;  %v973_v8 = vrot.slane %v971_v33, 5  ;;  %v2820_v63 = vrot.slane %v2819_v24, 4  ;;  %v2832_v50 = vshll.u32 %v8774_v15, 16  ;;  %v8799_v24 = vld [vmem:[%s8008_s22 + $0x184] sm:$0xf] }
  0x95   : > { %v959_v44 = vrot.slane %v958_v37, 4  ;;  %v2824_v10 = vrot.slane %v2822_v56, 5  ;;  %v3389_v27 = vshrl.u32 %v8782_v45, 16  ;;  %v3392_v0 = vshll.u32 %v8782_v45, 16  ;;  %12098 = vst [vmem:[#allocation33_spill] sm:$0xff] %v8799_v24 }
  0x96   : > { %v969_v38 = vrot.slane %v968_v3, 4  ;;  %v2834_v33 = vrot.slane %v2832_v50, 5  ;;  %v1075_v37 = vld [vmem:[%s8008_s22 + $0x168] sm:$0xe]  ;;  %v12099_v2 = vor.u32 %v8662_v39, %v8649_v53  ;;  %v2130_v3 = vor.u32 %v8733_v22, %v8712_v51  ;;  %v240_v15 = vld [vmem:[%s8008_s22 + $0x180] sm:$0xf] }
  0x97   : > { %v8786_v36 = vpop.permute.xlu0 %4268  ;;  %v964_v55 = vsel %vm8136_vm5, %v959_v44, %v963_v47  ;;  %v2829_v5 = vor.u32 %v2828_v20, %v2824_v10  ;;  %v2825_v20 = vsel %vm8136_vm5, %v2820_v63, %v2824_v10  ;;  %v3391_v17 = vrot.slane %v3389_v27, 4  ;;  %v8829_v27 = vld [vmem:[%s8008_s22 + $0x3c] sm:$0xf] }
  0x98   : > { %v8802_v56 = vpop.permute.xlu1 %4716  ;;  %v8807_v31 = vrot.slane %v12099_v2, 4  ;;  %4228 = vrot.lane.b32.xlu1 %v7264_v30, %s7961_s25  ;;  %v974_v47 = vsel %vm8136_vm5, %v969_v38, %v973_v8  ;;  %v3394_v58 = vrot.slane %v3392_v0, 5  ;;  %v3402_v39 = vshrl.u32 %v8799_v24, 16 }
  0x99   : > { %v7256_v50 = vcombine.low %v964_v55, %v974_v47  ;;  %v2830_v44 = vrot.slane %v2829_v5, 4  ;;  %v6872_v2 = vrot.slane %v1075_v37, 9  ;;  %v1376_v51 = vrot.slane %v8751_v52, 5  ;;  %v8865_v5 = vld [vmem:[%s8008_s22 + $0x40] sm:$0xf] }
  0x9a   : > { %12100 = vst [vmem:[#allocation34_spill] sm:$0xff] %v8807_v31  ;;  %v1379_v22 = vrot.slane %v8764_v21, 5  ;;  %v1572_v30 = vshrl.u32 %v8657_v11, 16  ;;  %v1575_v8 = vshll.u32 %v8657_v11, 16  ;;  %v7416_v10 = vcombine.low %v8782_v45, %v8799_v24  ;;  %v8835_v11 = vld [vmem:[%s8008_s22 + $0x188] sm:$0x1] }
  0x9b   : > { %4116 = vrot.lane.b32.xlu0 %v7256_v50, %s7963_s6  ;;  %v2835_v63 = vsel %vm8136_vm5, %v2830_v44, %v2834_v33  ;;  %v2148_v38 = vshrl.u32 %v8677_v43, 16  ;;  %v1377_v21 = vsel %vm8047_vm2, %v6872_v2, %v1376_v51  ;;  %v1378_v0 = vrot.slane %v1376_v51, 4  ;;  %12101 = vst [vmem:[#allocation35_spill] sm:$0xff] %v8835_v11  ;;  %v8849_v50 = vld [vmem:[%s8008_s22 + $0x174] sm:$0xf] }
  0x9c   : > { %v7424_v52 = vcombine.low %v2825_v20, %v2835_v63  ;;  %v8837_v55 = vrot.slane %v2130_v3, 4  ;;  %v3395_v37 = vor.u32 %v3394_v58, %v3391_v17  ;;  %v7296_v47 = vcombine.low %v8829_v27, %v8696_v40  ;;  %v190_v2 = vld [vmem:[%s8008_s22 + $0x3c] sm:$0xf]  ;;  %v8874_v33 = vld [vmem:[%s8008_s22 + $0x44] sm:$0x1] }
  0x9d   : > { %v8841_v45 = vpop.permute.xlu1 %4220  ;;  %v1380_v20 = vsel %vm8047_vm2, %v1378_v0, %v1379_v22  ;;  %v3398_v3 = vshll.u32 %v8799_v24, 16  ;;  %v3404_v44 = vrot.slane %v3402_v39, 4  ;;  %v8853_v51 = vrot.slane %v1572_v30, 4  ;;  %v8913_v31 = vld [vmem:[%s8008_s22 + $0x58] sm:$0xf] }
  0x9e   : > { %12102 = vst [vmem:[#allocation36_spill] sm:$0xff] %v8837_v55  ;;  %5028 = vrot.lane.b32.xlu1 %v7424_v52, %s7962_s30  ;;  %v7288_v58 = vcombine.low %v1377_v21, %v1380_v20  ;;  %v3396_v17 = vrot.slane %v3395_v37, 4  ;;  %v3408_v63 = vshll.u32 %v8835_v11, 16  ;;  %v8859_v52 = vrot.slane %v1575_v8, 5  ;;  %12106 = vst [vmem:[#allocation38_spill] sm:$0xff] %v8913_v31 }
  0x9f   : > { %v8816_v53 = vpop.permute.xlu0 %4060  ;;  %4916 = vrot.lane.b32.xlu0 %v7416_v10, %s7961_s25  ;;  %v8861_v22 = vrot.slane %v2148_v38, 4  ;;  %v2151_v0 = vshll.u32 %v8677_v43, 16  ;;  %v3400_v39 = vrot.slane %v3398_v3, 5  ;;  %v7320_v30 = vcombine.low %v8849_v50, %v8726_v12  ;;  %v6977_v12 = vld [vmem:[%s8008_s22 + $0x48] sm:$0xe] }
  0xa0   : > { %v12103_v10 = vshll.u32 %v8042_v19, 16  ;;  %v12104_v37 = vshll.u32 %v8035_v14, 16  ;;  %v400_v8 = vshrl.u32 %v190_v2, 16  ;;  %v3410_v3 = vrot.slane %v3408_v63, 5 }
  0xa1   : > { %v3401_v43 = vsel %vm8136_vm5, %v3396_v17, %v3400_v39  ;;  %v3405_v38 = vor.u32 %v3404_v44, %v3400_v39  ;;  %v403_v57 = vshll.u32 %v190_v2, 16  ;;  %v413_v2 = vshrl.u32 %v8865_v5, 16  ;;  %v8894_v39 = vld [vmem:[%s8008_s22 + $0x50] sm:$0x1] }
  0xa2   : > { %v1521_v21 = vrot.slane %v12103_v10, 5  ;;  %v1511_v20 = vrot.slane %v12104_v37, 5  ;;  %4420 = vrot.lane.b32.xlu1 %v7296_v47, %s7962_s30  ;;  %v402_v10 = vrot.slane %v400_v8, 4  ;;  %v409_v47 = vshll.u32 %v8865_v5, 16  ;;  %v8887_v37 = vld [vmem:[%s8008_s22 + $0x4c] sm:$0xf] }
  0xa3   : > { %v8857_v40 = vpop.permute.xlu0 %4108  ;;  %4276 = vrot.lane.b32.xlu0 %v7288_v58, %s7961_s25  ;;  %v3406_v44 = vrot.slane %v3405_v38, 4  ;;  %v405_v63 = vrot.slane %v403_v57, 5  ;;  %v419_v58 = vshll.u32 %v8874_v33, 16  ;;  %12105 = vst [vmem:[#allocation37_spill] sm:$0xff] %v8894_v39  ;;  %v7009_v8 = vrot.slane %v6977_v12, 9 }
  0xa4   : > { %v1512_v14 = vsel %vm8136_vm5, %v8428_v7, %v1511_v20  ;;  %v1516_v19 = vor.u32 %v8322_v61, %v1511_v20  ;;  %v8898_v7 = vrot.slane %v2151_v0, 5  ;;  %v411_v20 = vrot.slane %v409_v47, 5 }
  0xa5   : > { %v8889_v17 = vpop.permute.xlu1 %5020  ;;  %v3411_v57 = vsel %vm8136_vm5, %v3406_v44, %v3410_v3  ;;  %v406_v38 = vor.u32 %v405_v63, %v402_v10  ;;  %v415_v1 = vrot.slane %v413_v2, 4  ;;  %v421_v25 = vrot.slane %v419_v58, 5  ;;  %v7001_v44 = vld [vmem:[%s8008_s22 + $0x180] sm:$0xe] }
  0xa6   : > { %v1517_v61 = vrot.slane %v1516_v19, 4  ;;  %4468 = vrot.lane.b32.xlu1 %v7320_v30, %s7962_s30  ;;  %v7448_v55 = vcombine.low %v3401_v43, %v3411_v57  ;;  %v2432_v19 = vrot.slane %v8887_v37, 5  ;;  %v2435_v47 = vrot.slane %v8894_v39, 5  ;;  %v8930_v57 = vld [vmem:[%s8008_s22 + $0x184] sm:$0xf] }
  0xa7   : > { %v8896_v13 = vpop.permute.xlu0 %5068  ;;  %v407_v4 = vrot.slane %v406_v38, 4  ;;  %v416_v30 = vor.u32 %v415_v1, %v411_v20  ;;  %v2837_v3 = vshrl.u32 %v8901_v6, 16  ;;  %v1578_v2 = vor.u32 %v8859_v52, %v8853_v51  ;;  %v1052_v52 = vld [vmem:[%s8008_s22 + $0x3c] sm:$0xe] }
  0xa8   : > { %v1522_v0 = vsel %vm8136_vm5, %v1517_v61, %v1521_v21  ;;  %5076 = vrot.lane.b32.xlu0 %v7448_v55, %s7962_s30  ;;  %v2433_v21 = vsel %vm8047_vm2, %v7009_v8, %v2432_v19  ;;  %v8933_v55 = vld [vmem:[%s8008_s22 + $0x188] sm:$0x1]  ;;  %v2154_v8 = vor.u32 %v8898_v7, %v8861_v22  ;;  %v7033_v1 = vrot.slane %v7001_v44, 9  ;;  %v238_v44 = vld [vmem:[%s8008_s22 + $0x174] sm:$0xf] }
  0xa9   : > { %v8910_v12 = vcombine.low %v1512_v14, %v1522_v0  ;;  %v2434_v14 = vrot.slane %v2432_v19, 4  ;;  %v412_v58 = vsel %vm8136_vm5, %v407_v4, %v411_v20  ;;  %v417_v61 = vrot.slane %v416_v30, 4  ;;  %12107 = vst [vmem:[#allocation39_spill] sm:$0xff] %v8933_v55 }
  0xaa   : > { %v2840_v19 = vshll.u32 %v8901_v6, 16  ;;  %v2839_v30 = vrot.slane %v2837_v3, 4  ;;  %v2600_v43 = vrot.slane %v8930_v57, 5  ;;  %v2603_v22 = vrot.slane %v8933_v55, 5  ;;  %v7811_v55 = vld [vmem:[%s8008_s22 + $0x18] sm:$0xf] }
  0xab   : > { %v2436_v0 = vsel %vm8047_vm2, %v2434_v14, %v2435_v47  ;;  %v422_v4 = vsel %vm8136_vm5, %v417_v61, %v421_v25  ;;  %v12108_v7 = vshll.u32 %v8063_v32, 16  ;;  %v7393_v14 = vcombine.low %v8901_v6, %v8913_v31 }
  0xac   : > { %v8935_v38 = vpop.permute.xlu0 %4670  ;;  %v7361_v20 = vcombine.low %v2433_v21, %v2436_v0  ;;  %v7233_v10 = vcombine.low %v412_v58, %v422_v4  ;;  %v12109_v51 = vshll.u32 %v8092_v48, 16  ;;  %v6849_v21 = vrot.slane %v1052_v52, 9  ;;  %v8965_v0 = vld [vmem:[%s8008_s22 + $0x178] sm:$0xf] }
  0xad   : > { %v8922_v63 = vpop.permute.xlu1 %4062  ;;  %v2087_v47 = vrot.slane %v12108_v7, 5  ;;  %v1215_v3 = vrot.slane %v8865_v5, 5  ;;  %v2601_v58 = vsel %vm8047_vm2, %v7033_v1, %v2600_v43  ;;  %v2602_v32 = vrot.slane %v2600_v43, 4 }
  0xae   : > { %4678 = vrot.lane.b32.xlu0 %v7361_v20, %s7963_s6  ;;  %v2097_v25 = vrot.slane %v12109_v51, 5  ;;  %4070 = vrot.lane.b32.xlu1 %v7233_v10, %s7963_s6  ;;  %v2842_v51 = vrot.slane %v2840_v19, 5  ;;  %v1218_v10 = vrot.slane %v8874_v33, 5  ;;  %v979_v20 = vshll.u32 %v238_v44, 16 }
  0xaf   : > { %v2088_v61 = vsel %vm8136_vm5, %v8479_v41, %v2087_v47  ;;  %v2092_v6 = vor.u32 %v8477_v46, %v2087_v47  ;;  %v1216_v5 = vsel %vm8047_vm2, %v6849_v21, %v1215_v3  ;;  %v1217_v52 = vrot.slane %v1215_v3, 4  ;;  %v8977_v41 = vld [vmem:[%s8008_s22 + $0x17c] sm:$0x1] }
  0xb0   : > { %v2604_v43 = vsel %vm8047_vm2, %v2602_v32, %v2603_v22  ;;  %v976_v46 = vshrl.u32 %v238_v44, 16  ;;  %v985_v47 = vshll.u32 %v8965_v0, 16  ;;  %v989_v21 = vshrl.u32 %v8965_v0, 16 }
  0xb1   : > { %v8967_v48 = vpop.permute.xlu1 %4862  ;;  %v2093_v1 = vrot.slane %v2092_v6, 4  ;;  %v7385_v7 = vcombine.low %v2601_v58, %v2604_v43  ;;  %v1219_v19 = vsel %vm8047_vm2, %v1217_v52, %v1218_v10  ;;  %v981_v32 = vrot.slane %v979_v20, 5  ;;  %v9022_v10 = vld [vmem:[%s8008_s22 + $0x190] sm:$0xf] }
  0xb2   : > { %4870 = vrot.lane.b32.xlu1 %v7393_v14, %s7961_s25  ;;  %v7265_v22 = vcombine.low %v1216_v5, %v1219_v19  ;;  %v978_v3 = vrot.slane %v976_v46, 4  ;;  %v987_v58 = vrot.slane %v985_v47, 5  ;;  %v991_v6 = vrot.slane %v989_v21, 4  ;;  %v7799_v5 = vld [vmem:[%s8008_s22] sm:$0xf]  ;;  %12114 = vst [vmem:[#allocation43_spill] sm:$0xff] %v9022_v10 }
  0xb3   : > { %v8972_v4 = vpop.permute.xlu0 %4718  ;;  %v2098_v33 = vsel %vm8136_vm5, %v2093_v1, %v2097_v25  ;;  %4726 = vrot.lane.b32.xlu0 %v7385_v7, %s7963_s6  ;;  %v995_v52 = vshll.u32 %v8977_v41, 16  ;;  %v8989_v43 = vrot.slane %v1578_v2, 4  ;;  %v2843_v25 = vor.u32 %v2842_v51, %v2839_v30  ;;  %v7800_v46 = vld [vmem:[%s8008_s22 + $0x4] sm:$0xf] }
  0xb4   : > { %v7348_v44 = vcombine.low %v2088_v61, %v2098_v33  ;;  %v982_v14 = vor.u32 %v981_v32, %v978_v3  ;;  %v7196_v20 = vcombine.low %v7799_v5, %v7800_v46  ;;  %v992_v7 = vor.u32 %v991_v6, %v987_v58  ;;  %v7094_v5 = vld [vmem:[%s8008_s22 + $0x18c] sm:$0xf] }
  0xb5   : > { %12110 = vst [vmem:[#allocation40_spill] sm:$0xff] %v8989_v43  ;;  %v8994_v1 = vpop.permute.xlu1 %4222  ;;  %v997_v61 = vrot.slane %v995_v52, 5  ;;  %v9000_v47 = vrot.slane %v2154_v8, 4  ;;  %v2846_v51 = vshll.u32 %v8913_v31, 16  ;;  %v2844_v33 = vrot.slane %v2843_v25, 4 }
  0xb6   : > { %4230 = vrot.lane.b32.xlu1 %v7265_v22, %s7961_s25  ;;  %v983_v30 = vrot.slane %v982_v14, 4  ;;  %v993_v21 = vrot.slane %v992_v7, 4  ;;  %v12113_v3 = vshrl.u32 %v8913_v31, 16  ;;  %v2856_v6 = vshll.u32 %v8992_v29, 16  ;;  %v7801_v7 = vld [vmem:[%s8008_s22 + $0x13c] sm:$0xf] }
  0xb7   : > { %12112 = vst [vmem:[#allocation42_spill] sm:$0xff] %v9000_v47  ;;  %v5441_v52 = vsel %vm5180_vm6, %v8910_v12, %v8756_v42  ;;  %v2848_v14 = vrot.slane %v2846_v51, 5  ;;  %v5183_v25 = vsel %vm5180_vm6, %v7196_v20, %v8816_v53  ;;  %v5513_v42 = vsel %vm5180_vm6, %v7348_v44, %v8802_v56  ;;  %v7807_v43 = vld [vmem:[%s8008_s22 + $0x144] sm:$0xf]  ;;  %v7050_v31 = vld [vmem:[%s8008_s22 + $0x6c] sm:$0xf] }
  0xb8   : > { %v2852_v32 = vrot.slane %v12113_v3, 4  ;;  %v988_v22 = vsel %vm8136_vm5, %v983_v30, %v987_v58  ;;  %v998_v46 = vsel %vm8136_vm5, %v993_v21, %v997_v61  ;;  %v7802_v3 = vld [vmem:[%s8008_s22 + $0x138] sm:$0xf]  ;;  %v2858_v58 = vrot.slane %v2856_v6, 5  ;;  %v1076_v30 = vld [vmem:[%s8008_s22 + $0x174] sm:$0xe] }
  0xb9   : > { %v8998_v19 = vpop.permute.xlu0 %4110  ;;  %v7220_v2 = vcombine.low %v7802_v3, %v7801_v7  ;;  %v7257_v12 = vcombine.low %v988_v22, %v998_v46  ;;  %v5279_v53 = vsel %vm5277_vm7, %v5183_v25, %v8841_v45  ;;  %v2849_v20 = vsel %vm8136_vm5, %v2844_v33, %v2848_v14  ;;  %v9047_v25 = vld [vmem:[%s8008_s22 + $0x48] sm:$0xf] }
  0xba   : > { %v2853_v8 = vor.u32 %v2852_v32, %v2848_v14  ;;  %v3413_v61 = vshrl.u32 %v7094_v5, 16  ;;  %v3416_v21 = vshll.u32 %v7094_v5, 16  ;;  %v7417_v44 = vcombine.low %v7094_v5, %v9022_v10 }
  0xbb   : > { %4118 = vrot.lane.b32.xlu0 %v7257_v12, %s7963_s6  ;;  %v5536_v32 = vsel %vm5277_vm7, %v5441_v52, %v8707_v9  ;;  %v1599_v6 = vshll.u32 %v8829_v27, 16  ;;  %v5255_v45 = vsel %vm5180_vm6, %v7220_v2, %v8857_v40  ;;  %v6873_v22 = vrot.slane %v1076_v30, 9 }
  0xbc   : > { %v9027_v51 = vpop.permute.xlu1 %5022  ;;  %v2854_v56 = vrot.slane %v2853_v8, 4  ;;  %v5600_v33 = vsel %vm5342_vm8, %v5536_v32, %v8889_v17  ;;  %v1383_v8 = vrot.slane %v8965_v0, 5  ;;  %v1386_v5 = vrot.slane %v8977_v41, 5 }
  0xbd   : > { %v9033_v7 = vpop.permute.xlu0 %4910  ;;  %5974 = vmatprep.mubr.bf16.mxu0 %v5600_v33  ;;  %v5344_v9 = vsel %vm5342_vm8, %v5279_v53, %v8742_v28  ;;  %v3415_v40 = vrot.slane %v3413_v61, 4  ;;  %v3418_v2 = vrot.slane %v3416_v21, 5  ;;  %v5584_v17 = vsel %vm5277_vm7, %v5513_v42, %v8718_v49 }
  0xbe   : > { %v2859_v14 = vsel %vm8136_vm5, %v2854_v56, %v2858_v58  ;;  %5975 = vmatmul.mubr.bf16.vlgmr.msra.gmra.mrb[0].mxu0 %v5344_v9  ;;  %v1384_v46 = vsel %vm8047_vm2, %v6873_v22, %v1383_v8  ;;  %v1385_v0 = vrot.slane %v1383_v8, 4  ;;  %v5672_v41 = vsel %vm5342_vm8, %v5584_v17, %v8896_v13  ;;  %v7803_v58 = vld [vmem:[%s8008_s22 + $0x1c] sm:$0xf]  ;;  %v9072_v13 = vld [vmem:[%s8008_s22 + $0x180] sm:$0xf] }
  0xbf   : > { %v7425_v52 = vcombine.low %v2849_v20, %v2859_v14  ;;  %4918 = vrot.lane.b32.xlu0 %v7417_v44, %s7961_s25  ;;  %v5327_v28 = vsel %vm5277_vm7, %v5255_v45, %v8786_v36  ;;  %v3426_v12 = vshrl.u32 %v9022_v10, 16  ;;  %v7297_v49 = vcombine.low %v9047_v25, %v8887_v37  ;;  %6166 = vmatprep.mubr.bf16.mxu1 %v5672_v41  ;;  %v9081_v37 = vld [vmem:[%s8008_s22 + $0x194] sm:$0x1]  ;;  %v9120_v20 = vld [vmem:[%s8008_s22 + $0x50] sm:$0x1] }
  0xc0   : > { %v9062_v3 = vpop.permute.xlu1 %4414  ;;  %v5416_v42 = vsel %vm5342_vm8, %v5327_v28, %v8776_v59  ;;  %v1533_v30 = vshll.u32 %v7803_v58, 16  ;;  %v1387_v61 = vsel %vm8047_vm2, %v1385_v0, %v1386_v5  ;;  %v1537_v21 = vshrl.u32 %v7803_v58, 16  ;;  %12115 = vst [vmem:[#allocation44_spill] sm:$0xff] %v9081_v37  ;;  %v192_v28 = vld [vmem:[%s8008_s22 + $0x48] sm:$0xf] }
  0xc1   : > { %5030 = vrot.lane.b32.xlu1 %v7425_v52, %s7962_s30  ;;  %v9074_v53 = vpop.permute.xlu0 %4270  ;;  %6167 = vmatmul.mubr.bf16.vlgmr.msra.gmra.mrb[0].mxu1 %v5416_v42  ;;  %v2172_v59 = vshrl.u32 %v8849_v50, 16  ;;  %v7289_v44 = vcombine.low %v1384_v46, %v1387_v61  ;;  %v12116_v45 = vshrl.u32 %v8829_v27, 16  ;;  %v3419_v14 = vor.u32 %v3418_v2, %v3415_v40  ;;  %v12117_v46 = vld [vmem:[#allocation7_spill] sm:$0xff]  ;;  %v7804_v58 = vld [vmem:[%s8008_s22 + $0x154] sm:$0xf] }
  0xc2   : > { %v1535_v32 = vrot.slane %v1533_v30, 5  ;;  %v1539_v22 = vrot.slane %v1537_v21, 4  ;;  %v3422_v8 = vshll.u32 %v9022_v10, 16  ;;  %v9090_v5 = vrot.slane %v1599_v6, 5  ;;  %v12119_v21 = vld [vmem:[#allocation26_spill] sm:$0xff] }
  0xc3   : > { %v9087_v33 = vrot.slane %v12116_v45, 4  ;;  %4278 = vrot.lane.b32.xlu0 %v7289_v44, %s7961_s25  ;;  %v7321_v9 = vcombine.low %v9072_v13, %v8930_v57  ;;  %v3428_v52 = vrot.slane %v3426_v12, 4  ;;  %v3432_v27 = vshll.u32 %v9081_v37, 16  ;;  %v9107_v12 = vld [vmem:[%s8008_s22 + $0x4c] sm:$0xf] }
  0xc4   : > { %v1540_v17 = vor.u32 %v1539_v22, %v1535_v32  ;;  %v12118_v0 = vshll.u32 %v12117_v46, 16  ;;  %v3420_v2 = vrot.slane %v3419_v14, 4  ;;  %v3424_v41 = vrot.slane %v3422_v8, 5  ;;  %v9100_v6 = vpop.permute.xlu1 %4462  ;;  %v7107_v10 = vld [vmem:[%s8008_s22 + $0x74] sm:$0x1] }
  0xc5   : > { %4422 = vrot.lane.b32.xlu1 %v7297_v49, %s7962_s30  ;;  %v9102_v42 = vrot.slane %v2172_v59, 4  ;;  %v2175_v49 = vshll.u32 %v8849_v50, 16  ;;  %v2109_v30 = vshll.u32 %v7804_v58, 16  ;;  %v2113_v57 = vshrl.u32 %v7804_v58, 16  ;;  %v7820_v37 = vld [vmem:[%s8008_s22 + $0x160] sm:$0xf] }
  0xc6   : > { %v1545_v40 = vrot.slane %v12118_v0, 5  ;;  %v1536_v44 = vsel %vm8136_vm5, %v12119_v21, %v1535_v32  ;;  %v1541_v45 = vrot.slane %v1540_v17, 4  ;;  %v3429_v22 = vor.u32 %v3428_v52, %v3424_v41 }
  0xc7   : > { %v9109_v61 = vpop.permute.xlu0 %5070  ;;  %v3434_v14 = vrot.slane %v3432_v27, 5  ;;  %v3425_v50 = vsel %vm8136_vm5, %v3420_v2, %v3424_v41  ;;  %v2111_v59 = vrot.slane %v2109_v30, 5  ;;  %v2115_v8 = vrot.slane %v2113_v57, 4  ;;  %v9126_v41 = vld [vmem:[%s8008_s22 + $0x58] sm:$0xf] }
  0xc8   : > { %v424_v46 = vshrl.u32 %v192_v28, 16  ;;  %v1546_v0 = vsel %vm8136_vm5, %v1541_v45, %v1545_v40  ;;  %v3430_v58 = vrot.slane %v3429_v22, 4  ;;  %v427_v32 = vshll.u32 %v192_v28, 16  ;;  %v6978_v45 = vld [vmem:[%s8008_s22 + $0x54] sm:$0xe] }
  0xc9   : > { %4470 = vrot.lane.b32.xlu1 %v7321_v9, %s7962_s30  ;;  %v433_v52 = vshll.u32 %v9107_v12, 16  ;;  %v7325_v27 = vcombine.low %v1536_v44, %v1546_v0  ;;  %v2116_v17 = vor.u32 %v2115_v8, %v2111_v59  ;;  %v12120_v9 = vld [vmem:[#allocation9_spill] sm:$0xff]  ;;  %v437_v28 = vshrl.u32 %v9107_v12, 16  ;;  %v12122_v8 = vld [vmem:[#allocation28_spill] sm:$0xff] }
  0xca   : > { %v12121_v21 = vshll.u32 %v12120_v9, 16  ;;  %v426_v2 = vrot.slane %v424_v46, 4  ;;  %v3435_v40 = vsel %vm8136_vm5, %v3430_v58, %v3434_v14  ;;  %v429_v30 = vrot.slane %v427_v32, 5  ;;  %v9132_v22 = vpop.permute.xlu1 %4064  ;;  %v7805_v58 = vld [vmem:[%s8008_s22 + $0xc] sm:$0xf] }
  0xcb   : > { %v435_v57 = vrot.slane %v433_v52, 5  ;;  %v7449_v44 = vcombine.low %v3425_v50, %v3435_v40  ;;  %v2112_v0 = vsel %vm8136_vm5, %v12122_v8, %v2111_v59  ;;  %v2117_v46 = vrot.slane %v2116_v17, 4  ;;  %v9141_v36 = vpop.permute.xlu0 %4672  ;;  %v7806_v32 = vld [vmem:[%s8008_s22 + $0x10] sm:$0xf]  ;;  %v7048_v8 = vld [vmem:[%s8008_s22 + $0x60] sm:$0xf] }
  0xcc   : > { %v2121_v56 = vrot.slane %v12121_v21, 5  ;;  %v443_v9 = vshll.u32 %v9120_v20, 16  ;;  %v9139_v21 = vld [vmem:[%s8008_s22 + $0x5c] sm:$0x1]  ;;  %v9143_v14 = vrot.slane %v2175_v49, 5  ;;  %v7197_v52 = vcombine.low %v7805_v58, %v7806_v32 }
  0xcd   : > { %v430_v54 = vor.u32 %v429_v30, %v426_v2  ;;  %v439_v16 = vrot.slane %v437_v28, 4  ;;  %5078 = vrot.lane.b32.xlu0 %v7449_v44, %s7962_s30  ;;  %v7010_v17 = vrot.slane %v6978_v45, 9  ;;  %v2439_v40 = vrot.slane %v9126_v41, 5 }
  0xce   : > { %v2122_v50 = vsel %vm8136_vm5, %v2117_v46, %v2121_v56  ;;  %v445_v59 = vrot.slane %v443_v9, 5  ;;  %v2442_v58 = vrot.slane %v9139_v21, 5  ;;  %v9167_v46 = vld [vmem:[%s8008_s22 + $0x190] sm:$0xf]  ;;  %v9169_v9 = vpop.permute.xlu1 %4864  ;;  %v5186_v30 = vsel %vm5180_vm6, %v7197_v52, %v8922_v63 }
  0xcf   : > { %v9152_v62 = vcombine.low %v2112_v0, %v2122_v50  ;;  %v431_v49 = vrot.slane %v430_v54, 4  ;;  %v440_v34 = vor.u32 %v439_v16, %v435_v57  ;;  %v2440_v56 = vsel %vm8047_vm2, %v7010_v17, %v2439_v40  ;;  %v9164_v16 = vld [vmem:[%s8008_s22 + $0x64] sm:$0xf] }
  0xd0   : > { %v2441_v28 = vrot.slane %v2439_v40, 4  ;;  %v2861_v0 = vshrl.u32 %v7048_v8, 16  ;;  %v5444_v50 = vsel %vm5180_vm6, %v7325_v27, %v8935_v38  ;;  %v7002_v40 = vld [vmem:[%s8008_s22 + $0x18c] sm:$0xe]  ;;  %v1053_v27 = vld [vmem:[%s8008_s22 + $0x48] sm:$0xe]  ;;  %v7394_v60 = vcombine.low %v7048_v8, %v9164_v16 }
  0xd1   : > { %v436_v44 = vsel %vm8136_vm5, %v431_v49, %v435_v57  ;;  %v441_v54 = vrot.slane %v440_v34, 4  ;;  %v2864_v57 = vshll.u32 %v7048_v8, 16  ;;  %v9178_v34 = vld [vmem:[%s8008_s22 + $0x194] sm:$0x1]  ;;  %v9181_v49 = vpop.permute.xlu0 %4720  ;;  %v5538_v2 = vsel %vm5277_vm7, %v5444_v50, %v8967_v48  ;;  %v9197_v50 = vld [vmem:[%s8008_s22 + $0x184] sm:$0xf] }
  0xd2   : > { %v2443_v17 = vsel %vm8047_vm2, %v2441_v28, %v2442_v58  ;;  %v2863_v58 = vrot.slane %v2861_v0, 4  ;;  %v2874_v24 = vshrl.u32 %v9164_v16, 16  ;;  %v7034_v63 = vrot.slane %v7002_v40, 9  ;;  %v9205_v0 = vld [vmem:[%s8008_s22 + $0x188] sm:$0x1]  ;;  %v9209_v40 = vpop.permute.xlu1 %4224 }
  0xd3   : > { %v446_v32 = vsel %vm8136_vm5, %v441_v54, %v445_v59  ;;  %v7362_v38 = vcombine.low %v2440_v56, %v2443_v17  ;;  %v2866_v28 = vrot.slane %v2864_v57, 5  ;;  %v2607_v52 = vrot.slane %v9167_v46, 5 }
  0xd4   : > { %v7234_v45 = vcombine.low %v436_v44, %v446_v32  ;;  %v2610_v48 = vrot.slane %v9178_v34, 5  ;;  %v6850_v59 = vrot.slane %v1053_v27, 9  ;;  %v1222_v56 = vrot.slane %v9107_v12, 5 }
  0xd5   : > { %4680 = vrot.lane.b32.xlu0 %v7362_v38, %s7963_s6  ;;  %v1225_v44 = vrot.slane %v9120_v20, 5  ;;  %v5603_v54 = vsel %vm5342_vm8, %v5538_v2, %v9027_v51  ;;  %v2608_v8 = vsel %vm8047_vm2, %v7034_v63, %v2607_v52  ;;  %v2609_v32 = vrot.slane %v2607_v52, 4 }
  0xd6   : > { %4072 = vrot.lane.b32.xlu1 %v7234_v45, %s7963_s6  ;;  %5982 = vmatprep.mubr.bf16.mxu0 %v5603_v54  ;;  %v1000_v17 = vshrl.u32 %v240_v15, 16  ;;  %v1003_v57 = vshll.u32 %v240_v15, 16  ;;  %v1223_v12 = vsel %vm8047_vm2, %v6850_v59, %v1222_v56  ;;  %v1224_v45 = vrot.slane %v1222_v56, 4  ;;  %v9215_v2 = vpop.permute.xlu0 %4112 }
  0xd7   : > { %v1009_v20 = vshll.u32 %v9197_v50, 16  ;;  %v1013_v51 = vshrl.u32 %v9197_v50, 16  ;;  %v2611_v38 = vsel %vm8047_vm2, %v2609_v32, %v2610_v48  ;;  %v1019_v15 = vshll.u32 %v9205_v0, 16 }
  0xd8   : > { %v1002_v27 = vrot.slane %v1000_v17, 4  ;;  %v1005_v63 = vrot.slane %v1003_v57, 5  ;;  %v7386_v52 = vcombine.low %v2608_v8, %v2611_v38  ;;  %v1226_v59 = vsel %vm8047_vm2, %v1224_v45, %v1225_v44  ;;  %v7808_v44 = vld [vmem:[%s8008_s22 + $0x148] sm:$0xf] }
  0xd9   : > { %v1011_v56 = vrot.slane %v1009_v20, 5  ;;  %v1015_v54 = vrot.slane %v1013_v51, 4  ;;  %v5281_v48 = vsel %vm5277_vm7, %v5186_v30, %v8994_v1  ;;  %v7266_v32 = vcombine.low %v1223_v12, %v1226_v59  ;;  %v9236_v30 = vpop.permute.xlu1 %5024 }
  0xda   : > { %4872 = vrot.lane.b32.xlu1 %v7394_v60, %s7961_s25  ;;  %v1006_v17 = vor.u32 %v1005_v63, %v1002_v27  ;;  %v1021_v57 = vrot.slane %v1019_v15, 5  ;;  %4728 = vrot.lane.b32.xlu0 %v7386_v52, %s7963_s6  ;;  %v2867_v60 = vor.u32 %v2866_v28, %v2863_v58  ;;  %v2870_v8 = vshll.u32 %v9164_v16, 16 }
  0xdb   : > { %v1016_v47 = vor.u32 %v1015_v54, %v1011_v56  ;;  %v2876_v38 = vrot.slane %v2874_v24, 4  ;;  %v7221_v45 = vcombine.low %v7807_v43, %v7808_v44  ;;  %v2880_v51 = vshll.u32 %v9224_v18, 16  ;;  %v9244_v43 = vpop.permute.xlu0 %4912 }
  0xdc   : > { %v1007_v20 = vrot.slane %v1006_v17, 4  ;;  %v5347_v1 = vsel %vm5342_vm8, %v5281_v48, %v9062_v3  ;;  %v12123_v12 = vor.u32 %v9090_v5, %v9087_v33  ;;  %v2868_v28 = vrot.slane %v2867_v60, 4  ;;  %v9255_v5 = vld [vmem:[%s8008_s22 + $0x19c] sm:$0xf] }
  0xdd   : > { %v1017_v24 = vrot.slane %v1016_v47, 4  ;;  %v2872_v27 = vrot.slane %v2870_v8, 5  ;;  %5983 = vmatmul.mubr.bf16.gmra.mrb[4].mxu0 %v5347_v1  ;;  %v12124_v63 = vor.u32 %v9143_v14, %v9102_v42  ;;  %v3437_v52 = vshrl.u32 %v7096_v26, 16  ;;  %v9283_v1 = vld [vmem:[%s8008_s22 + $0x54] sm:$0xf] }
  0xde   : > { %v9241_v58 = vrot.slane %v12123_v12, 4  ;;  %4232 = vrot.lane.b32.xlu1 %v7266_v32, %s7961_s25  ;;  %v1012_v33 = vsel %vm8136_vm5, %v1007_v20, %v1011_v56  ;;  %v2882_v54 = vrot.slane %v2880_v51, 5  ;;  %v3440_v48 = vshll.u32 %v7096_v26, 16  ;;  %v1077_v32 = vld [vmem:[%s8008_s22 + $0x180] sm:$0xe] }
  0xdf   : > { %v9249_v3 = vrot.slane %v12124_v63, 4  ;;  %v1022_v47 = vsel %vm8136_vm5, %v1017_v24, %v1021_v57  ;;  %v2877_v59 = vor.u32 %v2876_v38, %v2872_v27  ;;  %v1620_v17 = vshrl.u32 %v9047_v25, 16 }
  0xe0   : > { %v5516_v42 = vsel %vm5180_vm6, %v9152_v62, %v8972_v4  ;;  %v5258_v14 = vsel %vm5180_vm6, %v7221_v45, %v8998_v19  ;;  %v7258_v56 = vcombine.low %v1012_v33, %v1022_v47  ;;  %v2873_v57 = vsel %vm8136_vm5, %v2868_v28, %v2872_v27  ;;  %v9276_v19 = vpop.permute.xlu1 %4416  ;;  %v7809_v27 = vld [vmem:[%s8008_s22 + $0x28] sm:$0xf]  ;;  %v12132_v47 = vld [vmem:[#allocation36_spill] sm:$0xff] }
  0xe1   : > { %v5586_v60 = vsel %vm5277_vm7, %v5516_v42, %v9033_v7  ;;  %v2878_v8 = vrot.slane %v2877_v59, 4  ;;  %v7418_v38 = vcombine.low %v7096_v26, %v9255_v5  ;;  %v6874_v44 = vrot.slane %v1077_v32, 9 }
  0xe2   : > { %4120 = vrot.lane.b32.xlu0 %v7258_v56, %s7963_s6  ;;  %v1390_v20 = vrot.slane %v9197_v50, 5  ;;  %v1393_v62 = vrot.slane %v9205_v0, 5  ;;  %v5675_v4 = vsel %vm5342_vm8, %v5586_v60, %v9109_v61  ;;  %v5329_v7 = vsel %vm5277_vm7, %v5258_v14, %v9074_v53  ;;  %v9285_v50 = vpop.permute.xlu0 %4272  ;;  %v9307_v56 = vld [vmem:[%s8008_s22 + $0x1a0] sm:$0x1] }
  0xe3   : > { %v2883_v45 = vsel %vm8136_vm5, %v2878_v8, %v2882_v54  ;;  %v3439_v26 = vrot.slane %v3437_v52, 4  ;;  %v3442_v51 = vrot.slane %v3440_v48, 5  ;;  %6174 = vmatprep.mubr.bf16.mxu1 %v5675_v4  ;;  %v5419_v24 = vsel %vm5342_vm8, %v5329_v7, %v9100_v6  ;;  %v9303_v54 = vld [vmem:[%s8008_s22 + $0x18c] sm:$0xf]  ;;  %12125 = vst [vmem:[#allocation7_spill] sm:$0xff] %v9307_v56 }
  0xe4   : > { %v7426_v0 = vcombine.low %v2873_v57, %v2883_v45  ;;  %v1391_v61 = vsel %vm8047_vm2, %v6874_v44, %v1390_v20  ;;  %v1392_v12 = vrot.slane %v1390_v20, 4  ;;  %v3450_v28 = vshrl.u32 %v9255_v5, 16  ;;  %6175 = vmatmul.mubr.bf16.gmra.mrb[4].mxu1 %v5419_v24  ;;  %v12126_v20 = vld [vmem:[#allocation14_spill] sm:$0xff]  ;;  %v9364_v52 = vld [vmem:[%s8008_s22 + $0x68] sm:$0x1] }
  0xe5   : > { %v1557_v63 = vshll.u32 %v7809_v27, 16  ;;  %v1561_v33 = vshrl.u32 %v7809_v27, 16  ;;  %v7298_v6 = vcombine.low %v9283_v1, %v9126_v41  ;;  %v9309_v60 = vrot.slane %v1620_v17, 4  ;;  %v7810_v27 = vld [vmem:[%s8008_s22 + $0x160] sm:$0xf]  ;;  %12131 = vst [vmem:[#allocation26_spill] sm:$0xff] %v9364_v52 }
  0xe6   : > { %5032 = vrot.lane.b32.xlu1 %v7426_v0, %s7962_s30  ;;  %4920 = vrot.lane.b32.xlu0 %v7418_v38, %s7961_s25  ;;  %v1394_v59 = vsel %vm8047_vm2, %v1392_v12, %v1393_v62  ;;  %v1623_v57 = vshll.u32 %v9047_v25, 16  ;;  %v2196_v8 = vshrl.u32 %v9072_v13, 16  ;;  %v3443_v41 = vor.u32 %v3442_v51, %v3439_v26  ;;  %v9313_v38 = vpop.permute.xlu1 %4464  ;;  %v194_v0 = vld [vmem:[%s8008_s22 + $0x54] sm:$0xf]  ;;  %v12128_v25 = vld [vmem:[#allocation34_spill] sm:$0xff] }
  0xe7   : > { %v7290_v32 = vcombine.low %v1391_v61, %v1394_v59  ;;  %v1559_v42 = vrot.slane %v1557_v63, 5  ;;  %v1563_v14 = vrot.slane %v1561_v33, 4  ;;  %v12127_v62 = vshll.u32 %v12126_v20, 16  ;;  %v9319_v61 = vpop.permute.xlu0 %5072 }
  0xe8   : > { %v3446_v7 = vshll.u32 %v9255_v5, 16  ;;  %v3452_v45 = vrot.slane %v3450_v28, 4  ;;  %v7322_v26 = vcombine.low %v9303_v54, %v9167_v46  ;;  %v3444_v51 = vrot.slane %v3443_v41, 4 }
  0xe9   : > { %v1564_v44 = vor.u32 %v1563_v14, %v1559_v42  ;;  %v1569_v4 = vrot.slane %v12127_v62, 5  ;;  %v1560_v17 = vsel %vm8136_vm5, %v12128_v25, %v1559_v42  ;;  %v3456_v12 = vshll.u32 %v9307_v56, 16  ;;  %v9336_v14 = vld [vmem:[%s8008_s22 + $0x58] sm:$0xf]  ;;  %v9341_v62 = vld [vmem:[%s8008_s22 + $0x5c] sm:$0x1] }
  0xea   : > { %4424 = vrot.lane.b32.xlu1 %v7298_v6, %s7962_s30  ;;  %4280 = vrot.lane.b32.xlu0 %v7290_v32, %s7961_s25  ;;  %v3448_v28 = vrot.slane %v3446_v7, 5  ;;  %v2133_v63 = vshll.u32 %v7810_v27, 16  ;;  %v2137_v33 = vshrl.u32 %v7810_v27, 16  ;;  %v9330_v59 = vrot.slane %v1623_v57, 5  ;;  %v1070_v56 = vld [vmem:[%s8008_s22 + $0x12c] sm:$0xe] }
  0xeb   : > { %v1565_v24 = vrot.slane %v1564_v44, 4  ;;  %v9332_v6 = vrot.slane %v2196_v8, 4  ;;  %v2199_v32 = vshll.u32 %v9072_v13, 16  ;;  %v448_v42 = vshrl.u32 %v194_v0, 16  ;;  %v9344_v13 = vpop.permute.xlu1 %4066 }
  0xec   : > { %v3453_v41 = vor.u32 %v3452_v45, %v3448_v28  ;;  %v3458_v20 = vrot.slane %v3456_v12, 5  ;;  %v2135_v44 = vrot.slane %v2133_v63, 5  ;;  %v2139_v57 = vrot.slane %v2137_v33, 4  ;;  %v9351_v12 = vld [vmem:[%s8008_s22 + $0x64] sm:$0xf] }
  0xed   : > { %v1570_v46 = vsel %vm8136_vm5, %v1565_v24, %v1569_v4  ;;  %v450_v8 = vrot.slane %v448_v42, 4  ;;  %v451_v25 = vshll.u32 %v194_v0, 16  ;;  %v3449_v27 = vsel %vm8136_vm5, %v3444_v51, %v3448_v28 }
  0xee   : > { %v7326_v7 = vcombine.low %v1560_v17, %v1570_v46  ;;  %4472 = vrot.lane.b32.xlu1 %v7322_v26, %s7962_s30  ;;  %v3454_v15 = vrot.slane %v3453_v41, 4  ;;  %v457_v4 = vshll.u32 %v9336_v14, 16  ;;  %v461_v45 = vshrl.u32 %v9336_v14, 16  ;;  %v9353_v17 = vpop.permute.xlu0 %4674  ;;  %v12129_v26 = vld [vmem:[#allocation16_spill] sm:$0xff]  ;;  %v6979_v46 = vld [vmem:[%s8008_s22 + $0x60] sm:$0xe] }
  0xef   : > { %v2140_v24 = vor.u32 %v2139_v57, %v2135_v44  ;;  %v12130_v63 = vshll.u32 %v12129_v26, 16  ;;  %v453_v0 = vrot.slane %v451_v25, 5  ;;  %v467_v42 = vshll.u32 %v9341_v62, 16 }
  0xf0   : > { %v9359_v51 = vrot.slane %v2199_v32, 5  ;;  %v3459_v28 = vsel %vm8136_vm5, %v3454_v15, %v3458_v20  ;;  %v459_v41 = vrot.slane %v457_v4, 5  ;;  %v463_v48 = vrot.slane %v461_v45, 4  ;;  %v7812_v15 = vld [vmem:[%s8008_s22 + $0x1c] sm:$0xf] }
  0xf1   : > { %v2145_v33 = vrot.slane %v12130_v63, 5  ;;  %v7450_v57 = vcombine.low %v3449_v27, %v3459_v28  ;;  %v2136_v25 = vsel %vm8136_vm5, %v12132_v47, %v2135_v44  ;;  %v2141_v26 = vrot.slane %v2140_v24, 4  ;;  %v9377_v44 = vpop.permute.xlu1 %4866 }
  0xf2   : > { %v454_v63 = vor.u32 %v453_v0, %v450_v8  ;;  %v464_v53 = vor.u32 %v463_v48, %v459_v41  ;;  %v469_v11 = vrot.slane %v467_v42, 5  ;;  %v7011_v29 = vrot.slane %v6979_v46, 9  ;;  %v9383_v24 = vpop.permute.xlu0 %4722  ;;  %v9389_v42 = vld [vmem:[%s8008_s22 + $0x70] sm:$0xf]  ;;  %v1054_v0 = vld [vmem:[%s8008_s22 + $0x54] sm:$0xe] }
  0xf3   : > { %v2446_v32 = vrot.slane %v9351_v12, 5  ;;  %v7198_v20 = vcombine.low %v7811_v55, %v7812_v15  ;;  %5080 = vrot.lane.b32.xlu0 %v7450_v57, %s7962_s30  ;;  %v2146_v27 = vsel %vm8136_vm5, %v2141_v26, %v2145_v33  ;;  %v2449_v47 = vrot.slane %v9364_v52, 5  ;;  %v9400_v26 = vld [vmem:[%s8008_s22 + $0x19c] sm:$0xf] }
  0xf4   : > { %v455_v4 = vrot.slane %v454_v63, 4  ;;  %v9379_v48 = vcombine.low %v2136_v25, %v2146_v27  ;;  %v465_v8 = vrot.slane %v464_v53, 4  ;;  %v2885_v46 = vshrl.u32 %v7050_v31, 16  ;;  %v7003_v63 = vld [vmem:[%s8008_s22 + $0x198] sm:$0xe] }
  0xf5   : > { %v2447_v45 = vsel %vm8047_vm2, %v7011_v29, %v2446_v32  ;;  %v2448_v55 = vrot.slane %v2446_v32, 4  ;;  %v2888_v28 = vshll.u32 %v7050_v31, 16  ;;  %v5189_v32 = vsel %vm5180_vm6, %v7198_v20, %v9132_v22  ;;  %v242_v29 = vld [vmem:[%s8008_s22 + $0x18c] sm:$0xf] }
  0xf6   : > { %v460_v33 = vsel %vm8136_vm5, %v455_v4, %v459_v41  ;;  %v470_v53 = vsel %vm8136_vm5, %v465_v8, %v469_v11  ;;  %v9403_v41 = vld [vmem:[%s8008_s22 + $0x1a0] sm:$0x1]  ;;  %v5447_v15 = vsel %vm5180_vm6, %v7326_v7, %v9141_v36  ;;  %v2887_v8 = vrot.slane %v2885_v46, 4 }
  0xf7   : > { %v2450_v25 = vsel %vm8047_vm2, %v2448_v55, %v2449_v47  ;;  %12133 = vst [vmem:[#allocation9_spill] sm:$0xff] %v9403_v41  ;;  %v7235_v27 = vcombine.low %v460_v33, %v470_v53  ;;  %v5540_v11 = vsel %vm5277_vm7, %v5447_v15, %v9169_v9  ;;  %v2890_v47 = vrot.slane %v2888_v28, 5  ;;  %v9423_v9 = vpop.permute.xlu1 %4226 }
  0xf8   : > { %v7363_v4 = vcombine.low %v2447_v45, %v2450_v25  ;;  %v2898_v55 = vshrl.u32 %v9389_v42, 16  ;;  %v7395_v22 = vcombine.low %v7050_v31, %v9389_v42  ;;  %v7035_v20 = vrot.slane %v7003_v63, 9  ;;  %v9421_v45 = vld [vmem:[%s8008_s22 + $0x190] sm:$0xf]  ;;  %v9430_v25 = vld [vmem:[%s8008_s22 + $0x194] sm:$0x1]  ;;  %v9432_v31 = vpop.permute.xlu0 %4114 }
  0xf9   : > { %4074 = vrot.lane.b32.xlu1 %v7235_v27, %s7963_s6  ;;  %v2614_v36 = vrot.slane %v9400_v26, 5  ;;  %v2617_v7 = vrot.slane %v9403_v41, 5  ;;  %v6851_v33 = vrot.slane %v1054_v0, 9  ;;  %v1229_v46 = vrot.slane %v9336_v14, 5 }
  0xfa   : > { %4682 = vrot.lane.b32.xlu0 %v7363_v4, %s7963_s6  ;;  %v1232_v28 = vrot.slane %v9341_v62, 5  ;;  %v5606_v53 = vsel %vm5342_vm8, %v5540_v11, %v9236_v30  ;;  %v1024_v27 = vshrl.u32 %v242_v29, 16  ;;  %v1027_v4 = vshll.u32 %v242_v29, 16 }
  0xfb   : > { %v2615_v63 = vsel %vm8047_vm2, %v7035_v20, %v2614_v36  ;;  %v2616_v15 = vrot.slane %v2614_v36, 4  ;;  %5990 = vmatprep.mubr.bf16.mxu0 %v5606_v53  ;;  %v1230_v14 = vsel %vm8047_vm2, %v6851_v33, %v1229_v46  ;;  %v1231_v0 = vrot.slane %v1229_v46, 4 }
  0xfc   : > { %v1033_v62 = vshll.u32 %v9421_v45, 16  ;;  %v1037_v30 = vshrl.u32 %v9421_v45, 16  ;;  %v1026_v57 = vrot.slane %v1024_v27, 4  ;;  %v1029_v20 = vrot.slane %v1027_v4, 5 }
  0xfd   : > { %4874 = vrot.lane.b32.xlu1 %v7395_v22, %s7961_s25  ;;  %v2618_v11 = vsel %vm8047_vm2, %v2616_v15, %v2617_v7  ;;  %v1043_v36 = vshll.u32 %v9430_v25, 16  ;;  %v1233_v29 = vsel %vm8047_vm2, %v1231_v0, %v1232_v28  ;;  %v5283_v22 = vsel %vm5277_vm7, %v5189_v32, %v9209_v40  ;;  %v9449_v15 = vpop.permute.xlu1 %5026  ;;  %v7098_v0 = vld [vmem:[%s8008_s22 + $0x1a4] sm:$0xf] }
  0xfe   : > { %v7387_v53 = vcombine.low %v2615_v63, %v2618_v11  ;;  %v1035_v33 = vrot.slane %v1033_v62, 5  ;;  %v1039_v46 = vrot.slane %v1037_v30, 4  ;;  %v7267_v39 = vcombine.low %v1230_v14, %v1233_v29  ;;  %v9454_v62 = vpop.permute.xlu0 %4914  ;;  %v7813_v30 = vld [vmem:[%s8008_s22 + $0x150] sm:$0xf]  ;;  %v7814_v11 = vld [vmem:[%s8008_s22 + $0x154] sm:$0xf] }
  0xff   : > { %v1030_v41 = vor.u32 %v1029_v20, %v1026_v57  ;;  %v1045_v7 = vrot.slane %v1043_v36, 5  ;;  %v2891_v63 = vor.u32 %v2890_v47, %v2887_v8  ;;  %v2894_v4 = vshll.u32 %v9389_v42, 16 }
 0x100   : > { %4730 = vrot.lane.b32.xlu0 %v7387_v53, %s7963_s6  ;;  %v1040_v27 = vor.u32 %v1039_v46, %v1035_v33  ;;  %v2900_v28 = vrot.slane %v2898_v55, 4  ;;  %v7222_v52 = vcombine.low %v7813_v30, %v7814_v11  ;;  %v2904_v57 = vshll.u32 %v7107_v10, 16 }
 0x101   : > { %4234 = vrot.lane.b32.xlu1 %v7267_v39, %s7961_s25  ;;  %v1031_v40 = vrot.slane %v1030_v41, 4  ;;  %v5350_v32 = vsel %vm5342_vm8, %v5283_v22, %v9276_v19  ;;  %v12134_v8 = vor.u32 %v9330_v59, %v9309_v60  ;;  %v2892_v14 = vrot.slane %v2891_v63, 4  ;;  %v9475_v19 = vld [vmem:[%s8008_s22 + $0x1a8] sm:$0xf]  ;;  %v1078_v22 = vld [vmem:[%s8008_s22 + $0x18c] sm:$0xe]  ;;  %v9486_v63 = vpop.permute.xlu1 %4418 }
 0x102   : > { %v1041_v55 = vrot.slane %v1040_v27, 4  ;;  %v2896_v20 = vrot.slane %v2894_v4, 5  ;;  %5991 = vmatmul.mubr.bf16.gmra.mrb[8].mxu0 %v5350_v32  ;;  %v12135_v36 = vor.u32 %v9359_v51, %v9332_v6  ;;  %v3461_v41 = vshrl.u32 %v7098_v0, 16  ;;  %v9493_v11 = vpop.permute.xlu0 %4274  ;;  %v9505_v32 = vld [vmem:[%s8008_s22 + $0x60] sm:$0xf] }
 0x103   : > { %v9464_v47 = vrot.slane %v12134_v8, 4  ;;  %v1036_v10 = vsel %vm8136_vm5, %v1031_v40, %v1035_v33  ;;  %v2906_v29 = vrot.slane %v2904_v57, 5  ;;  %v3464_v46 = vshll.u32 %v7098_v0, 16 }
 0x104   : > { %v9469_v53 = vrot.slane %v12135_v36, 4  ;;  %v1046_v60 = vsel %vm8136_vm5, %v1041_v55, %v1045_v7  ;;  %v2901_v59 = vor.u32 %v2900_v28, %v2896_v20  ;;  %v1644_v27 = vshrl.u32 %v9283_v1, 16  ;;  %v7053_v55 = vld [vmem:[%s8008_s22 + $0x7c] sm:$0xf] }
 0x105   : > { %v5519_v6 = vsel %vm5180_vm6, %v9379_v48, %v9181_v49  ;;  %v5261_v51 = vsel %vm5180_vm6, %v7222_v52, %v9215_v2  ;;  %v7259_v33 = vcombine.low %v1036_v10, %v1046_v60  ;;  %v2897_v4 = vsel %vm8136_vm5, %v2892_v14, %v2896_v20  ;;  %v7815_v14 = vld [vmem:[%s8008_s22 + $0x34] sm:$0xf] }
 0x106   : > { %v5588_v7 = vsel %vm5277_vm7, %v5519_v6, %v9244_v43  ;;  %v2902_v28 = vrot.slane %v2901_v59, 4  ;;  %v7419_v30 = vcombine.low %v7098_v0, %v9475_v19  ;;  %v6875_v49 = vrot.slane %v1078_v22, 9  ;;  %v9523_v59 = vld [vmem:[%s8008_s22 + $0x198] sm:$0xf] }
 0x107   : > { %4122 = vrot.lane.b32.xlu0 %v7259_v33, %s7963_s6  ;;  %v1397_v2 = vrot.slane %v9421_v45, 5  ;;  %v1400_v52 = vrot.slane %v9430_v25, 5  ;;  %v5678_v48 = vsel %vm5342_vm8, %v5588_v7, %v9319_v61  ;;  %v5331_v43 = vsel %vm5277_vm7, %v5261_v51, %v9285_v50  ;;  %v7131_v33 = vld [vmem:[%s8008_s22 + $0x1ac] sm:$0x1]  ;;  %v9529_v7 = vpop.permute.xlu0 %5074 }
 0x108   : > { %v2907_v40 = vsel %vm8136_vm5, %v2902_v28, %v2906_v29  ;;  %v3463_v0 = vrot.slane %v3461_v41, 4  ;;  %v3466_v57 = vrot.slane %v3464_v46, 5  ;;  %6182 = vmatprep.mubr.bf16.mxu1 %v5678_v48  ;;  %v5422_v61 = vsel %vm5342_vm8, %v5331_v43, %v9313_v38  ;;  %v9525_v29 = vpop.permute.xlu1 %4466  ;;  %v12141_v46 = vld [vmem:[#allocation42_spill] sm:$0xff]  ;;  %v7052_v41 = vld [vmem:[%s8008_s22 + $0x78] sm:$0xf] }
 0x109   : > { %v7427_v8 = vcombine.low %v2897_v4, %v2907_v40  ;;  %v1398_v45 = vsel %vm8047_vm2, %v6875_v49, %v1397_v2  ;;  %v1399_v25 = vrot.slane %v1397_v2, 4  ;;  %v3474_v50 = vshrl.u32 %v9475_v19, 16  ;;  %6183 = vmatmul.mubr.bf16.gmra.mrb[8].mxu1 %v5422_v61  ;;  %v12136_v2 = vld [vmem:[#allocation21_spill] sm:$0xff] }
 0x10a   : > { %v1581_v20 = vshll.u32 %v7815_v14, 16  ;;  %v1585_v36 = vshrl.u32 %v7815_v14, 16  ;;  %v7299_v38 = vcombine.low %v9505_v32, %v9351_v12  ;;  %v9531_v4 = vrot.slane %v1644_v27, 4  ;;  %v12138_v27 = vld [vmem:[#allocation40_spill] sm:$0xff] }
 0x10b   : > { %5034 = vrot.lane.b32.xlu1 %v7427_v8, %s7962_s30  ;;  %4922 = vrot.lane.b32.xlu0 %v7419_v30, %s7961_s25  ;;  %v1401_v60 = vsel %vm8047_vm2, %v1399_v25, %v1400_v52  ;;  %v1647_v12 = vshll.u32 %v9283_v1, 16  ;;  %v2220_v28 = vshrl.u32 %v9303_v54, 16  ;;  %v3467_v30 = vor.u32 %v3466_v57, %v3463_v0  ;;  %v196_v8 = vld [vmem:[%s8008_s22 + $0x60] sm:$0xf] }
 0x10c   : > { %v7291_v22 = vcombine.low %v1398_v45, %v1401_v60  ;;  %v1583_v6 = vrot.slane %v1581_v20, 5  ;;  %v1587_v51 = vrot.slane %v1585_v36, 4  ;;  %v12137_v52 = vshll.u32 %v12136_v2, 16  ;;  %v9553_v60 = vld [vmem:[%s8008_s22 + $0x64] sm:$0xf] }
 0x10d   : > { %v3470_v43 = vshll.u32 %v9475_v19, 16  ;;  %v3476_v40 = vrot.slane %v3474_v50, 4  ;;  %v7323_v0 = vcombine.low %v9523_v59, %v9400_v26  ;;  %v3468_v57 = vrot.slane %v3467_v30, 4  ;;  %v7816_v19 = vld [vmem:[%s8008_s22 + $0x16c] sm:$0xf] }
 0x10e   : > { %v1588_v49 = vor.u32 %v1587_v51, %v1583_v6  ;;  %v1593_v48 = vrot.slane %v12137_v52, 5  ;;  %v1584_v1 = vsel %vm8136_vm5, %v12138_v27, %v1583_v6  ;;  %v3480_v45 = vshll.u32 %v7131_v33, 16  ;;  %v9555_v6 = vpop.permute.xlu1 %4068 }
 0x10f   : > { %4426 = vrot.lane.b32.xlu1 %v7299_v38, %s7962_s30  ;;  %4282 = vrot.lane.b32.xlu0 %v7291_v22, %s7961_s25  ;;  %v3472_v61 = vrot.slane %v3470_v43, 5  ;;  %v2157_v50 = vshll.u32 %v7816_v19, 16  ;;  %v2161_v14 = vshrl.u32 %v7816_v19, 16  ;;  %v9547_v20 = vrot.slane %v1647_v12, 5  ;;  %v9562_v12 = vpop.permute.xlu0 %4676  ;;  %v12139_v19 = vld [vmem:[#allocation23_spill] sm:$0xff] }
 0x110   : > { %v1589_v25 = vrot.slane %v1588_v49, 4  ;;  %v9549_v36 = vrot.slane %v2220_v28, 4  ;;  %v2223_v38 = vshll.u32 %v9303_v54, 16  ;;  %v472_v22 = vshrl.u32 %v196_v8, 16  ;;  %v9560_v49 = vld [vmem:[%s8008_s22 + $0x68] sm:$0x1] }
 0x111   : > { %v3477_v51 = vor.u32 %v3476_v40, %v3472_v61  ;;  %v3482_v33 = vrot.slane %v3480_v45, 5  ;;  %v2159_v30 = vrot.slane %v2157_v50, 5  ;;  %v2163_v54 = vrot.slane %v2161_v14, 4  ;;  %v9572_v45 = vld [vmem:[%s8008_s22 + $0x70] sm:$0xf] }
 0x112   : > { %v1594_v26 = vsel %vm8136_vm5, %v1589_v25, %v1593_v48  ;;  %v474_v2 = vrot.slane %v472_v22, 4  ;;  %v475_v52 = vshll.u32 %v196_v8, 16  ;;  %v3473_v43 = vsel %vm8136_vm5, %v3468_v57, %v3472_v61  ;;  %v6980_v14 = vld [vmem:[%s8008_s22 + $0x6c] sm:$0xe] }
 0x113   : > { %v9564_v28 = vcombine.low %v1584_v1, %v1594_v26  ;;  %4474 = vrot.lane.b32.xlu1 %v7323_v0, %s7962_s30  ;;  %v3478_v48 = vrot.slane %v3477_v51, 4  ;;  %v481_v40 = vshll.u32 %v9553_v60, 16  ;;  %v485_v27 = vshrl.u32 %v9553_v60, 16  ;;  %v6948_v51 = vld [vmem:[%s8008_s22 + $0x74] sm:$0x1] }
 0x114   : > { %v2164_v25 = vor.u32 %v2163_v54, %v2159_v30  ;;  %v12140_v1 = vshll.u32 %v12139_v19, 16  ;;  %v477_v26 = vrot.slane %v475_v52, 5  ;;  %v491_v0 = vshll.u32 %v9560_v49, 16 }
 0x115   : > { %v9578_v8 = vrot.slane %v2223_v38, 5  ;;  %v3483_v57 = vsel %vm8136_vm5, %v3478_v48, %v3482_v33  ;;  %v483_v61 = vrot.slane %v481_v40, 5  ;;  %v487_v22 = vrot.slane %v485_v27, 4  ;;  %v1055_v40 = vld [vmem:[%s8008_s22 + $0x60] sm:$0xe]  ;;  %v9591_v27 = vpop.permute.xlu0 %4724 }
 0x116   : > { %v2169_v50 = vrot.slane %v12140_v1, 5  ;;  %v7451_v39 = vcombine.low %v3473_v43, %v3483_v57  ;;  %v2160_v54 = vsel %vm8136_vm5, %v12141_v46, %v2159_v30  ;;  %v2165_v19 = vrot.slane %v2164_v25, 4  ;;  %v9586_v1 = vpop.permute.xlu1 %4868  ;;  %v7819_v38 = vld [vmem:[%s8008_s22 + $0x15c] sm:$0xf] }
 0x117   : > { %v478_v52 = vor.u32 %v477_v26, %v474_v2  ;;  %v488_v10 = vor.u32 %v487_v22, %v483_v61  ;;  %v493_v33 = vrot.slane %v491_v0, 5  ;;  %v7012_v48 = vrot.slane %v6980_v14, 9  ;;  %v7817_v26 = vld [vmem:[%s8008_s22 + $0x24] sm:$0xf]  ;;  %v7818_v0 = vld [vmem:[%s8008_s22 + $0x28] sm:$0xf] }
 0x118   : > { %5082 = vrot.lane.b32.xlu0 %v7451_v39, %s7962_s30  ;;  %v2170_v46 = vsel %vm8136_vm5, %v2165_v19, %v2169_v50  ;;  %v2453_v2 = vrot.slane %v9572_v45, 5  ;;  %v2456_v43 = vrot.slane %v6948_v51, 5  ;;  %v7199_v14 = vcombine.low %v7817_v26, %v7818_v0 }
 0x119   : > { %v479_v30 = vrot.slane %v478_v52, 4  ;;  %v7351_v57 = vcombine.low %v2160_v54, %v2170_v46  ;;  %v489_v22 = vrot.slane %v488_v10, 4  ;;  %v6852_v52 = vrot.slane %v1055_v40, 9 }
 0x11a   : > { %v2454_v50 = vsel %vm8047_vm2, %v7012_v48, %v2453_v2  ;;  %v2455_v19 = vrot.slane %v2453_v2, 4  ;;  %v1239_v25 = vrot.slane %v9560_v49, 5  ;;  %v7223_v26 = vcombine.low %v7819_v38, %v7820_v37  ;;  %v9619_v37 = vpop.permute.xlu0 %4116 }
 0x11b   : > { %v484_v39 = vsel %vm8136_vm5, %v479_v30, %v483_v61  ;;  %v494_v51 = vsel %vm8136_vm5, %v489_v22, %v493_v33  ;;  %v1236_v10 = vrot.slane %v9553_v60, 5  ;;  %v2909_v46 = vshrl.u32 %v7052_v41, 16  ;;  %v9615_v30 = vpop.permute.xlu1 %4228  ;;  %v7108_v22 = vld [vmem:[%s8008_s22 + $0x80] sm:$0x1] }
 0x11c   : > { %v7236_v54 = vcombine.low %v484_v39, %v494_v51  ;;  %v2457_v61 = vsel %vm8047_vm2, %v2455_v19, %v2456_v43  ;;  %v2912_v48 = vshll.u32 %v7052_v41, 16  ;;  %v2922_v2 = vshrl.u32 %v7053_v55, 16 }
 0x11d   : > { %v7364_v40 = vcombine.low %v2454_v50, %v2457_v61  ;;  %v1237_v33 = vsel %vm8047_vm2, %v6852_v52, %v1236_v10  ;;  %v1238_v49 = vrot.slane %v1236_v10, 4  ;;  %v5192_v60 = vsel %vm5180_vm6, %v7199_v14, %v9344_v13  ;;  %v253_v61 = vld [vmem:[%s8008_s22 + $0x74] sm:$0x1] }
 0x11e   : > { %v5450_v38 = vsel %vm5180_vm6, %v9564_v28, %v9353_v17  ;;  %4076 = vrot.lane.b32.xlu1 %v7236_v54, %s7963_s6  ;;  %v2911_v43 = vrot.slane %v2909_v46, 4  ;;  %v2914_v0 = vrot.slane %v2912_v48, 5  ;;  %v5285_v50 = vsel %vm5277_vm7, %v5192_v60, %v9423_v9  ;;  %v6892_v17 = vld [vmem:[%s8008_s22 + $0x6c] sm:$0xf] }
 0x11f   : > { %v5542_v39 = vsel %vm5277_vm7, %v5450_v38, %v9377_v44  ;;  %4684 = vrot.lane.b32.xlu0 %v7364_v40, %s7963_s6  ;;  %v1240_v13 = vsel %vm8047_vm2, %v1238_v49, %v1239_v25  ;;  %v7396_v14 = vcombine.low %v7052_v41, %v7053_v55  ;;  %v198_v28 = vld [vmem:[%s8008_s22 + $0x6c] sm:$0xf]  ;;  %v2918_v10 = vshll.u32 %v7053_v55, 16  ;;  %v199_v44 = vld [vmem:[%s8008_s22 + $0x70] sm:$0xf] }
 0x120   : > { %v7268_v19 = vcombine.low %v1237_v33, %v1240_v13  ;;  %v5609_v52 = vsel %vm5342_vm8, %v5542_v39, %v9449_v15  ;;  %v2915_v51 = vor.u32 %v2914_v0, %v2911_v43  ;;  %v5522_v54 = vsel %vm5180_vm6, %v7351_v57, %v9383_v24  ;;  %v9650_v40 = vld [vmem:[%s8008_s22 + $0x7c] sm:$0xf]  ;;  %v9652_v24 = vpop.permute.xlu1 %5028  ;;  %v6981_v49 = vld [vmem:[%s8008_s22 + $0x78] sm:$0xe]  ;;  %v6949_v0 = vld [vmem:[%s8008_s22 + $0x80] sm:$0x1] }
 0x121   : > { %v9644_v9 = vsel %vm5180_vm6, %v7223_v26, %v9432_v31  ;;  %5998 = vmatprep.mubr.bf16.mxu0 %v5609_v52  ;;  %v2924_v41 = vrot.slane %v2922_v2, 4  ;;  %v2928_v25 = vshll.u32 %v7108_v22, 16  ;;  %v7300_v46 = vcombine.low %v6892_v17, %v9572_v45  ;;  %v9656_v2 = vpop.permute.xlu0 %4916  ;;  %v1056_v22 = vld [vmem:[%s8008_s22 + $0x6c] sm:$0xe] }
 0x122   : > { %4236 = vrot.lane.b32.xlu1 %v7268_v19, %s7961_s25  ;;  %v2916_v15 = vrot.slane %v2915_v51, 4  ;;  %v2920_v55 = vrot.slane %v2918_v10, 5  ;;  %v496_v48 = vshrl.u32 %v198_v28, 16  ;;  %v499_v57 = vshll.u32 %v198_v28, 16 }
 0x123   : > { %4876 = vrot.lane.b32.xlu0 %v7396_v14, %s7961_s25  ;;  %v2930_v31 = vrot.slane %v2928_v25, 5  ;;  %v505_v26 = vshll.u32 %v199_v44, 16  ;;  %v509_v33 = vshrl.u32 %v199_v44, 16  ;;  %v515_v43 = vshll.u32 %v253_v61, 16 }
 0x124   : > { %v2921_v45 = vsel %vm8136_vm5, %v2916_v15, %v2920_v55  ;;  %v2925_v60 = vor.u32 %v2924_v41, %v2920_v55  ;;  %v498_v38 = vrot.slane %v496_v48, 4  ;;  %v501_v39 = vrot.slane %v499_v57, 5  ;;  %v7054_v55 = vld [vmem:[%s8008_s22 + $0x84] sm:$0xf]  ;;  %v9671_v57 = vpop.permute.xlu1 %4420 }
 0x125   : > { %v507_v13 = vrot.slane %v505_v26, 5  ;;  %v511_v17 = vrot.slane %v509_v33, 4  ;;  %v5353_v14 = vsel %vm5342_vm8, %v5285_v50, %v9486_v63  ;;  %v517_v19 = vrot.slane %v515_v43, 5 }
 0x126   : > { %4428 = vrot.lane.b32.xlu1 %v7300_v46, %s7962_s30  ;;  %v2926_v28 = vrot.slane %v2925_v60, 4  ;;  %5999 = vmatmul.mubr.bf16.gmra.mrb[12].mxu0 %v5353_v14  ;;  %v7013_v52 = vrot.slane %v6981_v49, 9  ;;  %v2460_v51 = vrot.slane %v9650_v40, 5  ;;  %v502_v10 = vor.u32 %v501_v39, %v498_v38  ;;  %v9673_v38 = vpop.permute.xlu0 %4276 }
 0x127   : > { %v512_v41 = vor.u32 %v511_v17, %v507_v13  ;;  %v2463_v25 = vrot.slane %v6949_v0, 5  ;;  %v6853_v15 = vrot.slane %v1056_v22, 9  ;;  %v1243_v46 = vrot.slane %v199_v44, 5  ;;  %v7055_v22 = vld [vmem:[%s8008_s22 + $0x88] sm:$0xf] }
 0x128   : > { %v2931_v48 = vsel %vm8136_vm5, %v2926_v28, %v2930_v31  ;;  %v2461_v63 = vsel %vm8047_vm2, %v7013_v52, %v2460_v51  ;;  %v2462_v50 = vrot.slane %v2460_v51, 4  ;;  %v503_v33 = vrot.slane %v502_v10, 4 }
 0x129   : > { %v7428_v26 = vcombine.low %v2921_v45, %v2931_v48  ;;  %v513_v49 = vrot.slane %v512_v41, 4  ;;  %v1246_v60 = vrot.slane %v253_v61, 5  ;;  %v1244_v0 = vsel %vm8047_vm2, %v6853_v15, %v1243_v46 }
 0x12a   : > { %v2464_v43 = vsel %vm8047_vm2, %v2462_v50, %v2463_v25  ;;  %v1245_v31 = vrot.slane %v1243_v46, 4  ;;  %v2933_v39 = vshrl.u32 %v7054_v55, 16  ;;  %v508_v44 = vsel %vm8136_vm5, %v503_v33, %v507_v13  ;;  %v9699_v50 = vpop.permute.xlu1 %4468  ;;  %v9710_v33 = vpop.permute.xlu0 %5076 }
 0x12b   : > { %5036 = vrot.lane.b32.xlu0 %v7428_v26, %s7962_s30  ;;  %v518_v61 = vsel %vm8136_vm5, %v513_v49, %v517_v19  ;;  %v7365_v45 = vcombine.low %v2461_v63, %v2464_v43  ;;  %v2936_v17 = vshll.u32 %v7054_v55, 16  ;;  %v5590_v14 = vsel %vm5277_vm7, %v5522_v54, %v9454_v62  ;;  %v7821_v54 = vld [vmem:[%s8008_s22 + $0x40] sm:$0xf]  ;;  %v7109_v63 = vld [vmem:[%s8008_s22 + $0x8c] sm:$0x1] }
 0x12c   : > { %v7237_v28 = vcombine.low %v508_v44, %v518_v61  ;;  %v1247_v52 = vsel %vm8047_vm2, %v1245_v31, %v1246_v60  ;;  %v2935_v51 = vrot.slane %v2933_v39, 4  ;;  %v5333_v10 = vsel %vm5277_vm7, %v9644_v9, %v9493_v11  ;;  %v12144_v31 = vld [vmem:[#allocation29_spill] sm:$0xff] }
 0x12d   : > { %v2938_v13 = vrot.slane %v2936_v17, 5  ;;  %v2946_v41 = vshrl.u32 %v7055_v22, 16  ;;  %v5681_v19 = vsel %vm5342_vm8, %v5590_v14, %v9529_v7  ;;  %v7269_v25 = vcombine.low %v1244_v0, %v1247_v52 }
 0x12e   : > { %4078 = vrot.lane.b32.xlu1 %v7237_v28, %s7963_s6  ;;  %6190 = vmatprep.mubr.bf16.mxu1 %v5681_v19  ;;  %v5425_v62 = vsel %vm5342_vm8, %v5333_v10, %v9525_v29  ;;  %v1605_v15 = vshll.u32 %v7821_v54, 16  ;;  %v1609_v48 = vshrl.u32 %v7821_v54, 16  ;;  %v12142_v9 = vor.u32 %v9547_v20, %v9531_v4  ;;  %v6894_v29 = vld [vmem:[%s8008_s22 + $0x78] sm:$0xf]  ;;  %v12146_v19 = vld [vmem:[#allocation31_spill] sm:$0xff] }
 0x12f   : > { %4686 = vrot.lane.b32.xlu0 %v7365_v45, %s7963_s6  ;;  %v7397_v26 = vcombine.low %v7054_v55, %v7055_v22  ;;  %6191 = vmatmul.mubr.bf16.gmra.mrb[12].mxu1 %v5425_v62  ;;  %v12143_v49 = vor.u32 %v9578_v8, %v9549_v36  ;;  %v2939_v20 = vor.u32 %v2938_v13, %v2935_v51  ;;  %v1668_v0 = vshrl.u32 %v9505_v32, 16  ;;  %v200_v45 = vld [vmem:[%s8008_s22 + $0x78] sm:$0xf]  ;;  %v9729_v13 = vld [vmem:[%s8008_s22 + $0x7c] sm:$0xf] }
 0x130   : > { %v9705_v7 = vrot.slane %v12142_v9, 4  ;;  %v1607_v43 = vrot.slane %v1605_v15, 5  ;;  %v1611_v4 = vrot.slane %v1609_v48, 4  ;;  %v12145_v39 = vshll.u32 %v12144_v31, 16  ;;  %v7822_v51 = vld [vmem:[%s8008_s22 + $0x178] sm:$0xf]  ;;  %v9733_v15 = vpop.permute.xlu1 %4070 }
 0x131   : > { %v9715_v60 = vrot.slane %v12143_v49, 4  ;;  %v2942_v55 = vshll.u32 %v7055_v22, 16  ;;  %v2948_v61 = vrot.slane %v2946_v41, 4  ;;  %v7301_v17 = vcombine.low %v6894_v29, %v9650_v40  ;;  %v9738_v29 = vpop.permute.xlu0 %4678  ;;  %v6982_v31 = vld [vmem:[%s8008_s22 + $0x84] sm:$0xe] }
 0x132   : > { %v1617_v44 = vrot.slane %v12145_v39, 5  ;;  %4238 = vrot.lane.b32.xlu1 %v7269_v25, %s7961_s25  ;;  %v1608_v36 = vsel %vm8136_vm5, %v9241_v58, %v1607_v43  ;;  %v1612_v8 = vor.u32 %v1611_v4, %v1607_v43  ;;  %v2952_v14 = vshll.u32 %v7109_v63, 16 }
 0x133   : > { %4878 = vrot.lane.b32.xlu0 %v7397_v26, %s7961_s25  ;;  %v2940_v28 = vrot.slane %v2939_v20, 4  ;;  %v2944_v52 = vrot.slane %v2942_v55, 5  ;;  %v2181_v10 = vshll.u32 %v7822_v51, 16  ;;  %v2185_v22 = vshrl.u32 %v7822_v51, 16  ;;  %v9736_v26 = vld [vmem:[%s8008_s22 + $0x80] sm:$0x1] }
 0x134   : > { %v1613_v41 = vrot.slane %v1612_v8, 4  ;;  %v12147_v25 = vshll.u32 %v12146_v19, 16  ;;  %v520_v58 = vshrl.u32 %v200_v45, 16  ;;  %v523_v54 = vshll.u32 %v200_v45, 16  ;;  %v9748_v8 = vld [vmem:[%s8008_s22 + $0x88] sm:$0xf] }
 0x135   : > { %v2949_v40 = vor.u32 %v2948_v61, %v2944_v52  ;;  %v2954_v48 = vrot.slane %v2952_v14, 5  ;;  %v2183_v63 = vrot.slane %v2181_v10, 5  ;;  %v2187_v9 = vrot.slane %v2185_v22, 4  ;;  %v6950_v10 = vld [vmem:[%s8008_s22 + $0x8c] sm:$0x1] }
 0x136   : > { %v2193_v62 = vrot.slane %v12147_v25, 5  ;;  %v1618_v49 = vsel %vm8136_vm5, %v1613_v41, %v1617_v44  ;;  %4430 = vrot.lane.b32.xlu1 %v7301_v17, %s7962_s30  ;;  %v522_v43 = vrot.slane %v520_v58, 4  ;;  %v525_v4 = vrot.slane %v523_v54, 5  ;;  %v12148_v41 = vld [vmem:[#allocation26_spill] sm:$0xff] }
 0x137   : > { %v529_v20 = vshll.u32 %v9729_v13, 16  ;;  %v7328_v39 = vcombine.low %v1608_v36, %v1618_v49  ;;  %v2945_v55 = vsel %vm8136_vm5, %v2940_v28, %v2944_v52  ;;  %v2950_v61 = vrot.slane %v2949_v40, 4  ;;  %v1057_v40 = vld [vmem:[%s8008_s22 + $0x78] sm:$0xe] }
 0x138   : > { %v2188_v45 = vor.u32 %v2187_v9, %v2183_v63  ;;  %v526_v14 = vor.u32 %v525_v4, %v522_v43  ;;  %v533_v44 = vshrl.u32 %v9729_v13, 16  ;;  %v539_v17 = vshll.u32 %v9736_v26, 16  ;;  %v9760_v9 = vpop.permute.xlu1 %4870  ;;  %v9766_v43 = vpop.permute.xlu0 %4726 }
 0x139   : > { %v531_v51 = vrot.slane %v529_v20, 5  ;;  %v2955_v22 = vsel %vm8136_vm5, %v2950_v61, %v2954_v48  ;;  %v2184_v36 = vsel %vm8136_vm5, %v9249_v3, %v2183_v63  ;;  %v7014_v52 = vrot.slane %v6982_v31, 9  ;;  %v7056_v61 = vld [vmem:[%s8008_s22 + $0x90] sm:$0xf] }
 0x13a   : > { %v2189_v28 = vrot.slane %v2188_v45, 4  ;;  %v1687_v19 = vshll.u32 %v12148_v41, 16  ;;  %v7429_v25 = vcombine.low %v2945_v55, %v2955_v22  ;;  %v527_v58 = vrot.slane %v526_v14, 4  ;;  %v7823_v45 = vld [vmem:[%s8008_s22 + $0x30] sm:$0xf] }
 0x13b   : > { %v535_v54 = vrot.slane %v533_v44, 4  ;;  %v1671_v49 = vshll.u32 %v9505_v32, 16  ;;  %v2467_v3 = vrot.slane %v9748_v8, 5  ;;  %v2470_v63 = vrot.slane %v6950_v10, 5  ;;  %v7824_v14 = vld [vmem:[%s8008_s22 + $0x34] sm:$0xf] }
 0x13c   : > { %v2194_v48 = vsel %vm8136_vm5, %v2189_v28, %v2193_v62  ;;  %v9768_v4 = vrot.slane %v1668_v0, 4  ;;  %5038 = vrot.lane.b32.xlu0 %v7429_v25, %s7962_s30  ;;  %v541_v55 = vrot.slane %v539_v17, 5  ;;  %v7200_v32 = vcombine.low %v7823_v45, %v7824_v14 }
 0x13d   : > { %v7352_v20 = vcombine.low %v2184_v36, %v2194_v48  ;;  %v536_v31 = vor.u32 %v535_v54, %v531_v51  ;;  %v2468_v62 = vsel %vm8047_vm2, %v7014_v52, %v2467_v3  ;;  %v2469_v44 = vrot.slane %v2467_v3, 4  ;;  %v7057_v36 = vld [vmem:[%s8008_s22 + $0x94] sm:$0xf] }
 0x13e   : > { %v6854_v22 = vrot.slane %v1057_v40, 9  ;;  %v532_v10 = vsel %vm8136_vm5, %v527_v58, %v531_v51  ;;  %v1250_v28 = vrot.slane %v9729_v13, 5  ;;  %v1253_v25 = vrot.slane %v9736_v26, 5  ;;  %v9789_v51 = vpop.permute.xlu1 %4230 }
 0x13f   : > { %v537_v0 = vrot.slane %v536_v31, 4  ;;  %v5453_v17 = vsel %vm5180_vm6, %v7328_v39, %v9562_v12  ;;  %v2471_v54 = vsel %vm8047_vm2, %v2469_v44, %v2470_v63  ;;  %v2957_v48 = vshrl.u32 %v7056_v61, 16  ;;  %v9791_v63 = vpop.permute.xlu0 %4118  ;;  %v7768_v31 = vld [vmem:[%s12005_s1 + $0x80] sm:$0xff]  }
 0x140   : > { %v2960_v45 = vshll.u32 %v7056_v61, 16  ;;  %v7366_v40 = vcombine.low %v2468_v62, %v2471_v54  ;;  %v1251_v13 = vsel %vm8047_vm2, %v6854_v22, %v1250_v28  ;;  %v1252_v26 = vrot.slane %v1250_v28, 4  ;;  %v6896_v22 = vld [vmem:[%s8008_s22 + $0x84] sm:$0xf]  ;;  %7572 = vmatprep.subr.bf16.mxu1 %v7768_v31 }
 0x141   : > { %v542_v52 = vsel %vm8136_vm5, %v537_v0, %v541_v55  ;;  %v2959_v12 = vrot.slane %v2957_v48, 4  ;;  %v2970_v3 = vshrl.u32 %v7057_v36, 16  ;;  %v5195_v55 = vsel %vm5180_vm6, %v7200_v32, %v9555_v6  ;;  %v202_v0 = vld [vmem:[%s8008_s22 + $0x84] sm:$0xf]  ;;  %7573 = vmatpush3.bf16.msra.mxu1 %v7768_v31 }
 0x142   : > { %v7238_v58 = vcombine.low %v532_v10, %v542_v52  ;;  %v2962_v39 = vrot.slane %v2960_v45, 5  ;;  %v5544_v14 = vsel %vm5277_vm7, %v5453_v17, %v9586_v1  ;;  %4688 = vrot.lane.b32.xlu0 %v7366_v40, %s7963_s6  ;;  %v1254_v62 = vsel %vm8047_vm2, %v1252_v26, %v1253_v25  ;;  %v7110_v10 = vld [vmem:[%s8008_s22 + $0x98] sm:$0x1]  ;;  %v9814_v17 = vld [vmem:[%s8008_s22 + $0x88] sm:$0xf]  ;;  %v9832_v31 = vpop.permute.xlu1 %5030 }
 0x143   : > { %v7398_v44 = vcombine.low %v7056_v61, %v7057_v36  ;;  %v9806_v28 = vrot.slane %v1671_v49, 5  ;;  %v5287_v6 = vsel %vm5277_vm7, %v5195_v55, %v9615_v30  ;;  %v7270_v32 = vcombine.low %v1251_v13, %v1254_v62  ;;  %v7825_v61 = vld [vmem:[%s8008_s22 + $0x168] sm:$0xf]  ;;  %v7826_v25 = vld [vmem:[%s8008_s22 + $0x16c] sm:$0xf]  ;;  %v9838_v62 = vpop.permute.xlu0 %4918 }
 0x144   : > { %4080 = vrot.lane.b32.xlu1 %v7238_v58, %s7963_s6  ;;  %v5612_v1 = vsel %vm5342_vm8, %v5544_v14, %v9652_v24  ;;  %v7224_v54 = vcombine.low %v7825_v61, %v7826_v25  ;;  %v2963_v49 = vor.u32 %v2962_v39, %v2959_v12  ;;  %v2966_v48 = vshll.u32 %v7057_v36, 16  ;;  %v9819_v52 = vld [vmem:[%s8008_s22 + $0x8c] sm:$0x1]  ;;  %v9827_v26 = vld [vmem:[%s8008_s22 + $0x94] sm:$0xf] }
 0x145   : > { %6006 = vmatprep.mubr.bf16.mxu0 %v5612_v1  ;;  %v2972_v45 = vrot.slane %v2970_v3, 4  ;;  %v9823_v30 = vsel %vm5180_vm6, %v7352_v20, %v9591_v27  ;;  %v7302_v24 = vcombine.low %v6896_v22, %v9748_v8  ;;  %v2976_v40 = vshll.u32 %v7110_v10, 16  ;;  %v6983_v3 = vld [vmem:[%s8008_s22 + $0x90] sm:$0xe]  ;;  %v6951_v14 = vld [vmem:[%s8008_s22 + $0x98] sm:$0x1] }
 0x146   : > { %v544_v13 = vshrl.u32 %v202_v0, 16  ;;  %4880 = vrot.lane.b32.xlu0 %v7398_v44, %s7961_s25  ;;  %v2964_v58 = vrot.slane %v2963_v49, 4  ;;  %v2968_v12 = vrot.slane %v2966_v48, 5  ;;  %v547_v36 = vshll.u32 %v202_v0, 16  ;;  %v1058_v1 = vld [vmem:[%s8008_s22 + $0x84] sm:$0xe] }
 0x147   : > { %v553_v39 = vshll.u32 %v9814_v17, 16  ;;  %v2978_v27 = vrot.slane %v2976_v40, 5  ;;  %v557_v20 = vshrl.u32 %v9814_v17, 16  ;;  %v563_v55 = vshll.u32 %v9819_v52, 16  ;;  %v7771_v48 = vld [vmem:[%s12005_s1 + $0x88] sm:$0xff]  }
 0x148   : > { %4240 = vrot.lane.b32.xlu1 %v7270_v32, %s7961_s25  ;;  %v546_v8 = vrot.slane %v544_v13, 4  ;;  %v2969_v44 = vsel %vm8136_vm5, %v2964_v58, %v2968_v12  ;;  %v2973_v22 = vor.u32 %v2972_v45, %v2968_v12  ;;  %v549_v10 = vrot.slane %v547_v36, 5  ;;  %7574 = vmatprep.subr.bf16.mxu1 %v7771_v48 }
 0x149   : > { %v555_v0 = vrot.slane %v553_v39, 5  ;;  %v559_v61 = vrot.slane %v557_v20, 4  ;;  %v565_v25 = vrot.slane %v563_v55, 5  ;;  %v5356_v32 = vsel %vm5342_vm8, %v5287_v6, %v9671_v57  ;;  %v9853_v57 = vld [vmem:[%s8008_s22 + $0x9c] sm:$0xf]  ;;  %7575 = vmatpush3.bf16.msra.mxu1 %v7771_v48 }
 0x14a   : > { %v7015_v49 = vrot.slane %v6983_v3, 9  ;;  %v2974_v40 = vrot.slane %v2973_v22, 4  ;;  %v550_v13 = vor.u32 %v549_v10, %v546_v8  ;;  %6007 = vmatmul.mubr.bf16.gmra.mrb[16].mxu0 %v5356_v32  ;;  %v2474_v58 = vrot.slane %v9827_v26, 5  ;;  %v9863_v10 = vpop.permute.xlu0 %4278 }
 0x14b   : > { %v2477_v45 = vrot.slane %v6951_v14, 5  ;;  %v560_v12 = vor.u32 %v559_v61, %v555_v0  ;;  %v6855_v36 = vrot.slane %v1058_v1, 9  ;;  %v1257_v39 = vrot.slane %v9814_v17, 5  ;;  %v9859_v14 = vpop.permute.xlu1 %4422  ;;  %v7059_v61 = vld [vmem:[%s8008_s22 + $0xa0] sm:$0xf] }
 0x14c   : > { %4432 = vrot.lane.b32.xlu1 %v7302_v24, %s7962_s30  ;;  %v1260_v20 = vrot.slane %v9819_v52, 5  ;;  %v2979_v6 = vsel %vm8136_vm5, %v2974_v40, %v2978_v27  ;;  %v551_v3 = vrot.slane %v550_v13, 4  ;;  %v2475_v8 = vsel %vm8047_vm2, %v7015_v49, %v2474_v58 }
 0x14d   : > { %v2476_v55 = vrot.slane %v2474_v58, 4  ;;  %v5267_v17 = vsel %vm5180_vm6, %v7224_v54, %v9619_v37  ;;  %v7430_v24 = vcombine.low %v2969_v44, %v2979_v6  ;;  %v561_v52 = vrot.slane %v560_v12, 4 }
 0x14e   : > { %v1259_v22 = vrot.slane %v1257_v39, 4  ;;  %v556_v1 = vsel %vm8136_vm5, %v551_v3, %v555_v0  ;;  %v2981_v32 = vshrl.u32 %v9853_v57, 16  ;;  %v2984_v49 = vshll.u32 %v9853_v57, 16  ;;  %v6898_v3 = vld [vmem:[%s8008_s22 + $0x90] sm:$0xf] }
 0x14f   : > { %v2478_v27 = vsel %vm8047_vm2, %v2476_v55, %v2477_v45  ;;  %5040 = vrot.lane.b32.xlu0 %v7430_v24, %s7962_s30  ;;  %v566_v37 = vsel %vm8136_vm5, %v561_v52, %v565_v25  ;;  %v1258_v44 = vsel %vm8047_vm2, %v6855_v36, %v1257_v39  ;;  %v5592_v48 = vsel %vm5277_vm7, %v9823_v30, %v9656_v2  ;;  %v7827_v30 = vld [vmem:[%s8008_s22 + $0x4c] sm:$0xf]  ;;  %v9893_v55 = vpop.permute.xlu1 %4470  ;;  %v9900_v52 = vpop.permute.xlu0 %5078 }
 0x150   : > { %v7367_v54 = vcombine.low %v2475_v8, %v2478_v27  ;;  %v1261_v0 = vsel %vm8047_vm2, %v1259_v22, %v1260_v20  ;;  %v7239_v40 = vcombine.low %v556_v1, %v566_v37  ;;  %v2983_v13 = vrot.slane %v2981_v32, 4  ;;  %v7111_v8 = vld [vmem:[%s8008_s22 + $0xa4] sm:$0x1]  ;;  %v12150_v37 = vld [vmem:[#allocation37_spill] sm:$0xff] }
 0x151   : > { %v2986_v58 = vrot.slane %v2984_v49, 5  ;;  %v5335_v25 = vsel %vm5277_vm7, %v5267_v17, %v9673_v38  ;;  %v2994_v12 = vshrl.u32 %v7059_v61, 16  ;;  %v5684_v36 = vsel %vm5342_vm8, %v5592_v48, %v9710_v33  ;;  %v12149_v38 = vld [vmem:[#allocation9_spill] sm:$0xff]  ;;  %v204_v49 = vld [vmem:[%s8008_s22 + $0x90] sm:$0xf] }
 0x152   : > { %4082 = vrot.lane.b32.xlu1 %v7239_v40, %s7963_s6  ;;  %v7271_v39 = vcombine.low %v1258_v44, %v1261_v0  ;;  %6198 = vmatprep.mubr.bf16.mxu1 %v5684_v36  ;;  %v5428_v2 = vsel %vm5342_vm8, %v5335_v25, %v9699_v50  ;;  %v1629_v20 = vshll.u32 %v7827_v30, 16  ;;  %v1633_v6 = vshrl.u32 %v7827_v30, 16  ;;  %v7828_v25 = vld [vmem:[%s8008_s22 + $0x184] sm:$0xf] }
 0x153   : > { %v2263_v17 = vshll.u32 %v12149_v38, 16  ;;  %v1674_v33 = vor.u32 %v9806_v28, %v9768_v4  ;;  %4690 = vrot.lane.b32.xlu0 %v7367_v54, %s7963_s6  ;;  %v7399_v24 = vcombine.low %v9853_v57, %v7059_v61  ;;  %6199 = vmatmul.mubr.bf16.gmra.mrb[16].mxu1 %v5428_v2  ;;  %v2987_v50 = vor.u32 %v2986_v58, %v2983_v13  ;;  %v9910_v2 = vld [vmem:[%s8008_s22 + $0x94] sm:$0xf] }
 0x154   : > { %v2244_v22 = vshrl.u32 %v9523_v59, 16  ;;  %v1631_v1 = vrot.slane %v1629_v20, 5  ;;  %v1635_v27 = vrot.slane %v1633_v6, 4  ;;  %v2990_v32 = vshll.u32 %v7059_v61, 16 }
 0x155   : > { %v12151_v44 = vshll.u32 %v12150_v37, 16  ;;  %v7303_v48 = vcombine.low %v6898_v3, %v9827_v26  ;;  %v2996_v54 = vrot.slane %v2994_v12, 4  ;;  %v3000_v40 = vshll.u32 %v7111_v8, 16  ;;  %v12152_v3 = vld [vmem:[#allocation39_spill] sm:$0xff] }
 0x156   : > { %4242 = vrot.lane.b32.xlu1 %v7271_v39, %s7961_s25  ;;  %v1636_v57 = vor.u32 %v1635_v27, %v1631_v1  ;;  %v2988_v13 = vrot.slane %v2987_v50, 4  ;;  %v2992_v58 = vrot.slane %v2990_v32, 5  ;;  %v2205_v36 = vshll.u32 %v7828_v25, 16  ;;  %v9919_v27 = vld [vmem:[%s8008_s22 + $0x98] sm:$0x1]  ;;  %v9921_v32 = vpop.permute.xlu1 %4072 }
 0x157   : > { %v1641_v0 = vrot.slane %v12151_v44, 5  ;;  %4882 = vrot.lane.b32.xlu0 %v7399_v24, %s7961_s25  ;;  %v1632_v61 = vsel %vm8136_vm5, %v9464_v47, %v1631_v1  ;;  %v3002_v26 = vrot.slane %v3000_v40, 5  ;;  %v2209_v12 = vshrl.u32 %v7828_v25, 16  ;;  %v6984_v47 = vld [vmem:[%s8008_s22 + $0x9c] sm:$0xe]  ;;  %v9925_v1 = vpop.permute.xlu0 %4680 }
 0x158   : > { %v568_v30 = vshrl.u32 %v204_v49, 16  ;;  %v1637_v20 = vrot.slane %v1636_v57, 4  ;;  %v2997_v39 = vor.u32 %v2996_v54, %v2992_v58  ;;  %v2207_v6 = vrot.slane %v2205_v36, 5 }
 0x159   : > { %v12153_v8 = vshll.u32 %v12152_v3, 16  ;;  %v2211_v37 = vrot.slane %v2209_v12, 4  ;;  %v571_v44 = vshll.u32 %v204_v49, 16  ;;  %v577_v46 = vshll.u32 %v9910_v2, 16  ;;  %v9934_v3 = vld [vmem:[%s8008_s22 + $0xa0] sm:$0xf] }
 0x15a   : > { %v570_v24 = vrot.slane %v568_v30, 4  ;;  %v1642_v54 = vsel %vm8136_vm5, %v1637_v20, %v1641_v0  ;;  %4434 = vrot.lane.b32.xlu1 %v7303_v48, %s7962_s30  ;;  %v2993_v40 = vsel %vm8136_vm5, %v2988_v13, %v2992_v58  ;;  %v2998_v57 = vrot.slane %v2997_v39, 4  ;;  %v6952_v48 = vld [vmem:[%s8008_s22 + $0xa4] sm:$0x1] }
 0x15b   : > { %v2217_v50 = vrot.slane %v12153_v8, 5  ;;  %v581_v25 = vshrl.u32 %v9910_v2, 16  ;;  %v7329_v36 = vcombine.low %v1632_v61, %v1642_v54  ;;  %v2212_v12 = vor.u32 %v2211_v37, %v2207_v6  ;;  %v9946_v54 = vpop.permute.xlu1 %4872 }
 0x15c   : > { %v573_v49 = vrot.slane %v571_v44, 5  ;;  %v579_v30 = vrot.slane %v577_v46, 5  ;;  %v3003_v8 = vsel %vm8136_vm5, %v2998_v57, %v3002_v26  ;;  %v587_v0 = vshll.u32 %v9919_v27, 16  ;;  %v1059_v44 = vld [vmem:[%s8008_s22 + $0x90] sm:$0xe] }
 0x15d   : > { %v583_v11 = vrot.slane %v581_v25, 4  ;;  %v7016_v20 = vrot.slane %v6984_v47, 9  ;;  %v7431_v45 = vcombine.low %v2993_v40, %v3003_v8  ;;  %v2208_v13 = vsel %vm8136_vm5, %v9469_v53, %v2207_v6 }
 0x15e   : > { %v2213_v58 = vrot.slane %v2212_v12, 4  ;;  %v574_v61 = vor.u32 %v573_v49, %v570_v24  ;;  %v2247_v39 = vshll.u32 %v9523_v59, 16  ;;  %v589_v37 = vrot.slane %v587_v0, 5  ;;  %v9953_v24 = vpop.permute.xlu0 %4728  ;;  %v7830_v12 = vld [vmem:[%s8008_s22 + $0x40] sm:$0xf] }
 0x15f   : > { %v584_v46 = vor.u32 %v583_v11, %v579_v30  ;;  %v2481_v26 = vrot.slane %v9934_v3, 5  ;;  %v9948_v57 = vrot.slane %v2244_v22, 4  ;;  %5042 = vrot.lane.b32.xlu0 %v7431_v45, %s7962_s30  ;;  %v2484_v59 = vrot.slane %v6952_v48, 5  ;;  %v7829_v22 = vld [vmem:[%s8008_s22 + $0x3c] sm:$0xf] }
 0x160   : > { %v2218_v53 = vsel %vm8136_vm5, %v2213_v58, %v2217_v50  ;;  %v575_v6 = vrot.slane %v574_v61, 4  ;;  %v7201_v49 = vcombine.low %v7829_v22, %v7830_v12  ;;  %v6856_v8 = vrot.slane %v1059_v44, 9  ;;  %v7060_v0 = vld [vmem:[%s8008_s22 + $0xa8] sm:$0xf]  ;;  %v7061_v48 = vld [vmem:[%s8008_s22 + $0xac] sm:$0xf] }
 0x161   : > { %v7353_v11 = vcombine.low %v2208_v13, %v2218_v53  ;;  %v585_v47 = vrot.slane %v584_v46, 4  ;;  %v2482_v40 = vsel %vm8047_vm2, %v7016_v20, %v2481_v26  ;;  %v2483_v25 = vrot.slane %v2481_v26, 4  ;;  %v7832_v44 = vld [vmem:[%s8008_s22 + $0x178] sm:$0xf]  ;;  %v6900_v22 = vld [vmem:[%s8008_s22 + $0x9c] sm:$0xf] }
 0x162   : > { %v580_v45 = vsel %vm8136_vm5, %v575_v6, %v579_v30  ;;  %v1264_v50 = vrot.slane %v9910_v2, 5  ;;  %v5456_v13 = vsel %vm5180_vm6, %v7329_v36, %v9738_v29  ;;  %v1267_v61 = vrot.slane %v9919_v27, 5  ;;  %v7831_v30 = vld [vmem:[%s8008_s22 + $0x174] sm:$0xf]  ;;  %v7112_v12 = vld [vmem:[%s8008_s22 + $0xb0] sm:$0x1] }
 0x163   : > { %v590_v20 = vsel %vm8136_vm5, %v585_v47, %v589_v37  ;;  %v2485_v58 = vsel %vm8047_vm2, %v2483_v25, %v2484_v59  ;;  %v7225_v2 = vcombine.low %v7831_v30, %v7832_v44  ;;  %v3005_v29 = vshrl.u32 %v7060_v0, 16  ;;  %v9975_v47 = vpop.permute.xlu1 %4232  ;;  %v10007_v44 = vld [vmem:[%s8008_s22 + $0xac] sm:$0xf] }
 0x164   : > { %v7240_v46 = vcombine.low %v580_v45, %v590_v20  ;;  %v7368_v26 = vcombine.low %v2482_v40, %v2485_v58  ;;  %v1265_v53 = vsel %vm8047_vm2, %v6856_v8, %v1264_v50  ;;  %v1266_v6 = vrot.slane %v1264_v50, 4  ;;  %v9987_v45 = vpop.permute.xlu0 %4120  ;;  %v9995_v50 = vld [vmem:[%s8008_s22 + $0xa0] sm:$0xf]  ;;  %v10004_v58 = vld [vmem:[%s8008_s22 + $0xa4] sm:$0x1] }
 0x165   : > { %v3008_v36 = vshll.u32 %v7060_v0, 16  ;;  %v3018_v37 = vshrl.u32 %v7061_v48, 16  ;;  %v9977_v59 = vrot.slane %v2247_v39, 5  ;;  %v5198_v27 = vsel %vm5180_vm6, %v7201_v49, %v9733_v15 }
 0x166   : > { %v5546_v40 = vsel %vm5277_vm7, %v5456_v13, %v9760_v9  ;;  %4084 = vrot.lane.b32.xlu1 %v7240_v46, %s7963_s6  ;;  %4692 = vrot.lane.b32.xlu0 %v7368_v26, %s7963_s6  ;;  %v7400_v25 = vcombine.low %v7060_v0, %v7061_v48  ;;  %v5289_v39 = vsel %vm5277_vm7, %v5198_v27, %v9789_v51  ;;  %v3007_v49 = vrot.slane %v3005_v29, 4  ;;  %v206_v9 = vld [vmem:[%s8008_s22 + $0x9c] sm:$0xf] }
 0x167   : > { %v1268_v15 = vsel %vm8047_vm2, %v1266_v6, %v1267_v61  ;;  %v3010_v8 = vrot.slane %v3008_v36, 5  ;;  %v5528_v13 = vsel %vm5180_vm6, %v7353_v11, %v9766_v43  ;;  %v5270_v0 = vsel %vm5180_vm6, %v7225_v2, %v9791_v63  ;;  %v6953_v2 = vld [vmem:[%s8008_s22 + $0xb0] sm:$0x1]  ;;  %v6985_v36 = vld [vmem:[%s8008_s22 + $0xa8] sm:$0xe] }
 0x168   : > { %v7272_v20 = vcombine.low %v1265_v53, %v1268_v15  ;;  %v5615_v51 = vsel %vm5342_vm8, %v5546_v40, %v9832_v31  ;;  %v3014_v46 = vshll.u32 %v7061_v48, 16  ;;  %v3020_v26 = vrot.slane %v3018_v37, 4  ;;  %v10016_v37 = vpop.permute.xlu1 %5032 }
 0x169   : > { %6014 = vmatprep.mubr.bf16.mxu0 %v5615_v51  ;;  %v3011_v61 = vor.u32 %v3010_v8, %v3007_v49  ;;  %v3024_v30 = vshll.u32 %v7112_v12, 16  ;;  %v7304_v43 = vcombine.low %v6900_v22, %v9934_v3  ;;  %v592_v63 = vshrl.u32 %v206_v9, 16  ;;  %v1060_v3 = vld [vmem:[%s8008_s22 + $0x9c] sm:$0xe]  ;;  %v10020_v22 = vpop.permute.xlu0 %4920 }
 0x16a   : > { %4244 = vrot.lane.b32.xlu1 %v7272_v20, %s7961_s25  ;;  %4884 = vrot.lane.b32.xlu0 %v7400_v25, %s7961_s25  ;;  %v595_v11 = vshll.u32 %v206_v9, 16  ;;  %v601_v31 = vshll.u32 %v9995_v50, 16  ;;  %v3016_v6 = vrot.slane %v3014_v46, 5  ;;  %v605_v48 = vshrl.u32 %v9995_v50, 16 }
 0x16b   : > { %v3012_v53 = vrot.slane %v3011_v61, 4  ;;  %v3026_v29 = vrot.slane %v3024_v30, 5  ;;  %v594_v27 = vrot.slane %v592_v63, 4  ;;  %v611_v12 = vshll.u32 %v10004_v58, 16  ;;  %v10029_v30 = vld [vmem:[%s8008_s22 + $0xb4] sm:$0xf] }
 0x16c   : > { %v597_v40 = vrot.slane %v595_v11, 5  ;;  %v603_v25 = vrot.slane %v601_v31, 5  ;;  %v3021_v49 = vor.u32 %v3020_v26, %v3016_v6  ;;  %v607_v8 = vrot.slane %v605_v48, 4 }
 0x16d   : > { %v3017_v15 = vsel %vm8136_vm5, %v3012_v53, %v3016_v6  ;;  %v5359_v9 = vsel %vm5342_vm8, %v5289_v39, %v9859_v14  ;;  %v613_v51 = vrot.slane %v611_v12, 5  ;;  %v7017_v61 = vrot.slane %v6985_v36, 9 }
 0x16e   : > { %4436 = vrot.lane.b32.xlu1 %v7304_v43, %s7962_s30  ;;  %v598_v20 = vor.u32 %v597_v40, %v594_v27  ;;  %6015 = vmatmul.mubr.bf16.gmra.mrb[20].mxu0 %v5359_v9  ;;  %v2488_v46 = vrot.slane %v10007_v44, 5  ;;  %v3022_v63 = vrot.slane %v3021_v49, 4  ;;  %v608_v11 = vor.u32 %v607_v8, %v603_v25  ;;  %v10038_v40 = vpop.permute.xlu1 %4424  ;;  %v7063_v49 = vld [vmem:[%s8008_s22 + $0xb8] sm:$0xf]  ;;  %v10047_v8 = vpop.permute.xlu0 %4280 }
 0x16f   : > { %v2491_v31 = vrot.slane %v6953_v2, 5  ;;  %v6857_v53 = vrot.slane %v1060_v3, 9  ;;  %v1271_v39 = vrot.slane %v9995_v50, 5  ;;  %v1274_v36 = vrot.slane %v10004_v58, 5 }
 0x170   : > { %v599_v26 = vrot.slane %v598_v20, 4  ;;  %v2489_v6 = vsel %vm8047_vm2, %v7017_v61, %v2488_v46  ;;  %v2490_v14 = vrot.slane %v2488_v46, 4  ;;  %v3027_v43 = vsel %vm8136_vm5, %v3022_v63, %v3026_v29 }
 0x171   : > { %v609_v48 = vrot.slane %v608_v11, 4  ;;  %v3029_v27 = vshrl.u32 %v10029_v30, 16  ;;  %v5594_v2 = vsel %vm5277_vm7, %v5528_v13, %v9838_v62  ;;  %v7432_v12 = vcombine.low %v3017_v15, %v3027_v43  ;;  %v7833_v11 = vld [vmem:[%s8008_s22 + $0x58] sm:$0xf] }
 0x172   : > { %v604_v3 = vsel %vm8136_vm5, %v599_v26, %v603_v25  ;;  %v2492_v50 = vsel %vm8047_vm2, %v2490_v14, %v2491_v31  ;;  %v5337_v58 = vsel %vm5277_vm7, %v5270_v0, %v9863_v10  ;;  %v1272_v62 = vsel %vm8047_vm2, %v6857_v53, %v1271_v39  ;;  %v10066_v26 = vld [vmem:[%s8008_s22 + $0x74] sm:$0x1]  ;;  %v7113_v14 = vld [vmem:[%s8008_s22 + $0xbc] sm:$0x1] }
 0x173   : > { %v614_v29 = vsel %vm8136_vm5, %v609_v48, %v613_v51  ;;  %v1273_v13 = vrot.slane %v1271_v39, 4  ;;  %5044 = vrot.lane.b32.xlu0 %v7432_v12, %s7962_s30  ;;  %v7369_v15 = vcombine.low %v2489_v6, %v2492_v50  ;;  %v3031_v9 = vrot.slane %v3029_v27, 4  ;;  %v10076_v39 = vpop.permute.xlu1 %4472  ;;  %v208_v50 = vld [vmem:[%s8008_s22 + $0xa8] sm:$0xf] }
 0x174   : > { %v7241_v25 = vcombine.low %v604_v3, %v614_v29  ;;  %v3032_v20 = vshll.u32 %v10029_v30, 16  ;;  %v3042_v0 = vshrl.u32 %v7063_v49, 16  ;;  %v5687_v51 = vsel %vm5342_vm8, %v5594_v2, %v9900_v52  ;;  %v10080_v2 = vpop.permute.xlu0 %5080 }
 0x175   : > { %v1275_v10 = vsel %vm8047_vm2, %v1273_v13, %v1274_v36  ;;  %v5431_v61 = vsel %vm5342_vm8, %v5337_v58, %v9893_v55  ;;  %6206 = vmatprep.mubr.bf16.mxu1 %v5687_v51  ;;  %v1653_v31 = vshll.u32 %v7833_v11, 16  ;;  %v1657_v53 = vshrl.u32 %v7833_v11, 16  ;;  %v6902_v55 = vld [vmem:[%s8008_s22 + $0xa8] sm:$0xf] }
 0x176   : > { %4086 = vrot.lane.b32.xlu1 %v7241_v25, %s7963_s6  ;;  %v7273_v46 = vcombine.low %v1272_v62, %v1275_v10  ;;  %v3034_v63 = vrot.slane %v3032_v20, 5  ;;  %v10072_v52 = vrot.slane %v1674_v33, 4  ;;  %6207 = vmatmul.mubr.bf16.gmra.mrb[20].mxu1 %v5431_v61  ;;  %v7401_v43 = vcombine.low %v10029_v30, %v7063_v49 }
 0x177   : > { %4694 = vrot.lane.b32.xlu0 %v7369_v15, %s7963_s6  ;;  %v1655_v48 = vrot.slane %v1653_v31, 5  ;;  %v1659_v36 = vrot.slane %v1657_v53, 4  ;;  %v2250_v4 = vor.u32 %v9977_v59, %v9948_v57  ;;  %v12154_v28 = vshll.u32 %v9139_v21, 16  ;;  %v7835_v57 = vld [vmem:[%s8008_s22 + $0x190] sm:$0xf] }
 0x178   : > { %v3035_v27 = vor.u32 %v3034_v63, %v3031_v9  ;;  %v3038_v12 = vshll.u32 %v7063_v49, 16  ;;  %v3044_v3 = vrot.slane %v3042_v0, 4  ;;  %v7305_v29 = vcombine.low %v6902_v55, %v10007_v44  ;;  %v10094_v15 = vld [vmem:[%s8008_s22 + $0xac] sm:$0xf]  ;;  %v10102_v63 = vpop.permute.xlu1 %4074  ;;  %v6986_v55 = vld [vmem:[%s8008_s22 + $0xb4] sm:$0xe] }
 0x179   : > { %v1665_v33 = vrot.slane %v12154_v28, 5  ;;  %v1656_v30 = vsel %vm8136_vm5, %v9705_v7, %v1655_v48  ;;  %v1660_v58 = vor.u32 %v1659_v36, %v1655_v48  ;;  %v3048_v62 = vshll.u32 %v7113_v14, 16  ;;  %v10109_v14 = vpop.permute.xlu0 %4682  ;;  %v10114_v28 = vld [vmem:[%s8008_s22 + $0xb8] sm:$0xf] }
 0x17a   : > { %4246 = vrot.lane.b32.xlu1 %v7273_v46, %s7961_s25  ;;  %v3036_v13 = vrot.slane %v3035_v27, 4  ;;  %v3040_v25 = vrot.slane %v3038_v12, 5  ;;  %v2229_v59 = vshll.u32 %v7835_v57, 16  ;;  %v2233_v21 = vshrl.u32 %v7835_v57, 16  ;;  %v10100_v46 = vld [vmem:[%s8008_s22 + $0xb0] sm:$0x1] }
 0x17b   : > { %4886 = vrot.lane.b32.xlu0 %v7401_v43, %s7961_s25  ;;  %v1661_v49 = vrot.slane %v1660_v58, 4  ;;  %v12155_v9 = vshll.u32 %v9178_v34, 16  ;;  %v616_v7 = vshrl.u32 %v208_v50, 16  ;;  %v619_v10 = vshll.u32 %v208_v50, 16  ;;  %v6954_v58 = vld [vmem:[%s8008_s22 + $0xbc] sm:$0x1] }
 0x17c   : > { %v3045_v0 = vor.u32 %v3044_v3, %v3040_v25  ;;  %v3050_v44 = vrot.slane %v3048_v62, 5  ;;  %v2231_v51 = vrot.slane %v2229_v59, 5  ;;  %v2235_v61 = vrot.slane %v2233_v21, 4 }
 0x17d   : > { %v2241_v20 = vrot.slane %v12155_v9, 5  ;;  %v1666_v11 = vsel %vm8136_vm5, %v1661_v49, %v1665_v33  ;;  %v618_v31 = vrot.slane %v616_v7, 4  ;;  %v621_v34 = vrot.slane %v619_v10, 5  ;;  %v1061_v49 = vld [vmem:[%s8008_s22 + $0xa8] sm:$0xe] }
 0x17e   : > { %4438 = vrot.lane.b32.xlu1 %v7305_v29, %s7962_s30  ;;  %v625_v53 = vshll.u32 %v10094_v15, 16  ;;  %v7330_v43 = vcombine.low %v1656_v30, %v1666_v11  ;;  %v3041_v48 = vsel %vm8136_vm5, %v3036_v13, %v3040_v25  ;;  %v3046_v36 = vrot.slane %v3045_v0, 4  ;;  %v10128_v9 = vld [vmem:[%s8008_s22 + $0x74] sm:$0x1] }
 0x17f   : > { %v2236_v27 = vor.u32 %v2235_v61, %v2231_v51  ;;  %v622_v33 = vor.u32 %v621_v34, %v618_v31  ;;  %v629_v3 = vshrl.u32 %v10094_v15, 16  ;;  %v635_v50 = vshll.u32 %v10100_v46, 16  ;;  %v7064_v34 = vld [vmem:[%s8008_s22 + $0xc0] sm:$0xf] }
 0x180   : > { %v627_v12 = vrot.slane %v625_v53, 5  ;;  %v3051_v30 = vsel %vm8136_vm5, %v3046_v36, %v3050_v44  ;;  %v2232_v29 = vsel %vm8136_vm5, %v9715_v60, %v2231_v51  ;;  %v7018_v13 = vrot.slane %v6986_v55, 9  ;;  %v10134_v44 = vpop.permute.xlu1 %4874  ;;  %v10142_v53 = vpop.permute.xlu0 %4730  ;;  %v7838_v55 = vld [vmem:[%s8008_s22 + $0x48] sm:$0xf] }
 0x181   : > { %v2237_v62 = vrot.slane %v2236_v27, 4  ;;  %v10124_v25 = vrot.slane %v2250_v4, 4  ;;  %v7433_v57 = vcombine.low %v3041_v48, %v3051_v30  ;;  %v623_v59 = vrot.slane %v622_v33, 4  ;;  %v10137_v4 = vld [vmem:[%s8008_s22 + $0x6c] sm:$0xf] }
 0x182   : > { %v631_v21 = vrot.slane %v629_v3, 4  ;;  %v1711_v7 = vshll.u32 %v10128_v9, 16  ;;  %v2495_v60 = vrot.slane %v10114_v28, 5  ;;  %v2498_v0 = vrot.slane %v6954_v58, 5 }
 0x183   : > { %v2242_v10 = vsel %vm8136_vm5, %v2237_v62, %v2241_v20  ;;  %v1692_v51 = vshrl.u32 %v10137_v4, 16  ;;  %5046 = vrot.lane.b32.xlu0 %v7433_v57, %s7962_s30  ;;  %v637_v31 = vrot.slane %v635_v50, 5  ;;  %v7839_v20 = vld [vmem:[%s8008_s22 + $0x4c] sm:$0xf]  ;;  %v6858_v33 = vrot.slane %v1061_v49, 9 }
 0x184   : > { %v7354_v61 = vcombine.low %v2232_v29, %v2242_v10  ;;  %v632_v11 = vor.u32 %v631_v21, %v627_v12  ;;  %v7202_v48 = vcombine.low %v7838_v55, %v7839_v20  ;;  %v2496_v36 = vsel %vm8047_vm2, %v7018_v13, %v2495_v60  ;;  %v7065_v50 = vld [vmem:[%s8008_s22 + $0xc4] sm:$0xf]  ;;  %v6904_v20 = vld [vmem:[%s8008_s22 + $0xb4] sm:$0xf] }
 0x185   : > { %v2497_v27 = vrot.slane %v2495_v60, 4  ;;  %v628_v3 = vsel %vm8136_vm5, %v623_v59, %v627_v12  ;;  %v1278_v30 = vrot.slane %v10094_v15, 5  ;;  %v1281_v29 = vrot.slane %v10100_v46, 5 }
 0x186   : > { %v633_v58 = vrot.slane %v632_v11, 4  ;;  %v5459_v62 = vsel %vm5180_vm6, %v7330_v43, %v9925_v1  ;;  %v3053_v21 = vshrl.u32 %v7064_v34, 16  ;;  %v3056_v13 = vshll.u32 %v7064_v34, 16  ;;  %v10161_v43 = vpop.permute.xlu1 %4234 }
 0x187   : > { %v2499_v57 = vsel %vm8047_vm2, %v2497_v27, %v2498_v0  ;;  %v1279_v15 = vsel %vm8047_vm2, %v6858_v33, %v1278_v30  ;;  %v1280_v46 = vrot.slane %v1278_v30, 4  ;;  %v3066_v1 = vshrl.u32 %v7065_v50, 16  ;;  %v210_v27 = vld [vmem:[%s8008_s22 + $0xb4] sm:$0xf]  ;;  %v10173_v33 = vpop.permute.xlu0 %4122  ;;  %v7841_v30 = vld [vmem:[%s8008_s22 + $0x184] sm:$0xf] }
 0x188   : > { %v638_v49 = vsel %vm8136_vm5, %v633_v58, %v637_v31  ;;  %v7370_v12 = vcombine.low %v2496_v36, %v2499_v57  ;;  %v3055_v10 = vrot.slane %v3053_v21, 4  ;;  %v3058_v60 = vrot.slane %v3056_v13, 5  ;;  %v7114_v36 = vld [vmem:[%s8008_s22 + $0xc8] sm:$0x1]  ;;  %v10182_v58 = vld [vmem:[%s8008_s22 + $0xb8] sm:$0xf] }
 0x189   : > { %v7242_v59 = vcombine.low %v628_v3, %v638_v49  ;;  %v5201_v0 = vsel %vm5180_vm6, %v7202_v48, %v9921_v32  ;;  %v5548_v11 = vsel %vm5277_vm7, %v5459_v62, %v9946_v54  ;;  %v1282_v31 = vsel %vm8047_vm2, %v1280_v46, %v1281_v29  ;;  %v259_v13 = vld [vmem:[%s8008_s22 + $0xbc] sm:$0x1] }
 0x18a   : > { %4696 = vrot.lane.b32.xlu0 %v7370_v12, %s7963_s6  ;;  %v7402_v55 = vcombine.low %v7064_v34, %v7065_v50  ;;  %v1695_v3 = vshll.u32 %v10137_v4, 16  ;;  %v5291_v32 = vsel %vm5277_vm7, %v5201_v0, %v9975_v47  ;;  %v7274_v54 = vcombine.low %v1279_v15, %v1282_v31  ;;  %v7840_v34 = vld [vmem:[%s8008_s22 + $0x180] sm:$0xf]  ;;  %v10193_v15 = vld [vmem:[%s8008_s22 + $0xc4] sm:$0xf] }
 0x18b   : > { %4088 = vrot.lane.b32.xlu1 %v7242_v59, %s7963_s6  ;;  %v5618_v48 = vsel %vm5342_vm8, %v5548_v11, %v10016_v37  ;;  %v7226_v29 = vcombine.low %v7840_v34, %v7841_v30  ;;  %v3059_v62 = vor.u32 %v3058_v60, %v3055_v10  ;;  %v3062_v57 = vshll.u32 %v7065_v50, 16  ;;  %v6987_v60 = vld [vmem:[%s8008_s22 + $0xc0] sm:$0xe]  ;;  %v6955_v0 = vld [vmem:[%s8008_s22 + $0xc8] sm:$0x1]  ;;  %v10201_v11 = vpop.permute.xlu1 %5034 }
 0x18c   : > { %6022 = vmatprep.mubr.bf16.mxu0 %v5618_v48  ;;  %v3068_v21 = vrot.slane %v3066_v1, 4  ;;  %v10189_v49 = vsel %vm5180_vm6, %v7354_v61, %v9953_v24  ;;  %v7306_v47 = vcombine.low %v6904_v20, %v10114_v28  ;;  %v3072_v12 = vshll.u32 %v7114_v36, 16  ;;  %v10206_v48 = vpop.permute.xlu0 %4922 }
 0x18d   : > { %v640_v37 = vshrl.u32 %v210_v27, 16  ;;  %v3060_v46 = vrot.slane %v3059_v62, 4  ;;  %v3064_v59 = vrot.slane %v3062_v57, 5  ;;  %v643_v10 = vshll.u32 %v210_v27, 16  ;;  %v1062_v27 = vld [vmem:[%s8008_s22 + $0xb4] sm:$0xe] }
 0x18e   : > { %4888 = vrot.lane.b32.xlu0 %v7402_v55, %s7961_s25  ;;  %v649_v50 = vshll.u32 %v10182_v58, 16  ;;  %v3074_v24 = vrot.slane %v3072_v12, 5  ;;  %v653_v1 = vshrl.u32 %v10182_v58, 16  ;;  %v659_v28 = vshll.u32 %v259_v13, 16 }
 0x18f   : > { %4248 = vrot.lane.b32.xlu1 %v7274_v54, %s7961_s25  ;;  %v642_v61 = vrot.slane %v640_v37, 4  ;;  %v3065_v31 = vsel %vm8136_vm5, %v3060_v46, %v3064_v59  ;;  %v3069_v55 = vor.u32 %v3068_v21, %v3064_v59  ;;  %v645_v20 = vrot.slane %v643_v10, 5 }
 0x190   : > { %v651_v36 = vrot.slane %v649_v50, 5  ;;  %v655_v34 = vrot.slane %v653_v1, 4  ;;  %v661_v54 = vrot.slane %v659_v28, 5  ;;  %v5362_v30 = vsel %vm5342_vm8, %v5291_v32, %v10038_v40  ;;  %v10214_v50 = vld [vmem:[%s8008_s22 + $0xcc] sm:$0xf] }
 0x191   : > { %v7019_v62 = vrot.slane %v6987_v60, 9  ;;  %v3070_v57 = vrot.slane %v3069_v55, 4  ;;  %v646_v12 = vor.u32 %v645_v20, %v642_v61  ;;  %6023 = vmatmul.mubr.bf16.gmra.mrb[24].mxu0 %v5362_v30  ;;  %v2502_v37 = vrot.slane %v10193_v15, 5  ;;  %v10222_v55 = vpop.permute.xlu1 %4426  ;;  %v10233_v30 = vpop.f32.mrb[0].mxu0 }
 0x192   : > { %v2505_v6 = vrot.slane %v6955_v0, 5  ;;  %v656_v21 = vor.u32 %v655_v34, %v651_v36  ;;  %v6859_v46 = vrot.slane %v1062_v27, 9  ;;  %v1285_v59 = vrot.slane %v10182_v58, 5  ;;  %v10231_v34 = vpop.permute.xlu0 %4282  ;;  %12156 = vst [vmem:[#allocation28_spill] sm:$0xff] %v10233_v30 }
 0x193   : > { %4440 = vrot.lane.b32.xlu1 %v7306_v47, %s7962_s30  ;;  %v1288_v10 = vrot.slane %v259_v13, 5  ;;  %v3075_v40 = vsel %vm8136_vm5, %v3070_v57, %v3074_v24  ;;  %v647_v32 = vrot.slane %v646_v12, 4  ;;  %v2503_v60 = vsel %vm8047_vm2, %v7019_v62, %v2502_v37  ;;  %v7067_v24 = vld [vmem:[%s8008_s22 + $0xd0] sm:$0xf] }
 0x194   : > { %v2504_v61 = vrot.slane %v2502_v37, 4  ;;  %v5273_v1 = vsel %vm5180_vm6, %v7226_v29, %v9987_v45  ;;  %v7434_v47 = vcombine.low %v3065_v31, %v3075_v40  ;;  %v657_v28 = vrot.slane %v656_v21, 4  ;;  %v10242_v62 = vpop.f32.mrb[0].mxu1 }
 0x195   : > { %v1287_v0 = vrot.slane %v1285_v59, 4  ;;  %v652_v58 = vsel %vm8136_vm5, %v647_v32, %v651_v36  ;;  %v3077_v20 = vshrl.u32 %v10214_v50, 16  ;;  %v3080_v27 = vshll.u32 %v10214_v50, 16  ;;  %v5978_v36 = vpop.f32.mrb[1].mxu0  ;;  %12157 = vst [vmem:[#allocation14_spill] sm:$0xff] %v10242_v62  ;;  %v6170_v40 = vpop.f32.mrb[1].mxu1 }
 0x196   : > { %v2506_v13 = vsel %vm8047_vm2, %v2504_v61, %v2505_v6  ;;  %5048 = vrot.lane.b32.xlu0 %v7434_v47, %s7962_s30  ;;  %v662_v45 = vsel %vm8136_vm5, %v657_v28, %v661_v54  ;;  %v1286_v31 = vsel %vm8047_vm2, %v6859_v46, %v1285_v59  ;;  %v5596_v57 = vsel %vm5277_vm7, %v10189_v49, %v10020_v22  ;;  %v10247_v54 = vpop.f32.mrb[2].mxu0  ;;  %v7115_v49 = vld [vmem:[%s8008_s22 + $0xd4] sm:$0x1]  ;;  %v7842_v61 = vld [vmem:[%s8008_s22 + $0x64] sm:$0xf] }
 0x197   : > { %v7371_v29 = vcombine.low %v2503_v60, %v2506_v13  ;;  %v1289_v6 = vsel %vm8047_vm2, %v1287_v0, %v1288_v10  ;;  %v7243_v12 = vcombine.low %v652_v58, %v662_v45  ;;  %v3079_v37 = vrot.slane %v3077_v20, 4  ;;  %12158 = vst [vmem:[#allocation34_spill] sm:$0xff] %v10247_v54  ;;  %v5981_v32 = vpop.f32.mrb[3].mxu0  ;;  %v6906_v0 = vld [vmem:[%s8008_s22 + $0xc0] sm:$0xf] }
 0x198   : > { %v3082_v21 = vrot.slane %v3080_v27, 5  ;;  %v10251_v46 = vrot.slane %v1692_v51, 4  ;;  %v5339_v59 = vsel %vm5277_vm7, %v5273_v1, %v10047_v8  ;;  %v3090_v10 = vshrl.u32 %v7067_v24, 16  ;;  %v10263_v8 = vpop.f32.mrb[2].mxu1  ;;  %v10270_v1 = vld [vmem:[%s8008_s22 + $0x78] sm:$0xf] }
 0x199   : > { %v5690_v22 = vsel %vm5342_vm8, %v5596_v57, %v10080_v2  ;;  %4090 = vrot.lane.b32.xlu1 %v7243_v12, %s7963_s6  ;;  %v7275_v60 = vcombine.low %v1286_v31, %v1289_v6  ;;  %v5434_v51 = vsel %vm5342_vm8, %v5339_v59, %v10076_v39  ;;  %v1677_v47 = vshll.u32 %v7842_v61, 16  ;;  %12159 = vst [vmem:[#allocation16_spill] sm:$0xff] %v10263_v8  ;;  %v6173_v20 = vpop.f32.mrb[3].mxu1  ;;  %v10276_v27 = vld [vmem:[%s8008_s22 + $0x54] sm:$0xf]  ;;  %v10284_v57 = vpop.permute.xlu1 %4474 }
 0x19a   : > { %6214 = vmatprep.mubr.bf16.mxu1 %v5690_v22  ;;  %v1681_v28 = vshrl.u32 %v7842_v61, 16  ;;  %v10267_v2 = vrot.slane %v1695_v3, 5  ;;  %v1716_v58 = vshrl.u32 %v10270_v1, 16  ;;  %4698 = vrot.lane.b32.xlu0 %v7371_v29, %s7963_s6  ;;  %v7403_v13 = vcombine.low %v10214_v50, %v7067_v24  ;;  %v10279_v45 = vld [vmem:[%s8008_s22 + $0x58] sm:$0xf] }
 0x19b   : > { %6215 = vmatmul.mubr.bf16.gmra.mrb[24].mxu1 %v5434_v51  ;;  %v3083_v39 = vor.u32 %v3082_v21, %v3079_v37  ;;  %v7203_v4 = vcombine.low %v10276_v27, %v10279_v45  ;;  %v1679_v3 = vrot.slane %v1677_v47, 5  ;;  %v3086_v6 = vshll.u32 %v7067_v24, 16  ;;  %v212_v36 = vld [vmem:[%s8008_s22 + $0xd8] sm:$0xf]  ;;  %v10289_v21 = vpop.permute.xlu0 %5082  ;;  %v7846_v32 = vld [vmem:[%s8008_s22 + $0x19c] sm:$0xf] }
 0x19c   : > { %v1683_v31 = vrot.slane %v1681_v28, 4  ;;  %v1689_v50 = vrot.slane %v1687_v19, 5  ;;  %v7307_v29 = vcombine.low %v6906_v0, %v10193_v15  ;;  %v3092_v12 = vrot.slane %v3090_v10, 4  ;;  %v10294_v51 = vld [vmem:[%s8008_s22 + $0xdc] sm:$0xf] }
 0x19d   : > { %v3096_v37 = vshll.u32 %v7115_v49, 16  ;;  %4250 = vrot.lane.b32.xlu1 %v7275_v60, %s7961_s25  ;;  %v3084_v59 = vrot.slane %v3083_v39, 4  ;;  %v3088_v22 = vrot.slane %v3086_v6, 5  ;;  %v2253_v24 = vshll.u32 %v7846_v32, 16  ;;  %v10303_v28 = vld [vmem:[%s8008_s22 + $0xe0] sm:$0x1]  ;;  %v10313_v6 = vpop.permute.xlu1 %4076 }
 0x19e   : > { %v1684_v40 = vor.u32 %v1683_v31, %v1679_v3  ;;  %4890 = vrot.lane.b32.xlu0 %v7403_v13, %s7961_s25  ;;  %v1680_v41 = vsel %vm8136_vm5, %v10072_v52, %v1679_v3  ;;  %v2257_v15 = vshrl.u32 %v7846_v32, 16  ;;  %v664_v10 = vshrl.u32 %v212_v36, 16  ;;  %v6988_v31 = vld [vmem:[%s8008_s22 + $0xe4] sm:$0xe]  ;;  %v10316_v32 = vld [vmem:[%s8008_s22 + $0xe8] sm:$0xf] }
 0x19f   : > { %v3098_v19 = vrot.slane %v3096_v37, 5  ;;  %v3093_v60 = vor.u32 %v3092_v12, %v3088_v22  ;;  %v2255_v61 = vrot.slane %v2253_v24, 5  ;;  %v2265_v47 = vrot.slane %v2263_v17, 5  ;;  %v10318_v24 = vpop.permute.xlu0 %4684  ;;  %v7139_v62 = vld [vmem:[%s8008_s22 + $0x6c] sm:$0xe] }
 0x1a0   : > { %v1685_v49 = vrot.slane %v1684_v40, 4  ;;  %v2259_v0 = vrot.slane %v2257_v15, 4  ;;  %v666_v39 = vrot.slane %v664_v10, 4  ;;  %v667_v20 = vshll.u32 %v212_v36, 16 }
 0x1a1   : > { %v673_v13 = vshll.u32 %v10294_v51, 16  ;;  %4442 = vrot.lane.b32.xlu1 %v7307_v29, %s7962_s30  ;;  %v3089_v3 = vsel %vm8136_vm5, %v3084_v59, %v3088_v22  ;;  %v3094_v38 = vrot.slane %v3093_v60, 4  ;;  %v677_v17 = vshrl.u32 %v10294_v51, 16  ;;  %v6956_v22 = vld [vmem:[%s8008_s22 + $0xec] sm:$0x1] }
 0x1a2   : > { %v1690_v52 = vsel %vm8136_vm5, %v1685_v49, %v1689_v50  ;;  %v2260_v37 = vor.u32 %v2259_v0, %v2255_v61  ;;  %v669_v36 = vrot.slane %v667_v20, 5  ;;  %v683_v59 = vshll.u32 %v10303_v28, 16 }
 0x1a3   : > { %v7331_v12 = vcombine.low %v1680_v41, %v1690_v52  ;;  %v675_v40 = vrot.slane %v673_v13, 5  ;;  %v3099_v50 = vsel %vm8136_vm5, %v3094_v38, %v3098_v19  ;;  %v679_v29 = vrot.slane %v677_v17, 4  ;;  %v1063_v19 = vld [vmem:[%s8008_s22 + $0xd8] sm:$0xe] }
 0x1a4   : > { %v7020_v15 = vrot.slane %v6988_v31, 9  ;;  %v7435_v10 = vcombine.low %v3089_v3, %v3099_v50  ;;  %v2256_v41 = vsel %vm8136_vm5, %v10124_v25, %v2255_v61  ;;  %v2261_v49 = vrot.slane %v2260_v37, 4 }
 0x1a5   : > { %v670_v60 = vor.u32 %v669_v36, %v666_v39  ;;  %v1719_v0 = vshll.u32 %v10270_v1, 16  ;;  %v680_v20 = vor.u32 %v679_v29, %v675_v40  ;;  %v685_v13 = vrot.slane %v683_v59, 5  ;;  %v10339_v36 = vpop.permute.xlu1 %4236  ;;  %v7068_v29 = vld [vmem:[%s8008_s22 + $0xf0] sm:$0xf]  ;;  %v7069_v59 = vld [vmem:[%s8008_s22 + $0xf4] sm:$0xf] }
 0x1a6   : > { %v2509_v52 = vrot.slane %v10316_v32, 5  ;;  %v10332_v38 = vrot.slane %v1716_v58, 4  ;;  %5050 = vrot.lane.b32.xlu0 %v7435_v10, %s7962_s30  ;;  %v2266_v25 = vsel %vm8136_vm5, %v2261_v49, %v2265_v47  ;;  %v2512_v39 = vrot.slane %v6956_v22, 5  ;;  %v10351_v22 = vpop.permute.xlu0 %4876 }
 0x1a7   : > { %v671_v61 = vrot.slane %v670_v60, 4  ;;  %v7355_v31 = vcombine.low %v2256_v41, %v2266_v25  ;;  %v681_v3 = vrot.slane %v680_v20, 4  ;;  %v5204_v1 = vsel %vm5180_vm6, %v7203_v4, %v10102_v63  ;;  %v6908_v25 = vld [vmem:[%s8008_s22 + $0xe4] sm:$0xf] }
 0x1a8   : > { %v2510_v17 = vsel %vm8047_vm2, %v7020_v15, %v2509_v52  ;;  %v2511_v37 = vrot.slane %v2509_v52, 4  ;;  %v6860_v47 = vrot.slane %v1063_v19, 9  ;;  %v1292_v50 = vrot.slane %v10294_v51, 5  ;;  %v7847_v51 = vld [vmem:[%s8008_s22 + $0x18c] sm:$0xf] }
 0x1a9   : > { %v676_v58 = vsel %vm8136_vm5, %v671_v61, %v675_v40  ;;  %v5462_v15 = vsel %vm5180_vm6, %v7331_v12, %v10109_v14  ;;  %v686_v10 = vsel %vm8136_vm5, %v681_v3, %v685_v13  ;;  %v1295_v63 = vrot.slane %v10303_v28, 5  ;;  %v7848_v40 = vld [vmem:[%s8008_s22 + $0x190] sm:$0xf]  ;;  %v7116_v61 = vld [vmem:[%s8008_s22 + $0xf8] sm:$0x1] }
 0x1aa   : > { %v2513_v27 = vsel %vm8047_vm2, %v2511_v37, %v2512_v39  ;;  %v7244_v45 = vcombine.low %v676_v58, %v686_v10  ;;  %v7227_v41 = vcombine.low %v7847_v51, %v7848_v40  ;;  %v1293_v49 = vsel %vm8047_vm2, %v6860_v47, %v1292_v50  ;;  %v10380_v37 = vld [vmem:[%s8008_s22 + $0xe8] sm:$0xf]  ;;  %v10382_v58 = vpop.permute.xlu1 %4428  ;;  %v6957_v51 = vld [vmem:[%s8008_s22 + $0xf8] sm:$0x1] }
 0x1ab   : > { %v7372_v4 = vcombine.low %v2510_v17, %v2513_v27  ;;  %v1294_v60 = vrot.slane %v1292_v50, 4  ;;  %v3101_v14 = vshrl.u32 %v7068_v29, 16  ;;  %v3104_v12 = vshll.u32 %v7068_v29, 16  ;;  %v214_v17 = vld [vmem:[%s8008_s22 + $0xe4] sm:$0xf]  ;;  %v10395_v50 = vpop.permute.xlu0 %5036 }
 0x1ac   : > { %v3114_v20 = vshrl.u32 %v7069_v59, 16  ;;  %v10364_v13 = vrot.slane %v1719_v0, 5  ;;  %v5550_v28 = vsel %vm5277_vm7, %v5462_v15, %v10134_v44  ;;  %4092 = vrot.lane.b32.xlu1 %v7244_v45, %s7963_s6  ;;  %v5293_v52 = vsel %vm5277_vm7, %v5204_v1, %v10161_v43 }
 0x1ad   : > { %4700 = vrot.lane.b32.xlu0 %v7372_v4, %s7963_s6  ;;  %v7404_v19 = vcombine.low %v7068_v29, %v7069_v59  ;;  %v5534_v39 = vsel %vm5180_vm6, %v7355_v31, %v10142_v53  ;;  %v1296_v0 = vsel %vm8047_vm2, %v1294_v60, %v1295_v63  ;;  %v3103_v3 = vrot.slane %v3101_v14, 4  ;;  %v10393_v31 = vld [vmem:[%s8008_s22 + $0xec] sm:$0x1]  ;;  %v6989_v14 = vld [vmem:[%s8008_s22 + $0xf0] sm:$0xe] }
 0x1ae   : > { %v3106_v44 = vrot.slane %v3104_v12, 5  ;;  %v5276_v43 = vsel %vm5180_vm6, %v7227_v41, %v10173_v33  ;;  %v7276_v1 = vcombine.low %v1293_v49, %v1296_v0  ;;  %v10388_v47 = vsel %vm5277_vm7, %v5534_v39, %v10206_v48  ;;  %v10398_v33 = vld [vmem:[%s8008_s22 + $0xf4] sm:$0xf] }
 0x1af   : > { %v5621_v53 = vsel %vm5342_vm8, %v5550_v28, %v10201_v11  ;;  %v3110_v15 = vshll.u32 %v7069_v59, 16  ;;  %v3116_v10 = vrot.slane %v3114_v20, 4  ;;  %v3120_v27 = vshll.u32 %v7116_v61, 16  ;;  %v1064_v61 = vld [vmem:[%s8008_s22 + $0xe4] sm:$0xe] }
 0x1b0   : > { %6030 = vmatprep.mubr.bf16.mxu0 %v5621_v53  ;;  %v3107_v29 = vor.u32 %v3106_v44, %v3103_v3  ;;  %v10400_v63 = vpop.f32.mrb[4].mxu0  ;;  %4252 = vrot.lane.b32.xlu1 %v7276_v1, %s7961_s25  ;;  %v7308_v11 = vcombine.low %v6908_v25, %v10316_v32  ;;  %v688_v48 = vshrl.u32 %v214_v17, 16  ;;  %v691_v45 = vshll.u32 %v214_v17, 16  ;;  %v10415_v3 = vpop.permute.xlu1 %4078 }
 0x1b1   : > { %12160 = vst [vmem:[#allocation36_spill] sm:$0xff] %v10400_v63  ;;  %4892 = vrot.lane.b32.xlu0 %v7404_v19, %s7961_s25  ;;  %v697_v4 = vshll.u32 %v10380_v37, 16  ;;  %v5986_v59 = vpop.f32.mrb[5].mxu0  ;;  %v3112_v41 = vrot.slane %v3110_v15, 5  ;;  %v3122_v49 = vrot.slane %v3120_v27, 5  ;;  %v701_v60 = vshrl.u32 %v10380_v37, 16  ;;  %v10422_v15 = vpop.permute.xlu0 %4686 }
 0x1b2   : > { %v3108_v40 = vrot.slane %v3107_v29, 4  ;;  %v690_v12 = vrot.slane %v688_v48, 4  ;;  %v693_v20 = vrot.slane %v691_v45, 5  ;;  %v707_v19 = vshll.u32 %v10393_v31, 16  ;;  %v10420_v29 = vld [vmem:[%s8008_s22 + $0xfc] sm:$0xf] }
 0x1b3   : > { %v699_v28 = vrot.slane %v697_v4, 5  ;;  %v3117_v25 = vor.u32 %v3116_v10, %v3112_v41  ;;  %v703_v39 = vrot.slane %v701_v60, 4  ;;  %v5365_v0 = vsel %vm5342_vm8, %v5293_v52, %v10222_v55  ;;  %v10431_v60 = vld [vmem:[%s8008_s22 + $0x100] sm:$0xf] }
 0x1b4   : > { %v3113_v32 = vsel %vm8136_vm5, %v3108_v40, %v3112_v41  ;;  %4444 = vrot.lane.b32.xlu1 %v7308_v11, %s7962_s30  ;;  %v694_v44 = vor.u32 %v693_v20, %v690_v12  ;;  %v709_v17 = vrot.slane %v707_v19, 5  ;;  %6031 = vmatmul.mubr.bf16.gmra.mrb[28].mxu0 %v5365_v0  ;;  %v7021_v1 = vrot.slane %v6989_v14, 9  ;;  %v10440_v19 = vpop.f32.mrb[6].mxu0 }
 0x1b5   : > { %v2516_v53 = vrot.slane %v10398_v33, 5  ;;  %v3118_v10 = vrot.slane %v3117_v25, 4  ;;  %v704_v27 = vor.u32 %v703_v39, %v699_v28  ;;  %v2519_v48 = vrot.slane %v6957_v51, 5  ;;  %12161 = vst [vmem:[#allocation21_spill] sm:$0xff] %v10440_v19  ;;  %v10446_v25 = vpop.permute.xlu1 %4238  ;;  %v226_v19 = vld [vmem:[%s8008_s22 + $0x12c] sm:$0xf] }
 0x1b6   : > { %v6861_v45 = vrot.slane %v1064_v61, 9  ;;  %v695_v55 = vrot.slane %v694_v44, 4  ;;  %v1299_v4 = vrot.slane %v10380_v37, 5  ;;  %v1302_v41 = vrot.slane %v10393_v31, 5  ;;  %v10451_v44 = vpop.permute.xlu0 %4878 }
 0x1b7   : > { %v2517_v52 = vsel %vm8047_vm2, %v7021_v1, %v2516_v53  ;;  %v2518_v11 = vrot.slane %v2516_v53, 4  ;;  %v3123_v59 = vsel %vm8136_vm5, %v3118_v10, %v3122_v49  ;;  %v705_v40 = vrot.slane %v704_v27, 4  ;;  %v7849_v53 = vld [vmem:[%s8008_s22 + $0x60] sm:$0xf]  ;;  %v7850_v10 = vld [vmem:[%s8008_s22 + $0x64] sm:$0xf] }
 0x1b8   : > { %v3125_v14 = vshrl.u32 %v10420_v29, 16  ;;  %v7436_v12 = vcombine.low %v3113_v32, %v3123_v59  ;;  %v5341_v51 = vsel %vm5277_vm7, %v5276_v43, %v10231_v34  ;;  %v700_v20 = vsel %vm8136_vm5, %v695_v55, %v699_v28  ;;  %v5989_v34 = vpop.f32.mrb[7].mxu0  ;;  %v12162_v59 = vld [vmem:[#allocation8_spill] sm:$0xff] }
 0x1b9   : > { %v2520_v37 = vsel %vm8047_vm2, %v2518_v11, %v2519_v48  ;;  %v710_v31 = vsel %vm8136_vm5, %v705_v40, %v709_v17  ;;  %v1300_v61 = vsel %vm8047_vm2, %v6861_v45, %v1299_v4  ;;  %v1301_v32 = vrot.slane %v1299_v4, 4  ;;  %v7851_v11 = vld [vmem:[%s8008_s22 + $0x70] sm:$0xf] }
 0x1ba   : > { %v7373_v49 = vcombine.low %v2517_v52, %v2520_v37  ;;  %5052 = vrot.lane.b32.xlu0 %v7436_v12, %s7962_s30  ;;  %v7245_v43 = vcombine.low %v700_v20, %v710_v31  ;;  %v3127_v28 = vrot.slane %v3125_v14, 4  ;;  %v3128_v39 = vshll.u32 %v10420_v29, 16 }
 0x1bb   : > { %v3138_v0 = vshrl.u32 %v10431_v60, 16  ;;  %v1303_v17 = vsel %vm8047_vm2, %v1301_v32, %v1302_v41  ;;  %v5693_v1 = vsel %vm5342_vm8, %v10388_v47, %v10289_v21  ;;  %v7204_v27 = vcombine.low %v7849_v53, %v7850_v10  ;;  %v12164_v47 = vld [vmem:[#allocation18_spill] sm:$0xff]  ;;  %v10497_v10 = vpop.permute.xlu0 %5038 }
 0x1bc   : > { %v5437_v48 = vsel %vm5342_vm8, %v5341_v51, %v10284_v57  ;;  %4094 = vrot.lane.b32.xlu1 %v7245_v43, %s7963_s6  ;;  %v7277_v45 = vcombine.low %v1300_v61, %v1303_v17  ;;  %v3130_v55 = vrot.slane %v3128_v39, 5  ;;  %6222 = vmatprep.mubr.bf16.mxu1 %v5693_v1  ;;  %v1698_v52 = vor.u32 %v10267_v2, %v10251_v46  ;;  %v10475_v57 = vld [vmem:[%s8008_s22 + $0x84] sm:$0xf]  ;;  %v6910_v51 = vld [vmem:[%s8008_s22 + $0xf0] sm:$0xf]  ;;  %v10491_v1 = vpop.permute.xlu1 %4430 }
 0x1bd   : > { %v1701_v4 = vshll.u32 %v7851_v11, 16  ;;  %v12163_v21 = vrot.slane %v12162_v59, 5  ;;  %v12165_v40 = vrot.slane %v12164_v47, 9  ;;  %v1740_v14 = vshrl.u32 %v10475_v57, 16  ;;  %6223 = vmatmul.mubr.bf16.gmra.mrb[28].mxu1 %v5437_v48  ;;  %v7117_v46 = vld [vmem:[%s8008_s22 + $0x104] sm:$0x1] }
 0x1be   : > { %v1705_v12 = vshrl.u32 %v7851_v11, 16  ;;  %4702 = vrot.lane.b32.xlu0 %v7373_v49, %s7963_s6  ;;  %v7405_v20 = vcombine.low %v10420_v29, %v10431_v60  ;;  %v1699_v37 = vrot.slane %v1698_v52, 4  ;;  %v5207_v61 = vsel %vm5180_vm6, %v7204_v27, %v10313_v6  ;;  %v216_v39 = vld [vmem:[%s8008_s22 + $0xf0] sm:$0xf]  ;;  %v10489_v17 = vld [vmem:[%s8008_s22 + $0xf4] sm:$0xf] }
 0x1bf   : > { %v10472_v41 = vsel %vm8047_vm2, %v12165_v40, %v12163_v21  ;;  %v1703_v31 = vrot.slane %v1701_v4, 5  ;;  %v3131_v34 = vor.u32 %v3130_v55, %v3127_v28  ;;  %v3134_v43 = vshll.u32 %v10431_v60, 16  ;;  %v10502_v55 = vld [vmem:[%s8008_s22 + $0xf8] sm:$0x1]  ;;  %v6990_v52 = vld [vmem:[%s8008_s22 + $0xfc] sm:$0xe] }
 0x1c0   : > { %v1707_v32 = vrot.slane %v1705_v12, 4  ;;  %4254 = vrot.lane.b32.xlu1 %v7277_v45, %s7961_s25  ;;  %v1713_v29 = vrot.slane %v1711_v7, 5  ;;  %v7309_v49 = vcombine.low %v6910_v51, %v10398_v33  ;;  %v3140_v6 = vrot.slane %v3138_v0, 4  ;;  %v10505_v45 = vld [vmem:[%s8008_s22 + $0x100] sm:$0xf] }
 0x1c1   : > { %v3144_v53 = vshll.u32 %v7117_v46, 16  ;;  %v1704_v60 = vsel %vm8136_vm5, %v1699_v37, %v1703_v31  ;;  %v3132_v27 = vrot.slane %v3131_v34, 4  ;;  %v3136_v48 = vrot.slane %v3134_v43, 5  ;;  %v6958_v47 = vld [vmem:[%s8008_s22 + $0x104] sm:$0x1]  ;;  %v10517_v37 = vpop.f32.mrb[4].mxu1 }
 0x1c2   : > { %v1708_v28 = vor.u32 %v1707_v32, %v1703_v31  ;;  %4894 = vrot.lane.b32.xlu0 %v7405_v20, %s7961_s25  ;;  %v712_v7 = vshrl.u32 %v216_v39, 16  ;;  %v715_v33 = vshll.u32 %v216_v39, 16  ;;  %v721_v0 = vshll.u32 %v10489_v17, 16  ;;  %v7132_v40 = vld [vmem:[%s8008_s22 + $0x18] sm:$0xe]  ;;  %12166 = vst [vmem:[#allocation40_spill] sm:$0xff] %v10517_v37  ;;  %v10521_v39 = vpop.permute.xlu1 %4080 }
 0x1c3   : > { %v3146_v9 = vrot.slane %v3144_v53, 5  ;;  %v3137_v4 = vsel %vm8136_vm5, %v3132_v27, %v3136_v48  ;;  %v3141_v59 = vor.u32 %v3140_v6, %v3136_v48  ;;  %v725_v21 = vshrl.u32 %v10489_v17, 16  ;;  %v6178_v6 = vpop.f32.mrb[5].mxu1  ;;  %v10524_v48 = vpop.permute.xlu0 %4688  ;;  %v12168_v2 = vld [vmem:[#allocation2_spill] sm:$0xff]  ;;  %v1067_v37 = vld [vmem:[%s8008_s22 + $0x108] sm:$0xe] }
 0x1c4   : > { %v1709_v11 = vrot.slane %v1708_v28, 4  ;;  %4446 = vrot.lane.b32.xlu1 %v7309_v49, %s7962_s30  ;;  %v714_v12 = vrot.slane %v712_v7, 4  ;;  %v717_v51 = vrot.slane %v715_v33, 5  ;;  %v723_v46 = vrot.slane %v721_v0, 5  ;;  %v10526_v7 = vpop.f32.mrb[6].mxu1 }
 0x1c5   : > { %v731_v20 = vshll.u32 %v10502_v55, 16  ;;  %v3142_v32 = vrot.slane %v3141_v59, 4  ;;  %v727_v34 = vrot.slane %v725_v21, 4  ;;  %v7022_v43 = vrot.slane %v6990_v52, 9  ;;  %12167 = vst [vmem:[#allocation23_spill] sm:$0xff] %v10526_v7  ;;  %v6181_v59 = vpop.f32.mrb[7].mxu1 }
 0x1c6   : > { %v1714_v31 = vsel %vm8136_vm5, %v1709_v11, %v1713_v29  ;;  %v718_v28 = vor.u32 %v717_v51, %v714_v12  ;;  %v2523_v27 = vrot.slane %v10505_v45, 5  ;;  %v2526_v0 = vrot.slane %v6958_v47, 5  ;;  %v1065_v52 = vld [vmem:[%s8008_s22 + $0xf0] sm:$0xe] }
 0x1c7   : > { %v7332_v53 = vcombine.low %v1704_v60, %v1714_v31  ;;  %v733_v49 = vrot.slane %v731_v20, 5  ;;  %v3147_v29 = vsel %vm8136_vm5, %v3142_v32, %v3146_v9  ;;  %v728_v33 = vor.u32 %v727_v34, %v723_v46  ;;  %v12173_v34 = vld [vmem:[#allocation11_spill] sm:$0xff] }
 0x1c8   : > { %v7164_v11 = vrot.slane %v7132_v40, 9  ;;  %v7437_v21 = vcombine.low %v3137_v4, %v3147_v29  ;;  %v5295_v12 = vsel %vm5277_vm7, %v5207_v61, %v10339_v36  ;;  %v719_v51 = vrot.slane %v718_v28, 4  ;;  %v7072_v40 = vld [vmem:[%s8008_s22 + $0x108] sm:$0xf]  ;;  %v12170_v4 = vld [vmem:[#allocation5_spill] sm:$0xff]  ;;  %v12172_v36 = vld [vmem:[#allocation4_spill] sm:$0xff]  ;;  %v10557_v29 = vpop.permute.xlu1 %4240 }
 0x1c9   : > { %v5465_v60 = vsel %vm5180_vm6, %v7332_v53, %v10318_v24  ;;  %v729_v20 = vrot.slane %v728_v33, 4  ;;  %v2524_v31 = vsel %vm8047_vm2, %v7022_v43, %v2523_v27  ;;  %v2525_v6 = vrot.slane %v2523_v27, 4 }
 0x1ca   : > { %v12169_v9 = vrot.slane %v12168_v2, 5  ;;  %5054 = vrot.lane.b32.xlu0 %v7437_v21, %s7962_s30  ;;  %v724_v24 = vsel %vm8136_vm5, %v719_v51, %v723_v46  ;;  %v12171_v32 = vrot.slane %v12170_v4, 5  ;;  %v7453_v43 = vcombine.low %v10472_v41, %v12173_v34  ;;  %v10560_v21 = vpop.permute.xlu0 %4880  ;;  %v6912_v4 = vld [vmem:[%s8008_s22 + $0xfc] sm:$0xf] }
 0x1cb   : > { %v6862_v2 = vrot.slane %v1065_v52, 9  ;;  %v734_v53 = vsel %vm8136_vm5, %v729_v20, %v733_v49  ;;  %v2527_v28 = vsel %vm8047_vm2, %v2525_v6, %v2526_v0  ;;  %v1306_v46 = vrot.slane %v10489_v17, 5  ;;  %v7073_v52 = vld [vmem:[%s8008_s22 + $0x10c] sm:$0xf] }
 0x1cc   : > { %v3615_v47 = vsel %vm8047_vm2, %v7164_v11, %v12169_v9  ;;  %v3618_v61 = vsel %vm8047_vm2, %v12172_v36, %v12171_v32  ;;  %v7246_v33 = vcombine.low %v724_v24, %v734_v53  ;;  %v7374_v11 = vcombine.low %v2524_v31, %v2527_v28  ;;  %v7855_v36 = vld [vmem:[%s8008_s22 + $0x7c] sm:$0xf]  ;;  %v10592_v53 = vpop.permute.xlu1 %4432 }
 0x1cd   : > { %v7452_v27 = vcombine.low %v3615_v47, %v3618_v61  ;;  %v1309_v59 = vrot.slane %v10502_v55, 5  ;;  %v3149_v41 = vshrl.u32 %v7072_v40, 16  ;;  %v5552_v49 = vsel %vm5277_vm7, %v5465_v60, %v10351_v22  ;;  %v7853_v22 = vld [vmem:[%s8008_s22 + $0x6c] sm:$0xf]  ;;  %v7854_v60 = vld [vmem:[%s8008_s22 + $0x70] sm:$0xf] }
 0x1ce   : > { %v1307_v0 = vsel %vm8047_vm2, %v6862_v2, %v1306_v46  ;;  %v1308_v17 = vrot.slane %v1306_v46, 4  ;;  %v3152_v51 = vshll.u32 %v7072_v40, 16  ;;  %4096 = vrot.lane.b32.xlu1 %v7246_v33, %s7963_s6  ;;  %4704 = vrot.lane.b32.xlu0 %v7374_v11, %s7963_s6  ;;  %v7406_v20 = vcombine.low %v7072_v40, %v7073_v52  ;;  %v7134_v11 = vld [vmem:[%s8008_s22 + $0x30] sm:$0xe] }
 0x1cf   : > { %7576 = vmatprep.mubr.msk.bf16.mxu1 %vm5180_vm6, %v7452_v27  ;;  %v3151_v55 = vrot.slane %v3149_v41, 4  ;;  %v5624_v31 = vsel %vm5342_vm8, %v5552_v49, %v10395_v50  ;;  %v7205_v6 = vcombine.low %v7853_v22, %v7854_v60  ;;  %v5368_v24 = vsel %vm5342_vm8, %v5295_v12, %v10382_v58 }
 0x1d0   : > { %7577 = vmatmul.mubr.msk.bf16.vlgmr.msra.gmra.mrb[32].mxu1 %vm5180_vm6, %v7453_v43  ;;  %v1310_v9 = vsel %vm8047_vm2, %v1308_v17, %v1309_v59  ;;  %v3154_v47 = vrot.slane %v3152_v51, 5  ;;  %6038 = vmatprep.mubr.bf16.mxu0 %v5624_v31  ;;  %v1722_v40 = vor.u32 %v10364_v13, %v10332_v38  ;;  %v3162_v50 = vshrl.u32 %v7073_v52, 16  ;;  %v7856_v38 = vld [vmem:[%s8008_s22 + $0x80] sm:$0x1]  ;;  %v10602_v59 = vld [vmem:[%s8008_s22 + $0x90] sm:$0xf] }
 0x1d1   : > { %v7278_v32 = vcombine.low %v1307_v0, %v1310_v9  ;;  %6039 = vmatmul.mubr.bf16.gmra.mrb[32].mxu0 %v5368_v24  ;;  %v1725_v61 = vshll.u32 %v7855_v36, 16  ;;  %v1729_v34 = vshrl.u32 %v7855_v36, 16  ;;  %v10585_v43 = vrot.slane %v1740_v14, 4  ;;  %v7118_v14 = vld [vmem:[%s8008_s22 + $0x110] sm:$0x1] }
 0x1d2   : > { %v12174_v2 = vshll.u32 %v10475_v57, 16  ;;  %v1723_v12 = vrot.slane %v1722_v40, 4  ;;  %v1735_v13 = vshll.u32 %v7856_v38, 16  ;;  %4896 = vrot.lane.b32.xlu0 %v7406_v20, %s7961_s25  ;;  %v7310_v46 = vcombine.low %v6912_v4, %v10505_v45  ;;  %v10599_v57 = vpop.permute.xlu0 %5040  ;;  %v7135_v51 = vld [vmem:[%s8008_s22 + $0x3c] sm:$0xe] }
 0x1d3   : > { %4256 = vrot.lane.b32.xlu1 %v7278_v32, %s7961_s25  ;;  %v1727_v28 = vrot.slane %v1725_v61, 5  ;;  %v1731_v27 = vrot.slane %v1729_v34, 4  ;;  %v3155_v33 = vor.u32 %v3154_v47, %v3151_v55  ;;  %v1764_v41 = vshrl.u32 %v10602_v59, 16  ;;  %v12175_v47 = vld [vmem:[#allocation15_spill] sm:$0xff] }
 0x1d4   : > { %v10589_v58 = vrot.slane %v12174_v2, 5  ;;  %v1767_v49 = vshll.u32 %v10602_v59, 16  ;;  %v5210_v0 = vsel %vm5180_vm6, %v7205_v6, %v10415_v3  ;;  %v3158_v17 = vshll.u32 %v7073_v52, 16  ;;  %v12177_v52 = vld [vmem:[#allocation22_spill] sm:$0xff] }
 0x1d5   : > { %v1732_v20 = vor.u32 %v1731_v27, %v1727_v28  ;;  %v1737_v31 = vrot.slane %v1735_v13, 5  ;;  %v3156_v45 = vrot.slane %v3155_v33, 4  ;;  %v3164_v55 = vrot.slane %v3162_v50, 4  ;;  %v219_v13 = vld [vmem:[%s8008_s22 + $0x100] sm:$0xf] }
 0x1d6   : > { %v3160_v22 = vrot.slane %v3158_v17, 5  ;;  %v3168_v60 = vshll.u32 %v7118_v14, 16  ;;  %v7166_v9 = vrot.slane %v7134_v11, 9  ;;  %v12176_v24 = vrot.slane %v12175_v47, 5 }
 0x1d7   : > { %v1728_v4 = vsel %vm8136_vm5, %v1723_v12, %v1727_v28  ;;  %v1733_v32 = vrot.slane %v1732_v20, 4  ;;  %4448 = vrot.lane.b32.xlu1 %v7310_v46, %s7962_s30  ;;  %v7167_v3 = vrot.slane %v7135_v51, 9  ;;  %v12178_v6 = vrot.slane %v12177_v52, 5  ;;  %v218_v12 = vld [vmem:[%s8008_s22 + $0xfc] sm:$0xf]  ;;  %v10624_v28 = vpop.permute.xlu1 %4082  ;;  %v12183_v51 = vld [vmem:[#allocation24_spill] sm:$0xff] }
 0x1d8   : > { %v3630_v40 = vrot.slane %v12176_v24, 4  ;;  %v3161_v50 = vsel %vm8136_vm5, %v3156_v45, %v3160_v22  ;;  %v3165_v61 = vor.u32 %v3164_v55, %v3160_v22  ;;  %v3170_v34 = vrot.slane %v3168_v60, 5  ;;  %v12180_v46 = vld [vmem:[#allocation17_spill] sm:$0xff]  ;;  %v263_v55 = vld [vmem:[%s8008_s22 + $0x104] sm:$0x1]  ;;  %v10642_v60 = vpop.permute.xlu0 %4690 }
 0x1d9   : > { %v3637_v36 = vrot.slane %v12178_v6, 4  ;;  %v12179_v2 = vmov %v12176_v24  ;;  %v1738_v27 = vsel %vm8136_vm5, %v1733_v32, %v1737_v31  ;;  %v12181_v14 = vrot.slane %v12180_v46, 5  ;;  %v6991_v22 = vld [vmem:[%s8008_s22 + $0x108] sm:$0xe]  ;;  %v10644_v31 = vpop.f32.mrb[8].mxu0 }
 0x1da   : > { %v3629_v38 = vsel %vm8047_vm2, %v7166_v9, %v12179_v2  ;;  %v12182_v11 = vmov %v12178_v6  ;;  %v12184_v20 = vrot.slane %v12183_v51, 5  ;;  %12185 = vst [vmem:[#allocation42_spill] sm:$0xff] %v10644_v31  ;;  %v7333_v9 = vcombine.low %v1728_v4, %v1738_v27  ;;  %v5994_v32 = vpop.f32.mrb[9].mxu0  ;;  %v10647_v46 = vld [vmem:[%s8008_s22 + $0x10c] sm:$0xf] }
 0x1db   : > { %v3632_v33 = vsel %vm8047_vm2, %v3630_v40, %v12181_v14  ;;  %v3636_v17 = vsel %vm8047_vm2, %v7167_v3, %v12182_v11  ;;  %v3166_v47 = vrot.slane %v3165_v61, 4  ;;  %v736_v52 = vshrl.u32 %v218_v12, 16  ;;  %v6959_v61 = vld [vmem:[%s8008_s22 + $0x110] sm:$0x1]  ;;  %v1066_v14 = vld [vmem:[%s8008_s22 + $0xfc] sm:$0xe] }
 0x1dc   : > { %v3639_v45 = vsel %vm8047_vm2, %v3637_v36, %v12184_v20  ;;  %v7454_v24 = vcombine.low %v3629_v38, %v3632_v33  ;;  %v739_v3 = vshll.u32 %v218_v12, 16  ;;  %v745_v6 = vshll.u32 %v219_v13, 16 }
 0x1dd   : > { %v7455_v40 = vcombine.low %v3636_v17, %v3639_v45  ;;  %v749_v2 = vshrl.u32 %v219_v13, 16  ;;  %v3171_v36 = vsel %vm8136_vm5, %v3166_v47, %v3170_v34  ;;  %v5297_v4 = vsel %vm5277_vm7, %v5210_v0, %v10446_v25  ;;  %v10661_v47 = vld [vmem:[%s8008_s22 + $0x114] sm:$0xf]  ;;  %v10663_v25 = vpop.permute.xlu1 %4242 }
 0x1de   : > { %7580 = vmatprep.mubr.msk.bf16.mxu1 %vm5180_vm6, %v7454_v24  ;;  %v755_v27 = vshll.u32 %v263_v55, 16  ;;  %v7023_v38 = vrot.slane %v6991_v22, 9  ;;  %v5468_v12 = vsel %vm5180_vm6, %v7333_v9, %v10422_v15  ;;  %v7438_v33 = vcombine.low %v3161_v50, %v3171_v36  ;;  %v10666_v9 = vpop.permute.xlu0 %4882 }
 0x1df   : > { %7581 = vmatmul.mubr.msk.bf16.gmra.mrb[36].mxu1 %vm5180_vm6, %v7455_v40  ;;  %v738_v11 = vrot.slane %v736_v52, 4  ;;  %v741_v17 = vrot.slane %v739_v3, 5  ;;  %v747_v51 = vrot.slane %v745_v6, 5  ;;  %v751_v34 = vrot.slane %v749_v2, 4  ;;  %v10671_v3 = vld [vmem:[%s8008_s22 + $0x118] sm:$0xf] }
 0x1e0   : > { %v757_v20 = vrot.slane %v755_v27, 5  ;;  %v2530_v45 = vrot.slane %v10647_v46, 5  ;;  %5056 = vrot.lane.b32.xlu0 %v7438_v33, %s7962_s30  ;;  %v2533_v22 = vrot.slane %v6959_v61, 5  ;;  %v6863_v15 = vrot.slane %v1066_v14, 9  ;;  %v10678_v27 = vpop.f32.mrb[10].mxu0 }
 0x1e1   : > { %v742_v0 = vor.u32 %v741_v17, %v738_v11  ;;  %v1313_v50 = vrot.slane %v219_v13, 5  ;;  %v752_v24 = vor.u32 %v751_v34, %v747_v51  ;;  %v1316_v52 = vrot.slane %v263_v55, 5  ;;  %12186 = vst [vmem:[#allocation29_spill] sm:$0xff] %v10678_v27  ;;  %v7136_v33 = vld [vmem:[%s8008_s22 + $0x48] sm:$0xe]  ;;  %v5997_v11 = vpop.f32.mrb[11].mxu0 }
 0x1e2   : > { %v2531_v40 = vsel %vm8047_vm2, %v7023_v38, %v2530_v45  ;;  %v2532_v32 = vrot.slane %v2530_v45, 4  ;;  %v3173_v13 = vshrl.u32 %v10661_v47, 16  ;;  %v5554_v61 = vsel %vm5277_vm7, %v5468_v12, %v10451_v44  ;;  %v10686_v17 = vpop.f32.mrb[8].mxu1  ;;  %v7137_v44 = vld [vmem:[%s8008_s22 + $0x54] sm:$0xe]  ;;  %v10699_v11 = vpop.permute.xlu1 %4434 }
 0x1e3   : > { %v743_v6 = vrot.slane %v742_v0, 4  ;;  %v10675_v2 = vsel %vm8047_vm2, %v6863_v15, %v1313_v50  ;;  %v1315_v36 = vrot.slane %v1313_v50, 4  ;;  %v753_v14 = vrot.slane %v752_v24, 4  ;;  %12187 = vst [vmem:[#allocation31_spill] sm:$0xff] %v10686_v17  ;;  %v6186_v12 = vpop.f32.mrb[9].mxu1 }
 0x1e4   : > { %v2534_v55 = vsel %vm8047_vm2, %v2532_v32, %v2533_v22  ;;  %v3176_v38 = vshll.u32 %v10661_v47, 16  ;;  %v3186_v15 = vshrl.u32 %v10671_v3, 16  ;;  %v3175_v24 = vrot.slane %v3173_v13, 4  ;;  %v12194_v12 = vld [vmem:[#allocation32_spill] sm:$0xff] }
 0x1e5   : > { %v748_v34 = vsel %vm8136_vm5, %v743_v6, %v747_v51  ;;  %v7375_v45 = vcombine.low %v2531_v40, %v2534_v55  ;;  %v1317_v0 = vsel %vm8047_vm2, %v1315_v36, %v1316_v52  ;;  %v758_v22 = vsel %vm8136_vm5, %v753_v14, %v757_v20  ;;  %v10701_v51 = vpop.f32.mrb[10].mxu1  ;;  %v12189_v36 = vld [vmem:[#allocation30_spill] sm:$0xff] }
 0x1e6   : > { %v7279_v50 = vcombine.low %v10675_v2, %v1317_v0  ;;  %v7407_v32 = vcombine.low %v10661_v47, %v10671_v3  ;;  %12188 = vst [vmem:[#allocation26_spill] sm:$0xff] %v10701_v51  ;;  %v7247_v40 = vcombine.low %v748_v34, %v758_v22  ;;  %v5627_v52 = vsel %vm5342_vm8, %v5554_v61, %v10497_v10  ;;  %v10708_v2 = vpop.permute.xlu0 %5042  ;;  %v6189_v47 = vpop.f32.mrb[11].mxu1 }
 0x1e7   : > { %4706 = vrot.lane.b32.xlu0 %v7375_v45, %s7963_s6  ;;  %v7168_v6 = vrot.slane %v7136_v33, 9  ;;  %v12190_v20 = vrot.slane %v12189_v36, 5  ;;  %v3178_v13 = vrot.slane %v3176_v38, 5  ;;  %6046 = vmatprep.mubr.bf16.mxu0 %v5627_v52  ;;  %v5371_v55 = vsel %vm5342_vm8, %v5297_v4, %v10491_v1  ;;  %v12191_v45 = vld [vmem:[#allocation38_spill] sm:$0xff]  ;;  %v7858_v4 = vld [vmem:[%s8008_s22 + $0x88] sm:$0xf] }
 0x1e8   : > { %v7169_v34 = vrot.slane %v7137_v44, 9  ;;  %v12192_v0 = vrot.slane %v12191_v45, 5  ;;  %4098 = vrot.lane.b32.xlu1 %v7247_v40, %s7963_s6  ;;  %v12195_v22 = vrot.slane %v12194_v12, 5  ;;  %6047 = vmatmul.mubr.bf16.gmra.mrb[36].mxu0 %v5371_v55  ;;  %v1746_v1 = vor.u32 %v10589_v58, %v10585_v43  ;;  %v7860_v40 = vld [vmem:[%s8008_s22 + $0x7c] sm:$0xf] }
 0x1e9   : > { %v3644_v14 = vrot.slane %v12190_v20, 4  ;;  %v12193_v61 = vmov %v12190_v20  ;;  %v1749_v44 = vshll.u32 %v7858_v4, 16  ;;  %v7859_v20 = vld [vmem:[%s8008_s22 + $0x78] sm:$0xf]  ;;  %v6914_v55 = vld [vmem:[%s8008_s22 + $0x108] sm:$0xf]  ;;  %v3179_v59 = vor.u32 %v3178_v13, %v3175_v24 }
 0x1ea   : > { %v3651_v10 = vrot.slane %v12192_v0, 4  ;;  %v3643_v33 = vsel %vm8047_vm2, %v7168_v6, %v12193_v61  ;;  %v7206_v47 = vcombine.low %v7859_v20, %v7860_v40  ;;  %v12196_v36 = vmov %v12192_v0  ;;  %v12197_v0 = vld [vmem:[#allocation41_spill] sm:$0xff]  ;;  %v10738_v43 = vld [vmem:[%s8008_s22 + $0x1a8] sm:$0xf]  ;;  %v10753_v40 = vpop.permute.xlu1 %4084 }
 0x1eb   : > { %v3646_v38 = vsel %vm8047_vm2, %v3644_v14, %v12195_v22  ;;  %v3650_v6 = vsel %vm8047_vm2, %v7169_v34, %v12196_v36  ;;  %v12198_v61 = vrot.slane %v12197_v0, 5  ;;  %4898 = vrot.lane.b32.xlu0 %v7407_v32, %s7961_s25  ;;  %v1751_v12 = vrot.slane %v1749_v44, 5  ;;  %v7119_v32 = vld [vmem:[%s8008_s22 + $0x11c] sm:$0x1]  ;;  %v220_v44 = vld [vmem:[%s8008_s22 + $0x108] sm:$0xf] }
 0x1ec   : > { %v7456_v52 = vcombine.low %v3643_v33, %v3646_v38  ;;  %v1753_v45 = vshrl.u32 %v7858_v4, 16  ;;  %v10744_v34 = vrot.slane %v1764_v41, 4  ;;  %v10748_v22 = vrot.slane %v1767_v49, 5  ;;  %v7862_v38 = vld [vmem:[%s8008_s22 + $0x8c] sm:$0x1]  ;;  %4258 = vrot.lane.b32.xlu1 %v7279_v50, %s7961_s25 }
 0x1ed   : > { %v3653_v14 = vsel %vm8047_vm2, %v3651_v10, %v12198_v61  ;;  %v1747_v10 = vrot.slane %v1746_v1, 4  ;;  %v1759_v20 = vshll.u32 %v7862_v38, 16  ;;  %v7311_v41 = vcombine.low %v6914_v55, %v10647_v46  ;;  %v10761_v36 = vld [vmem:[%s8008_s22 + $0x10c] sm:$0xf]  ;;  %v10763_v1 = vpop.permute.xlu0 %4692 }
 0x1ee   : > { %v7457_v33 = vcombine.low %v3650_v6, %v3653_v14  ;;  %7584 = vmatprep.mubr.msk.bf16.mxu1 %vm5180_vm6, %v7456_v52  ;;  %v1755_v4 = vrot.slane %v1753_v45, 4  ;;  %v3182_v49 = vshll.u32 %v10671_v3, 16  ;;  %v10766_v52 = vld [vmem:[%s8008_s22 + $0x9c] sm:$0xf]  ;;  %v10771_v50 = vsel %vm5180_vm6, %v7206_v47, %v10521_v39  ;;  %v10774_v14 = vld [vmem:[%s8008_s22 + $0x110] sm:$0x1]  ;;  %v10789_v6 = vpop.permute.xlu1 %4244 }
 0x1ef   : > { %v1761_v0 = vrot.slane %v1759_v20, 5  ;;  %v3188_v61 = vrot.slane %v3186_v15, 4  ;;  %v3180_v3 = vrot.slane %v3179_v59, 4  ;;  %v3192_v13 = vshll.u32 %v7119_v32, 16  ;;  %v6992_v39 = vld [vmem:[%s8008_s22 + $0x114] sm:$0xe] }
 0x1f0   : > { %7585 = vmatmul.mubr.msk.bf16.gmra.mrb[40].mxu1 %vm5180_vm6, %v7457_v33  ;;  %v1756_v46 = vor.u32 %v1755_v4, %v1751_v12  ;;  %v3184_v24 = vrot.slane %v3182_v49, 5  ;;  %v1752_v55 = vsel %vm8136_vm5, %v1747_v10, %v1751_v12  ;;  %v760_v33 = vshrl.u32 %v220_v44, 16  ;;  %4450 = vrot.lane.b32.xlu1 %v7311_v41, %s7962_s30  ;;  %v10784_v32 = vld [vmem:[%s8008_s22 + $0x118] sm:$0xf]  ;;  %v6960_v59 = vld [vmem:[%s8008_s22 + $0x11c] sm:$0x1] }
 0x1f1   : > { %v763_v45 = vshll.u32 %v220_v44, 16  ;;  %v769_v38 = vshll.u32 %v10761_v36, 16  ;;  %v3194_v4 = vrot.slane %v3192_v13, 5  ;;  %v773_v10 = vshrl.u32 %v10761_v36, 16  ;;  %v7138_v44 = vld [vmem:[%s8008_s22 + $0x60] sm:$0xe] }
 0x1f2   : > { %v1757_v47 = vrot.slane %v1756_v46, 4  ;;  %v3185_v15 = vsel %vm8136_vm5, %v3180_v3, %v3184_v24  ;;  %v3189_v20 = vor.u32 %v3188_v61, %v3184_v24  ;;  %v762_v49 = vrot.slane %v760_v33, 4  ;;  %v10794_v24 = vpop.permute.xlu0 %4884 }
 0x1f3   : > { %v765_v58 = vrot.slane %v763_v45, 5  ;;  %v771_v12 = vrot.slane %v769_v38, 5  ;;  %v779_v3 = vshll.u32 %v10774_v14, 16  ;;  %v7024_v61 = vrot.slane %v6992_v39, 9 }
 0x1f4   : > { %v1762_v41 = vsel %vm8136_vm5, %v1757_v47, %v1761_v0  ;;  %v3190_v46 = vrot.slane %v3189_v20, 4  ;;  %v775_v45 = vrot.slane %v773_v10, 4  ;;  %v2537_v38 = vrot.slane %v10784_v32, 5 }
 0x1f5   : > { %v7334_v13 = vcombine.low %v1752_v55, %v1762_v41  ;;  %v766_v33 = vor.u32 %v765_v58, %v762_v49  ;;  %v781_v17 = vrot.slane %v779_v3, 5  ;;  %v2540_v8 = vrot.slane %v6960_v59, 5 }
 0x1f6   : > { %v3195_v51 = vsel %vm8136_vm5, %v3190_v46, %v3194_v4  ;;  %v7170_v7 = vrot.slane %v7138_v44, 9  ;;  %v776_v39 = vor.u32 %v775_v45, %v771_v12  ;;  %v2538_v55 = vsel %vm8047_vm2, %v7024_v61, %v2537_v38 }
 0x1f7   : > { %v5471_v0 = vsel %vm5180_vm6, %v7334_v13, %v10524_v48  ;;  %v7439_v47 = vcombine.low %v3185_v15, %v3195_v51  ;;  %v767_v20 = vrot.slane %v766_v33, 4  ;;  %v2539_v49 = vrot.slane %v2537_v38, 4  ;;  %v7076_v13 = vld [vmem:[%s8008_s22 + $0x120] sm:$0xf]  ;;  %v10824_v33 = vpop.permute.xlu0 %5044 }
 0x1f8   : > { %v5556_v58 = vsel %vm5277_vm7, %v5471_v0, %v10560_v21  ;;  %v12199_v4 = vrot.slane %v9164_v16, 5  ;;  %v777_v51 = vrot.slane %v776_v39, 4  ;;  %v7171_v44 = vrot.slane %v7139_v62, 9  ;;  %v10816_v21 = vpop.permute.xlu1 %4436 }
 0x1f9   : > { %5058 = vrot.lane.b32.xlu0 %v7439_v47, %s7962_s30  ;;  %v772_v48 = vsel %vm8136_vm5, %v767_v20, %v771_v12  ;;  %v2541_v41 = vsel %vm8047_vm2, %v2539_v49, %v2540_v8  ;;  %v12201_v46 = vrot.slane %v9389_v42, 5  ;;  %v1320_v61 = vrot.slane %v10761_v36, 5  ;;  %v10843_v20 = vld [vmem:[%s8008_s22 + $0x124] sm:$0xf]  ;;  %v10847_v49 = vpop.f32.mrb[12].mxu0 }
 0x1fa   : > { %v3657_v59 = vsel %vm8047_vm2, %v7170_v7, %v12199_v4  ;;  %v12200_v15 = vmov %v12199_v4  ;;  %v6864_v7 = vrot.slane %v1067_v37, 9  ;;  %v782_v16 = vsel %vm8136_vm5, %v777_v51, %v781_v17  ;;  %12205 = vst [vmem:[#allocation9_spill] sm:$0xff] %v10847_v49 }
 0x1fb   : > { %v3658_v10 = vrot.slane %v12200_v15, 4  ;;  %v3665_v3 = vrot.slane %v12201_v46, 4  ;;  %v7376_v12 = vcombine.low %v2538_v55, %v2541_v41  ;;  %v12202_v62 = vrot.slane %v9224_v18, 5 }
 0x1fc   : > { %v12203_v8 = vmov %v12201_v46  ;;  %v7248_v37 = vcombine.low %v772_v48, %v782_v16  ;;  %v12204_v36 = vrot.slane %v10066_v26, 5  ;;  %v1321_v17 = vsel %vm8047_vm2, %v6864_v7, %v1320_v61 }
 0x1fd   : > { %v3660_v45 = vsel %vm8047_vm2, %v3658_v10, %v12202_v62  ;;  %v3664_v38 = vsel %vm8047_vm2, %v7171_v44, %v12203_v8  ;;  %4708 = vrot.lane.b32.xlu0 %v7376_v12, %s7963_s6  ;;  %v1322_v39 = vrot.slane %v1320_v61, 4  ;;  %v1323_v42 = vrot.slane %v10774_v14, 5  ;;  %v6002_v14 = vpop.f32.mrb[13].mxu0  ;;  %v6916_v10 = vld [vmem:[%s8008_s22 + $0x114] sm:$0xf]  ;;  %v10864_v44 = vpop.permute.xlu1 %4086 }
 0x1fe   : > { %v7458_v0 = vcombine.low %v3657_v59, %v3660_v45  ;;  %v3667_v47 = vsel %vm8047_vm2, %v3665_v3, %v12204_v36  ;;  %v3197_v55 = vshrl.u32 %v7076_v13, 16  ;;  %v5299_v26 = vsel %vm5277_vm7, %v10771_v50, %v10557_v29  ;;  %4100 = vrot.lane.b32.xlu1 %v7248_v37, %s7963_s6  ;;  %v10866_v41 = vpop.f32.mrb[14].mxu0  ;;  %v7864_v3 = vld [vmem:[%s8008_s22 + $0x94] sm:$0xf]  ;;  %v10871_v61 = vpop.permute.xlu0 %4694  ;;  %v7140_v36 = vld [vmem:[%s8008_s22 + $0x78] sm:$0xe] }
 0x1ff   : > { %v7459_v18 = vcombine.low %v3664_v38, %v3667_v47  ;;  %v3200_v4 = vshll.u32 %v7076_v13, 16  ;;  %v7408_v59 = vcombine.low %v7076_v13, %v10843_v20  ;;  %v5630_v48 = vsel %vm5342_vm8, %v5556_v58, %v10599_v57  ;;  %12206 = vst [vmem:[#allocation37_spill] sm:$0xff] %v10866_v41  ;;  %v10874_v13 = vld [vmem:[%s8008_s22 + $0x1ac] sm:$0x1]  ;;  %v10891_v47 = vld [vmem:[%s8008_s22 + $0xa8] sm:$0xf] }
 0x200   : > { %7588 = vmatprep.mubr.msk.bf16.mxu1 %vm5180_vm6, %v7458_v0  ;;  %v1324_v51 = vsel %vm8047_vm2, %v1322_v39, %v1323_v42  ;;  %v3199_v15 = vrot.slane %v3197_v55, 4  ;;  %v3210_v29 = vshrl.u32 %v10843_v20, 16  ;;  %6054 = vmatprep.mubr.bf16.mxu0 %v5630_v48  ;;  %v5374_v50 = vsel %vm5342_vm8, %v5299_v26, %v10592_v53  ;;  %v6005_v53 = vpop.f32.mrb[15].mxu0  ;;  %12207 = vst [vmem:[#allocation39_spill] sm:$0xff] %v10874_v13  ;;  %v10887_v0 = vld [vmem:[%s8008_s22 + $0x128] sm:$0x1] }
 0x201   : > { %7589 = vmatmul.mubr.msk.bf16.gmra.mrb[44].mxu1 %vm5180_vm6, %v7459_v18  ;;  %v7280_v57 = vcombine.low %v1321_v17, %v1324_v51  ;;  %v3202_v58 = vrot.slane %v3200_v4, 5  ;;  %6055 = vmatmul.mubr.bf16.gmra.mrb[40].mxu0 %v5374_v50  ;;  %v1770_v46 = vor.u32 %v10748_v22, %v10744_v34  ;;  %v1773_v7 = vshll.u32 %v7864_v3, 16  ;;  %v7866_v34 = vld [vmem:[%s8008_s22 + $0x98] sm:$0x1]  ;;  %v7868_v26 = vld [vmem:[%s8008_s22 + $0x84] sm:$0xf] }
 0x202   : > { %v1791_v12 = vshll.u32 %v10766_v52, 16  ;;  %4900 = vrot.lane.b32.xlu0 %v7408_v59, %s7961_s25  ;;  %v1777_v62 = vshrl.u32 %v7864_v3, 16  ;;  %v1783_v22 = vshll.u32 %v7866_v34, 16  ;;  %v12208_v45 = vshrl.u32 %v10766_v52, 16  ;;  %v7869_v4 = vld [vmem:[%s8008_s22 + $0x88] sm:$0xf] }
 0x203   : > { %4260 = vrot.lane.b32.xlu1 %v7280_v57, %s7961_s25  ;;  %v1775_v38 = vrot.slane %v1773_v7, 5  ;;  %v7312_v37 = vcombine.low %v6916_v10, %v10784_v32  ;;  %v1771_v18 = vrot.slane %v1770_v46, 4  ;;  %v3203_v42 = vor.u32 %v3202_v58, %v3199_v15  ;;  %v7141_v14 = vld [vmem:[%s8008_s22 + $0x84] sm:$0xe]  ;;  %v10900_v46 = vpop.permute.xlu1 %4246  ;;  %v7870_v3 = vld [vmem:[%s8008_s22 + $0x7c] sm:$0xf] }
 0x204   : > { %v10882_v8 = vrot.slane %v12208_v45, 4  ;;  %v1779_v39 = vrot.slane %v1777_v62, 4  ;;  %v7207_v59 = vcombine.low %v7868_v26, %v7869_v4  ;;  %v3206_v48 = vshll.u32 %v10843_v20, 16  ;;  %v7871_v53 = vld [vmem:[%s8008_s22 + $0x80] sm:$0x1]  ;;  %v10907_v62 = vpop.f32.mrb[12].mxu1 }
 0x205   : > { %v3212_v32 = vrot.slane %v3210_v29, 4  ;;  %v1785_v50 = vrot.slane %v1783_v22, 5  ;;  %v3216_v10 = vshll.u32 %v10887_v0, 16  ;;  %v7172_v57 = vrot.slane %v7140_v36, 9  ;;  %v10905_v29 = vpop.permute.xlu0 %4886  ;;  %12209 = vst [vmem:[#allocation8_spill] sm:$0xff] %v10907_v62 }
 0x206   : > { %v1780_v51 = vor.u32 %v1779_v39, %v1775_v38  ;;  %v3204_v15 = vrot.slane %v3203_v42, 4  ;;  %v3208_v58 = vrot.slane %v3206_v48, 5  ;;  %v3670_v7 = vrot.slane %v7870_v3, 5  ;;  %v7872_v36 = vld [vmem:[%s8008_s22 + $0x88] sm:$0xf]  ;;  %v6194_v42 = vpop.f32.mrb[13].mxu1 }
 0x207   : > { %4452 = vrot.lane.b32.xlu1 %v7312_v37, %s7962_s30  ;;  %v3673_v20 = vrot.slane %v7871_v53, 5  ;;  %v1776_v34 = vsel %vm8136_vm5, %v1771_v18, %v1775_v38  ;;  %v7173_v45 = vrot.slane %v7141_v14, 9  ;;  %v3677_v39 = vrot.slane %v7872_v36, 5  ;;  %v222_v37 = vld [vmem:[%s8008_s22 + $0x114] sm:$0xf]  ;;  %v10918_v16 = vpop.f32.mrb[14].mxu1 }
 0x208   : > { %v1781_v22 = vrot.slane %v1780_v51, 4  ;;  %v3213_v26 = vor.u32 %v3212_v32, %v3208_v58  ;;  %v3218_v4 = vrot.slane %v3216_v10, 5  ;;  %v3671_v48 = vsel %vm8047_vm2, %v7172_v57, %v3670_v7  ;;  %v10916_v53 = vld [vmem:[%s8008_s22 + $0x118] sm:$0xf]  ;;  %12210 = vst [vmem:[#allocation18_spill] sm:$0xff] %v10918_v16  ;;  %v6197_v10 = vpop.f32.mrb[15].mxu1 }
 0x209   : > { %v3672_v3 = vrot.slane %v3670_v7, 4  ;;  %v3678_v18 = vsel %vm8047_vm2, %v7173_v45, %v3677_v39  ;;  %v3679_v14 = vrot.slane %v3677_v39, 4  ;;  %v7873_v51 = vld [vmem:[%s8008_s22 + $0x8c] sm:$0x1]  ;;  %v3209_v57 = vsel %vm8136_vm5, %v3204_v15, %v3208_v58  ;;  %v10936_v10 = vpop.permute.xlu1 %4438  ;;  %v7144_v41 = vld [vmem:[%s8008_s22 + $0xa8] sm:$0xe] }
 0x20a   : > { %v1786_v38 = vsel %vm8136_vm5, %v1781_v22, %v1785_v50  ;;  %v3680_v32 = vrot.slane %v7873_v51, 5  ;;  %v3214_v7 = vrot.slane %v3213_v26, 4  ;;  %v784_v42 = vshrl.u32 %v222_v37, 16  ;;  %v265_v22 = vld [vmem:[%s8008_s22 + $0x11c] sm:$0x1] }
 0x20b   : > { %v3674_v36 = vsel %vm8047_vm2, %v3672_v3, %v3673_v20  ;;  %v787_v45 = vshll.u32 %v222_v37, 16  ;;  %v793_v39 = vshll.u32 %v10916_v53, 16  ;;  %v10934_v51 = vld [vmem:[%s8008_s22 + $0x124] sm:$0xf]  ;;  %v7335_v17 = vcombine.low %v1776_v34, %v1786_v38  ;;  %v6961_v26 = vld [vmem:[%s8008_s22 + $0x128] sm:$0x1]  ;;  %v10942_v3 = vpop.permute.xlu0 %5046 }
 0x20c   : > { %v7460_v55 = vcombine.low %v3671_v48, %v3674_v36  ;;  %v3681_v50 = vsel %vm8047_vm2, %v3679_v14, %v3680_v32  ;;  %v3219_v15 = vsel %vm8136_vm5, %v3214_v7, %v3218_v4  ;;  %v786_v20 = vrot.slane %v784_v42, 4  ;;  %v6993_v48 = vld [vmem:[%s8008_s22 + $0x120] sm:$0xe] }
 0x20d   : > { %v7461_v58 = vcombine.low %v3678_v18, %v3681_v50  ;;  %v10946_v37 = vrot.slane %v1791_v12, 5  ;;  %v5216_v14 = vsel %vm5180_vm6, %v7207_v59, %v10624_v28  ;;  %v7440_v32 = vcombine.low %v3209_v57, %v3219_v15  ;;  %v1068_v12 = vld [vmem:[%s8008_s22 + $0x114] sm:$0xe]  ;;  %v7078_v15 = vld [vmem:[%s8008_s22 + $0x12c] sm:$0xf] }
 0x20e   : > { %7592 = vmatprep.mubr.msk.bf16.mxu1 %vm5180_vm6, %v7460_v55  ;;  %v789_v34 = vrot.slane %v787_v45, 5  ;;  %v12211_v4 = vshrl.u32 %v10891_v47, 16  ;;  %v795_v18 = vrot.slane %v793_v39, 5  ;;  %v797_v7 = vshrl.u32 %v10916_v53, 16 }
 0x20f   : > { %7593 = vmatmul.mubr.msk.bf16.gmra.mrb[48].mxu1 %vm5180_vm6, %v7461_v58  ;;  %v803_v52 = vshll.u32 %v265_v22, 16  ;;  %5060 = vrot.lane.b32.xlu0 %v7440_v32, %s7962_s30  ;;  %v7025_v28 = vrot.slane %v6993_v48, 9  ;;  %v2544_v59 = vrot.slane %v10934_v51, 5  ;;  %v2547_v55 = vrot.slane %v6961_v26, 5  ;;  %v10971_v26 = vpop.permute.xlu1 %4088 }
 0x210   : > { %v10953_v38 = vrot.slane %v12211_v4, 4  ;;  %v790_v36 = vor.u32 %v789_v34, %v786_v20  ;;  %v12212_v57 = vshll.u32 %v10891_v47, 16  ;;  %v5474_v50 = vsel %vm5180_vm6, %v7335_v17, %v10642_v60  ;;  %v10975_v60 = vld [vmem:[%s8008_s22 + $0x130] sm:$0xf] }
 0x211   : > { %v5301_v45 = vsel %vm5277_vm7, %v5216_v14, %v10663_v25  ;;  %v799_v39 = vrot.slane %v797_v7, 4  ;;  %v2545_v20 = vsel %vm8047_vm2, %v7025_v28, %v2544_v59  ;;  %v2546_v48 = vrot.slane %v2544_v59, 4  ;;  %v10977_v25 = vpop.permute.xlu0 %4696 }
 0x212   : > { %v10962_v42 = vrot.slane %v12212_v57, 5  ;;  %v791_v58 = vrot.slane %v790_v36, 4  ;;  %v6865_v32 = vrot.slane %v1068_v12, 9  ;;  %v805_v34 = vrot.slane %v803_v52, 5  ;;  %v7142_v36 = vld [vmem:[%s8008_s22 + $0x90] sm:$0xe] }
 0x213   : > { %v800_v47 = vor.u32 %v799_v39, %v795_v18  ;;  %v1327_v4 = vrot.slane %v10916_v53, 5  ;;  %v1330_v57 = vrot.slane %v265_v22, 5  ;;  %v5558_v17 = vsel %vm5277_vm7, %v5474_v50, %v10666_v9  ;;  %v7143_v50 = vld [vmem:[%s8008_s22 + $0x9c] sm:$0xe] }
 0x214   : > { %v2548_v14 = vsel %vm8047_vm2, %v2546_v48, %v2547_v55  ;;  %v3221_v7 = vshrl.u32 %v7078_v15, 16  ;;  %v3224_v12 = vshll.u32 %v7078_v15, 16  ;;  %v796_v52 = vsel %vm8136_vm5, %v791_v58, %v795_v18 }
 0x215   : > { %v801_v53 = vrot.slane %v800_v47, 4  ;;  %v7377_v22 = vcombine.low %v2545_v20, %v2548_v14  ;;  %v1329_v28 = vrot.slane %v1327_v4, 4  ;;  %v1328_v59 = vsel %vm8047_vm2, %v6865_v32, %v1327_v4  ;;  %v7874_v20 = vld [vmem:[%s8008_s22 + $0x94] sm:$0xf]  ;;  %v7875_v14 = vld [vmem:[%s8008_s22 + $0x98] sm:$0x1] }
 0x216   : > { %v3234_v39 = vshrl.u32 %v10975_v60, 16  ;;  %v7409_v9 = vcombine.low %v7078_v15, %v10975_v60  ;;  %v5633_v55 = vsel %vm5342_vm8, %v5558_v17, %v10708_v2  ;;  %v7174_v58 = vrot.slane %v7142_v36, 9  ;;  %v11000_v17 = vpop.permute.xlu1 %4248 }
 0x217   : > { %v806_v48 = vsel %vm8136_vm5, %v801_v53, %v805_v34  ;;  %4710 = vrot.lane.b32.xlu0 %v7377_v22, %s7963_s6  ;;  %v1331_v18 = vsel %vm8047_vm2, %v1329_v28, %v1330_v57  ;;  %6062 = vmatprep.mubr.bf16.mxu0 %v5633_v55  ;;  %v3684_v32 = vrot.slane %v7874_v20, 5  ;;  %v3223_v15 = vrot.slane %v3221_v7, 4  ;;  %v11006_v22 = vpop.permute.xlu0 %4888  ;;  %v7877_v28 = vld [vmem:[%s8008_s22 + $0xa4] sm:$0x1] }
 0x218   : > { %v7249_v47 = vcombine.low %v796_v52, %v806_v48  ;;  %v3226_v4 = vrot.slane %v3224_v12, 5  ;;  %v3687_v2 = vrot.slane %v7875_v14, 5  ;;  %v5377_v57 = vsel %vm5342_vm8, %v5301_v45, %v10699_v11  ;;  %v7876_v12 = vld [vmem:[%s8008_s22 + $0xa0] sm:$0xf]  ;;  %v7879_v20 = vld [vmem:[%s8008_s22 + $0xa4] sm:$0x1] }
 0x219   : > { %v3685_v34 = vsel %vm8047_vm2, %v7174_v58, %v3684_v32  ;;  %v3686_v53 = vrot.slane %v3684_v32, 4  ;;  %v7175_v36 = vrot.slane %v7143_v50, 9  ;;  %v7281_v7 = vcombine.low %v1328_v59, %v1331_v18  ;;  %6063 = vmatmul.mubr.bf16.gmra.mrb[44].mxu0 %v5377_v57  ;;  %v7878_v45 = vld [vmem:[%s8008_s22 + $0xa0] sm:$0xf] }
 0x21a   : > { %4102 = vrot.lane.b32.xlu1 %v7249_v47, %s7963_s6  ;;  %v3691_v52 = vrot.slane %v7876_v12, 5  ;;  %v3694_v55 = vrot.slane %v7877_v28, 5  ;;  %v1794_v48 = vor.u32 %v10946_v37, %v10882_v8  ;;  %v1797_v50 = vshll.u32 %v7878_v45, 16  ;;  %v6918_v18 = vld [vmem:[%s8008_s22 + $0x120] sm:$0xf] }
 0x21b   : > { %4902 = vrot.lane.b32.xlu0 %v7409_v9, %s7961_s25  ;;  %v3688_v11 = vsel %vm8047_vm2, %v3686_v53, %v3687_v2  ;;  %v1801_v58 = vshrl.u32 %v7878_v45, 16  ;;  %v1807_v59 = vshll.u32 %v7879_v20, 16  ;;  %v11022_v37 = vld [vmem:[%s8008_s22 + $0xb4] sm:$0xf]  ;;  %v11027_v12 = vld [vmem:[%s8008_s22 + $0xc0] sm:$0xf]  ;;  %v11039_v45 = vpop.permute.xlu1 %4440  ;;  %v11046_v9 = vpop.permute.xlu0 %5048 }
 0x21c   : > { %v7462_v32 = vcombine.low %v3685_v34, %v3688_v11  ;;  %v3692_v47 = vsel %vm8047_vm2, %v7175_v36, %v3691_v52  ;;  %v3693_v14 = vrot.slane %v3691_v52, 4  ;;  %v1795_v8 = vrot.slane %v1794_v48, 4  ;;  %v11036_v28 = vld [vmem:[%s8008_s22 + $0x134] sm:$0x1]  ;;  %v224_v11 = vld [vmem:[%s8008_s22 + $0x120] sm:$0xf] }
 0x21d   : > { %v1799_v53 = vrot.slane %v1797_v50, 5  ;;  %v1803_v57 = vrot.slane %v1801_v58, 4  ;;  %v7313_v52 = vcombine.low %v6918_v18, %v10934_v51  ;;  %v3227_v48 = vor.u32 %v3226_v4, %v3223_v15  ;;  %v7882_v50 = vld [vmem:[%s8008_s22 + $0x90] sm:$0xf]  ;;  %v7883_v58 = vld [vmem:[%s8008_s22 + $0x94] sm:$0xf] }
 0x21e   : > { %4262 = vrot.lane.b32.xlu1 %v7281_v7, %s7961_s25  ;;  %7596 = vmatprep.mubr.msk.bf16.mxu1 %vm5180_vm6, %v7462_v32  ;;  %v3695_v36 = vsel %vm8047_vm2, %v3693_v14, %v3694_v55  ;;  %v7208_v20 = vcombine.low %v7882_v50, %v7883_v58  ;;  %v1809_v2 = vrot.slane %v1807_v59, 5  ;;  %v11044_v32 = vld [vmem:[%s8008_s22 + $0x124] sm:$0xf]  ;;  %v3230_v15 = vshll.u32 %v10975_v60, 16  ;;  %v11055_v18 = vld [vmem:[%s8008_s22 + $0x128] sm:$0x1] }
 0x21f   : > { %v7463_v34 = vcombine.low %v3692_v47, %v3695_v36  ;;  %v1804_v7 = vor.u32 %v1803_v57, %v1799_v53  ;;  %v1800_v55 = vsel %vm8136_vm5, %v1795_v8, %v1799_v53  ;;  %v3236_v4 = vrot.slane %v3234_v39, 4  ;;  %v6994_v36 = vld [vmem:[%s8008_s22 + $0x12c] sm:$0xe]  ;;  %v11063_v58 = vpop.f32.mrb[16].mxu0  ;;  %v11077_v31 = vpop.permute.xlu1 %4090 }
 0x220   : > { %v3228_v47 = vrot.slane %v3227_v48, 4  ;;  %v3240_v14 = vshll.u32 %v11036_v28, 16  ;;  %v808_v57 = vshrl.u32 %v224_v11, 16  ;;  %v3232_v8 = vrot.slane %v3230_v15, 5  ;;  %12213 = vst [vmem:[#allocation2_spill] sm:$0xff] %v11063_v58  ;;  %v6010_v58 = vpop.f32.mrb[17].mxu0 }
 0x221   : > { %7597 = vmatmul.mubr.msk.bf16.gmra.mrb[52].mxu1 %vm5180_vm6, %v7463_v34  ;;  %v1805_v59 = vrot.slane %v1804_v7, 4  ;;  %v811_v53 = vshll.u32 %v224_v11, 16  ;;  %v817_v50 = vshll.u32 %v11044_v32, 16  ;;  %v821_v39 = vshrl.u32 %v11044_v32, 16  ;;  %v6962_v15 = vld [vmem:[%s8008_s22 + $0x134] sm:$0x1] }
 0x222   : > { %4454 = vrot.lane.b32.xlu1 %v7313_v52, %s7962_s30  ;;  %v11067_v34 = vsel %vm5180_vm6, %v7208_v20, %v10753_v40  ;;  %v810_v7 = vrot.slane %v808_v57, 4  ;;  %v827_v51 = vshll.u32 %v11055_v18, 16  ;;  %v11073_v52 = vld [vmem:[%s8008_s22 + $0x130] sm:$0xf]  ;;  %v3237_v16 = vor.u32 %v3236_v4, %v3232_v8  ;;  %v11081_v57 = vpop.permute.xlu0 %4698  ;;  %v11083_v49 = vpop.f32.mrb[18].mxu0 }
 0x223   : > { %v1810_v48 = vsel %vm8136_vm5, %v1805_v59, %v1809_v2  ;;  %v3242_v62 = vrot.slane %v3240_v14, 5  ;;  %v813_v27 = vrot.slane %v811_v53, 5  ;;  %v3233_v40 = vsel %vm8136_vm5, %v3228_v47, %v3232_v8  ;;  %12214 = vst [vmem:[#allocation5_spill] sm:$0xff] %v11083_v49  ;;  %v6013_v53 = vpop.f32.mrb[19].mxu0 }
 0x224   : > { %v7336_v11 = vcombine.low %v1800_v55, %v1810_v48  ;;  %v819_v20 = vrot.slane %v817_v50, 5  ;;  %v823_v2 = vrot.slane %v821_v39, 4  ;;  %v7026_v59 = vrot.slane %v6994_v36, 9  ;;  %v7145_v36 = vld [vmem:[%s8008_s22 + $0xb4] sm:$0xe] }
 0x225   : > { %v3238_v54 = vrot.slane %v3237_v16, 4  ;;  %v814_v55 = vor.u32 %v813_v27, %v810_v7  ;;  %v829_v4 = vrot.slane %v827_v51, 5  ;;  %v2551_v14 = vrot.slane %v11073_v52, 5  ;;  %v7884_v53 = vld [vmem:[%s8008_s22 + $0xac] sm:$0xf] }
 0x226   : > { %v5477_v58 = vsel %vm5180_vm6, %v7336_v11, %v10763_v1  ;;  %v824_v48 = vor.u32 %v823_v2, %v819_v20  ;;  %v2554_v47 = vrot.slane %v6962_v15, 5  ;;  %v7176_v8 = vrot.slane %v7144_v41, 9  ;;  %v7885_v1 = vld [vmem:[%s8008_s22 + $0xb0] sm:$0x1] }
 0x227   : > { %v3243_v50 = vsel %vm8136_vm5, %v3238_v54, %v3242_v62  ;;  %v815_v16 = vrot.slane %v814_v55, 4  ;;  %v2552_v27 = vsel %vm8047_vm2, %v7026_v59, %v2551_v14  ;;  %v2553_v51 = vrot.slane %v2551_v14, 4  ;;  %v7886_v54 = vld [vmem:[%s8008_s22 + $0xb8] sm:$0xf]  ;;  %v1069_v55 = vld [vmem:[%s8008_s22 + $0x120] sm:$0xe]  ;;  %v11101_v59 = vpop.permute.xlu1 %4250 }
 0x228   : > { %v7441_v39 = vcombine.low %v3233_v40, %v3243_v50  ;;  %v825_v7 = vrot.slane %v824_v48, 4  ;;  %v3698_v49 = vrot.slane %v7884_v53, 5  ;;  %v3701_v11 = vrot.slane %v7885_v1, 5  ;;  %v7080_v50 = vld [vmem:[%s8008_s22 + $0x138] sm:$0xf] }
 0x229   : > { %v820_v41 = vsel %vm8136_vm5, %v815_v16, %v819_v20  ;;  %v2555_v15 = vsel %vm8047_vm2, %v2553_v51, %v2554_v47  ;;  %v7177_v2 = vrot.slane %v7145_v36, 9  ;;  %v3705_v62 = vrot.slane %v7886_v54, 5  ;;  %v11109_v16 = vpop.permute.xlu0 %4890  ;;  %v11111_v47 = vpop.f32.mrb[16].mxu1  ;;  %v7887_v1 = vld [vmem:[%s8008_s22 + $0xbc] sm:$0x1] }
 0x22a   : > { %5062 = vrot.lane.b32.xlu0 %v7441_v39, %s7962_s30  ;;  %v830_v40 = vsel %vm8136_vm5, %v825_v7, %v829_v4  ;;  %v7378_v14 = vcombine.low %v2552_v27, %v2555_v15  ;;  %v3699_v48 = vsel %vm8047_vm2, %v7176_v8, %v3698_v49  ;;  %v3700_v20 = vrot.slane %v3698_v49, 4  ;;  %12215 = vst [vmem:[#allocation4_spill] sm:$0xff] %v11111_v47  ;;  %v6202_v54 = vpop.f32.mrb[17].mxu1 }
 0x22b   : > { %v7250_v36 = vcombine.low %v820_v41, %v830_v40  ;;  %v3706_v51 = vsel %vm8047_vm2, %v7177_v2, %v3705_v62  ;;  %v3707_v53 = vrot.slane %v3705_v62, 4  ;;  %v3708_v39 = vrot.slane %v7887_v1, 5  ;;  %v11120_v7 = vpop.f32.mrb[18].mxu1 }
 0x22c   : > { %v3702_v4 = vsel %vm8047_vm2, %v3700_v20, %v3701_v11  ;;  %v6866_v27 = vrot.slane %v1069_v55, 9  ;;  %v1334_v49 = vrot.slane %v11044_v32, 5  ;;  %v1337_v8 = vrot.slane %v11055_v18, 5  ;;  %12216 = vst [vmem:[#allocation11_spill] sm:$0xff] %v11120_v7  ;;  %v6205_v40 = vpop.f32.mrb[19].mxu1 }
 0x22d   : > { %4104 = vrot.lane.b32.xlu1 %v7250_v36, %s7963_s6  ;;  %v7464_v41 = vcombine.low %v3699_v48, %v3702_v4  ;;  %v3709_v15 = vsel %vm8047_vm2, %v3707_v53, %v3708_v39  ;;  %v3245_v2 = vshrl.u32 %v7080_v50, 16  ;;  %v3248_v62 = vshll.u32 %v7080_v50, 16  ;;  %v11131_v20 = vld [vmem:[%s8008_s22 + $0x13c] sm:$0xf]  ;;  %v11149_v39 = vld [vmem:[%s8008_s22 + $0x12c] sm:$0xf] }
 0x22e   : > { %v5560_v11 = vsel %vm5277_vm7, %v5477_v58, %v10794_v24  ;;  %4712 = vrot.lane.b32.xlu0 %v7378_v14, %s7963_s6  ;;  %v7465_v32 = vcombine.low %v3706_v51, %v3709_v15  ;;  %v1335_v18 = vsel %vm8047_vm2, %v6866_v27, %v1334_v49  ;;  %v1336_v55 = vrot.slane %v1334_v49, 4  ;;  %v11140_v14 = vpop.permute.xlu1 %4442  ;;  %12217 = vst [vmem:[#allocation15_spill] sm:$0xff] %v11149_v39  ;;  %v7895_v7 = vld [vmem:[%s8008_s22 + $0xd0] sm:$0xf] }
 0x22f   : > { %v5303_v48 = vsel %vm5277_vm7, %v11067_v34, %v10789_v6  ;;  %7600 = vmatprep.mubr.msk.bf16.mxu1 %vm5180_vm6, %v7464_v41  ;;  %v3247_v36 = vrot.slane %v3245_v2, 4  ;;  %v7410_v24 = vcombine.low %v7080_v50, %v11131_v20  ;;  %v5636_v58 = vsel %vm5342_vm8, %v5560_v11, %v10824_v33  ;;  %v7888_v34 = vld [vmem:[%s8008_s22 + $0xac] sm:$0xf]  ;;  %v11151_v50 = vpop.permute.xlu0 %5050  ;;  %v7889_v2 = vld [vmem:[%s8008_s22 + $0xb0] sm:$0x1] }
 0x230   : > { %7601 = vmatmul.mubr.msk.bf16.gmra.mrb[56].mxu1 %vm5180_vm6, %v7465_v32  ;;  %v1338_v51 = vsel %vm8047_vm2, %v1336_v55, %v1337_v8  ;;  %v3250_v53 = vrot.slane %v3248_v62, 5  ;;  %6070 = vmatprep.mubr.bf16.mxu0 %v5636_v58  ;;  %v5380_v6 = vsel %vm5342_vm8, %v5303_v48, %v10816_v21  ;;  %v1821_v1 = vshll.u32 %v7888_v34, 16  ;;  %v7146_v32 = vld [vmem:[%s8008_s22 + $0xc0] sm:$0xe]  ;;  %v11182_v48 = vld [vmem:[%s8008_s22 + $0xe4] sm:$0xf] }
 0x231   : > { %v12218_v33 = vshrl.u32 %v11022_v37, 16  ;;  %v7282_v4 = vcombine.low %v1335_v18, %v1338_v51  ;;  %6071 = vmatmul.mubr.bf16.gmra.mrb[48].mxu0 %v5380_v6  ;;  %v1818_v27 = vor.u32 %v10962_v42, %v10953_v38  ;;  %v1825_v49 = vshrl.u32 %v7888_v34, 16 }
 0x232   : > { %v12219_v21 = vshll.u32 %v11022_v37, 16  ;;  %v3258_v41 = vshrl.u32 %v11131_v20, 16  ;;  %4904 = vrot.lane.b32.xlu0 %v7410_v24, %s7961_s25  ;;  %v1823_v15 = vrot.slane %v1821_v1, 5  ;;  %v1831_v62 = vshll.u32 %v7889_v2, 16  ;;  %v11174_v37 = vld [vmem:[%s8008_s22 + $0x140] sm:$0x1] }
 0x233   : > { %v11155_v54 = vrot.slane %v12218_v33, 4  ;;  %v12220_v40 = vshrl.u32 %v11027_v12, 16  ;;  %4264 = vrot.lane.b32.xlu1 %v7282_v4, %s7961_s25  ;;  %v1827_v38 = vrot.slane %v1825_v49, 4  ;;  %v7314_v42 = vcombine.low %v11149_v39, %v11073_v52  ;;  %v7147_v33 = vld [vmem:[%s8008_s22 + $0xcc] sm:$0xe] }
 0x234   : > { %v11161_v8 = vrot.slane %v12219_v21, 5  ;;  %v12221_v18 = vshll.u32 %v11027_v12, 16  ;;  %v1819_v58 = vrot.slane %v1818_v27, 4  ;;  %v3251_v51 = vor.u32 %v3250_v53, %v3247_v36  ;;  %v11188_v12 = vpop.permute.xlu1 %4092  ;;  %v11191_v27 = vpop.permute.xlu0 %4700  ;;  %v7891_v36 = vld [vmem:[%s8008_s22 + $0x9c] sm:$0xf] }
 0x235   : > { %v11168_v11 = vrot.slane %v12220_v40, 4  ;;  %v1828_v34 = vor.u32 %v1827_v38, %v1823_v15  ;;  %v1833_v52 = vrot.slane %v1831_v62, 5  ;;  %v3254_v1 = vshll.u32 %v11131_v20, 16  ;;  %v7892_v53 = vld [vmem:[%s8008_s22 + $0xa0] sm:$0xf] }
 0x236   : > { %v11179_v55 = vrot.slane %v12221_v18, 5  ;;  %v3252_v4 = vrot.slane %v3251_v51, 4  ;;  %v3260_v49 = vrot.slane %v3258_v41, 4  ;;  %v3264_v21 = vshll.u32 %v11174_v37, 16  ;;  %v7893_v18 = vld [vmem:[%s8008_s22 + $0xc4] sm:$0xf] }
 0x237   : > { %v7178_v2 = vrot.slane %v7146_v32, 9  ;;  %v7209_v40 = vcombine.low %v7891_v36, %v7892_v53  ;;  %v1829_v38 = vrot.slane %v1828_v34, 4  ;;  %4456 = vrot.lane.b32.xlu1 %v7314_v42, %s7962_s30  ;;  %v3256_v62 = vrot.slane %v3254_v1, 5  ;;  %v7894_v51 = vld [vmem:[%s8008_s22 + $0xc8] sm:$0x1] }
 0x238   : > { %v3712_v6 = vrot.slane %v7893_v18, 5  ;;  %v1824_v41 = vsel %vm8136_vm5, %v1819_v58, %v1823_v15  ;;  %v3715_v24 = vrot.slane %v7894_v51, 5  ;;  %v7179_v32 = vrot.slane %v7147_v33, 9  ;;  %v11207_v53 = vld [vmem:[%s8008_s22 + $0x130] sm:$0xf] }
 0x239   : > { %v3719_v47 = vrot.slane %v7895_v7, 5  ;;  %v1834_v36 = vsel %vm8136_vm5, %v1829_v38, %v1833_v52  ;;  %v3257_v34 = vsel %vm8136_vm5, %v3252_v4, %v3256_v62  ;;  %v3261_v42 = vor.u32 %v3260_v49, %v3256_v62  ;;  %v7896_v51 = vld [vmem:[%s8008_s22 + $0xd4] sm:$0x1]  ;;  %v11214_v49 = vpop.permute.xlu1 %4252 }
 0x23a   : > { %v3266_v1 = vrot.slane %v3264_v21, 5  ;;  %v3713_v15 = vsel %vm8047_vm2, %v7178_v2, %v3712_v6  ;;  %v3714_v58 = vrot.slane %v3712_v6, 4  ;;  %v3722_v52 = vrot.slane %v7896_v51, 5  ;;  %v267_v2 = vld [vmem:[%s8008_s22 + $0x134] sm:$0x1] }
 0x23b   : > { %v3720_v33 = vsel %vm8047_vm2, %v7179_v32, %v3719_v47  ;;  %v3721_v7 = vrot.slane %v3719_v47, 4  ;;  %v3262_v18 = vrot.slane %v3261_v42, 4  ;;  %v832_v4 = vshrl.u32 %v226_v19, 16  ;;  %v11223_v32 = vpop.permute.xlu0 %4892 }
 0x23c   : > { %v835_v38 = vshll.u32 %v226_v19, 16  ;;  %v5222_v21 = vsel %vm5180_vm6, %v7209_v40, %v10864_v44  ;;  %v3716_v6 = vsel %vm8047_vm2, %v3714_v58, %v3715_v24  ;;  %v841_v47 = vshll.u32 %v11207_v53, 16  ;;  %v11230_v44 = vld [vmem:[%s8008_s22 + $0x13c] sm:$0xf]  ;;  %v6963_v40 = vld [vmem:[%s8008_s22 + $0x140] sm:$0x1] }
 0x23d   : > { %v845_v62 = vshrl.u32 %v11207_v53, 16  ;;  %v7337_v42 = vcombine.low %v1824_v41, %v1834_v36  ;;  %v3267_v19 = vsel %vm8136_vm5, %v3262_v18, %v3266_v1  ;;  %v7466_v51 = vcombine.low %v3713_v15, %v3716_v6  ;;  %v6995_v24 = vld [vmem:[%s8008_s22 + $0x138] sm:$0xe] }
 0x23e   : > { %v3723_v30 = vsel %vm8047_vm2, %v3721_v7, %v3722_v52  ;;  %v7442_v58 = vcombine.low %v3257_v34, %v3267_v19  ;;  %v834_v39 = vrot.slane %v832_v4, 4  ;;  %v837_v13 = vrot.slane %v835_v38, 5 }
 0x23f   : > { %v7467_v63 = vcombine.low %v3720_v33, %v3723_v30  ;;  %7604 = vmatprep.mubr.msk.bf16.mxu1 %vm5180_vm6, %v7466_v51  ;;  %v5305_v41 = vsel %vm5277_vm7, %v5222_v21, %v10900_v46  ;;  %v843_v36 = vrot.slane %v841_v47, 5  ;;  %v847_v1 = vrot.slane %v845_v62, 4  ;;  %v11242_v33 = vld [vmem:[%s8008_s22 + $0x144] sm:$0xf]  ;;  %v11246_v21 = vpop.permute.xlu1 %4444  ;;  %v11251_v47 = vpop.permute.xlu0 %5052  ;;  %v11254_v51 = vld [vmem:[%s8008_s22 + $0x148] sm:$0xf] }
 0x240   : > { %v851_v15 = vshll.u32 %v267_v2, 16  ;;  %5064 = vrot.lane.b32.xlu0 %v7442_v58, %s7962_s30  ;;  %v838_v7 = vor.u32 %v837_v13, %v834_v39  ;;  %v7027_v18 = vrot.slane %v6995_v24, 9  ;;  %v2558_v30 = vrot.slane %v11230_v44, 5  ;;  %v7148_v58 = vld [vmem:[%s8008_s22 + $0xf0] sm:$0xe] }
 0x241   : > { %7605 = vmatmul.mubr.msk.bf16.gmra.mrb[60].mxu1 %vm5180_vm6, %v7467_v63  ;;  %v2561_v34 = vrot.slane %v6963_v40, 5  ;;  %v5480_v52 = vsel %vm5180_vm6, %v7337_v42, %v10871_v61  ;;  %v848_v4 = vor.u32 %v847_v1, %v843_v36  ;;  %v6867_v38 = vrot.slane %v1070_v56, 9 }
 0x242   : > { %v853_v46 = vrot.slane %v851_v15, 5  ;;  %v839_v6 = vrot.slane %v838_v7, 4  ;;  %v2559_v63 = vsel %vm8047_vm2, %v7027_v18, %v2558_v30  ;;  %v2560_v13 = vrot.slane %v2558_v30, 4  ;;  %v7149_v18 = vld [vmem:[%s8008_s22 + $0xfc] sm:$0xe] }
 0x243   : > { %v1341_v39 = vrot.slane %v11207_v53, 5  ;;  %v849_v62 = vrot.slane %v848_v4, 4  ;;  %v1344_v19 = vrot.slane %v267_v2, 5  ;;  %v3269_v61 = vshrl.u32 %v11242_v33, 16 }
 0x244   : > { %v3272_v56 = vshll.u32 %v11242_v33, 16  ;;  %v5562_v42 = vsel %vm5277_vm7, %v5480_v52, %v10905_v29  ;;  %v844_v40 = vsel %vm8136_vm5, %v839_v6, %v843_v36  ;;  %v2562_v53 = vsel %vm8047_vm2, %v2560_v13, %v2561_v34  ;;  %v11272_v29 = vpop.f32.mrb[20].mxu0 }
 0x245   : > { %v1343_v24 = vrot.slane %v1341_v39, 4  ;;  %v854_v2 = vsel %vm8136_vm5, %v849_v62, %v853_v46  ;;  %v7379_v1 = vcombine.low %v2559_v63, %v2562_v53  ;;  %v1342_v15 = vsel %vm8047_vm2, %v6867_v38, %v1341_v39  ;;  %v6018_v4 = vpop.f32.mrb[21].mxu0  ;;  %v7897_v63 = vld [vmem:[%s8008_s22 + $0xf4] sm:$0xf]  ;;  %v11285_v39 = vpop.permute.xlu1 %4094 }
 0x246   : > { %v11269_v7 = vrot.slane %v3269_v61, 4  ;;  %v7251_v30 = vcombine.low %v844_v40, %v854_v2  ;;  %v11276_v34 = vrot.slane %v3272_v56, 5  ;;  %v3282_v52 = vshrl.u32 %v11254_v51, 16  ;;  %v11287_v62 = vpop.f32.mrb[22].mxu0  ;;  %v7898_v61 = vld [vmem:[%s8008_s22 + $0xf8] sm:$0x1] }
 0x247   : > { %v1345_v36 = vsel %vm8047_vm2, %v1343_v24, %v1344_v19  ;;  %4714 = vrot.lane.b32.xlu0 %v7379_v1, %s7963_s6  ;;  %v7411_v46 = vcombine.low %v11242_v33, %v11254_v51  ;;  %v5639_v38 = vsel %vm5342_vm8, %v5562_v42, %v10942_v3  ;;  %v7180_v6 = vrot.slane %v7148_v58, 9  ;;  %12222 = vst [vmem:[#allocation22_spill] sm:$0xff] %v11287_v62  ;;  %v11293_v42 = vpop.permute.xlu0 %4702  ;;  %v7899_v24 = vld [vmem:[%s8008_s22 + $0x100] sm:$0xf]  ;;  %v7900_v2 = vld [vmem:[%s8008_s22 + $0x104] sm:$0x1] }
 0x248   : > { %v3726_v13 = vrot.slane %v7897_v63, 5  ;;  %4106 = vrot.lane.b32.xlu1 %v7251_v30, %s7963_s6  ;;  %v7283_v19 = vcombine.low %v1342_v15, %v1345_v36  ;;  %6078 = vmatprep.mubr.bf16.mxu0 %v5639_v38  ;;  %v3729_v33 = vrot.slane %v7898_v61, 5  ;;  %v5383_v3 = vsel %vm5342_vm8, %v5305_v41, %v10936_v10  ;;  %v6021_v15 = vpop.f32.mrb[23].mxu0  ;;  %v7901_v30 = vld [vmem:[%s8008_s22 + $0xa8] sm:$0xf]  ;;  %s7537_s6 = sshll.u32 %s12290_s14, 8 }
 0x249   : > { %v7181_v56 = vrot.slane %v7149_v18, 9  ;;  %6079 = vmatmul.mubr.bf16.gmra.mrb[52].mxu0 %v5383_v3  ;;  %v3733_v58 = vrot.slane %v7899_v24, 5  ;;  %v3736_v1 = vrot.slane %v7900_v2, 5  ;;  %v7902_v36 = vld [vmem:[%s8008_s22 + $0xac] sm:$0xf]  ;;  %v1842_v10 = vor.u32 %v11161_v8, %v11155_v54  ;;  %s11769_s14 = scalar_lea.vmem %s12007_s3, %s7537_s6 }
 0x24a   : > { %v3727_v40 = vsel %vm8047_vm2, %v7180_v6, %v3726_v13  ;;  %v3728_v53 = vrot.slane %v3726_v13, 4  ;;  %v7210_v4 = vcombine.low %v7901_v30, %v7902_v36  ;;  %v7903_v41 = vld [vmem:[%s8008_s22 + $0xb8] sm:$0xf]  ;;  %v7904_v61 = vld [vmem:[%s8008_s22 + $0xbc] sm:$0x1]  ;;  %v11331_v36 = vpop.permute.xlu1 %4254 }
 0x24b   : > { %v1845_v18 = vshll.u32 %v7903_v41, 16  ;;  %v1849_v38 = vshrl.u32 %v7903_v41, 16  ;;  %4906 = vrot.lane.b32.xlu0 %v7411_v46, %s7961_s25  ;;  %v3734_v63 = vsel %vm8047_vm2, %v7181_v56, %v3733_v58  ;;  %v3735_v13 = vrot.slane %v3733_v58, 4  ;;  %v11311_v24 = vld [vmem:[%s8008_s22 + $0x138] sm:$0xf] }
 0x24c   : > { %v3730_v6 = vsel %vm8047_vm2, %v3728_v53, %v3729_v33  ;;  %v1855_v3 = vshll.u32 %v7904_v61, 16  ;;  %4266 = vrot.lane.b32.xlu1 %v7283_v19, %s7961_s25  ;;  %v1843_v8 = vrot.slane %v1842_v10, 4  ;;  %v12223_v46 = vshrl.u32 %v11182_v48, 16  ;;  %v11323_v56 = vld [vmem:[%s8008_s22 + $0xf0] sm:$0xf]  ;;  %v11333_v10 = vpop.f32.mrb[20].mxu1  ;;  %v11339_v61 = vpop.permute.xlu0 %4894 }
 0x24d   : > { %v7468_v54 = vcombine.low %v3727_v40, %v3730_v6  ;;  %v1847_v2 = vrot.slane %v1845_v18, 5  ;;  %v1851_v15 = vrot.slane %v1849_v38, 4  ;;  %v12224_v33 = vshll.u32 %v11182_v48, 16  ;;  %v11329_v40 = vld [vmem:[%s8008_s22 + $0x14c] sm:$0x1]  ;;  %12225 = vst [vmem:[#allocation17_spill] sm:$0xff] %v11333_v10 }
 0x24e   : > { %v11316_v30 = vrot.slane %v12223_v46, 4  ;;  %v1908_v58 = vshrl.u32 %v11323_v56, 16  ;;  %v3737_v19 = vsel %vm8047_vm2, %v3735_v13, %v3736_v1  ;;  %v1857_v18 = vrot.slane %v1855_v3, 5  ;;  %v7150_v6 = vld [vmem:[%s8008_s22 + $0x108] sm:$0xe]  ;;  %v6210_v46 = vpop.f32.mrb[21].mxu1 }
 0x24f   : > { %v11320_v53 = vrot.slane %v12224_v33, 5  ;;  %7608 = vmatprep.mubr.msk.bf16.mxu1 %vm5180_vm6, %v7468_v54  ;;  %v7469_v41 = vcombine.low %v3734_v63, %v3737_v19  ;;  %v1852_v48 = vor.u32 %v1851_v15, %v1847_v2  ;;  %v7315_v38 = vcombine.low %v11311_v24, %v11230_v44  ;;  %v7151_v54 = vld [vmem:[%s8008_s22 + $0x114] sm:$0xe]  ;;  %v11348_v3 = vpop.f32.mrb[22].mxu1  ;;  %v7906_v46 = vld [vmem:[%s8008_s22 + $0x10c] sm:$0xf] }
 0x250   : > { %v1911_v1 = vshll.u32 %v11323_v56, 16  ;;  %v5225_v13 = vsel %vm5180_vm6, %v7210_v4, %v10971_v26  ;;  %v3275_v33 = vor.u32 %v11276_v34, %v11269_v7  ;;  %v3278_v63 = vshll.u32 %v11254_v51, 16  ;;  %12226 = vst [vmem:[#allocation24_spill] sm:$0xff] %v11348_v3  ;;  %v6213_v7 = vpop.f32.mrb[23].mxu1 }
 0x251   : > { %7609 = vmatmul.mubr.msk.bf16.gmra.mrb[64].mxu1 %vm5180_vm6, %v7469_v41  ;;  %v1848_v44 = vsel %vm8136_vm5, %v1843_v8, %v1847_v2  ;;  %v1853_v15 = vrot.slane %v1852_v48, 4  ;;  %4458 = vrot.lane.b32.xlu1 %v7315_v38, %s7962_s30  ;;  %v3284_v26 = vrot.slane %v3282_v52, 4  ;;  %v3288_v4 = vshll.u32 %v11329_v40, 16  ;;  %v7907_v2 = vld [vmem:[%s8008_s22 + $0x110] sm:$0x1] }
 0x252   : > { %v3276_v34 = vrot.slane %v3275_v33, 4  ;;  %v3280_v56 = vrot.slane %v3278_v63, 5  ;;  %v7182_v19 = vrot.slane %v7150_v6, 9  ;;  %v3740_v3 = vrot.slane %v7906_v46, 5  ;;  %v11365_v6 = vpop.permute.xlu1 %4446  ;;  %v7908_v46 = vld [vmem:[%s8008_s22 + $0x118] sm:$0xf] }
 0x253   : > { %v11358_v41 = vrot.slane %v1908_v58, 4  ;;  %v1858_v8 = vsel %vm8136_vm5, %v1853_v15, %v1857_v18  ;;  %v3743_v48 = vrot.slane %v7907_v2, 5  ;;  %v7183_v38 = vrot.slane %v7151_v54, 9  ;;  %v7909_v18 = vld [vmem:[%s8008_s22 + $0x11c] sm:$0x1]  ;;  %v11371_v54 = vpop.permute.xlu0 %5054 }
 0x254   : > { %v7338_v52 = vcombine.low %v1848_v44, %v1858_v8  ;;  %v3285_v10 = vor.u32 %v3284_v26, %v3280_v56  ;;  %v3290_v7 = vrot.slane %v3288_v4, 5  ;;  %v5307_v33 = vsel %vm5277_vm7, %v5225_v13, %v11000_v17  ;;  %v7910_v13 = vld [vmem:[%s8008_s22 + $0xb4] sm:$0xf]  ;;  %v7911_v4 = vld [vmem:[%s8008_s22 + $0xb8] sm:$0xf] }
 0x255   : > { %v3741_v58 = vsel %vm8047_vm2, %v7182_v19, %v3740_v3  ;;  %v3742_v63 = vrot.slane %v3740_v3, 4  ;;  %v3747_v62 = vrot.slane %v7908_v46, 5  ;;  %v3750_v15 = vrot.slane %v7909_v18, 5  ;;  %v7153_v18 = vld [vmem:[%s8008_s22 + $0x12c] sm:$0xe] }
 0x256   : > { %v5483_v44 = vsel %vm5180_vm6, %v7338_v52, %v10977_v25  ;;  %v3281_v26 = vsel %vm8136_vm5, %v3276_v34, %v3280_v56  ;;  %v3286_v17 = vrot.slane %v3285_v10, 4  ;;  %v7211_v8 = vcombine.low %v7910_v13, %v7911_v4  ;;  %v7915_v13 = vld [vmem:[%s8008_s22 + $0xfc] sm:$0xf] }
 0x257   : > { %v5564_v3 = vsel %vm5277_vm7, %v5483_v44, %v11006_v22  ;;  %v3744_v19 = vsel %vm8047_vm2, %v3742_v63, %v3743_v48  ;;  %v3748_v2 = vsel %vm8047_vm2, %v7183_v38, %v3747_v62  ;;  %v3749_v46 = vrot.slane %v3747_v62, 4  ;;  %v7152_v22 = vld [vmem:[%s8008_s22 + $0x120] sm:$0xe]  ;;  %v7912_v38 = vld [vmem:[%s8008_s22 + $0xc4] sm:$0xf] }
 0x258   : > { %v3291_v25 = vsel %vm8136_vm5, %v3286_v17, %v3290_v7  ;;  %v7470_v34 = vcombine.low %v3741_v58, %v3744_v19  ;;  %v5642_v10 = vsel %vm5342_vm8, %v5564_v3, %v11046_v9  ;;  %v5386_v56 = vsel %vm5342_vm8, %v5307_v33, %v11039_v45  ;;  %v7913_v33 = vld [vmem:[%s8008_s22 + $0xc8] sm:$0x1]  ;;  %v11406_v17 = vpop.permute.xlu0 %4704 }
 0x259   : > { %v7443_v52 = vcombine.low %v3281_v26, %v3291_v25  ;;  %v3751_v48 = vsel %vm8047_vm2, %v3749_v46, %v3750_v15  ;;  %6086 = vmatprep.mubr.bf16.mxu0 %v5642_v10  ;;  %v1866_v62 = vor.u32 %v11179_v55, %v11168_v11  ;;  %v1869_v7 = vshll.u32 %v7912_v38, 16  ;;  %v11402_v15 = vpop.permute.xlu1 %4096  ;;  %v7914_v26 = vld [vmem:[%s8008_s22 + $0x124] sm:$0xf]  ;;  %v7154_v46 = vld [vmem:[%s8008_s22 + $0x138] sm:$0xe] }
 0x25a   : > { %v11397_v58 = vrot.slane %v1911_v1, 5  ;;  %7612 = vmatprep.mubr.msk.bf16.mxu1 %vm5180_vm6, %v7470_v34  ;;  %v7471_v9 = vcombine.low %v3748_v2, %v3751_v48  ;;  %6087 = vmatmul.mubr.bf16.gmra.mrb[56].mxu0 %v5386_v56  ;;  %v1873_v45 = vshrl.u32 %v7912_v38, 16  ;;  %v1879_v63 = vshll.u32 %v7913_v33, 16 }
 0x25b   : > { %5066 = vrot.lane.b32.xlu0 %v7443_v52, %s7962_s30  ;;  %v1867_v11 = vrot.slane %v1866_v62, 4  ;;  %v1871_v55 = vrot.slane %v1869_v7, 5  ;;  %v7184_v44 = vrot.slane %v7152_v22, 9  ;;  %v3754_v1 = vrot.slane %v7914_v26, 5 }
 0x25c   : > { %v1932_v4 = vshrl.u32 %v7915_v13, 16  ;;  %v1935_v3 = vshll.u32 %v7915_v13, 16  ;;  %7613 = vmatmul.mubr.msk.bf16.gmra.mrb[68].mxu1 %vm5180_vm6, %v7471_v9  ;;  %v1875_v19 = vrot.slane %v1873_v45, 4  ;;  %v3757_v2 = vrot.slane %v10887_v0, 5 }
 0x25d   : > { %v5228_v25 = vsel %vm5180_vm6, %v7211_v8, %v11077_v31  ;;  %v3755_v34 = vsel %vm8047_vm2, %v7184_v44, %v3754_v1  ;;  %v3756_v10 = vrot.slane %v3754_v1, 4  ;;  %v7185_v56 = vrot.slane %v7153_v18, 9  ;;  %v7155_v8 = vld [vmem:[%s8008_s22 + $0x144] sm:$0xe]  ;;  %v11426_v18 = vpop.permute.xlu1 %4256  ;;  %v11433_v44 = vpop.permute.xlu0 %4896 }
 0x25e   : > { %v1876_v22 = vor.u32 %v1875_v19, %v1871_v55  ;;  %v1881_v52 = vrot.slane %v1879_v63, 5  ;;  %v3761_v48 = vrot.slane %v10975_v60, 5  ;;  %v3764_v62 = vrot.slane %v11036_v28, 5 }
 0x25f   : > { %v1872_v38 = vsel %vm8136_vm5, %v1867_v11, %v1871_v55  ;;  %v3758_v0 = vsel %vm8047_vm2, %v3756_v10, %v3757_v2  ;;  %v7186_v7 = vrot.slane %v7154_v46, 9  ;;  %v3768_v31 = vrot.slane %v11131_v20, 5 }
 0x260   : > { %v1877_v9 = vrot.slane %v1876_v22, 4  ;;  %v7472_v45 = vcombine.low %v3755_v34, %v3758_v0  ;;  %v3762_v33 = vsel %vm8047_vm2, %v7185_v56, %v3761_v48  ;;  %v3763_v63 = vrot.slane %v3761_v48, 4  ;;  %v7157_v0 = vld [vmem:[%s8008_s22 + $0x15c] sm:$0xe] }
 0x261   : > { %v11428_v60 = vrot.slane %v1932_v4, 4  ;;  %v3769_v28 = vsel %vm8047_vm2, %v7186_v7, %v3768_v31  ;;  %v3770_v11 = vrot.slane %v3768_v31, 4  ;;  %v3771_v55 = vrot.slane %v11174_v37, 5  ;;  %v11464_v7 = vpop.permute.xlu1 %4448 }
 0x262   : > { %v11435_v20 = vrot.slane %v1935_v3, 5  ;;  %v1882_v26 = vsel %vm8136_vm5, %v1877_v9, %v1881_v52  ;;  %7616 = vmatprep.mubr.msk.bf16.mxu1 %vm5180_vm6, %v7472_v45  ;;  %v3765_v1 = vsel %vm8047_vm2, %v3763_v63, %v3764_v62  ;;  %v7187_v13 = vrot.slane %v7155_v8, 9  ;;  %v7917_v52 = vld [vmem:[%s8008_s22 + $0xec] sm:$0x1]  ;;  %v7156_v62 = vld [vmem:[%s8008_s22 + $0x150] sm:$0xe] }
 0x263   : > { %v7339_v4 = vcombine.low %v1872_v38, %v1882_v26  ;;  %v5309_v37 = vsel %vm5277_vm7, %v5228_v25, %v11101_v59  ;;  %v7473_v19 = vcombine.low %v3762_v33, %v3765_v1  ;;  %v3772_v3 = vsel %vm8047_vm2, %v3770_v11, %v3771_v55  ;;  %v7916_v59 = vld [vmem:[%s8008_s22 + $0xe8] sm:$0xf]  ;;  %v7919_v38 = vld [vmem:[%s8008_s22 + $0xdc] sm:$0xf]  ;;  %v12227_v11 = vld [vmem:[#allocation6_spill] sm:$0xff] }
 0x264   : > { %v7474_v2 = vcombine.low %v3769_v28, %v3772_v3  ;;  %v3775_v46 = vrot.slane %v11254_v51, 5  ;;  %v3778_v34 = vrot.slane %v11329_v40, 5  ;;  %v1890_v10 = vor.u32 %v11320_v53, %v11316_v30  ;;  %v7918_v40 = vld [vmem:[%s8008_s22 + $0xd8] sm:$0xf]  ;;  %v12229_v26 = vld [vmem:[#allocation10_spill] sm:$0xff]  ;;  %v11479_v3 = vpop.f32.mrb[24].mxu0 }
 0x265   : > { %v5486_v56 = vsel %vm5180_vm6, %v7339_v4, %v11081_v57  ;;  %7617 = vmatmul.mubr.msk.bf16.gmra.mrb[72].mxu1 %vm5180_vm6, %v7473_v19  ;;  %v1893_v25 = vshll.u32 %v7916_v59, 16  ;;  %v1897_v22 = vshrl.u32 %v7916_v59, 16  ;;  %v1903_v48 = vshll.u32 %v7917_v52, 16 }
 0x266   : > { %v5566_v51 = vsel %vm5277_vm7, %v5486_v56, %v11109_v16  ;;  %7620 = vmatprep.mubr.msk.bf16.mxu1 %vm5180_vm6, %v7474_v2  ;;  %v7212_v30 = vcombine.low %v7918_v40, %v7919_v38  ;;  %v3776_v53 = vsel %vm8047_vm2, %v7187_v13, %v3775_v46  ;;  %v3777_v57 = vrot.slane %v3775_v46, 4  ;;  %v11468_v16 = vpop.permute.xlu0 %5056  ;;  %v7920_v2 = vld [vmem:[%s8008_s22 + $0x108] sm:$0xf]  ;;  %v12232_v56 = vld [vmem:[#allocation12_spill] sm:$0xff] }
 0x267   : > { %v5645_v31 = vsel %vm5342_vm8, %v5566_v51, %v11151_v50  ;;  %v1891_v8 = vrot.slane %v1890_v10, 4  ;;  %v1895_v9 = vrot.slane %v1893_v25, 5  ;;  %v1899_v45 = vrot.slane %v1897_v22, 4  ;;  %v12230_v46 = vld [vmem:[#allocation3_spill] sm:$0xff]  ;;  %v6026_v22 = vpop.f32.mrb[25].mxu0 }
 0x268   : > { %6094 = vmatprep.mubr.bf16.mxu0 %v5645_v31  ;;  %v5389_v33 = vsel %vm5342_vm8, %v5309_v37, %v11140_v14  ;;  %v3779_v63 = vsel %vm8047_vm2, %v3777_v57, %v3778_v34  ;;  %v7188_v28 = vrot.slane %v7156_v62, 9  ;;  %v12228_v55 = vrot.slane %v12227_v11, 5  ;;  %v11496_v40 = vpop.f32.mrb[26].mxu0  ;;  %v7921_v31 = vld [vmem:[%s8008_s22 + $0xf4] sm:$0xf] }
 0x269   : > { %6095 = vmatmul.mubr.bf16.gmra.mrb[60].mxu0 %v5389_v33  ;;  %v7475_v1 = vcombine.low %v3776_v53, %v3779_v63  ;;  %v1900_v13 = vor.u32 %v1899_v45, %v1895_v9  ;;  %v1905_v4 = vrot.slane %v1903_v48, 5  ;;  %v7189_v19 = vrot.slane %v7157_v0, 9  ;;  %v11506_v45 = vpop.permute.xlu1 %4098  ;;  %v6029_v33 = vpop.f32.mrb[27].mxu0 }
 0x26a   : > { %v3786_v50 = vsel %vm8047_vm2, %v12229_v26, %v12228_v55  ;;  %v1956_v14 = vshrl.u32 %v7920_v2, 16  ;;  %v5231_v37 = vsel %vm5180_vm6, %v7212_v30, %v11188_v12  ;;  %v12231_v34 = vrot.slane %v12230_v46, 5  ;;  %v12235_v30 = vld [vmem:[#allocation13_spill] sm:$0xff] }
 0x26b   : > { %v12233_v59 = vrot.slane %v12232_v56, 5  ;;  %v1896_v52 = vsel %vm8136_vm5, %v1891_v8, %v1895_v9  ;;  %v1901_v48 = vrot.slane %v1900_v13, 4  ;;  %v1959_v38 = vshll.u32 %v7920_v2, 16  ;;  %v7158_v9 = vld [vmem:[%s8008_s22 + $0x168] sm:$0xe]  ;;  %v11513_v13 = vpop.permute.xlu0 %4706 }
 0x26c   : > { %v3783_v10 = vsel %vm8047_vm2, %v7188_v28, %v12231_v34  ;;  %v12236_v53 = vrot.slane %v12235_v30, 5  ;;  %v1914_v0 = vor.u32 %v11397_v58, %v11358_v41  ;;  %v1917_v8 = vshll.u32 %v7921_v31, 16  ;;  %v7922_v55 = vld [vmem:[%s8008_s22 + $0xf8] sm:$0x1]  ;;  %v12237_v34 = vld [vmem:[#allocation19_spill] sm:$0xff]  ;;  %v12240_v30 = vld [vmem:[#allocation20_spill] sm:$0xff] }
 0x26d   : > { %v3791_v25 = vrot.slane %v12233_v59, 4  ;;  %v7476_v62 = vcombine.low %v3783_v10, %v3786_v50  ;;  %v12234_v51 = vmov %v12233_v59  ;;  %7621 = vmatmul.mubr.msk.bf16.gmra.mrb[76].mxu1 %vm5180_vm6, %v7475_v1  ;;  %v1906_v63 = vsel %vm8136_vm5, %v1901_v48, %v1905_v4  ;;  %v7159_v50 = vld [vmem:[%s8008_s22 + $0x174] sm:$0xe] }
 0x26e   : > { %v3790_v12 = vsel %vm8047_vm2, %v7189_v19, %v12234_v51  ;;  %v1921_v11 = vshrl.u32 %v7921_v31, 16  ;;  %v1927_v26 = vshll.u32 %v7922_v55, 16  ;;  %v11515_v41 = vrot.slane %v1956_v14, 4  ;;  %v7924_v14 = vld [vmem:[%s8008_s22 + $0xe8] sm:$0xf]  ;;  %v12242_v31 = vld [vmem:[#allocation25_spill] sm:$0xff] }
 0x26f   : > { %v3793_v57 = vsel %vm8047_vm2, %v3791_v25, %v12236_v53  ;;  %v7340_v58 = vcombine.low %v1896_v52, %v1906_v63  ;;  %v5311_v19 = vsel %vm5277_vm7, %v5231_v37, %v11214_v49  ;;  %7624 = vmatprep.mubr.msk.bf16.mxu1 %vm5180_vm6, %v7476_v62  ;;  %v1919_v1 = vrot.slane %v1917_v8, 5  ;;  %v7923_v25 = vld [vmem:[%s8008_s22 + $0xe4] sm:$0xf]  ;;  %v7160_v51 = vld [vmem:[%s8008_s22 + $0x180] sm:$0xe]  ;;  %v11550_v55 = vpop.f32.mrb[24].mxu1 }
 0x270   : > { %v7477_v28 = vcombine.low %v3790_v12, %v3793_v57  ;;  %v1915_v4 = vrot.slane %v1914_v0, 4  ;;  %v1923_v2 = vrot.slane %v1921_v11, 4  ;;  %v7190_v46 = vrot.slane %v7158_v9, 9  ;;  %v7161_v63 = vld [vmem:[%s8008_s22 + $0x18c] sm:$0xe]  ;;  %v11548_v11 = vpop.permute.xlu1 %4258 }
 0x271   : > { %v12238_v10 = vrot.slane %v12237_v34, 5  ;;  %v5489_v59 = vsel %vm5180_vm6, %v7340_v58, %v11191_v27  ;;  %v7213_v22 = vcombine.low %v7923_v25, %v7924_v14  ;;  %v1929_v52 = vrot.slane %v1927_v26, 5 }
 0x272   : > { %v7191_v48 = vrot.slane %v7159_v50, 9  ;;  %v5568_v49 = vsel %vm5277_vm7, %v5489_v59, %v11223_v32  ;;  %v1924_v37 = vor.u32 %v1923_v2, %v1919_v1  ;;  %v12241_v53 = vrot.slane %v12240_v30, 5  ;;  %v11556_v2 = vpop.permute.xlu0 %4898  ;;  %v12245_v59 = vld [vmem:[#allocation27_spill] sm:$0xff] }
 0x273   : > { %v3798_v56 = vrot.slane %v12238_v10, 4  ;;  %v12239_v62 = vmov %v12238_v10  ;;  %v5648_v57 = vsel %vm5342_vm8, %v5568_v49, %v11251_v47  ;;  %v12243_v8 = vrot.slane %v12242_v31, 5  ;;  %v11561_v10 = vld [vmem:[%s8008_s22 + $0x114] sm:$0xf] }
 0x274   : > { %v3797_v12 = vsel %vm8047_vm2, %v7190_v46, %v12239_v62  ;;  %6102 = vmatprep.mubr.bf16.mxu0 %v5648_v57  ;;  %v5392_v26 = vsel %vm5342_vm8, %v5311_v19, %v11246_v21  ;;  %v1920_v47 = vsel %vm8136_vm5, %v1915_v4, %v1919_v1  ;;  %v1925_v50 = vrot.slane %v1924_v37, 4  ;;  %v6218_v46 = vpop.f32.mrb[25].mxu1  ;;  %v12247_v19 = vld [vmem:[#allocation33_spill] sm:$0xff] }
 0x275   : > { %v3800_v27 = vsel %vm8047_vm2, %v3798_v56, %v12241_v53  ;;  %v11543_v32 = vsel %vm8047_vm2, %v7191_v48, %v12243_v8  ;;  %v12244_v9 = vmov %v12243_v8  ;;  %v7192_v58 = vrot.slane %v7160_v51, 9  ;;  %6103 = vmatmul.mubr.bf16.gmra.mrb[64].mxu0 %v5392_v26  ;;  %v11570_v4 = vpop.f32.mrb[26].mxu1  ;;  %7625 = vmatmul.mubr.msk.bf16.gmra.mrb[80].mxu1 %vm5180_vm6, %v7477_v28  ;;  %v12250_v28 = vld [vmem:[#allocation35_spill] sm:$0xff] }
 0x276   : > { %v7478_v0 = vcombine.low %v3797_v12, %v3800_v27  ;;  %v3805_v33 = vrot.slane %v12244_v9, 4  ;;  %v11558_v34 = vrot.slane %v1959_v38, 5  ;;  %v1980_v56 = vshrl.u32 %v11561_v10, 16  ;;  %v6221_v62 = vpop.f32.mrb[27].mxu1  ;;  %v12252_v27 = vld [vmem:[#allocation43_spill] sm:$0xff] }
 0x277   : > { %v12246_v25 = vrot.slane %v12245_v59, 5  ;;  %v12248_v14 = vrot.slane %v12247_v19, 5  ;;  %v1930_v38 = vsel %vm8136_vm5, %v1925_v50, %v1929_v52  ;;  %v7193_v37 = vrot.slane %v7161_v63, 9  ;;  %v12255_v63 = vld [vmem:[#allocation44_spill] sm:$0xff]  ;;  %v7162_v59 = vld [vmem:[%s8008_s22 + $0x198] sm:$0xe] }
 0x278   : > { %v5234_v12 = vsel %vm5180_vm6, %v7213_v22, %v11285_v39  ;;  %v7341_v30 = vcombine.low %v1920_v47, %v1930_v38  ;;  %7628 = vmatprep.mubr.msk.bf16.mxu1 %vm5180_vm6, %v7478_v0  ;;  %v12251_v52 = vrot.slane %v12250_v28, 5  ;;  %v12253_v57 = vrot.slane %v12252_v27, 5  ;;  %v7926_v22 = vld [vmem:[%s8008_s22 + $0x100] sm:$0xf]  ;;  %v7928_v28 = vld [vmem:[%s8008_s22 + $0xf0] sm:$0xf] }
 0x279   : > { %v3807_v21 = vsel %vm8047_vm2, %v3805_v33, %v12246_v25  ;;  %v3812_v1 = vrot.slane %v12248_v14, 4  ;;  %v12249_v51 = vmov %v12248_v14  ;;  %v1938_v39 = vor.u32 %v11435_v20, %v11428_v60  ;;  %v7163_v25 = vld [vmem:[%s8008_s22 + $0x1a4] sm:$0xe]  ;;  %v11616_v14 = vpop.permute.xlu0 %5058 }
 0x27a   : > { %v7479_v48 = vcombine.low %v11543_v32, %v3807_v21  ;;  %v3811_v49 = vsel %vm8047_vm2, %v7192_v58, %v12249_v51  ;;  %v3819_v31 = vrot.slane %v12253_v57, 4  ;;  %v12254_v32 = vmov %v12253_v57  ;;  %v7927_v58 = vld [vmem:[%s8008_s22 + $0x104] sm:$0x1]  ;;  %v11609_v21 = vpop.permute.xlu1 %4450 }
 0x27b   : > { %v3814_v53 = vsel %vm8047_vm2, %v3812_v1, %v12251_v52  ;;  %v11593_v9 = vsel %vm8047_vm2, %v7193_v37, %v12254_v32  ;;  %v1941_v0 = vshll.u32 %v7926_v22, 16  ;;  %v5492_v33 = vsel %vm5180_vm6, %v7341_v30, %v11293_v42  ;;  %v7929_v52 = vld [vmem:[%s8008_s22 + $0xf4] sm:$0xf]  ;;  %v12260_v32 = vld [vmem:[#allocation7_spill] sm:$0xff] }
 0x27c   : > { %v7480_v8 = vcombine.low %v3811_v49, %v3814_v53  ;;  %v12256_v26 = vrot.slane %v12255_v63, 5  ;;  %v1945_v50 = vshrl.u32 %v7926_v22, 16  ;;  %v1951_v46 = vshll.u32 %v7927_v58, 16 }
 0x27d   : > { %v1983_v60 = vshll.u32 %v11561_v10, 16  ;;  %v5570_v42 = vsel %vm5277_vm7, %v5492_v33, %v11339_v61  ;;  %v1943_v19 = vrot.slane %v1941_v0, 5  ;;  %v5313_v1 = vsel %vm5277_vm7, %v5234_v12, %v11331_v36  ;;  %7629 = vmatmul.mubr.msk.bf16.gmra.mrb[84].mxu1 %vm5180_vm6, %v7479_v48  ;;  %v12263_v33 = vld [vmem:[#allocation39_spill] sm:$0xff] }
 0x27e   : > { %v11604_v47 = vsel %vm8047_vm2, %v3819_v31, %v12256_v26  ;;  %v5651_v38 = vsel %vm5342_vm8, %v5570_v42, %v11371_v54  ;;  %v1939_v51 = vrot.slane %v1938_v39, 4  ;;  %v1947_v49 = vrot.slane %v1945_v50, 4  ;;  %7632 = vmatprep.mubr.msk.bf16.mxu1 %vm5180_vm6, %v7480_v8  ;;  %v7930_v50 = vld [vmem:[%s8008_s22 + $0x10c] sm:$0xf] }
 0x27f   : > { %v7481_v20 = vcombine.low %v11593_v9, %v11604_v47  ;;  %6110 = vmatprep.mubr.bf16.mxu0 %v5651_v38  ;;  %v5395_v10 = vsel %vm5342_vm8, %v5313_v1, %v11365_v6  ;;  %v7194_v37 = vrot.slane %v7162_v59, 9  ;;  %v12257_v61 = vrot.slane %v9255_v5, 5  ;;  %v11654_v47 = vpop.permute.xlu1 %4100  ;;  %v11661_v59 = vpop.permute.xlu0 %4708 }
 0x280   : > { %v7195_v30 = vrot.slane %v7163_v25, 9  ;;  %v7214_v53 = vcombine.low %v7928_v28, %v7929_v52  ;;  %6111 = vmatmul.mubr.bf16.gmra.mrb[68].mxu0 %v5395_v10  ;;  %v1948_v27 = vor.u32 %v1947_v49, %v1943_v19  ;;  %v1953_v36 = vrot.slane %v1951_v46, 5 }
 0x281   : > { %v3826_v62 = vrot.slane %v12257_v61, 4  ;;  %v12258_v54 = vrot.slane %v10738_v43, 5  ;;  %v1982_v57 = vrot.slane %v1980_v56, 4  ;;  %v12259_v6 = vmov %v12257_v61 }
 0x282   : > { %v3825_v31 = vsel %vm8047_vm2, %v7194_v37, %v12259_v6  ;;  %v12261_v9 = vrot.slane %v12260_v32, 5  ;;  %v1944_v5 = vsel %vm8136_vm5, %v1939_v51, %v1943_v19  ;;  %v1949_v56 = vrot.slane %v1948_v27, 4  ;;  %v7931_v19 = vld [vmem:[%s8008_s22 + $0x110] sm:$0x1] }
 0x283   : > { %v3833_v12 = vrot.slane %v12258_v54, 4  ;;  %v12262_v22 = vmov %v12258_v54  ;;  %v12264_v63 = vrot.slane %v12263_v33, 5  ;;  %v1962_v8 = vor.u32 %v11558_v34, %v11515_v41  ;;  %v7932_v41 = vld [vmem:[%s8008_s22 + $0x120] sm:$0xf] }
 0x284   : > { %v3828_v39 = vsel %vm8047_vm2, %v3826_v62, %v12261_v9  ;;  %v11643_v0 = vsel %vm8047_vm2, %v7195_v30, %v12262_v22  ;;  %v1965_v58 = vshll.u32 %v7930_v50, 16  ;;  %v1969_v46 = vshrl.u32 %v7930_v50, 16 }
 0x285   : > { %v7482_v48 = vcombine.low %v3825_v31, %v3828_v39  ;;  %v11652_v26 = vsel %vm8047_vm2, %v3833_v12, %v12264_v63  ;;  %v1985_v25 = vrot.slane %v1983_v60, 5  ;;  %v5237_v23 = vsel %vm5180_vm6, %v7214_v53, %v11402_v15  ;;  %v7933_v53 = vld [vmem:[%s8008_s22 + $0x118] sm:$0xf]  ;;  %7633 = vmatmul.mubr.msk.bf16.gmra.mrb[88].mxu1 %vm5180_vm6, %v7481_v20  ;;  %v7934_v12 = vld [vmem:[%s8008_s22 + $0x11c] sm:$0x1]  ;;  %v4901_v31 = vpop.permute.xlu0 %4900 }
 0x286   : > { %v7483_v43 = vcombine.low %v11643_v0, %v11652_v26  ;;  %v1954_v42 = vsel %vm8136_vm5, %v1949_v56, %v1953_v36  ;;  %v1975_v1 = vshll.u32 %v7931_v19, 16  ;;  %v1963_v51 = vrot.slane %v1962_v8, 4  ;;  %v11678_v36 = vpop.permute.xlu1 %4260  ;;  %v7937_v8 = vld [vmem:[%s8008_s22 + $0x124] sm:$0xf] }
 0x287   : > { %v7342_v38 = vcombine.low %v1944_v5, %v1954_v42  ;;  %v1967_v49 = vrot.slane %v1965_v58, 5  ;;  %v1971_v10 = vrot.slane %v1969_v46, 4  ;;  %v2004_v34 = vshrl.u32 %v7932_v41, 16  ;;  %7636 = vmatprep.mubr.msk.bf16.mxu1 %vm5180_vm6, %v7482_v48 }
 0x288   : > { %v2007_v37 = vshll.u32 %v7932_v41, 16  ;;  %v5315_v15 = vsel %vm5277_vm7, %v5237_v23, %v11426_v18  ;;  %v1977_v62 = vrot.slane %v1975_v1, 5  ;;  %v1986_v52 = vor.u32 %v1985_v25, %v1982_v57  ;;  %v7936_v57 = vld [vmem:[%s8008_s22 + $0x100] sm:$0xf]  ;;  %v7938_v41 = vld [vmem:[%s8008_s22 + $0x128] sm:$0x1] }
 0x289   : > { %v5495_v60 = vsel %vm5180_vm6, %v7342_v38, %v11406_v17  ;;  %v1972_v61 = vor.u32 %v1971_v10, %v1967_v49  ;;  %v1968_v28 = vsel %vm8136_vm5, %v1963_v51, %v1967_v49  ;;  %v1989_v27 = vshll.u32 %v7933_v53, 16  ;;  %v5061_v1 = vpop.permute.xlu0 %5060  ;;  %v11702_v49 = vpop.f32.mrb[28].mxu0 }
 0x28a   : > { %v5572_v30 = vsel %vm5277_vm7, %v5495_v60, %v11433_v44  ;;  %v1993_v54 = vshrl.u32 %v7933_v53, 16  ;;  %v1999_v6 = vshll.u32 %v7934_v12, 16  ;;  %v7935_v44 = vld [vmem:[%s8008_s22 + $0xfc] sm:$0xf]  ;;  %v5398_v9 = vsel %vm5342_vm8, %v5315_v15, %v11464_v7  ;;  %v4453_v23 = vpop.permute.xlu1 %4452  ;;  %v7939_v60 = vld [vmem:[%s8008_s22 + $0x108] sm:$0xf] }
 0x28b   : > { %v5654_v17 = vsel %vm5342_vm8, %v5572_v30, %v11468_v16  ;;  %v1973_v18 = vrot.slane %v1972_v61, 4  ;;  %v7215_v32 = vcombine.low %v7935_v44, %v7936_v57  ;;  %v1987_v39 = vrot.slane %v1986_v52, 4 }
 0x28c   : > { %6118 = vmatprep.mubr.bf16.mxu0 %v5654_v17  ;;  %v1991_v20 = vrot.slane %v1989_v27, 5  ;;  %v1995_v22 = vrot.slane %v1993_v54, 4  ;;  %v2006_v5 = vrot.slane %v2004_v34, 4  ;;  %v2009_v56 = vrot.slane %v2007_v37, 5  ;;  %v6034_v37 = vpop.f32.mrb[29].mxu0 }
 0x28d   : > { %6119 = vmatmul.mubr.bf16.gmra.mrb[72].mxu0 %v5398_v9  ;;  %v1978_v16 = vsel %vm8136_vm5, %v1973_v18, %v1977_v62  ;;  %v2001_v48 = vrot.slane %v1999_v6, 5  ;;  %v2013_v50 = vshll.u32 %v7937_v8, 16  ;;  %v2017_v58 = vshrl.u32 %v7937_v8, 16  ;;  %7637 = vmatmul.mubr.msk.bf16.gmra.mrb[92].mxu1 %vm5180_vm6, %v7483_v43  ;;  %v11717_v43 = vpop.f32.mrb[30].mxu0  ;;  %v4711_v17 = vpop.permute.xlu0 %4710 }
 0x28e   : > { %v7343_v33 = vcombine.low %v1968_v28, %v1978_v16  ;;  %v1996_v63 = vor.u32 %v1995_v22, %v1991_v20  ;;  %v5240_v46 = vsel %vm5180_vm6, %v7215_v32, %v11506_v45  ;;  %v1992_v25 = vsel %vm8136_vm5, %v1987_v39, %v1991_v20  ;;  %v4103_v30 = vpop.permute.xlu1 %4102  ;;  %v7942_v32 = vld [vmem:[%s8008_s22 + $0x118] sm:$0xf]  ;;  %v12265_v22 = vld [vmem:[#allocation15_spill] sm:$0xff] }
 0x28f   : > { %v2015_v38 = vrot.slane %v2013_v50, 5  ;;  %v2019_v51 = vrot.slane %v2017_v58, 4  ;;  %v2010_v10 = vor.u32 %v2009_v56, %v2006_v5  ;;  %v2023_v34 = vshll.u32 %v7938_v41, 16  ;;  %v11751_v41 = vld [vmem:[%s12006_s2] ss:$0 sm:$0xff] }
 0x290   : > { %v5498_v7 = vsel %vm5180_vm6, %v7343_v33, %v11513_v13  ;;  %v1997_v19 = vrot.slane %v1996_v63, 4  ;;  %v5317_v13 = vsel %vm5277_vm7, %v5240_v46, %v11548_v11  ;;  %v6037_v11 = vpop.f32.mrb[31].mxu0  ;;  %v11731_v6 = vpop.f32.mrb[28].mxu1  ;;  %v2028_v5 = vshrl.u32 %v12265_v22, 16  ;;  %v7943_v63 = vld [vmem:[%s8008_s22 + $0x130] sm:$0xf] }
 0x291   : > { %v5574_v42 = vsel %vm5277_vm7, %v5498_v7, %v11556_v2  ;;  %v5401_v61 = vsel %vm5342_vm8, %v5317_v13, %v11609_v21  ;;  %v2020_v26 = vor.u32 %v2019_v51, %v2015_v38  ;;  %v2011_v52 = vrot.slane %v2010_v10, 4  ;;  %v6226_v57 = vpop.f32.mrb[29].mxu1  ;;  %v4903_v39 = vpop.permute.xlu0 %4902 }
 0x292   : > { %v5657_v45 = vsel %vm5342_vm8, %v5574_v42, %v11616_v14  ;;  %v2002_v2 = vsel %vm8136_vm5, %v1997_v19, %v2001_v48  ;;  %v7940_v14 = vld [vmem:[%s8008_s22 + $0x10c] sm:$0xf]  ;;  %v2025_v27 = vrot.slane %v2023_v34, 5  ;;  %v4263_v44 = vpop.permute.xlu1 %4262  ;;  %v11736_v20 = vpop.f32.mrb[30].mxu1  ;;  %v2031_v56 = vshll.u32 %v12265_v22, 16  ;;  %v12266_v34 = vld [vmem:[#allocation36_spill] sm:$0xff] }
 0x293   : > { %6126 = vmatprep.mubr.bf16.mxu0 %v5657_v45  ;;  %v7216_v15 = vcombine.low %v7939_v60, %v7940_v14  ;;  %v7344_v0 = vcombine.low %v1992_v25, %v2002_v2  ;;  %v2021_v53 = vrot.slane %v2020_v26, 4  ;;  %v6229_v16 = vpop.f32.mrb[31].mxu1  ;;  %v2037_v48 = vshll.u32 %v7943_v63, 16  ;;  %v7944_v2 = vld [vmem:[%s8008_s22 + $0x134] sm:$0x1] }
 0x294   : > { %v2041_v8 = vshrl.u32 %v7943_v63, 16  ;;  %v2030_v25 = vrot.slane %v2028_v5, 4  ;;  %v2047_v10 = vshll.u32 %v7944_v2, 16  ;;  %v5985_v37 = vadd.f32 %v11751_v41, %v12266_v34  ;;  %v12271_v2 = vld [vmem:[#allocation42_spill] sm:$0xff] }
 0x295   : > { %6127 = vmatmul.mubr.bf16.gmra.mrb[76].mxu0 %v5401_v61  ;;  %v5501_v62 = vsel %vm5180_vm6, %v7344_v0, %v11661_v59  ;;  %v5243_v21 = vsel %vm5180_vm6, %v7216_v15, %v11654_v47  ;;  %v2016_v59 = vsel %vm8136_vm5, %v2011_v52, %v2015_v38  ;;  %v2026_v12 = vsel %vm8136_vm5, %v2021_v53, %v2025_v27  ;;  %v7941_v47 = vld [vmem:[%s8008_s22 + $0x114] sm:$0xf] }
 0x296   : > { %v5576_v28 = vsel %vm5277_vm7, %v5501_v62, %v4901_v31  ;;  %v5319_v54 = vsel %vm5277_vm7, %v5243_v21, %v11678_v36  ;;  %v7217_v9 = vcombine.low %v7941_v47, %v7942_v32  ;;  %v7345_v36 = vcombine.low %v2016_v59, %v2026_v12  ;;  %v4455_v58 = vpop.permute.xlu1 %4454  ;;  %v12267_v15 = vld [vmem:[#allocation28_spill] sm:$0xff] }
 0x297   : > { %v5660_v18 = vsel %vm5342_vm8, %v5576_v28, %v5061_v1  ;;  %v5404_v31 = vsel %vm5342_vm8, %v5319_v54, %v4453_v23  ;;  %v2033_v23 = vrot.slane %v2031_v56, 5  ;;  %v2039_v38 = vrot.slane %v2037_v48, 5  ;;  %v7945_v56 = vld [vmem:[%s8008_s22 + $0x120] sm:$0xf] }
 0x298   : > { %6134 = vmatprep.mubr.bf16.mxu0 %v5660_v18  ;;  %v5246_v33 = vsel %vm5180_vm6, %v7217_v9, %v4103_v30  ;;  %v5504_v50 = vsel %vm5180_vm6, %v7345_v36, %v4711_v17  ;;  %v2043_v51 = vrot.slane %v2041_v8, 4  ;;  %v5977_v61 = vadd.f32 %v11751_v41, %v12267_v15  ;;  %v12268_v30 = vld [vmem:[#allocation21_spill] sm:$0xff]  ;;  %v12269_v17 = vld [vmem:[#allocation34_spill] sm:$0xff] }
 0x299   : > { %v5578_v46 = vsel %vm5277_vm7, %v5504_v50, %v4903_v39  ;;  %v5321_v42 = vsel %vm5277_vm7, %v5246_v33, %v4263_v44  ;;  %v2034_v45 = vor.u32 %v2033_v23, %v2030_v25  ;;  %v2049_v26 = vrot.slane %v2047_v10, 5  ;;  %v7946_v33 = vld [vmem:[%s8008_s22 + $0x124] sm:$0xf] }
 0x29a   : > { %v5407_v1 = vsel %vm5342_vm8, %v5321_v42, %v4455_v58  ;;  %v2044_v13 = vor.u32 %v2043_v51, %v2039_v38  ;;  %v5988_v28 = vadd.f32 %v11751_v41, %v12268_v30  ;;  %v5980_v21 = vadd.f32 %v11751_v41, %v12269_v17 }
 0x29b   : > { %v2035_v14 = vrot.slane %v2034_v45, 4  ;;  %v7218_v63 = vcombine.low %v7945_v56, %v7946_v33  ;;  %v2052_v23 = vshrl.u32 %v11311_v24, 16  ;;  %v5993_v10 = vadd.f32 %v11751_v41, %v12271_v2  ;;  %v7948_v33 = vld [vmem:[%s8008_s22 + $0x140] sm:$0x1] }
 0x29c   : > { %v5063_v7 = vpop.permute.xlu0 %5062  ;;  %v2045_v0 = vrot.slane %v2044_v13, 4 }
 0x29d   : > { %6135 = vmatmul.mubr.bf16.gmra.mrb[80].mxu0 %v5404_v31  ;;  %v5663_v19 = vsel %vm5342_vm8, %v5578_v46, %v5063_v7  ;;  %v2040_v12 = vsel %vm8136_vm5, %v2035_v14, %v2039_v38  ;;  %v12270_v38 = vld [vmem:[#allocation9_spill] sm:$0xff]  ;;  %v2054_v30 = vrot.slane %v2052_v23, 4 }
 0x29e   : > { %6142 = vmatprep.mubr.bf16.mxu0 %v5663_v19  ;;  %v2050_v47 = vsel %vm8136_vm5, %v2045_v0, %v2049_v26  ;;  %v6001_v51 = vadd.f32 %v11751_v41, %v12270_v38 }
 0x29f   : > { %v4105_v60 = vpop.permute.xlu1 %4104  ;;  %v7346_v58 = vcombine.low %v2040_v12, %v2050_v47 }
 0x2a0   : > { %v4713_v11 = vpop.permute.xlu0 %4712  ;;  %v5249_v25 = vsel %vm5180_vm6, %v7218_v63, %v4105_v60  ;;  %v7947_v60 = vld [vmem:[%s8008_s22 + $0x13c] sm:$0xf]  ;;  %v2071_v63 = vshll.u32 %v7948_v33, 16  ;;  %v6036_v33 = vadd.f32 %v11751_v41, %v11717_v43 }
 0x2a1   : > { %v5507_v42 = vsel %vm5180_vm6, %v7346_v58, %v4713_v11  ;;  %v2061_v14 = vshll.u32 %v7947_v60, 16  ;;  %v2065_v26 = vshrl.u32 %v7947_v60, 16 }
 0x2a2   : > { %v2073_v23 = vrot.slane %v2071_v63, 5 }
 0x2a3   : > { %v7578_v62 = vpop.f32.mrb[32].mxu1  ;;  %v2063_v12 = vrot.slane %v2061_v14, 5 }
 0x2a4   : > { %v6274_v52 = vadd.f32 %v7578_v62, %v5985_v37  ;;  %v6265_v53 = vpop.f32.mrb[33].mxu1  ;;  %v11760_v27 = vpop.f32.mrb[32].mxu0 }
 0x2a5   : > { %6143 = vmatmul.mubr.bf16.gmra.mrb[84].mxu0 %v5407_v1  ;;  %v6266_v18 = vadd.f32 %v6265_v53, %v5977_v61  ;;  %v7579_v54 = vpop.f32.mrb[34].mxu1  ;;  %v6042_v59 = vpop.f32.mrb[33].mxu0  ;;  %v2055_v1 = vshll.u32 %v11311_v24, 16  ;;  %v12272_v61 = vld [vmem:[#allocation37_spill] sm:$0xff] }
 0x2a6   : > { %vm6522_vm9 = vcmp.ge.f32.partialorder %v6274_v52, 0.0  ;;  %v6586_v31 = vmul.f32 0.2, %v6274_v52  ;;  %v6277_v44 = vadd.f32 %v7579_v54, %v5988_v28  ;;  %v6268_v57 = vpop.f32.mrb[35].mxu1  ;;  %v11773_v39 = vpop.f32.mrb[34].mxu0  ;;  %v6004_v0 = vadd.f32 %v11751_v41, %v12272_v61  ;;  %v12273_v28 = vld [vmem:[#allocation29_spill] sm:$0xff] }
 0x2a7   : > { %vm6520_vm10 = vcmp.ge.f32.partialorder %v6266_v18, 0.0  ;;  %v6584_v32 = vmul.f32 0.2, %v6266_v18  ;;  %v6269_v9 = vadd.f32 %v6268_v57, %v5980_v21  ;;  %v4265_v36 = vpop.permute.xlu1 %4264  ;;  %v6045_v5 = vpop.f32.mrb[35].mxu0  ;;  %v2057_v21 = vrot.slane %v2055_v1, 5  ;;  %v12274_v1 = vld [vmem:[#allocation2_spill] sm:$0xff] }
 0x2a8   : > { %v6650_v16 = vsel %vm6522_vm9, %v6274_v52, %v6586_v31  ;;  %vm6523_vm11 = vcmp.ge.f32.partialorder %v6277_v44, 0.0  ;;  %v6587_v22 = vmul.f32 0.2, %v6277_v44  ;;  %v4905_v48 = vpop.permute.xlu0 %4904  ;;  %v5323_v34 = vsel %vm5277_vm7, %v5249_v25, %v4265_v36 }
 0x2a9   : > { %6714 = vst [vmem:[%s11769_s14 + $0x10] sm:$0xff] %v6650_v16  ;;  %v6648_v8 = vsel %vm6520_vm10, %v6266_v18, %v6584_v32  ;;  %vm6521_vm12 = vcmp.ge.f32.partialorder %v6269_v9, 0.0  ;;  %v6585_v50 = vmul.f32 0.2, %v6269_v9  ;;  %v5580_v45 = vsel %vm5277_vm7, %v5507_v42, %v4905_v48 }
 0x2aa   : > { %6712 = vst [vmem:[%s11769_s14] sm:$0xff] %v6648_v8  ;;  %v6651_v46 = vsel %vm6523_vm11, %v6277_v44, %v6587_v22  ;;  %v5996_v52 = vadd.f32 %v11751_v41, %v12273_v28  ;;  %v2067_v57 = vrot.slane %v2065_v26, 4  ;;  %v2058_v22 = vor.u32 %v2057_v21, %v2054_v30  ;;  %v7949_v30 = vld [vmem:[%s8008_s22 + $0x12c] sm:$0xf]  ;;  %v7950_v28 = vld [vmem:[%s8008_s22 + $0x130] sm:$0xf] }
 0x2ab   : > { %6715 = vst [vmem:[%s11769_s14 + $0x18] sm:$0xff] %v6651_v46  ;;  %v6649_v7 = vsel %vm6521_vm12, %v6269_v9, %v6585_v50  ;;  %v4457_v19 = vpop.permute.xlu1 %4456  ;;  %v6009_v38 = vadd.f32 %v11751_v41, %v12274_v1 }
 0x2ac   : > { %6713 = vst [vmem:[%s11769_s14 + $0x8] sm:$0xff] %v6649_v7  ;;  %v5410_v24 = vsel %vm5342_vm8, %v5323_v34, %v4457_v19  ;;  %v2068_v56 = vor.u32 %v2067_v57, %v2063_v12  ;;  %v2059_v58 = vrot.slane %v2058_v22, 4  ;;  %v6017_v7 = vadd.f32 %v11751_v41, %v11272_v29  ;;  %v12276_v34 = vld [vmem:[#allocation5_spill] sm:$0xff] }
 0x2ad   : > { %v6033_v22 = vadd.f32 %v11751_v41, %v11702_v49 }
 0x2ae   : > { %v2069_v25 = vrot.slane %v2068_v56, 4  ;;  %v2064_v29 = vsel %vm8136_vm5, %v2059_v58, %v2063_v12  ;;  %v6028_v58 = vadd.f32 %v11751_v41, %v11496_v40 }
 0x2b2   : > { %v5065_v13 = vpop.permute.xlu0 %5064  ;;  %v7582_v15 = vpop.f32.mrb[36].mxu1 }
 0x2b3   : > { %v5666_v37 = vsel %vm5342_vm8, %v5580_v45, %v5065_v13  ;;  %v6290_v11 = vadd.f32 %v7582_v15, %v6001_v51  ;;  %v6281_v62 = vpop.f32.mrb[37].mxu1  ;;  %v12275_v45 = vld [vmem:[#allocation22_spill] sm:$0xff]  ;;  %v2074_v15 = vsel %vm8136_vm5, %v2069_v25, %v2073_v23 }
 0x2b4   : > { %6150 = vmatprep.mubr.bf16.mxu0 %v5666_v37  ;;  %v6282_v53 = vadd.f32 %v6281_v62, %v5993_v10  ;;  %v7583_v17 = vpop.f32.mrb[38].mxu1  ;;  %v6020_v13 = vadd.f32 %v11751_v41, %v12275_v45  ;;  %v6012_v37 = vadd.f32 %v11751_v41, %v12276_v34  ;;  %v7347_v21 = vcombine.low %v2064_v29, %v2074_v15 }
 0x2b5   : > { %6151 = vmatmul.mubr.bf16.gmra.mrb[88].mxu0 %v5410_v24  ;;  %vm6526_vm13 = vcmp.ge.f32.partialorder %v6290_v11, 0.0  ;;  %v6590_v18 = vmul.f32 0.2, %v6290_v11  ;;  %v6293_v54 = vadd.f32 %v7583_v17, %v6004_v0  ;;  %v6284_v59 = vpop.f32.mrb[39].mxu1 }
 0x2b6   : > { %vm6524_vm14 = vcmp.ge.f32.partialorder %v6282_v53, 0.0  ;;  %v6588_v31 = vmul.f32 0.2, %v6282_v53  ;;  %v6285_v44 = vadd.f32 %v6284_v59, %v5996_v52  ;;  %v7219_v52 = vcombine.low %v7949_v30, %v7950_v28 }
 0x2b7   : > { %v6654_v47 = vsel %vm6526_vm13, %v6290_v11, %v6590_v18  ;;  %vm6527_vm15 = vcmp.ge.f32.partialorder %v6293_v54, 0.0  ;;  %v6591_v32 = vmul.f32 0.2, %v6293_v54 }
 0x2b8   : > { %6718 = vst [vmem:[%s11769_s14 + $0x30] sm:$0xff] %v6654_v47  ;;  %v6652_v9 = vsel %vm6524_vm14, %v6282_v53, %v6588_v31  ;;  %vm6525_vm0 = vcmp.ge.f32.partialorder %v6285_v44, 0.0  ;;  %v6589_v36 = vmul.f32 0.2, %v6285_v44 }
 0x2b9   : > { %6716 = vst [vmem:[%s11769_s14 + $0x20] sm:$0xff] %v6652_v9  ;;  %v6655_v16 = vsel %vm6527_vm15, %v6293_v54, %v6591_v32  ;;  %v4715_v42 = vpop.permute.xlu0 %4714 }
 0x2ba   : > { %6719 = vst [vmem:[%s11769_s14 + $0x38] sm:$0xff] %v6655_v16  ;;  %v6653_v5 = vsel %vm6525_vm0, %v6285_v44, %v6589_v36  ;;  %v4107_v50 = vpop.permute.xlu1 %4106  ;;  %v5510_v44 = vsel %vm5180_vm6, %v7347_v21, %v4715_v42 }
 0x2bb   : > { %6717 = vst [vmem:[%s11769_s14 + $0x28] sm:$0xff] %v6653_v5  ;;  %v11803_v48 = vpop.f32.mrb[36].mxu0  ;;  %v5252_v31 = vsel %vm5180_vm6, %v7219_v52, %v4107_v50  ;;  %v6025_v5 = vadd.f32 %v11751_v41, %v11479_v3 }
 0x2bc   : > { %v6050_v8 = vpop.f32.mrb[37].mxu0  ;;  %v6049_v34 = vadd.f32 %v11751_v41, %v11803_v48 }
 0x2bd   : > { %v11805_v46 = vpop.f32.mrb[38].mxu0  ;;  %v4907_v53 = vpop.permute.xlu0 %4906 }
 0x2be   : > { %v6053_v19 = vpop.f32.mrb[39].mxu0  ;;  %v4267_v26 = vpop.permute.xlu1 %4266  ;;  %v5582_v47 = vsel %vm5277_vm7, %v5510_v44, %v4907_v53 }
 0x2bf   : > { %v5325_v9 = vsel %vm5277_vm7, %v5252_v31, %v4267_v26 }
 0x2c3   : > { %v7586_v51 = vpop.f32.mrb[40].mxu1  ;;  %v4459_v57 = vpop.permute.xlu1 %4458 }
 0x2c4   : > { %v6306_v2 = vadd.f32 %v7586_v51, %v6017_v7  ;;  %v6297_v10 = vpop.f32.mrb[41].mxu1  ;;  %v5413_v16 = vsel %vm5342_vm8, %v5325_v9, %v4459_v57 }
 0x2c5   : > { %v6298_v60 = vadd.f32 %v6297_v10, %v6009_v38  ;;  %v7587_v14 = vpop.f32.mrb[42].mxu1 }
 0x2c6   : > { %vm6530_vm1 = vcmp.ge.f32.partialorder %v6306_v2, 0.0  ;;  %v6594_v61 = vmul.f32 0.2, %v6306_v2  ;;  %v6309_v0 = vadd.f32 %v7587_v14, %v6020_v13  ;;  %v6300_v24 = vpop.f32.mrb[43].mxu1 }
 0x2c7   : > { %vm6528_vm2 = vcmp.ge.f32.partialorder %v6298_v60, 0.0  ;;  %v6592_v11 = vmul.f32 0.2, %v6298_v60  ;;  %v6301_v62 = vadd.f32 %v6300_v24, %v6012_v37  ;;  %v6041_v37 = vadd.f32 %v11751_v41, %v11760_v27 }
 0x2c8   : > { %v6658_v17 = vsel %vm6530_vm1, %v6306_v2, %v6594_v61  ;;  %vm6531_vm3 = vcmp.ge.f32.partialorder %v6309_v0, 0.0  ;;  %v6595_v35 = vmul.f32 0.2, %v6309_v0  ;;  %v6044_v61 = vadd.f32 %v11751_v41, %v11773_v39 }
 0x2c9   : > { %6722 = vst [vmem:[%s11769_s14 + $0x50] sm:$0xff] %v6658_v17  ;;  %v6656_v18 = vsel %vm6528_vm2, %v6298_v60, %v6592_v11  ;;  %vm6529_vm4 = vcmp.ge.f32.partialorder %v6301_v62, 0.0  ;;  %v6593_v54 = vmul.f32 0.2, %v6301_v62  ;;  %v6052_v60 = vadd.f32 %v11751_v41, %v11805_v46 }
 0x2ca   : > { %6720 = vst [vmem:[%s11769_s14 + $0x40] sm:$0xff] %v6656_v18  ;;  %v6659_v59 = vsel %vm6531_vm3, %v6309_v0, %v6595_v35 }
 0x2cb   : > { %6723 = vst [vmem:[%s11769_s14 + $0x58] sm:$0xff] %v6659_v59  ;;  %v6657_v12 = vsel %vm6529_vm4, %v6301_v62, %v6593_v54 }
 0x2cc   : > { %6721 = vst [vmem:[%s11769_s14 + $0x48] sm:$0xff] %v6657_v12 }
 0x2cd   : > { %v5067_v32 = vpop.permute.xlu0 %5066 }
 0x2ce   : > { %v5669_v36 = vsel %vm5342_vm8, %v5582_v47, %v5067_v32 }
 0x2cf   : > { %6158 = vmatprep.mubr.bf16.mxu0 %v5669_v36 }
 0x2d0   : > { %6159 = vmatmul.mubr.bf16.gmra.mrb[92].mxu0 %v5413_v16 }
 0x2d4   : > { %v7590_v56 = vpop.f32.mrb[44].mxu1  ;;  %v6056_v50 = vpop.f32.mrb[40].mxu0 }
 0x2d5   : > { %v6322_v63 = vadd.f32 %v7590_v56, %v6033_v22  ;;  %v6313_v8 = vpop.f32.mrb[45].mxu1  ;;  %v6058_v23 = vpop.f32.mrb[41].mxu0  ;;  %v6057_v12 = vadd.f32 %v11751_v41, %v6056_v50 }
 0x2d6   : > { %v6314_v7 = vadd.f32 %v6313_v8, %v6025_v5  ;;  %v7591_v25 = vpop.f32.mrb[46].mxu1  ;;  %v6059_v19 = vpop.f32.mrb[42].mxu0 }
 0x2d7   : > { %vm6534_vm5 = vcmp.ge.f32.partialorder %v6322_v63, 0.0  ;;  %v6598_v49 = vmul.f32 0.2, %v6322_v63  ;;  %v6325_v42 = vadd.f32 %v7591_v25, %v6036_v33  ;;  %v6316_v3 = vpop.f32.mrb[47].mxu1  ;;  %v6061_v38 = vpop.f32.mrb[43].mxu0  ;;  %v6060_v47 = vadd.f32 %v11751_v41, %v6059_v19 }
 0x2d8   : > { %vm6532_vm6 = vcmp.ge.f32.partialorder %v6314_v7, 0.0  ;;  %v6596_v43 = vmul.f32 0.2, %v6314_v7  ;;  %v6317_v1 = vadd.f32 %v6316_v3, %v6028_v58 }
 0x2d9   : > { %v6662_v51 = vsel %vm6534_vm5, %v6322_v63, %v6598_v49  ;;  %vm6535_vm7 = vcmp.ge.f32.partialorder %v6325_v42, 0.0  ;;  %v6599_v45 = vmul.f32 0.2, %v6325_v42 }
 0x2da   : > { %6726 = vst [vmem:[%s11769_s14 + $0x70] sm:$0xff] %v6662_v51  ;;  %v6660_v40 = vsel %vm6532_vm6, %v6314_v7, %v6596_v43  ;;  %vm6533_vm8 = vcmp.ge.f32.partialorder %v6317_v1, 0.0  ;;  %v6597_v13 = vmul.f32 0.2, %v6317_v1 }
 0x2db   : > { %6724 = vst [vmem:[%s11769_s14 + $0x60] sm:$0xff] %v6660_v40  ;;  %v6663_v2 = vsel %vm6535_vm7, %v6325_v42, %v6599_v45 }
 0x2dc   : > { %6727 = vst [vmem:[%s11769_s14 + $0x78] sm:$0xff] %v6663_v2  ;;  %v6661_v10 = vsel %vm6533_vm8, %v6317_v1, %v6597_v13 }
 0x2dd   : > { %6725 = vst [vmem:[%s11769_s14 + $0x68] sm:$0xff] %v6661_v10 }
 0x2e2   : > { %v7594_v29 = vpop.f32.mrb[48].mxu1 }
 0x2e3   : > { %v6338_v14 = vadd.f32 %v7594_v29, %v6049_v34  ;;  %v6329_v15 = vpop.f32.mrb[49].mxu1 }
 0x2e4   : > { %v6330_v0 = vadd.f32 %v6329_v15, %v6041_v37  ;;  %v7595_v24 = vpop.f32.mrb[50].mxu1 }
 0x2e5   : > { %vm6538_vm9 = vcmp.ge.f32.partialorder %v6338_v14, 0.0  ;;  %v6602_v26 = vmul.f32 0.2, %v6338_v14  ;;  %v6341_v48 = vadd.f32 %v7595_v24, %v6052_v60  ;;  %v6332_v11 = vpop.f32.mrb[51].mxu1 }
 0x2e6   : > { %vm6536_vm10 = vcmp.ge.f32.partialorder %v6330_v0, 0.0  ;;  %v6600_v27 = vmul.f32 0.2, %v6330_v0  ;;  %v6333_v62 = vadd.f32 %v6332_v11, %v6044_v61 }
 0x2e7   : > { %v6666_v30 = vsel %vm6538_vm9, %v6338_v14, %v6602_v26  ;;  %vm6539_vm11 = vcmp.ge.f32.partialorder %v6341_v48, 0.0  ;;  %v6603_v46 = vmul.f32 0.2, %v6341_v48 }
 0x2e8   : > { %6730 = vst [vmem:[%s11769_s14 + $0x90] sm:$0xff] %v6666_v30  ;;  %v6664_v28 = vsel %vm6536_vm10, %v6330_v0, %v6600_v27  ;;  %vm6537_vm12 = vcmp.ge.f32.partialorder %v6333_v62, 0.0  ;;  %v6601_v52 = vmul.f32 0.2, %v6333_v62 }
 0x2e9   : > { %6728 = vst [vmem:[%s11769_s14 + $0x80] sm:$0xff] %v6664_v28  ;;  %v6667_v39 = vsel %vm6539_vm11, %v6341_v48, %v6603_v46 }
 0x2ea   : > { %6731 = vst [vmem:[%s11769_s14 + $0x98] sm:$0xff] %v6667_v39  ;;  %v6665_v53 = vsel %vm6537_vm12, %v6333_v62, %v6601_v52 }
 0x2eb   : > { %6729 = vst [vmem:[%s11769_s14 + $0x88] sm:$0xff] %v6665_v53 }
 0x2ec   : > { %v6064_v17 = vpop.f32.mrb[44].mxu0 }
 0x2ed   : > { %v6066_v35 = vpop.f32.mrb[45].mxu0  ;;  %v6065_v54 = vadd.f32 %v11751_v41, %v6064_v17 }
 0x2ee   : > { %v6067_v21 = vpop.f32.mrb[46].mxu0 }
 0x2ef   : > { %v6069_v18 = vpop.f32.mrb[47].mxu0  ;;  %v6068_v59 = vadd.f32 %v11751_v41, %v6067_v21 }
 0x2f4   : > { %v7598_v31 = vpop.f32.mrb[52].mxu1 }
 0x2f5   : > { %v6354_v44 = vadd.f32 %v7598_v31, %v6065_v54  ;;  %v6345_v57 = vpop.f32.mrb[53].mxu1 }
 0x2f6   : > { %v6346_v32 = vadd.f32 %v6345_v57, %v6057_v12  ;;  %v7599_v9 = vpop.f32.mrb[54].mxu1 }
 0x2f7   : > { %vm6542_vm13 = vcmp.ge.f32.partialorder %v6354_v44, 0.0  ;;  %v6606_v36 = vmul.f32 0.2, %v6354_v44  ;;  %v6357_v16 = vadd.f32 %v7599_v9, %v6068_v59  ;;  %v6348_v22 = vpop.f32.mrb[55].mxu1 }
 0x2f8   : > { %vm6540_vm14 = vcmp.ge.f32.partialorder %v6346_v32, 0.0  ;;  %v6604_v5 = vmul.f32 0.2, %v6346_v32  ;;  %v6349_v56 = vadd.f32 %v6348_v22, %v6060_v47 }
 0x2f9   : > { %v6670_v33 = vsel %vm6542_vm13, %v6354_v44, %v6606_v36  ;;  %vm6543_vm15 = vcmp.ge.f32.partialorder %v6357_v16, 0.0  ;;  %v6607_v63 = vmul.f32 0.2, %v6357_v16 }
 0x2fa   : > { %6734 = vst [vmem:[%s11769_s14 + $0xb0] sm:$0xff] %v6670_v33  ;;  %v6668_v8 = vsel %vm6540_vm14, %v6346_v32, %v6604_v5  ;;  %vm6541_vm0 = vcmp.ge.f32.partialorder %v6349_v56, 0.0  ;;  %v6605_v50 = vmul.f32 0.2, %v6349_v56 }
 0x2fb   : > { %6732 = vst [vmem:[%s11769_s14 + $0xa0] sm:$0xff] %v6668_v8  ;;  %v6671_v58 = vsel %vm6543_vm15, %v6357_v16, %v6607_v63 }
 0x2fc   : > { %6735 = vst [vmem:[%s11769_s14 + $0xb8] sm:$0xff] %v6671_v58  ;;  %v6669_v7 = vsel %vm6541_vm0, %v6349_v56, %v6605_v50 }
 0x2fd   : > { %6733 = vst [vmem:[%s11769_s14 + $0xa8] sm:$0xff] %v6669_v7 }
 0x303   : > { %v7602_v25 = vpop.f32.mrb[56].mxu1 }
 0x304   : > { %v6072_v23 = vpop.f32.mrb[48].mxu0  ;;  %v6361_v49 = vpop.f32.mrb[57].mxu1 }
 0x305   : > { %v6073_v42 = vadd.f32 %v11751_v41, %v6072_v23  ;;  %v6074_v3 = vpop.f32.mrb[49].mxu0  ;;  %v7603_v19 = vpop.f32.mrb[58].mxu1 }
 0x306   : > { %v6075_v43 = vpop.f32.mrb[50].mxu0  ;;  %v6364_v1 = vpop.f32.mrb[59].mxu1 }
 0x307   : > { %v6076_v38 = vadd.f32 %v11751_v41, %v6075_v43  ;;  %v6362_v51 = vadd.f32 %v6361_v49, %v6073_v42  ;;  %v6077_v45 = vpop.f32.mrb[51].mxu0 }
 0x309   : > { %vm6544_vm1 = vcmp.ge.f32.partialorder %v6362_v51, 0.0  ;;  %v6608_v40 = vmul.f32 0.2, %v6362_v51  ;;  %v6365_v13 = vadd.f32 %v6364_v1, %v6076_v38 }
 0x30b   : > { %v6672_v2 = vsel %vm6544_vm1, %v6362_v51, %v6608_v40  ;;  %vm6545_vm2 = vcmp.ge.f32.partialorder %v6365_v13, 0.0  ;;  %v6609_v10 = vmul.f32 0.2, %v6365_v13 }
 0x30c   : > { %6736 = vst [vmem:[%s11769_s14 + $0xc0] sm:$0xff] %v6672_v2  ;;  %v12277_v2 = vld [vmem:[#allocation40_spill] sm:$0xff] }
 0x30d   : > { %v6673_v34 = vsel %vm6545_vm2, %v6365_v13, %v6609_v10  ;;  %v6177_v10 = vadd.f32 %v11751_v41, %v12277_v2  ;;  %v12284_v2 = vld [vmem:[#allocation18_spill] sm:$0xff] }
 0x30e   : > { %6737 = vst [vmem:[%s11769_s14 + $0xc8] sm:$0xff] %v6673_v34 }
 0x314   : > { %v7606_v37 = vpop.f32.mrb[60].mxu1 }
 0x315   : > { %v6377_v29 = vpop.f32.mrb[61].mxu1 }
 0x316   : > { %v7607_v60 = vpop.f32.mrb[62].mxu1 }
 0x317   : > { %v6380_v14 = vpop.f32.mrb[63].mxu1 }
 0x31c   : > { %v6080_v15 = vpop.f32.mrb[52].mxu0 }
 0x31d   : > { %v6081_v61 = vadd.f32 %v11751_v41, %v6080_v15  ;;  %v6082_v0 = vpop.f32.mrb[53].mxu0 }
 0x31e   : > { %v6083_v24 = vpop.f32.mrb[54].mxu0 }
 0x31f   : > { %v6370_v26 = vadd.f32 %v7602_v25, %v6081_v61  ;;  %v6084_v48 = vadd.f32 %v11751_v41, %v6083_v24  ;;  %v6085_v11 = vpop.f32.mrb[55].mxu0  ;;  %v12279_v61 = vld [vmem:[#allocation23_spill] sm:$0xff] }
 0x320   : > { %v6180_v0 = vadd.f32 %v11751_v41, %v12279_v61  ;;  %v12280_v11 = vld [vmem:[#allocation16_spill] sm:$0xff] }
 0x321   : > { %vm6546_vm3 = vcmp.ge.f32.partialorder %v6370_v26, 0.0  ;;  %v6610_v27 = vmul.f32 0.2, %v6370_v26  ;;  %v6373_v62 = vadd.f32 %v7603_v19, %v6084_v48 }
 0x323   : > { %v6674_v30 = vsel %vm6546_vm3, %v6370_v26, %v6610_v27  ;;  %vm6547_vm4 = vcmp.ge.f32.partialorder %v6373_v62, 0.0  ;;  %v6611_v46 = vmul.f32 0.2, %v6373_v62  ;;  %v6172_v27 = vadd.f32 %v11751_v41, %v12280_v11 }
 0x324   : > { %v11869_v28 = vpop.f32.mrb[64].mxu1  ;;  %6738 = vst [vmem:[%s11769_s14 + $0xd0] sm:$0xff] %v6674_v30 }
 0x325   : > { %v6393_v52 = vpop.f32.mrb[65].mxu1  ;;  %v6675_v39 = vsel %vm6547_vm4, %v6373_v62, %v6611_v46 }
 0x326   : > { %v11872_v53 = vpop.f32.mrb[66].mxu1  ;;  %6739 = vst [vmem:[%s11769_s14 + $0xd8] sm:$0xff] %v6675_v39 }
 0x327   : > { %v11875_v17 = vpop.f32.mrb[67].mxu1 }
 0x32d   : > { %v6088_v35 = vpop.f32.mrb[56].mxu0 }
 0x32e   : > { %v6089_v21 = vadd.f32 %v11751_v41, %v6088_v35  ;;  %v6090_v18 = vpop.f32.mrb[57].mxu0 }
 0x32f   : > { %v6091_v54 = vpop.f32.mrb[58].mxu0  ;;  %v11878_v59 = vpop.f32.mrb[68].mxu1 }
 0x330   : > { %v6378_v12 = vadd.f32 %v6377_v29, %v6089_v21  ;;  %v6092_v31 = vadd.f32 %v11751_v41, %v6091_v54  ;;  %v6093_v44 = vpop.f32.mrb[59].mxu0  ;;  %v11881_v57 = vpop.f32.mrb[69].mxu1 }
 0x331   : > { %v11883_v47 = vpop.f32.mrb[70].mxu1 }
 0x332   : > { %vm6548_vm5 = vcmp.ge.f32.partialorder %v6378_v12, 0.0  ;;  %v6612_v32 = vmul.f32 0.2, %v6378_v12  ;;  %v6381_v9 = vadd.f32 %v6380_v14, %v6092_v31  ;;  %v11885_v36 = vpop.f32.mrb[71].mxu1 }
 0x334   : > { %v6676_v16 = vsel %vm6548_vm5, %v6378_v12, %v6612_v32  ;;  %vm6549_vm6 = vcmp.ge.f32.partialorder %v6381_v9, 0.0  ;;  %v6613_v22 = vmul.f32 0.2, %v6381_v9 }
 0x335   : > { %6740 = vst [vmem:[%s11769_s14 + $0xe0] sm:$0xff] %v6676_v16 }
 0x336   : > { %v6677_v5 = vsel %vm6549_vm6, %v6381_v9, %v6613_v22 }
 0x337   : > { %6741 = vst [vmem:[%s11769_s14 + $0xe8] sm:$0xff] %v6677_v5  ;;  %v12281_v5 = vld [vmem:[#allocation31_spill] sm:$0xff] }
 0x338   : > { %v11889_v56 = vpop.f32.mrb[72].mxu1 }
 0x339   : > { %v11891_v33 = vpop.f32.mrb[73].mxu1 }
 0x33a   : > { %v11893_v63 = vpop.f32.mrb[74].mxu1 }
 0x33b   : > { %v11895_v8 = vpop.f32.mrb[75].mxu1 }
 0x33c   : > { %v6096_v50 = vpop.f32.mrb[60].mxu0 }
 0x33d   : > { %v6097_v58 = vadd.f32 %v11751_v41, %v6096_v50  ;;  %v6098_v7 = vpop.f32.mrb[61].mxu0  ;;  %v6185_v50 = vadd.f32 %v11751_v41, %v12281_v5 }
 0x33e   : > { %v6099_v25 = vpop.f32.mrb[62].mxu0 }
 0x33f   : > { %v6386_v23 = vadd.f32 %v7606_v37, %v6097_v58  ;;  %v6100_v49 = vadd.f32 %v11751_v41, %v6099_v25  ;;  %v6101_v42 = vpop.f32.mrb[63].mxu0  ;;  %v12278_v37 = vld [vmem:[#allocation14_spill] sm:$0xff]  ;;  %v12282_v58 = vld [vmem:[#allocation8_spill] sm:$0xff] }
 0x340   : > { %v11899_v3 = vpop.f32.mrb[76].mxu1  ;;  %v6169_v29 = vadd.f32 %v11751_v41, %v12278_v37  ;;  %v6193_v7 = vadd.f32 %v11751_v41, %v12282_v58  ;;  %v12288_v58 = vld [vmem:[#allocation11_spill] sm:$0xff] }
 0x341   : > { %vm6550_vm7 = vcmp.ge.f32.partialorder %v6386_v23, 0.0  ;;  %v6614_v19 = vmul.f32 0.2, %v6386_v23  ;;  %v6389_v43 = vadd.f32 %v7607_v60, %v6100_v49  ;;  %v11901_v1 = vpop.f32.mrb[77].mxu1 }
 0x342   : > { %v11903_v38 = vpop.f32.mrb[78].mxu1 }
 0x343   : > { %v6678_v51 = vsel %vm6550_vm7, %v6386_v23, %v6614_v19  ;;  %vm6551_vm8 = vcmp.ge.f32.partialorder %v6389_v43, 0.0  ;;  %v6615_v45 = vmul.f32 0.2, %v6389_v43  ;;  %v11905_v40 = vpop.f32.mrb[79].mxu1 }
 0x344   : > { %6742 = vst [vmem:[%s11769_s14 + $0xf0] sm:$0xff] %v6678_v51 }
 0x345   : > { %v6679_v13 = vsel %vm6551_vm8, %v6389_v43, %v6615_v45  ;;  %v12283_v45 = vld [vmem:[#allocation26_spill] sm:$0xff] }
 0x346   : > { %6743 = vst [vmem:[%s11769_s14 + $0xf8] sm:$0xff] %v6679_v13  ;;  %v6188_v13 = vadd.f32 %v11751_v41, %v12283_v45 }
 0x348   : > { %v6104_v34 = vpop.f32.mrb[64].mxu0  ;;  %v7626_v60 = vpop.f32.mrb[80].mxu1 }
 0x349   : > { %v6105_v14 = vadd.f32 %v11751_v41, %v6104_v34  ;;  %v6106_v15 = vpop.f32.mrb[65].mxu0  ;;  %v6466_v24 = vadd.f32 %v7626_v60, %v6177_v10  ;;  %v6457_v26 = vpop.f32.mrb[81].mxu1  ;;  %v6196_v10 = vadd.f32 %v11751_v41, %v12284_v2 }
 0x34a   : > { %v6107_v48 = vpop.f32.mrb[66].mxu0  ;;  %v6458_v62 = vadd.f32 %v6457_v26, %v6169_v29  ;;  %v7627_v30 = vpop.f32.mrb[82].mxu1 }
 0x34b   : > { %v6394_v46 = vadd.f32 %v6393_v52, %v6105_v14  ;;  %v6108_v39 = vadd.f32 %v11751_v41, %v6107_v48  ;;  %v6109_v35 = vpop.f32.mrb[67].mxu0  ;;  %vm6570_vm9 = vcmp.ge.f32.partialorder %v6466_v24, 0.0  ;;  %v6634_v21 = vmul.f32 0.2, %v6466_v24  ;;  %v6460_v54 = vpop.f32.mrb[83].mxu1 }
 0x34c   : > { %v6469_v18 = vadd.f32 %v7627_v30, %v6180_v0  ;;  %vm6568_vm10 = vcmp.ge.f32.partialorder %v6458_v62, 0.0  ;;  %v6632_v12 = vmul.f32 0.2, %v6458_v62  ;;  %v6461_v31 = vadd.f32 %v6460_v54, %v6172_v27 }
 0x34d   : > { %vm6552_vm11 = vcmp.ge.f32.partialorder %v6394_v46, 0.0  ;;  %v6698_v44 = vsel %vm6570_vm9, %v6466_v24, %v6634_v21  ;;  %v6616_v9 = vmul.f32 0.2, %v6394_v46  ;;  %v6397_v22 = vadd.f32 %v11875_v17, %v6108_v39 }
 0x34e   : > { %vm6571_vm12 = vcmp.ge.f32.partialorder %v6469_v18, 0.0  ;;  %v6635_v32 = vmul.f32 0.2, %v6469_v18  ;;  %6762 = vst [vmem:[%s11769_s14 + $0x190] sm:$0xff] %v6698_v44  ;;  %v6696_v52 = vsel %vm6568_vm10, %v6458_v62, %v6632_v12  ;;  %vm6569_vm13 = vcmp.ge.f32.partialorder %v6461_v31, 0.0  ;;  %v12286_v44 = vld [vmem:[#allocation4_spill] sm:$0xff] }
 0x34f   : > { %v6633_v16 = vmul.f32 0.2, %v6461_v31  ;;  %6760 = vst [vmem:[%s11769_s14 + $0x180] sm:$0xff] %v6696_v52  ;;  %v6680_v23 = vsel %vm6552_vm11, %v6394_v46, %v6616_v9  ;;  %vm6553_vm14 = vcmp.ge.f32.partialorder %v6397_v22, 0.0  ;;  %v6617_v19 = vmul.f32 0.2, %v6397_v22 }
 0x350   : > { %v6699_v25 = vsel %vm6571_vm12, %v6469_v18, %v6635_v32  ;;  %6744 = vst [vmem:[%s11769_s14 + $0x100] sm:$0xff] %v6680_v23  ;;  %v7630_v43 = vpop.f32.mrb[84].mxu1  ;;  %v12285_v18 = vld [vmem:[#allocation17_spill] sm:$0xff]  ;;  %v6201_v32 = vadd.f32 %v11751_v41, %v12286_v44 }
 0x351   : > { %6763 = vst [vmem:[%s11769_s14 + $0x198] sm:$0xff] %v6699_v25  ;;  %v6697_v42 = vsel %vm6569_vm13, %v6461_v31, %v6633_v16  ;;  %v6482_v34 = vadd.f32 %v7630_v43, %v6193_v7  ;;  %v6473_v37 = vpop.f32.mrb[85].mxu1  ;;  %v6681_v60 = vsel %vm6553_vm14, %v6397_v22, %v6617_v19  ;;  %v6209_v54 = vadd.f32 %v11751_v41, %v12285_v18  ;;  %v12287_v22 = vld [vmem:[#allocation24_spill] sm:$0xff] }
 0x352   : > { %6761 = vst [vmem:[%s11769_s14 + $0x188] sm:$0xff] %v6697_v42  ;;  %v6474_v14 = vadd.f32 %v6473_v37, %v6185_v50  ;;  %v7631_v15 = vpop.f32.mrb[86].mxu1  ;;  %6745 = vst [vmem:[%s11769_s14 + $0x108] sm:$0xff] %v6681_v60  ;;  %v6212_v5 = vadd.f32 %v11751_v41, %v12287_v22  ;;  %v6204_v7 = vadd.f32 %v11751_v41, %v12288_v58 }
 0x353   : > { %v6112_v49 = vpop.f32.mrb[68].mxu0  ;;  %vm6574_vm15 = vcmp.ge.f32.partialorder %v6482_v34, 0.0  ;;  %v6638_v26 = vmul.f32 0.2, %v6482_v34  ;;  %v6485_v48 = vadd.f32 %v7631_v15, %v6196_v10  ;;  %v6476_v11 = vpop.f32.mrb[87].mxu1 }
 0x354   : > { %v6113_v17 = vadd.f32 %v11751_v41, %v6112_v49  ;;  %v6114_v51 = vpop.f32.mrb[69].mxu0  ;;  %vm6572_vm0 = vcmp.ge.f32.partialorder %v6474_v14, 0.0  ;;  %v6636_v27 = vmul.f32 0.2, %v6474_v14  ;;  %v6477_v62 = vadd.f32 %v6476_v11, %v6188_v13 }
 0x355   : > { %v6115_v29 = vpop.f32.mrb[70].mxu0  ;;  %v6702_v30 = vsel %vm6574_vm15, %v6482_v34, %v6638_v26  ;;  %vm6575_vm2 = vcmp.ge.f32.partialorder %v6485_v48, 0.0  ;;  %v6639_v46 = vmul.f32 0.2, %v6485_v48 }
 0x356   : > { %v6402_v61 = vadd.f32 %v11869_v28, %v6113_v17  ;;  %v6116_v0 = vadd.f32 %v11751_v41, %v6115_v29  ;;  %v6117_v24 = vpop.f32.mrb[71].mxu0  ;;  %6766 = vst [vmem:[%s11769_s14 + $0x1b0] sm:$0xff] %v6702_v30  ;;  %v6700_v39 = vsel %vm6572_vm0, %v6474_v14, %v6636_v27  ;;  %vm6573_vm3 = vcmp.ge.f32.partialorder %v6477_v62, 0.0 }
 0x357   : > { %v6637_v35 = vmul.f32 0.2, %v6477_v62  ;;  %6764 = vst [vmem:[%s11769_s14 + $0x1a0] sm:$0xff] %v6700_v39  ;;  %v6703_v12 = vsel %vm6575_vm2, %v6485_v48, %v6639_v46  ;;  %v6217_v48 = vadd.f32 %v11751_v41, %v11550_v55 }
 0x358   : > { %vm6554_vm1 = vcmp.ge.f32.partialorder %v6402_v61, 0.0  ;;  %v6618_v28 = vmul.f32 0.2, %v6402_v61  ;;  %v6405_v21 = vadd.f32 %v11872_v53, %v6116_v0  ;;  %6767 = vst [vmem:[%s11769_s14 + $0x1b8] sm:$0xff] %v6703_v12  ;;  %v7634_v52 = vpop.f32.mrb[88].mxu1  ;;  %v6225_v0 = vadd.f32 %v11751_v41, %v11731_v6 }
 0x359   : > { %v6701_v9 = vsel %vm6573_vm3, %v6477_v62, %v6637_v35  ;;  %v6498_v53 = vadd.f32 %v7634_v52, %v6209_v54  ;;  %v6489_v50 = vpop.f32.mrb[89].mxu1  ;;  %v6228_v62 = vadd.f32 %v11751_v41, %v11736_v20 }
 0x35a   : > { %v6682_v31 = vsel %vm6554_vm1, %v6402_v61, %v6618_v28  ;;  %vm6555_vm4 = vcmp.ge.f32.partialorder %v6405_v21, 0.0  ;;  %v6619_v16 = vmul.f32 0.2, %v6405_v21  ;;  %6765 = vst [vmem:[%s11769_s14 + $0x1a8] sm:$0xff] %v6701_v9  ;;  %v6490_v25 = vadd.f32 %v6489_v50, %v6201_v32  ;;  %v7635_v49 = vpop.f32.mrb[90].mxu1 }
 0x35b   : > { %6746 = vst [vmem:[%s11769_s14 + $0x110] sm:$0xff] %v6682_v31  ;;  %vm6578_vm5 = vcmp.ge.f32.partialorder %v6498_v53, 0.0  ;;  %v6642_v19 = vmul.f32 0.2, %v6498_v53  ;;  %v6501_v43 = vadd.f32 %v7635_v49, %v6212_v5  ;;  %v6492_v17 = vpop.f32.mrb[91].mxu1  ;;  %v6220_v28 = vadd.f32 %v11751_v41, %v11570_v4 }
 0x35c   : > { %v6683_v23 = vsel %vm6555_vm4, %v6405_v21, %v6619_v16  ;;  %vm6576_vm6 = vcmp.ge.f32.partialorder %v6490_v25, 0.0  ;;  %v6640_v13 = vmul.f32 0.2, %v6490_v25  ;;  %v6493_v2 = vadd.f32 %v6492_v17, %v6204_v7 }
 0x35d   : > { %6747 = vst [vmem:[%s11769_s14 + $0x118] sm:$0xff] %v6683_v23  ;;  %v6706_v34 = vsel %vm6578_vm5, %v6498_v53, %v6642_v19  ;;  %vm6579_vm7 = vcmp.ge.f32.partialorder %v6501_v43, 0.0  ;;  %v6643_v37 = vmul.f32 0.2, %v6501_v43 }
 0x35e   : > { %6770 = vst [vmem:[%s11769_s14 + $0x1d0] sm:$0xff] %v6706_v34  ;;  %v6704_v14 = vsel %vm6576_vm6, %v6490_v25, %v6640_v13  ;;  %vm6577_vm8 = vcmp.ge.f32.partialorder %v6493_v2, 0.0  ;;  %v6641_v15 = vmul.f32 0.2, %v6493_v2 }
 0x35f   : > { %6768 = vst [vmem:[%s11769_s14 + $0x1c0] sm:$0xff] %v6704_v14  ;;  %v6707_v24 = vsel %vm6579_vm7, %v6501_v43, %v6643_v37 }
 0x360   : > { %v6120_v42 = vpop.f32.mrb[72].mxu0  ;;  %6771 = vst [vmem:[%s11769_s14 + $0x1d8] sm:$0xff] %v6707_v24  ;;  %v7638_v11 = vpop.f32.mrb[92].mxu1 }
 0x361   : > { %v6121_v51 = vadd.f32 %v11751_v41, %v6120_v42  ;;  %v6122_v45 = vpop.f32.mrb[73].mxu0  ;;  %v6514_v30 = vadd.f32 %v7638_v11, %v6225_v0  ;;  %v6505_v46 = vpop.f32.mrb[93].mxu1 }
 0x362   : > { %v6123_v10 = vpop.f32.mrb[74].mxu0  ;;  %v6506_v39 = vadd.f32 %v6505_v46, %v6217_v48  ;;  %v7639_v35 = vpop.f32.mrb[94].mxu1 }
 0x363   : > { %v6410_v29 = vadd.f32 %v11881_v57, %v6121_v51  ;;  %v6125_v60 = vpop.f32.mrb[75].mxu0  ;;  %v6124_v61 = vadd.f32 %v11751_v41, %v6123_v10  ;;  %v6705_v57 = vsel %vm6577_vm8, %v6493_v2, %v6641_v15  ;;  %vm6582_vm11 = vcmp.ge.f32.partialorder %v6514_v30, 0.0  ;;  %v6508_v54 = vpop.f32.mrb[95].mxu1 }
 0x364   : > { %6769 = vst [vmem:[%s11769_s14 + $0x1c8] sm:$0xff] %v6705_v57  ;;  %v6646_v18 = vmul.f32 0.2, %v6514_v30  ;;  %vm6580_vm12 = vcmp.ge.f32.partialorder %v6506_v39, 0.0  ;;  %v6644_v31 = vmul.f32 0.2, %v6506_v39  ;;  %v6509_v44 = vadd.f32 %v6508_v54, %v6220_v28 }
 0x365   : > { %vm6556_vm9 = vcmp.ge.f32.partialorder %v6410_v29, 0.0  ;;  %v6620_v26 = vmul.f32 0.2, %v6410_v29  ;;  %v6413_v27 = vadd.f32 %v11885_v36, %v6124_v61  ;;  %v6517_v36 = vadd.f32 %v7639_v35, %v6228_v62 }
 0x366   : > { %v6710_v9 = vsel %vm6582_vm11, %v6514_v30, %v6646_v18  ;;  %v6708_v5 = vsel %vm6580_vm12, %v6506_v39, %v6644_v31  ;;  %vm6581_vm14 = vcmp.ge.f32.partialorder %v6509_v44, 0.0  ;;  %v6645_v53 = vmul.f32 0.2, %v6509_v44 }
 0x367   : > { %v6684_v6 = vsel %vm6556_vm9, %v6410_v29, %v6620_v26  ;;  %vm6557_vm10 = vcmp.ge.f32.partialorder %v6413_v27, 0.0  ;;  %v6621_v55 = vmul.f32 0.2, %v6413_v27  ;;  %vm6583_vm13 = vcmp.ge.f32.partialorder %v6517_v36, 0.0  ;;  %6774 = vst [vmem:[%s11769_s14 + $0x1f0] sm:$0xff] %v6710_v9  ;;  %6772 = vst [vmem:[%s11769_s14 + $0x1e0] sm:$0xff] %v6708_v5 }
 0x368   : > { %6748 = vst [vmem:[%s11769_s14 + $0x120] sm:$0xff] %v6684_v6  ;;  %v6128_v21 = vpop.f32.mrb[76].mxu0  ;;  %v6647_v52 = vmul.f32 0.2, %v6517_v36  ;;  %v6709_v25 = vsel %vm6581_vm14, %v6509_v44, %v6645_v53 }
 0x369   : > { %v6129_v20 = vadd.f32 %v11751_v41, %v6128_v21  ;;  %v6130_v12 = vpop.f32.mrb[77].mxu0  ;;  %v6685_v4 = vsel %vm6557_vm10, %v6413_v27, %v6621_v55  ;;  %6773 = vst [vmem:[%s11769_s14 + $0x1e8] sm:$0xff] %v6709_v25 }
 0x36a   : > { %v6131_v32 = vpop.f32.mrb[78].mxu0  ;;  %6749 = vst [vmem:[%s11769_s14 + $0x128] sm:$0xff] %v6685_v4  ;;  %v6711_v58 = vsel %vm6583_vm13, %v6517_v36, %v6647_v52 }
 0x36b   : > { %v6418_v16 = vadd.f32 %v11878_v59, %v6129_v20  ;;  %v6133_v22 = vpop.f32.mrb[79].mxu0  ;;  %v6132_v50 = vadd.f32 %v11751_v41, %v6131_v32  ;;  %6775 = vst [vmem:[%s11769_s14 + $0x1f8] sm:$0xff] %v6711_v58 }
 0x36d   : > { %vm6558_vm15 = vcmp.ge.f32.partialorder %v6418_v16, 0.0  ;;  %v6622_v7 = vmul.f32 0.2, %v6418_v16  ;;  %v6421_v23 = vadd.f32 %v11883_v47, %v6132_v50 }
 0x36f   : > { %v6686_v49 = vsel %vm6558_vm15, %v6418_v16, %v6622_v7  ;;  %vm6559_vm0 = vcmp.ge.f32.partialorder %v6421_v23, 0.0  ;;  %v6623_v59 = vmul.f32 0.2, %v6421_v23 }
 0x370   : > { %6750 = vst [vmem:[%s11769_s14 + $0x130] sm:$0xff] %v6686_v49  ;;  %v6136_v42 = vpop.f32.mrb[80].mxu0 }
 0x371   : > { %v6137_v19 = vadd.f32 %v11751_v41, %v6136_v42  ;;  %v6138_v43 = vpop.f32.mrb[81].mxu0  ;;  %v6687_v17 = vsel %vm6559_vm0, %v6421_v23, %v6623_v59 }
 0x372   : > { %v6139_v51 = vpop.f32.mrb[82].mxu0  ;;  %6751 = vst [vmem:[%s11769_s14 + $0x138] sm:$0xff] %v6687_v17 }
 0x373   : > { %v6426_v45 = vadd.f32 %v11891_v33, %v6137_v19  ;;  %v6140_v13 = vadd.f32 %v11751_v41, %v6139_v51  ;;  %v6141_v2 = vpop.f32.mrb[83].mxu0  ;;  %v7951_v33 = vld [vmem:[%s12006_s2] ss:$0 sm:$0xff] }
 0x375   : > { %vm6560_vm1 = vcmp.ge.f32.partialorder %v6426_v45, 0.0  ;;  %v6624_v47 = vmul.f32 0.2, %v6426_v45  ;;  %v6429_v10 = vadd.f32 %v11895_v8, %v6140_v13 }
 0x377   : > { %v6688_v34 = vsel %vm6560_vm1, %v6426_v45, %v6624_v47  ;;  %vm6561_vm2 = vcmp.ge.f32.partialorder %v6429_v10, 0.0  ;;  %v6625_v37 = vmul.f32 0.2, %v6429_v10 }
 0x378   : > { %6752 = vst [vmem:[%s11769_s14 + $0x140] sm:$0xff] %v6688_v34  ;;  %v6144_v60 = vpop.f32.mrb[84].mxu0 }
 0x379   : > { %v6689_v29 = vsel %vm6561_vm2, %v6429_v10, %v6625_v37  ;;  %v6145_v14 = vadd.f32 %v7951_v33, %v6144_v60  ;;  %v6146_v41 = vpop.f32.mrb[85].mxu0 }
 0x37a   : > { %6753 = vst [vmem:[%s11769_s14 + $0x148] sm:$0xff] %v6689_v29  ;;  %v6147_v15 = vpop.f32.mrb[86].mxu0 }
 0x37b   : > { %v6434_v61 = vadd.f32 %v11889_v56, %v6145_v14  ;;  %v6148_v0 = vadd.f32 %v7951_v33, %v6147_v15  ;;  %v6149_v8 = vpop.f32.mrb[87].mxu0 }
 0x37d   : > { %vm6562_vm3 = vcmp.ge.f32.partialorder %v6434_v61, 0.0  ;;  %v6626_v24 = vmul.f32 0.2, %v6434_v61  ;;  %v6437_v26 = vadd.f32 %v11893_v63, %v6148_v0 }
 0x37f   : > { %v6690_v48 = vsel %vm6562_vm3, %v6434_v61, %v6626_v24  ;;  %vm6563_vm4 = vcmp.ge.f32.partialorder %v6437_v26, 0.0  ;;  %v6627_v57 = vmul.f32 0.2, %v6437_v26 }
 0x380   : > { %6754 = vst [vmem:[%s11769_s14 + $0x150] sm:$0xff] %v6690_v48 }
 0x381   : > { %v6691_v11 = vsel %vm6563_vm4, %v6437_v26, %v6627_v57 }
 0x382   : > { %6755 = vst [vmem:[%s11769_s14 + $0x158] sm:$0xff] %v6691_v11 }
 0x388   : > { %v6152_v27 = vpop.f32.mrb[88].mxu0 }
 0x389   : > { %v6153_v62 = vadd.f32 %v7951_v33, %v6152_v27  ;;  %v6154_v30 = vpop.f32.mrb[89].mxu0 }
 0x38a   : > { %v6155_v46 = vpop.f32.mrb[90].mxu0 }
 0x38b   : > { %v6442_v56 = vadd.f32 %v11901_v1, %v6153_v62  ;;  %v6156_v6 = vadd.f32 %v7951_v33, %v6155_v46  ;;  %v6157_v28 = vpop.f32.mrb[91].mxu0 }
 0x38d   : > { %vm6564_vm5 = vcmp.ge.f32.partialorder %v6442_v56, 0.0  ;;  %v6628_v39 = vmul.f32 0.2, %v6442_v56  ;;  %v6445_v63 = vadd.f32 %v11905_v40, %v6156_v6 }
 0x38f   : > { %v6692_v35 = vsel %vm6564_vm5, %v6442_v56, %v6628_v39  ;;  %vm6565_vm6 = vcmp.ge.f32.partialorder %v6445_v63, 0.0  ;;  %v6629_v55 = vmul.f32 0.2, %v6445_v63 }
 0x390   : > { %6756 = vst [vmem:[%s11769_s14 + $0x160] sm:$0xff] %v6692_v35 }
 0x391   : > { %v6693_v21 = vsel %vm6565_vm6, %v6445_v63, %v6629_v55 }
 0x392   : > { %6757 = vst [vmem:[%s11769_s14 + $0x168] sm:$0xff] %v6693_v21 }
 0x3a3   : > { %v6160_v18 = vpop.f32.mrb[92].mxu0 }
 0x3a4   : > { %v6161_v36 = vadd.f32 %v7951_v33, %v6160_v18  ;;  %v6162_v54 = vpop.f32.mrb[93].mxu0 }
 0x3a5   : > { %v6163_v20 = vpop.f32.mrb[94].mxu0 }
 0x3a6   : > { %v6450_v1 = vadd.f32 %v11899_v3, %v6161_v36  ;;  %v6164_v12 = vadd.f32 %v7951_v33, %v6163_v20  ;;  %v6165_v31 = vpop.f32.mrb[95].mxu0 }
 0x3a8   : > { %vm6566_vm7 = vcmp.ge.f32.partialorder %v6450_v1, 0.0  ;;  %v6630_v44 = vmul.f32 0.2, %v6450_v1  ;;  %v6453_v40 = vadd.f32 %v11903_v38, %v6164_v12 }
 0x3aa   : > { %v6694_v4 = vsel %vm6566_vm7, %v6450_v1, %v6630_v44  ;;  %vm6567_vm8 = vcmp.ge.f32.partialorder %v6453_v40, 0.0  ;;  %v6631_v32 = vmul.f32 0.2, %v6453_v40 }
 0x3ab   : > { %6758 = vst [vmem:[%s11769_s14 + $0x170] sm:$0xff] %v6694_v4 }
 0x3ac   : > { %v6695_v9 = vsel %vm6567_vm8, %v6453_v40, %v6631_v32 }
 0x3ad   : > { %6759 = vst [vmem:[%s11769_s14 + $0x178] sm:$0xff] %v6695_v9 }
 0x3ae PF: > { %s13_s12 = sadd.s32 1, %s7958_s12  }
 0x3af   : > { %p10_p4 = scmp.ge.s32.totalorder %s13_s12, 4  }
 0x3b1   :  { %12 = sbr.rel (!%p10_p4) target bundleno = 1 (0x1), region = 64 }

</bundles_post_ra>
